<compile_context>
chip_gen: v7x
topology: tpu7x:2x2x1
jax: 0.10.0
libtpu: 0.0.40
codegen_flags: <defaults>
</compile_context>

<pallas_src>
import jax
import jax.numpy as jnp
from jax.experimental import pallas as pl
from jax.experimental.pallas import tpu as pltpu


# ----------------------------------------------------------------------------
# Pallas kernel: one batch *tile* (B_TILE rows) per grid step.
# ----------------------------------------------------------------------------
def attention_kernel(x_ref,        # (BT, N)     f32   input rows
                     ctx_ref,      # (BT, N, N)  bf16  raw context[b, l, c]
                     bias_ref,     # (BT, N)     f32   additive mask bias (0 or -1e30)
                     w_in_t_ref,   # (N, N)      f32   input_linear.weight.T   [D, H]
                     w_ctx_ref,    # (N, N)      bf16  context_linear.weight   [H, L]
                     b_in_ref,     # (1, N)      f32   input_linear.bias (row)
                     b_ctx_ref,    # (N, 1)      f32   context_linear.bias (column)
                     v_ref,        # (1, N)      f32   V (row)
                     hidden_ref,   # (BT, N)     f32   out: hidden_state
                     alpha_ref):   # (BT, N)     f32   out: alpha
    bt, n = x_ref.shape

    # ---- input_linear over the whole batch tile: (BT, D) @ (D, H) + b_in ----
    inp = jnp.dot(x_ref[...], w_in_t_ref[...],
                  preferred_element_type=jnp.float32) + b_in_ref[...]        # (BT, H)

    # ---- context_linear fused with context.permute(0, 2, 1) ----
    # ctx2[b, h, c] = sum_l W_ctx[h, l] * context[b, l, c] + b_ctx[h]
    #               == ctx[b, c, h] of the reference, held in transposed layout.
    w_b = jnp.broadcast_to(w_ctx_ref[...][None], (bt, n, n))                 # (BT, H, L) bf16
    ctx2 = jnp.einsum('bhl,blc->bhc', w_b, ctx_ref[...],
                      preferred_element_type=jnp.float32)                    # (BT, H, C) f32
    ctx2 = ctx2 + b_ctx_ref[...][None, :, :]                                 # + b_ctx[h]

    # ---- tanh(inp.unsqueeze(2).expand(...) + ctx) in the transposed layout ----
    # s[b, c, h] of the reference == s2[b, h, c] here.
    s = jnp.tanh(ctx2 + inp[:, None, :])                                     # (BT, H, C) f32

    # ---- att[b, h] = sum_c V[c] * s[b, c, h]  (VPU mul + lane reduce) ----
    att = jnp.sum(s * v_ref[...][None, :, :], axis=-1)                       # (BT, H)

    # ---- masking (additive -1e30 bias) + softmax over the last axis ----
    att = att + bias_ref[...]
    att_max = jnp.max(att, axis=-1, keepdims=True)
    e = jnp.exp(att - att_max)
    alpha = e / jnp.sum(e, axis=-1, keepdims=True)                           # (BT, H)

    # ---- hidden[b, c] = sum_h ctx[b, c, h] * alpha[b, h] ----
    hidden = jnp.sum(ctx2 * alpha[:, :, None], axis=1)                       # (BT, C)

    hidden_ref[...] = hidden
    alpha_ref[...] = alpha


# ----------------------------------------------------------------------------
# Wrapper: parameter plumbing + batch tiling. No transpose of `context` here.
# ----------------------------------------------------------------------------
def attention_pallas(x, context, mask, w_in, b_in, w_ctx, b_ctx, v,
                     *, batch_tile=256):
    B, N = x.shape
    assert context.shape == (B, N, N), context.shape
    assert mask.shape == (B, N), mask.shape
    # Block second-minor dim must be a multiple of 8 unless it spans the whole batch.
    assert batch_tile % 8 == 0 or batch_tile >= B

    bt = min(batch_tile, B)
    b_pad = -(-B // bt) * bt                          # round batch up to a tile multiple

    x_f = x.astype(jnp.float32)
    ctx_bf = context.astype(jnp.bfloat16)             # dominant HBM operand -> bf16
    bias = jnp.where(mask, -1e30, 0.0).astype(jnp.float32)

    if b_pad != B:                                    # zero-pad batch; padded rows sliced off
        pad = b_pad - B
        x_f = jnp.pad(x_f, ((0, pad), (0, 0)))
        ctx_bf = jnp.pad(ctx_bf, ((0, pad), (0, 0), (0, 0)))
        bias = jnp.pad(bias, ((0, pad), (0, 0)))

    w_in_t = w_in.T.astype(jnp.float32)               # (D, H)
    w_ctx_bf = w_ctx.astype(jnp.bfloat16)             # (H, L)
    b_in_row = b_in.reshape(1, N).astype(jnp.float32)
    b_ctx_col = b_ctx.reshape(N, 1).astype(jnp.float32)
    v_row = v.reshape(1, N).astype(jnp.float32)

    grid = (b_pad // bt,)

    grid_spec = pltpu.PrefetchScalarGridSpec(
        num_scalar_prefetch=0,
        grid=grid,
        in_specs=[
            pl.BlockSpec((bt, N), lambda i: (i, 0)),        # x
            pl.BlockSpec((bt, N, N), lambda i: (i, 0, 0)),  # context (native layout)
            pl.BlockSpec((bt, N), lambda i: (i, 0)),        # additive mask bias
            pl.BlockSpec((N, N), lambda i: (0, 0)),         # w_in.T   (fetched once)
            pl.BlockSpec((N, N), lambda i: (0, 0)),         # w_ctx    (fetched once)
            pl.BlockSpec((1, N), lambda i: (0, 0)),         # b_in row
            pl.BlockSpec((N, 1), lambda i: (0, 0)),         # b_ctx col
            pl.BlockSpec((1, N), lambda i: (0, 0)),         # V row
        ],
        out_specs=[
            pl.BlockSpec((bt, N), lambda i: (i, 0)),        # hidden
            pl.BlockSpec((bt, N), lambda i: (i, 0)),        # alpha
        ],
    )

    hidden, alpha = pl.pallas_call(
        attention_kernel,
        out_shape=(jax.ShapeDtypeStruct((b_pad, N), jnp.float32),
                   jax.ShapeDtypeStruct((b_pad, N), jnp.float32)),
        grid_spec=grid_spec,
        compiler_params=pltpu.CompilerParams(
            dimension_semantics=("parallel",)),
    )(x_f, ctx_bf, bias, w_in_t, w_ctx_bf, b_in_row, b_ctx_col, v_row)

    return hidden[:B], alpha[:B]


# ----------------------------------------------------------------------------
# Pure-JAX reference (mirrors the PyTorch forward line-by-line).
# ----------------------------------------------------------------------------
def attention_reference(x, context, mask, w_in, b_in, w_ctx, b_ctx, v):
    inp = x @ w_in.T + b_in                                # (B, H)
    inp_exp = inp[:, :, None]                              # unsqueeze(2) + expand
    ctxp = jnp.transpose(context, (0, 2, 1))               # permute(0, 2, 1)
    ctx = ctxp @ w_ctx.T + b_ctx                           # (B, C, H)
    s = jnp.tanh(inp_exp + ctx)                            # (B, N, N)
    att = jnp.einsum('h,bhl->bl', v, s)                    # bmm(V, tanh).squeeze(1)
    att = jnp.where(mask, -jnp.inf, att)                   # att[mask] = -inf
    alpha = jax.nn.softmax(att, axis=-1)
    hidden = jnp.einsum('bch,bh->bc', ctx, alpha)          # bmm(ctx, alpha).squeeze(2)
    return hidden, alpha


if __name__ == "__main__":
    B = 64
    N = 32   # input_dim == hidden_dim == seq_len == context feature dim (see NOTE above)

    key = jax.random.PRNGKey(0)
    ks = jax.random.split(key, 8)

    bound = 1.0 / N ** 0.5
    w_in = jax.random.uniform(ks[0], (N, N), jnp.float32, -bound, bound)
    b_in = jax.random.uniform(ks[1], (N,), jnp.float32, -bound, bound)
    w_ctx = jax.random.uniform(ks[2], (N, N), jnp.float32, -bound, bound)
    b_ctx = jax.random.uniform(ks[3], (N,), jnp.float32, -bound, bound)
    v = jax.random.uniform(ks[4], (N,), jnp.float32, -1.0, 1.0)   # nn.init.uniform(V, -1, 1)

    x = jax.random.normal(ks[5], (B, N), jnp.float32)
    context = jax.random.normal(ks[6], (B, N, N), jnp.float32)
    mask = jax.random.uniform(ks[7], (B, N)) < 0.3   # some (not all) positions masked

    # batch_tile=32 -> grid=(2,): exercises pipelining / megacore at this small demo size.
    hidden, alpha = attention_pallas(x, context, mask, w_in, b_in, w_ctx, b_ctx, v,
                                     batch_tile=32)
    jax.block_until_ready((hidden, alpha))

    # Reference with the same bf16 quantization applied to the big operands, so the
    # comparison isolates kernel correctness from the deliberate bf16 HBM compression.
    ctx_q = context.astype(jnp.bfloat16).astype(jnp.float32)
    w_ctx_q = w_ctx.astype(jnp.bfloat16).astype(jnp.float32)
    hidden_ref, alpha_ref = attention_reference(x, ctx_q, mask, w_in, b_in, w_ctx_q, b_ctx, v)

    assert hidden.shape == (B, N) and alpha.shape == (B, N)
    assert bool(jnp.all(jnp.isfinite(hidden))) and bool(jnp.all(jnp.isfinite(alpha)))
    assert jnp.allclose(alpha, alpha_ref, atol=1e-2, rtol=1e-2), "alpha mismatch"
    assert jnp.allclose(hidden, hidden_ref, atol=2e-2, rtol=2e-2), "hidden mismatch"

    print("KERNEL_OK")
</pallas_src>

<mosaic_0001>
module attributes {stable_mosaic.version = 11 : i64} {
  func.func @attention_kernel(%arg0: i32, %arg1: memref<32x32xf32, #tpu.memory_space<vmem>>, %arg2: memref<32x32x32xbf16, #tpu.memory_space<vmem>>, %arg3: memref<32x32xf32, #tpu.memory_space<vmem>>, %arg4: memref<32x32xf32, #tpu.memory_space<vmem>>, %arg5: memref<32x32xbf16, #tpu.memory_space<vmem>>, %arg6: memref<1x32xf32, #tpu.memory_space<vmem>>, %arg7: memref<32x1xf32, #tpu.memory_space<vmem>>, %arg8: memref<1x32xf32, #tpu.memory_space<vmem>>, %arg9: memref<32x32xf32, #tpu.memory_space<vmem>>, %arg10: memref<32x32xf32, #tpu.memory_space<vmem>>) attributes {dimension_semantics = [#tpu.dimension_semantics<parallel>], iteration_bounds = array<i64: 2>, scalar_prefetch = 0 : i64, scratch_operands = 0 : i64, tpu.core_type = #tpu.core_type<tc>, window_params = [{transform_indices = @transform_0, window_bounds = array<i64: 32, 32>}, {transform_indices = @transform_1, window_bounds = array<i64: 32, 32, 32>}, {transform_indices = @transform_2, window_bounds = array<i64: 32, 32>}, {pipeline_mode = #tpu.pipeline_mode<synchronous>, transform_indices = @transform_3, window_bounds = array<i64: 32, 32>}, {pipeline_mode = #tpu.pipeline_mode<synchronous>, transform_indices = @transform_4, window_bounds = array<i64: 32, 32>}, {pipeline_mode = #tpu.pipeline_mode<synchronous>, transform_indices = @transform_5, window_bounds = array<i64: 1, 32>}, {pipeline_mode = #tpu.pipeline_mode<synchronous>, transform_indices = @transform_6, window_bounds = array<i64: 32, 1>}, {pipeline_mode = #tpu.pipeline_mode<synchronous>, transform_indices = @transform_7, window_bounds = array<i64: 1, 32>}, {transform_indices = @transform_8, window_bounds = array<i64: 32, 32>}, {transform_indices = @transform_9, window_bounds = array<i64: 32, 32>}]} {
    %c0 = arith.constant 0 : index
    %c0_0 = arith.constant 0 : index
    %0 = vector.load %arg1[%c0, %c0_0] : memref<32x32xf32, #tpu.memory_space<vmem>>, vector<32x32xf32>
    %c0_1 = arith.constant 0 : index
    %c0_2 = arith.constant 0 : index
    %1 = vector.load %arg4[%c0_1, %c0_2] : memref<32x32xf32, #tpu.memory_space<vmem>>, vector<32x32xf32>
    %cst = arith.constant dense<0.000000e+00> : vector<32x32xf32>
    %2 = tpu.matmul %0, %1, %cst {dimension_numbers = #tpu.dot_dimension_numbers<[1], [0], [0], [1], [0, 0, 1, 1], [], []>} : vector<32x32xf32>, vector<32x32xf32>, vector<32x32xf32> -> vector<32x32xf32>
    %c0_3 = arith.constant 0 : index
    %c0_4 = arith.constant 0 : index
    %3 = vector.load %arg6[%c0_3, %c0_4] : memref<1x32xf32, #tpu.memory_space<vmem>>, vector<1x32xf32>
    %4 = vector.broadcast %3 : vector<1x32xf32> to vector<32x32xf32>
    %5 = arith.addf %2, %4 : vector<32x32xf32>
    %c0_5 = arith.constant 0 : index
    %c0_6 = arith.constant 0 : index
    %6 = vector.load %arg5[%c0_5, %c0_6] : memref<32x32xbf16, #tpu.memory_space<vmem>>, vector<32x32xbf16>
    %7 = vector.shape_cast %6 : vector<32x32xbf16> to vector<1x32x32xbf16>
    %8 = vector.shape_cast %7 : vector<1x32x32xbf16> to vector<1x32x32xbf16>
    %9 = vector.broadcast %8 : vector<1x32x32xbf16> to vector<32x32x32xbf16>
    %c0_7 = arith.constant 0 : index
    %c0_8 = arith.constant 0 : index
    %c0_9 = arith.constant 0 : index
    %10 = vector.load %arg2[%c0_7, %c0_8, %c0_9] : memref<32x32x32xbf16, #tpu.memory_space<vmem>>, vector<32x32x32xbf16>
    "tpu.trace_start"() <{level = 10 : i32, message = "bhl,blc->bhc"}> : () -> ()
    %cst_10 = arith.constant dense<0.000000e+00> : vector<32x32x32xf32>
    %11 = tpu.matmul %9, %10, %cst_10 {dimension_numbers = #tpu.dot_dimension_numbers<[2], [1], [1], [2], [0, 0, 0, 1, 1, 2], [0], [0]>} : vector<32x32x32xbf16>, vector<32x32x32xbf16>, vector<32x32x32xf32> -> vector<32x32x32xf32>
    "tpu.trace_stop"() : () -> ()
    %c0_11 = arith.constant 0 : index
    %c0_12 = arith.constant 0 : index
    %12 = vector.load %arg7[%c0_11, %c0_12] : memref<32x1xf32, #tpu.memory_space<vmem>>, vector<32x1xf32>
    %13 = vector.shape_cast %12 : vector<32x1xf32> to vector<1x32x1xf32>
    %14 = vector.broadcast %13 : vector<1x32x1xf32> to vector<32x32x32xf32>
    %15 = arith.addf %11, %14 : vector<32x32x32xf32>
    %16 = vector.shape_cast %5 : vector<32x32xf32> to vector<32x1x32xf32>
    %17 = vector.broadcast %16 : vector<32x1x32xf32> to vector<32x32x32xf32>
    %18 = arith.addf %15, %17 : vector<32x32x32xf32>
    %19 = math.tanh %18 : vector<32x32x32xf32>
    %c0_13 = arith.constant 0 : index
    %c0_14 = arith.constant 0 : index
    %20 = vector.load %arg8[%c0_13, %c0_14] : memref<1x32xf32, #tpu.memory_space<vmem>>, vector<1x32xf32>
    %21 = vector.shape_cast %20 : vector<1x32xf32> to vector<1x1x32xf32>
    %22 = vector.broadcast %21 : vector<1x1x32xf32> to vector<32x32x32xf32>
    %23 = arith.mulf %19, %22 : vector<32x32x32xf32>
    %cst_15 = arith.constant dense<0.000000e+00> : vector<32x32xf32>
    %24 = vector.multi_reduction <add>, %23, %cst_15 [2] : vector<32x32x32xf32> to vector<32x32xf32>
    %c0_16 = arith.constant 0 : index
    %c0_17 = arith.constant 0 : index
    %25 = vector.load %arg3[%c0_16, %c0_17] : memref<32x32xf32, #tpu.memory_space<vmem>>, vector<32x32xf32>
    %26 = arith.addf %24, %25 : vector<32x32xf32>
    %cst_18 = arith.constant dense<0xFF800000> : vector<32xf32>
    %27 = vector.multi_reduction <maximumf>, %26, %cst_18 [1] : vector<32x32xf32> to vector<32xf32>
    %28 = vector.shape_cast %27 : vector<32xf32> to vector<32x1xf32>
    %29 = vector.broadcast %28 : vector<32x1xf32> to vector<32x32xf32>
    %30 = arith.subf %26, %29 : vector<32x32xf32>
    %31 = math.exp %30 : vector<32x32xf32>
    %cst_19 = arith.constant dense<0.000000e+00> : vector<32xf32>
    %32 = vector.multi_reduction <add>, %31, %cst_19 [1] : vector<32x32xf32> to vector<32xf32>
    %33 = vector.shape_cast %32 : vector<32xf32> to vector<32x1xf32>
    %34 = vector.broadcast %33 : vector<32x1xf32> to vector<32x32xf32>
    %35 = arith.divf %31, %34 : vector<32x32xf32>
    %36 = vector.shape_cast %35 : vector<32x32xf32> to vector<32x32x1xf32>
    %37 = vector.broadcast %36 : vector<32x32x1xf32> to vector<32x32x32xf32>
    %38 = arith.mulf %15, %37 : vector<32x32x32xf32>
    %cst_20 = arith.constant dense<0.000000e+00> : vector<32x32xf32>
    %39 = vector.multi_reduction <add>, %38, %cst_20 [1] : vector<32x32x32xf32> to vector<32x32xf32>
    %c0_21 = arith.constant 0 : index
    %c0_22 = arith.constant 0 : index
    %40 = vector.load %arg9[%c0_21, %c0_22] : memref<32x32xf32, #tpu.memory_space<vmem>>, vector<32x32xf32>
    tpu.vector_store %arg9[%c0_21, %c0_22], %39 {strides = array<i32>} : memref<32x32xf32, #tpu.memory_space<vmem>>, vector<32x32xf32>,
    %c0_23 = arith.constant 0 : index
    %c0_24 = arith.constant 0 : index
    %41 = vector.load %arg10[%c0_23, %c0_24] : memref<32x32xf32, #tpu.memory_space<vmem>>, vector<32x32xf32>
    tpu.vector_store %arg10[%c0_23, %c0_24], %35 {strides = array<i32>} : memref<32x32xf32, #tpu.memory_space<vmem>>, vector<32x32xf32>,
    return
  }
  func.func @transform_0(%arg0: i32) -> (i32, i32) {
    %c0_i32 = arith.constant 0 : i32
    %c0_i32_0 = arith.constant 0 : i32
    return %arg0, %c0_i32 : i32, i32
  }
  func.func @transform_1(%arg0: i32) -> (i32, i32, i32) {
    %c0_i32 = arith.constant 0 : i32
    %c0_i32_0 = arith.constant 0 : i32
    %c0_i32_1 = arith.constant 0 : i32
    return %arg0, %c0_i32, %c0_i32_0 : i32, i32, i32
  }
  func.func @transform_2(%arg0: i32) -> (i32, i32) {
    %c0_i32 = arith.constant 0 : i32
    %c0_i32_0 = arith.constant 0 : i32
    return %arg0, %c0_i32 : i32, i32
  }
  func.func @transform_3(%arg0: i32) -> (i32, i32) {
    %c0_i32 = arith.constant 0 : i32
    %c0_i32_0 = arith.constant 0 : i32
    %c0_i32_1 = arith.constant 0 : i32
    return %c0_i32, %c0_i32_0 : i32, i32
  }
  func.func @transform_4(%arg0: i32) -> (i32, i32) {
    %c0_i32 = arith.constant 0 : i32
    %c0_i32_0 = arith.constant 0 : i32
    %c0_i32_1 = arith.constant 0 : i32
    return %c0_i32, %c0_i32_0 : i32, i32
  }
  func.func @transform_5(%arg0: i32) -> (i32, i32) {
    %c0_i32 = arith.constant 0 : i32
    %c0_i32_0 = arith.constant 0 : i32
    %c0_i32_1 = arith.constant 0 : i32
    return %c0_i32, %c0_i32_0 : i32, i32
  }
  func.func @transform_6(%arg0: i32) -> (i32, i32) {
    %c0_i32 = arith.constant 0 : i32
    %c0_i32_0 = arith.constant 0 : i32
    %c0_i32_1 = arith.constant 0 : i32
    return %c0_i32, %c0_i32_0 : i32, i32
  }
  func.func @transform_7(%arg0: i32) -> (i32, i32) {
    %c0_i32 = arith.constant 0 : i32
    %c0_i32_0 = arith.constant 0 : i32
    %c0_i32_1 = arith.constant 0 : i32
    return %c0_i32, %c0_i32_0 : i32, i32
  }
  func.func @transform_8(%arg0: i32) -> (i32, i32) {
    %c0_i32 = arith.constant 0 : i32
    %c0_i32_0 = arith.constant 0 : i32
    return %arg0, %c0_i32 : i32, i32
  }
  func.func @transform_9(%arg0: i32) -> (i32, i32) {
    %c0_i32 = arith.constant 0 : i32
    %c0_i32_0 = arith.constant 0 : i32
    return %arg0, %c0_i32 : i32, i32
  }
}

</mosaic_0001>

<bundles_post_ra>
// kernel: tpu_custom_call.1
= control target key start
LH: loop header
LB: loop body
LE: loop exit
PB: predicated region body
PF: predicated region fallthrough
CT: control target
= control target key end

     0   :  { %s11152_s30 = smov 0   ;;  %s17715_s0 = inlined_call_operand.vmem [shape: f32[64,32], index: 0, kind: input, shape index: {}]   ;;  %s17716_s1 = inlined_call_operand.vmem [shape: bf16[64,32,32], index: 1, kind: input, shape index: {}]   ;;  %s17717_s2 = inlined_call_operand.vmem [shape: f32[64,32], index: 2, kind: input, shape index: {}]   ;;  %s17718_s3 = inlined_call_operand.vmem [shape: f32[32,32], index: 3, kind: input, shape index: {}]   ;;  %s17719_s4 = inlined_call_operand.vmem [shape: bf16[32,32], index: 4, kind: input, shape index: {}]   ;;  %s17720_s5 = inlined_call_operand.vmem [shape: f32[1,32], index: 5, kind: input, shape index: {}]   ;;  %s17721_s6 = inlined_call_operand.vmem [shape: f32[32,1], index: 6, kind: input, shape index: {}]   ;;  %s17722_s7 = inlined_call_operand.vmem [shape: f32[1,32], index: 7, kind: input, shape index: {}]   ;;  %s17723_s8 = inlined_call_operand.vmem [shape: f32[64,32], index: 8, kind: output, shape index: {0}]   ;;  %s17724_s9 = inlined_call_operand.vmem [shape: f32[64,32], index: 9, kind: output, shape index: {1}]  }
   0x1 LB: > { %s9867_s10 = sadd.s32 4294967295, %s11098_s30   ;;  %p9871_p0 = scmp.ge.s32.totalorder %s11098_s30, 1  ;;  %s11098_s30 = sphi %s11152_s30, %s20_s30  }
   0x2   : > { %p314_p1 = scmp.lt.s32.totalorder %s11098_s30, 3 }
   0x4   : > { %p315_p2 = pnand %p9871_p0, %p314_p1 }
   0x6   : > { %318 = sbr.rel (%p315_p2) target bundleno = 2247 (0x8c7), region = 52 }
   0xd   : > { %v402_v0 = vld [vmem:[%s17718_s3] sm:$0xff]  ;;  %v403_v1 = vld [vmem:[%s17718_s3 + $0x8] sm:$0xff]  ;;  %v404_v2 = vld [vmem:[%s17718_s3 + $0x10] sm:$0xff]  ;;  %s9872_s17 = sshll.u32 %s9867_s10, 2  ;;  %vm413_vm0 = vcmask 261120   ;;  %s9874_s18 = sshll.u32 %s9867_s10, 5  ;;  %v17725_v20 = vlaneseq }
   0xe   : > { %v10428_v3 = vpack.c.bf16 %v403_v1, %v402_v0  ;;  %v405_v4 = vld [vmem:[%s17718_s3 + $0x18] sm:$0xff]  ;;  %p367_p3 = scmp.lt.s32.totalorder %s9872_s17, 7  ;;  %p373_p4 = scmp.lt.s32.totalorder %s9874_s18, 63  ;;  %v11175_v5 = vld [vmem:[%s17719_s4] sm:$0xff]   ;;  %v645_v7 = vld [vmem:[%s17721_s6 + $0x10] sm:$0xff]  ;;  %v11100_v8 = vmov 0  }
   0xf   : > { %v10432_v6 = vpack.c.bf16 %v405_v4, %v404_v2  ;;  %10176 = vmatprep.mubr.msk.bf16.mxu1 %vm413_vm0, %v11175_v5  ;;  %10447 = vset.pattern.permute.xlu1 %v11100_v8  ;;  %v643_v9 = vld [vmem:[%s17721_s6] sm:$0xff]  ;;  %v646_v10 = vld [vmem:[%s17721_s6 + $0x18] sm:$0xff]  ;;  %v644_v13 = vld [vmem:[%s17721_s6 + $0x8] sm:$0xff]  ;;  %v11219_v23 = vshrl.u32 %v17725_v20, 7  ;;  %vm5165_vm1 = vcmask 130112   ;;  %vm5172_vm2 = vcmask 195712  }
  0x10   : > { %10429 = vmatprep.subr.bf16.mxu0 %v10428_v3  ;;  %s19633_s17 = smov (!%p367_p3, %s9872_s17), 7  ;;  %s19635_s18 = smov (!%p373_p4, %s9874_s18), 63  ;;  %659 = vperm.xlu1 %10447, %v645_v7   ;;  %v11224_v24 = vld [vmem:[%s17719_s4 + $0x8] sm:$0xff]   ;;  %vm5179_vm3 = vcmask 261312   ;;  %vm5770_vm4 = vcmask 1041409   ;;  %vm5772_vm5 = vcmask 1042434  }
  0x11   : > { %10431 = vmatpush3.bf16.msra.mxu0 %v10428_v3  ;;  %s11185_s27 = sshll.u32 %s19633_s17, 3  ;;  %10446 = vset.pattern.permute.xlu0 %v11100_v8  ;;  %s10021_s13 = sshll.u32 %s19635_s18, 4  ;;  %18212 = vst [vmem:[#allocation2_spill] sm:$0xff] %v11219_v23  ;;  %v11232_v26 = vsub.s32 0, %v11219_v23  ;;  %v11251_v34 = vsub.s32 1, %v11219_v23  ;;  %v11270_v40 = vsub.s32 2, %v11219_v23 }
  0x12   : > { %10433 = vmatprep.subr.bf16.mxu0 %v10432_v6  ;;  %s370_s10 = scalar_lea.vmem %s17715_s0, %s11185_s27  ;;  %649 = vperm.xlu0 %10446, %v643_v9   ;;  %s11201_s19 = scalar_lea.vmem %s17716_s1, %s10021_s13  ;;  %v11295_v48 = vsub.s32 3, %v11219_v23  ;;  %v11312_v54 = vsub.s32 4, %v11219_v23  ;;  %v11333_v62 = vsub.s32 5, %v11219_v23  ;;  %v11358_v7 = vsub.s32 6, %v11219_v23 }
  0x13   : > { %v398_v11 = vld [vmem:[%s370_s10] sm:$0xff]  ;;  %v399_v12 = vld [vmem:[%s370_s10 + $0x8] sm:$0xff]  ;;  %v400_v14 = vld [vmem:[%s370_s10 + $0x10] sm:$0xff]  ;;  %s11213_s21 = scalar_lea.vmem %s17717_s2, %s11185_s27  ;;  %18213 = vst [vmem:[#allocation3_spill] sm:$0xff] %v11232_v26  ;;  %vm5774_vm6 = vcmask 1043459   ;;  %vm5776_vm7 = vcmask 1044484   ;;  %s16674_s15 = scalar_lea.vmem %s17724_s9, %s11185_s27 }
  0x14   : > { %10166 = vmatprep.mubr.msk.f32.mxu0 %vm413_vm0, %v398_v11  ;;  %664 = vperm.xlu1 %10447, %v646_v10   ;;  %v10448_v15 = vld [vmem:[%s11201_s19] sm:$0xff]   ;;  %v401_v16 = vld [vmem:[%s370_s10 + $0x18] sm:$0xff]  ;;  %v10449_v17 = vld [vmem:[%s11201_s19 + $0x10] sm:$0xff]   ;;  %18214 = vst [vmem:[#allocation4_spill] sm:$0xff] %v11251_v34  ;;  %vm5778_vm8 = vcmask 1045509   ;;  %vm5780_vm9 = vcmask 1046534  }
  0x15   : > { %10435 = vmatpush3.bf16.msra.mxu0 %v10432_v6  ;;  %10172 = vmatprep.subr.bf16.mxu1 %v10448_v15  ;;  %v10450_v18 = vld [vmem:[%s11201_s19 + $0x8] sm:$0xff]   ;;  %v10451_v19 = vld [vmem:[%s11201_s19 + $0x18] sm:$0xff]   ;;  %v10454_v21 = vld [vmem:[%s11201_s19 + $0x20] sm:$0xff]   ;;  %18215 = vst [vmem:[#allocation5_spill] sm:$0xff] %v11270_v40  ;;  %vm5782_vm10 = vcmask 1047559  }
  0x16   : > { %654 = vperm.xlu0 %10446, %v644_v13   ;;  %10173 = vmatpush3.bf16.msra.mxu1 %v10448_v15  ;;  %v10455_v22 = vld [vmem:[%s11201_s19 + $0x30] sm:$0xff]   ;;  %v11229_v25 = vld [vmem:[%s11213_s21] sm:$0xff]  ;;  %v10456_v27 = vld [vmem:[%s11201_s19 + $0x28] sm:$0xff]   ;;  %18216 = vst [vmem:[#allocation6_spill] sm:$0xff] %v11295_v48  ;;  %v11375_v13 = vsub.s32 7, %v11219_v23 }
  0x17   : > { %10180 = vmatprep.subr.bf16.mxu0 %v10449_v17  ;;  %10174 = vmatprep.subr.bf16.mxu1 %v10450_v18  ;;  %v10457_v28 = vld [vmem:[%s11201_s19 + $0x38] sm:$0xff]   ;;  %v3781_v29 = vrot.slane %v11229_v25, %v11232_v26  ;;  %v10458_v30 = vld [vmem:[%s11201_s19 + $0x40] sm:$0xff]   ;;  %v10459_v31 = vld [vmem:[%s11201_s19 + $0x50] sm:$0xff]   ;;  %v3800_v37 = vrot.slane %v11229_v25, %v11251_v34  ;;  %v3819_v43 = vrot.slane %v11229_v25, %v11270_v40 }
  0x18   : > { %10167 = vmatmul.mubr.msk.f32.vlgmr.msra.gmra.mrb[0].mxu0 %vm413_vm0, %v399_v12  ;;  %v10460_v32 = vld [vmem:[%s11201_s19 + $0x48] sm:$0xff]   ;;  %v10461_v33 = vld [vmem:[%s11201_s19 + $0x58] sm:$0xff]   ;;  %v10462_v35 = vld [vmem:[%s11201_s19 + $0x60] sm:$0xff]   ;;  %v3838_v51 = vrot.slane %v11229_v25, %v11295_v48  ;;  %18217 = vst [vmem:[#allocation7_spill] sm:$0xff] %v11312_v54  ;;  %v3857_v57 = vrot.slane %v11229_v25, %v11312_v54  ;;  %v3876_v1 = vrot.slane %v11229_v25, %v11333_v62 }
  0x19   : > { %10169 = vmatprep.mubr.msk.f32.mxu0 %vm413_vm0, %v400_v14  ;;  %10181 = vmatpush3.bf16.msra.mxu0 %v10449_v17  ;;  %v10463_v36 = vld [vmem:[%s11201_s19 + $0x70] sm:$0xff]   ;;  %v10464_v38 = vld [vmem:[%s11201_s19 + $0x68] sm:$0xff]   ;;  %v10465_v39 = vld [vmem:[%s11201_s19 + $0x78] sm:$0xff]   ;;  %18218 = vst [vmem:[#allocation8_spill] sm:$0xff] %v11333_v62  ;;  %v3895_v10 = vrot.slane %v11229_v25, %v11358_v7 }
  0x1a   : > { %10182 = vmatprep.subr.bf16.mxu0 %v10451_v19  ;;  %10175 = vmatpush3.bf16.msra.mxu1 %v10450_v18  ;;  %v10466_v41 = vld [vmem:[%s11201_s19 + $0x80] sm:$0xff]   ;;  %v10467_v42 = vld [vmem:[%s11201_s19 + $0x90] sm:$0xff]   ;;  %v10468_v44 = vld [vmem:[%s11201_s19 + $0x88] sm:$0xff]   ;;  %18219 = vst [vmem:[#allocation9_spill] sm:$0xff] %v11358_v7 }
  0x1b   : > { %10188 = vmatprep.subr.bf16.mxu1 %v10454_v21  ;;  %3783 = vbcast.lane.b32.xlu1 %v3781_v29, 256  ;;  %v10469_v45 = vld [vmem:[%s11201_s19 + $0x98] sm:$0xff]   ;;  %v10470_v46 = vld [vmem:[%s11201_s19 + $0xa0] sm:$0xff]   ;;  %v10471_v47 = vld [vmem:[%s11201_s19 + $0xb0] sm:$0xff]   ;;  %18220 = vst [vmem:[#allocation10_spill] sm:$0xff] %v11375_v13 }
  0x1c   : > { %10170 = vmatmul.mubr.msk.f32.gmra.mrb[2].mxu0 %vm413_vm0, %v401_v16  ;;  %3787 = vbcast.lane.b32.xlu0 %v3781_v29, 264  ;;  %v10472_v49 = vld [vmem:[%s11201_s19 + $0xa8] sm:$0xff]   ;;  %v10473_v50 = vld [vmem:[%s11201_s19 + $0xb8] sm:$0xff]   ;;  %v10474_v52 = vld [vmem:[%s11201_s19 + $0xc0] sm:$0xff]   ;;  %v3914_v16 = vrot.slane %v11229_v25, %v11375_v13 }
  0x1d   : > { %10184 = vmatprep.mubr.msk.bf16.mxu0 %vm413_vm0, %v11175_v5  ;;  %10183 = vmatpush3.bf16.msra.mxu0 %v10451_v19  ;;  %v10475_v53 = vld [vmem:[%s11201_s19 + $0xd0] sm:$0xff]   ;;  %v10476_v55 = vld [vmem:[%s11201_s19 + $0xc8] sm:$0xff]   ;;  %v10477_v56 = vld [vmem:[%s11201_s19 + $0xd8] sm:$0xff]  }
  0x1e   : > { %10196 = vmatprep.subr.bf16.mxu0 %v10455_v22  ;;  %10177 = vmatmul.mubr.msk.bf16.vlgmr.msra.gmra.mrb[0].mxu1 %vm413_vm0, %v11224_v24  ;;  %v10478_v58 = vld [vmem:[%s11201_s19 + $0xe0] sm:$0xff]   ;;  %v10479_v59 = vld [vmem:[%s11201_s19 + $0xf0] sm:$0xff]   ;;  %v10480_v60 = vld [vmem:[%s11201_s19 + $0xe8] sm:$0xff]  }
  0x1f   : > { %10189 = vmatpush3.bf16.msra.mxu1 %v10454_v21  ;;  %10192 = vmatprep.mubr.msk.bf16.mxu1 %vm413_vm0, %v11175_v5  ;;  %v10481_v61 = vld [vmem:[%s11201_s19 + $0xf8] sm:$0xff]   ;;  %v10482_v63 = vld [vmem:[%s11201_s19 + $0x100] sm:$0xff]   ;;  %v10483_v0 = vld [vmem:[%s11201_s19 + $0x110] sm:$0xff]  }
  0x20   : > { %10185 = vmatmul.mubr.msk.bf16.vlgmr.msra.gmra.mrb[4].mxu0 %vm413_vm0, %v11224_v24  ;;  %10190 = vmatprep.subr.bf16.mxu1 %v10456_v27  ;;  %v10484_v2 = vld [vmem:[%s11201_s19 + $0x108] sm:$0xff]   ;;  %v10485_v3 = vld [vmem:[%s11201_s19 + $0x118] sm:$0xff]   ;;  %v10486_v4 = vld [vmem:[%s11201_s19 + $0x120] sm:$0xff]  }
  0x21   : > { %10197 = vmatpush3.bf16.msra.mxu0 %v10455_v22  ;;  %10200 = vmatprep.mubr.msk.bf16.mxu0 %vm413_vm0, %v11175_v5  ;;  %v10487_v6 = vld [vmem:[%s11201_s19 + $0x130] sm:$0xff]   ;;  %v10488_v8 = vld [vmem:[%s11201_s19 + $0x128] sm:$0xff]   ;;  %v10489_v9 = vld [vmem:[%s11201_s19 + $0x138] sm:$0xff]  }
  0x22   : > { %10198 = vmatprep.subr.bf16.mxu0 %v10457_v28  ;;  %3791 = vbcast.lane.b32.xlu1 %v3781_v29, 272  ;;  %v10490_v11 = vld [vmem:[%s11201_s19 + $0x140] sm:$0xff]   ;;  %v10491_v12 = vld [vmem:[%s11201_s19 + $0x150] sm:$0xff]   ;;  %v10492_v14 = vld [vmem:[%s11201_s19 + $0x148] sm:$0xff]  }
  0x23   : > { %10191 = vmatpush3.bf16.msra.mxu1 %v10456_v27  ;;  %3802 = vbcast.lane.b32.xlu0 %v3800_v37, 256  ;;  %v10493_v15 = vld [vmem:[%s11201_s19 + $0x158] sm:$0xff]   ;;  %v10494_v17 = vld [vmem:[%s11201_s19 + $0x160] sm:$0xff]   ;;  %v10495_v18 = vld [vmem:[%s11201_s19 + $0x170] sm:$0xff]  }
  0x24   : > { %10204 = vmatprep.subr.bf16.mxu1 %v10458_v30  ;;  %v10496_v19 = vld [vmem:[%s11201_s19 + $0x168] sm:$0xff]   ;;  %v10497_v21 = vld [vmem:[%s11201_s19 + $0x178] sm:$0xff]   ;;  %v10498_v22 = vld [vmem:[%s11201_s19 + $0x180] sm:$0xff]  }
  0x25   : > { %10199 = vmatpush3.bf16.msra.mxu0 %v10457_v28  ;;  %v10499_v25 = vld [vmem:[%s11201_s19 + $0x190] sm:$0xff]   ;;  %v10500_v27 = vld [vmem:[%s11201_s19 + $0x188] sm:$0xff]   ;;  %v10501_v28 = vld [vmem:[%s11201_s19 + $0x198] sm:$0xff]  }
  0x26   : > { %10212 = vmatprep.subr.bf16.mxu0 %v10459_v31  ;;  %10193 = vmatmul.mubr.msk.bf16.vlgmr.msra.gmra.mrb[4].mxu1 %vm413_vm0, %v11224_v24 }
  0x27   : > { %10205 = vmatpush3.bf16.msra.mxu1 %v10458_v30  ;;  %10208 = vmatprep.mubr.msk.bf16.mxu1 %vm413_vm0, %v11175_v5  ;;  %v10503_v30 = vld [vmem:[%s11201_s19 + $0x1b0] sm:$0xff]  }
  0x28   : > { %10201 = vmatmul.mubr.msk.bf16.vlgmr.msra.gmra.mrb[8].mxu0 %vm413_vm0, %v11224_v24  ;;  %10206 = vmatprep.subr.bf16.mxu1 %v10460_v32 }
  0x29   : > { %10213 = vmatpush3.bf16.msra.mxu0 %v10459_v31  ;;  %10216 = vmatprep.mubr.msk.bf16.mxu0 %vm413_vm0, %v11175_v5  ;;  %v10504_v31 = vld [vmem:[%s11201_s19 + $0x1a8] sm:$0xff]  }
  0x2a   : > { %10214 = vmatprep.subr.bf16.mxu0 %v10461_v33  ;;  %3795 = vbcast.lane.b32.xlu1 %v3781_v29, 280  ;;  %v10502_v29 = vld [vmem:[%s11201_s19 + $0x1a0] sm:$0xff]  }
  0x2b   : > { %10207 = vmatpush3.bf16.msra.mxu1 %v10460_v32  ;;  %3810 = vbcast.lane.b32.xlu0 %v3800_v37, 272  ;;  %v10505_v32 = vld [vmem:[%s11201_s19 + $0x1b8] sm:$0xff]  }
  0x2c   : > { %10220 = vmatprep.subr.bf16.mxu1 %v10462_v35 }
  0x2d   : > { %10215 = vmatpush3.bf16.msra.mxu0 %v10461_v33  ;;  %v10506_v33 = vld [vmem:[%s11201_s19 + $0x1c0] sm:$0xff]  }
  0x2e   : > { %10228 = vmatprep.subr.bf16.mxu0 %v10463_v36  ;;  %10209 = vmatmul.mubr.msk.bf16.vlgmr.msra.gmra.mrb[8].mxu1 %vm413_vm0, %v11224_v24 }
  0x2f   : > { %3806 = vbcast.lane.b32.xlu1 %v3800_v37, 264  ;;  %10221 = vmatpush3.bf16.msra.mxu1 %v10462_v35  ;;  %v10507_v35 = vld [vmem:[%s11201_s19 + $0x1d0] sm:$0xff]  }
  0x30   : > { %10217 = vmatmul.mubr.msk.bf16.vlgmr.msra.gmra.mrb[12].mxu0 %vm413_vm0, %v11224_v24  ;;  %10222 = vmatprep.subr.bf16.mxu1 %v10464_v38 }
  0x31   : > { %10229 = vmatpush3.bf16.msra.mxu0 %v10463_v36  ;;  %10224 = vmatprep.mubr.msk.bf16.mxu1 %vm413_vm0, %v11175_v5  ;;  %v10508_v36 = vld [vmem:[%s11201_s19 + $0x1c8] sm:$0xff]  }
  0x32   : > { %10230 = vmatprep.subr.bf16.mxu0 %v10465_v39  ;;  %10232 = vmatprep.mubr.msk.bf16.mxu0 %vm413_vm0, %v11175_v5 }
  0x33   : > { %3814 = vbcast.lane.b32.xlu1 %v3800_v37, 280  ;;  %10223 = vmatpush3.bf16.msra.mxu1 %v10464_v38  ;;  %v10509_v37 = vld [vmem:[%s11201_s19 + $0x1d8] sm:$0xff]   ;;  %v10510_v38 = vld [vmem:[%s11201_s19 + $0x1e0] sm:$0xff]  }
  0x34   : > { %10236 = vmatprep.subr.bf16.mxu1 %v10466_v41  ;;  %3821 = vbcast.lane.b32.xlu0 %v3819_v43, 256 }
  0x35   : > { %10231 = vmatpush3.bf16.msra.mxu0 %v10465_v39  ;;  %v10511_v39 = vld [vmem:[%s11201_s19 + $0x1f0] sm:$0xff]  }
  0x36   : > { %10244 = vmatprep.subr.bf16.mxu0 %v10467_v42  ;;  %10225 = vmatmul.mubr.msk.bf16.vlgmr.msra.gmra.mrb[12].mxu1 %vm413_vm0, %v11224_v24 }
  0x37   : > { %3825 = vbcast.lane.b32.xlu1 %v3819_v43, 264  ;;  %10237 = vmatpush3.bf16.msra.mxu1 %v10466_v41  ;;  %v10512_v41 = vld [vmem:[%s11201_s19 + $0x1e8] sm:$0xff]  }
  0x38   : > { %10233 = vmatmul.mubr.msk.bf16.vlgmr.msra.gmra.mrb[16].mxu0 %vm413_vm0, %v11224_v24  ;;  %10238 = vmatprep.subr.bf16.mxu1 %v10468_v44 }
  0x39   : > { %10245 = vmatpush3.bf16.msra.mxu0 %v10467_v42  ;;  %10240 = vmatprep.mubr.msk.bf16.mxu1 %vm413_vm0, %v11175_v5  ;;  %v10513_v42 = vld [vmem:[%s11201_s19 + $0x1f8] sm:$0xff]   ;;  %s16725_s19 = scalar_lea.vmem %s17723_s8, %s11185_s27 }
  0x3a   : > { %10246 = vmatprep.subr.bf16.mxu0 %v10469_v45  ;;  %10248 = vmatprep.mubr.msk.bf16.mxu0 %vm413_vm0, %v11175_v5 }
  0x3b   : > { %10239 = vmatpush3.bf16.msra.mxu1 %v10468_v44  ;;  %3833 = vbcast.lane.b32.xlu1 %v3819_v43, 280 }
  0x3c   : > { %10252 = vmatprep.subr.bf16.mxu1 %v10470_v46  ;;  %3829 = vbcast.lane.b32.xlu0 %v3819_v43, 272  ;;  %v11101_v43 = vmov 1966171168  }
  0x3d   : > { %10247 = vmatpush3.bf16.msra.mxu0 %v10469_v45  ;;  %v2641_v44 = vunpack.c.l.s4 %v11101_v43 }
  0x3e   : > { %10260 = vmatprep.subr.bf16.mxu0 %v10471_v47  ;;  %10241 = vmatmul.mubr.msk.bf16.vlgmr.msra.gmra.mrb[16].mxu1 %vm413_vm0, %v11224_v24 }
  0x3f   : > { %10253 = vmatpush3.bf16.msra.mxu1 %v10470_v46  ;;  %10256 = vmatprep.mubr.msk.bf16.mxu1 %vm413_vm0, %v11175_v5  ;;  %v2642_v45 = vunpack.c.0.s8 %v2641_v44  ;;  %v9883_v46 = vld [vmem:[%s17720_s5] ss:$0 sm:$0xff] }
  0x40   : > { %10249 = vmatmul.mubr.msk.bf16.vlgmr.msra.gmra.mrb[20].mxu0 %vm413_vm0, %v11224_v24  ;;  %10254 = vmatprep.subr.bf16.mxu1 %v10472_v49 }
  0x41   : > { %10261 = vmatpush3.bf16.msra.mxu0 %v10471_v47  ;;  %10264 = vmatprep.mubr.msk.bf16.mxu0 %vm413_vm0, %v11175_v5  ;;  %v11457_v47 = vsub.s32 %v2642_v45, %v11219_v23 }
  0x42   : > { %10262 = vmatprep.subr.bf16.mxu0 %v10473_v50  ;;  %3844 = vbcast.lane.b32.xlu1 %v3838_v51, 264 }
  0x43   : > { %10255 = vmatpush3.bf16.msra.mxu1 %v10472_v49  ;;  %3840 = vbcast.lane.b32.xlu0 %v3838_v51, 256 }
  0x44   : > { %10268 = vmatprep.subr.bf16.mxu1 %v10474_v52 }
  0x45   : > { %10263 = vmatpush3.bf16.msra.mxu0 %v10473_v50 }
  0x46   : > { %10276 = vmatprep.subr.bf16.mxu0 %v10475_v53  ;;  %10257 = vmatmul.mubr.msk.bf16.vlgmr.msra.gmra.mrb[20].mxu1 %vm413_vm0, %v11224_v24 }
  0x47   : > { %3852 = vbcast.lane.b32.xlu1 %v3838_v51, 280  ;;  %10269 = vmatpush3.bf16.msra.mxu1 %v10474_v52 }
  0x48   : > { %10265 = vmatmul.mubr.msk.bf16.vlgmr.msra.gmra.mrb[24].mxu0 %vm413_vm0, %v11224_v24  ;;  %10270 = vmatprep.subr.bf16.mxu1 %v10476_v55 }
  0x49   : > { %10277 = vmatpush3.bf16.msra.mxu0 %v10475_v53  ;;  %10272 = vmatprep.mubr.msk.bf16.mxu1 %vm413_vm0, %v11175_v5 }
  0x4a   : > { %10278 = vmatprep.subr.bf16.mxu0 %v10477_v56  ;;  %10280 = vmatprep.mubr.msk.bf16.mxu0 %vm413_vm0, %v11175_v5 }
  0x4b   : > { %3848 = vbcast.lane.b32.xlu0 %v3838_v51, 272  ;;  %10271 = vmatpush3.bf16.msra.mxu1 %v10476_v55 }
  0x4c   : > { %3863 = vbcast.lane.b32.xlu1 %v3857_v57, 264  ;;  %10284 = vmatprep.subr.bf16.mxu1 %v10478_v58 }
  0x4d   : > { %10279 = vmatpush3.bf16.msra.mxu0 %v10477_v56 }
  0x4e   : > { %10292 = vmatprep.subr.bf16.mxu0 %v10479_v59  ;;  %10273 = vmatmul.mubr.msk.bf16.vlgmr.msra.gmra.mrb[24].mxu1 %vm413_vm0, %v11224_v24 }
  0x4f   : > { %3859 = vbcast.lane.b32.xlu0 %v3857_v57, 256  ;;  %10285 = vmatpush3.bf16.msra.mxu1 %v10478_v58 }
  0x50   : > { %10281 = vmatmul.mubr.msk.bf16.vlgmr.msra.gmra.mrb[28].mxu0 %vm413_vm0, %v11224_v24  ;;  %10286 = vmatprep.subr.bf16.mxu1 %v10480_v60 }
  0x51   : > { %10293 = vmatpush3.bf16.msra.mxu0 %v10479_v59  ;;  %10288 = vmatprep.mubr.msk.bf16.mxu1 %vm413_vm0, %v11175_v5 }
  0x52   : > { %10294 = vmatprep.subr.bf16.mxu0 %v10481_v61  ;;  %10296 = vmatprep.mubr.msk.bf16.mxu0 %vm413_vm0, %v11175_v5 }
  0x53   : > { %3871 = vbcast.lane.b32.xlu1 %v3857_v57, 280  ;;  %10287 = vmatpush3.bf16.msra.mxu1 %v10480_v60 }
  0x54   : > { %3867 = vbcast.lane.b32.xlu0 %v3857_v57, 272  ;;  %10300 = vmatprep.subr.bf16.mxu1 %v10482_v63 }
  0x55   : > { %10295 = vmatpush3.bf16.msra.mxu0 %v10481_v61 }
  0x56   : > { %10308 = vmatprep.subr.bf16.mxu0 %v10483_v0  ;;  %10289 = vmatmul.mubr.msk.bf16.vlgmr.msra.gmra.mrb[28].mxu1 %vm413_vm0, %v11224_v24 }
  0x57   : > { %3882 = vbcast.lane.b32.xlu1 %v3876_v1, 264  ;;  %10301 = vmatpush3.bf16.msra.mxu1 %v10482_v63 }
  0x58   : > { %10297 = vmatmul.mubr.msk.bf16.vlgmr.msra.gmra.mrb[32].mxu0 %vm413_vm0, %v11224_v24  ;;  %10302 = vmatprep.subr.bf16.mxu1 %v10484_v2 }
  0x59   : > { %10309 = vmatpush3.bf16.msra.mxu0 %v10483_v0  ;;  %10304 = vmatprep.mubr.msk.bf16.mxu1 %vm413_vm0, %v11175_v5 }
  0x5a   : > { %10310 = vmatprep.subr.bf16.mxu0 %v10485_v3  ;;  %10312 = vmatprep.mubr.msk.bf16.mxu0 %vm413_vm0, %v11175_v5 }
  0x5b   : > { %3878 = vbcast.lane.b32.xlu0 %v3876_v1, 256  ;;  %10303 = vmatpush3.bf16.msra.mxu1 %v10484_v2 }
  0x5c   : > { %3890 = vbcast.lane.b32.xlu1 %v3876_v1, 280  ;;  %10316 = vmatprep.subr.bf16.mxu1 %v10486_v4 }
  0x5d   : > { %10311 = vmatpush3.bf16.msra.mxu0 %v10485_v3 }
  0x5e   : > { %10324 = vmatprep.subr.bf16.mxu0 %v10487_v6  ;;  %10305 = vmatmul.mubr.msk.bf16.vlgmr.msra.gmra.mrb[32].mxu1 %vm413_vm0, %v11224_v24 }
  0x5f   : > { %3886 = vbcast.lane.b32.xlu0 %v3876_v1, 272  ;;  %10317 = vmatpush3.bf16.msra.mxu1 %v10486_v4 }
  0x60   : > { %10313 = vmatmul.mubr.msk.bf16.vlgmr.msra.gmra.mrb[36].mxu0 %vm413_vm0, %v11224_v24  ;;  %10318 = vmatprep.subr.bf16.mxu1 %v10488_v8 }
  0x61   : > { %10325 = vmatpush3.bf16.msra.mxu0 %v10487_v6  ;;  %10320 = vmatprep.mubr.msk.bf16.mxu1 %vm413_vm0, %v11175_v5 }
  0x62   : > { %10326 = vmatprep.subr.bf16.mxu0 %v10489_v9  ;;  %10328 = vmatprep.mubr.msk.bf16.mxu0 %vm413_vm0, %v11175_v5 }
  0x63   : > { %3901 = vbcast.lane.b32.xlu1 %v3895_v10, 264  ;;  %10319 = vmatpush3.bf16.msra.mxu1 %v10488_v8 }
  0x64   : > { %3897 = vbcast.lane.b32.xlu0 %v3895_v10, 256  ;;  %10332 = vmatprep.subr.bf16.mxu1 %v10490_v11 }
  0x65   : > { %10327 = vmatpush3.bf16.msra.mxu0 %v10489_v9 }
  0x66   : > { %10340 = vmatprep.subr.bf16.mxu0 %v10491_v12  ;;  %10321 = vmatmul.mubr.msk.bf16.vlgmr.msra.gmra.mrb[36].mxu1 %vm413_vm0, %v11224_v24 }
  0x67   : > { %3909 = vbcast.lane.b32.xlu1 %v3895_v10, 280  ;;  %10333 = vmatpush3.bf16.msra.mxu1 %v10490_v11 }
  0x68   : > { %10329 = vmatmul.mubr.msk.bf16.vlgmr.msra.gmra.mrb[40].mxu0 %vm413_vm0, %v11224_v24  ;;  %10334 = vmatprep.subr.bf16.mxu1 %v10492_v14 }
  0x69   : > { %10341 = vmatpush3.bf16.msra.mxu0 %v10491_v12  ;;  %10336 = vmatprep.mubr.msk.bf16.mxu1 %vm413_vm0, %v11175_v5 }
  0x6a   : > { %10342 = vmatprep.subr.bf16.mxu0 %v10493_v15  ;;  %10344 = vmatprep.mubr.msk.bf16.mxu0 %vm413_vm0, %v11175_v5 }
  0x6b   : > { %3905 = vbcast.lane.b32.xlu0 %v3895_v10, 272  ;;  %10335 = vmatpush3.bf16.msra.mxu1 %v10492_v14 }
  0x6c   : > { %3920 = vbcast.lane.b32.xlu1 %v3914_v16, 264  ;;  %10348 = vmatprep.subr.bf16.mxu1 %v10494_v17 }
  0x6d   : > { %10343 = vmatpush3.bf16.msra.mxu0 %v10493_v15 }
  0x6e   : > { %10356 = vmatprep.subr.bf16.mxu0 %v10495_v18  ;;  %10337 = vmatmul.mubr.msk.bf16.vlgmr.msra.gmra.mrb[40].mxu1 %vm413_vm0, %v11224_v24 }
  0x6f   : > { %3916 = vbcast.lane.b32.xlu0 %v3914_v16, 256  ;;  %10349 = vmatpush3.bf16.msra.mxu1 %v10494_v17 }
  0x70   : > { %10345 = vmatmul.mubr.msk.bf16.vlgmr.msra.gmra.mrb[44].mxu0 %vm413_vm0, %v11224_v24  ;;  %10350 = vmatprep.subr.bf16.mxu1 %v10496_v19 }
  0x71   : > { %10357 = vmatpush3.bf16.msra.mxu0 %v10495_v18  ;;  %10352 = vmatprep.mubr.msk.bf16.mxu1 %vm413_vm0, %v11175_v5 }
  0x72   : > { %10358 = vmatprep.subr.bf16.mxu0 %v10497_v21  ;;  %10360 = vmatprep.mubr.msk.bf16.mxu0 %vm413_vm0, %v11175_v5 }
  0x73   : > { %3928 = vbcast.lane.b32.xlu1 %v3914_v16, 280  ;;  %10351 = vmatpush3.bf16.msra.mxu1 %v10496_v19 }
  0x74   : > { %3924 = vbcast.lane.b32.xlu0 %v3914_v16, 272  ;;  %10364 = vmatprep.subr.bf16.mxu1 %v10498_v22 }
  0x75   : > { %10359 = vmatpush3.bf16.msra.mxu0 %v10497_v21 }
  0x76   : > { %10372 = vmatprep.subr.bf16.mxu0 %v10499_v25  ;;  %10353 = vmatmul.mubr.msk.bf16.vlgmr.msra.gmra.mrb[44].mxu1 %vm413_vm0, %v11224_v24 }
  0x77   : > { %10365 = vmatpush3.bf16.msra.mxu1 %v10498_v22  ;;  %10368 = vmatprep.mubr.msk.bf16.mxu1 %vm413_vm0, %v11175_v5 }
  0x78   : > { %10361 = vmatmul.mubr.msk.bf16.vlgmr.msra.gmra.mrb[48].mxu0 %vm413_vm0, %v11224_v24  ;;  %10366 = vmatprep.subr.bf16.mxu1 %v10500_v27 }
  0x79   : > { %10373 = vmatpush3.bf16.msra.mxu0 %v10499_v25  ;;  %10376 = vmatprep.mubr.msk.bf16.mxu0 %vm413_vm0, %v11175_v5 }
  0x7a   : > { %10374 = vmatprep.subr.bf16.mxu0 %v10501_v28 }
  0x7b   : > { %10367 = vmatpush3.bf16.msra.mxu1 %v10500_v27 }
  0x7c   : > { %10380 = vmatprep.subr.bf16.mxu1 %v10502_v29 }
  0x7d   : > { %10375 = vmatpush3.bf16.msra.mxu0 %v10501_v28 }
  0x7e   : > { %10388 = vmatprep.subr.bf16.mxu0 %v10503_v30  ;;  %10369 = vmatmul.mubr.msk.bf16.vlgmr.msra.gmra.mrb[48].mxu1 %vm413_vm0, %v11224_v24 }
  0x7f   : > { %10381 = vmatpush3.bf16.msra.mxu1 %v10502_v29  ;;  %10384 = vmatprep.mubr.msk.bf16.mxu1 %vm413_vm0, %v11175_v5 }
  0x80   : > { %10377 = vmatmul.mubr.msk.bf16.vlgmr.msra.gmra.mrb[52].mxu0 %vm413_vm0, %v11224_v24  ;;  %10382 = vmatprep.subr.bf16.mxu1 %v10504_v31 }
  0x81   : > { %10389 = vmatpush3.bf16.msra.mxu0 %v10503_v30  ;;  %10392 = vmatprep.mubr.msk.bf16.mxu0 %vm413_vm0, %v11175_v5 }
  0x82   : > { %10390 = vmatprep.subr.bf16.mxu0 %v10505_v32 }
  0x83   : > { %10383 = vmatpush3.bf16.msra.mxu1 %v10504_v31 }
  0x84   : > { %10396 = vmatprep.subr.bf16.mxu1 %v10506_v33 }
  0x85   : > { %10391 = vmatpush3.bf16.msra.mxu0 %v10505_v32 }
  0x86   : > { %10404 = vmatprep.subr.bf16.mxu0 %v10507_v35  ;;  %10385 = vmatmul.mubr.msk.bf16.vlgmr.msra.gmra.mrb[52].mxu1 %vm413_vm0, %v11224_v24 }
  0x87   : > { %10397 = vmatpush3.bf16.msra.mxu1 %v10506_v33  ;;  %10400 = vmatprep.mubr.msk.bf16.mxu1 %vm413_vm0, %v11175_v5 }
  0x88   : > { %10393 = vmatmul.mubr.msk.bf16.vlgmr.msra.gmra.mrb[56].mxu0 %vm413_vm0, %v11224_v24  ;;  %10398 = vmatprep.subr.bf16.mxu1 %v10508_v36 }
  0x89   : > { %10405 = vmatpush3.bf16.msra.mxu0 %v10507_v35  ;;  %10408 = vmatprep.mubr.msk.bf16.mxu0 %vm413_vm0, %v11175_v5 }
  0x8a   : > { %10406 = vmatprep.subr.bf16.mxu0 %v10509_v37 }
  0x8b   : > { %10399 = vmatpush3.bf16.msra.mxu1 %v10508_v36 }
  0x8c   : > { %10412 = vmatprep.subr.bf16.mxu1 %v10510_v38 }
  0x8d   : > { %10407 = vmatpush3.bf16.msra.mxu0 %v10509_v37 }
  0x8e   : > { %10420 = vmatprep.subr.bf16.mxu0 %v10511_v39  ;;  %10401 = vmatmul.mubr.msk.bf16.vlgmr.msra.gmra.mrb[56].mxu1 %vm413_vm0, %v11224_v24 }
  0x8f   : > { %10413 = vmatpush3.bf16.msra.mxu1 %v10510_v38  ;;  %10416 = vmatprep.mubr.msk.bf16.mxu1 %vm413_vm0, %v11175_v5  ;;  %v11480_v15 = vpop.permute.xlu1 %659 }
  0x90   : > { %10409 = vmatmul.mubr.msk.bf16.vlgmr.msra.gmra.mrb[60].mxu0 %vm413_vm0, %v11224_v24  ;;  %10414 = vmatprep.subr.bf16.mxu1 %v10512_v41 }
  0x91   : > { %10421 = vmatpush3.bf16.msra.mxu0 %v10511_v39  ;;  %10424 = vmatprep.mubr.msk.bf16.mxu0 %vm413_vm0, %v11175_v5  ;;  %v11497_v32 = vpop.permute.xlu0 %649 }
  0x92   : > { %10422 = vmatprep.subr.bf16.mxu0 %v10513_v42 }
  0x93   : > { %10415 = vmatpush3.bf16.msra.mxu1 %v10512_v41 }
  0x95   : > { %10423 = vmatpush3.bf16.msra.mxu0 %v10513_v42 }
  0x96   : > { %10417 = vmatmul.mubr.msk.bf16.vlgmr.msra.gmra.mrb[60].mxu1 %vm413_vm0, %v11224_v24 }
  0x98   : > { %10425 = vmatmul.mubr.msk.bf16.vlgmr.msra.gmra.mrb[64].mxu0 %vm413_vm0, %v11224_v24 }
  0xeb   : > { %v10168_v49 = vpop.f32.mrb[0].mxu0 }
  0xec   : > { %v498_v5 = vadd.f32 %v10168_v49, %v9883_v46  ;;  %v492_v50 = vpop.f32.mrb[1].mxu0 }
  0xed   : > { %v11459_v51 = vadd.f32 %v9883_v46, %v492_v50 }
  0xee   : > { %v2688_v52 = vcombine.high %v498_v5, %v498_v5  ;;  %v2695_v53 = vrot.slane %v498_v5, %v11457_v47 }
  0xef   : > { %v10171_v55 = vpop.f32.mrb[2].mxu0  ;;  %v2646_v60 = vrot.slane %v11459_v51, %v11457_v47 }
  0xf0   : > { %v2702_v24 = vrot.slane %v2688_v52, %v11457_v47  ;;  %v2703_v56 = vcombine.high %v2695_v53, %v2695_v53  ;;  %v11464_v57 = vrot.slane %v2695_v53, %v11457_v47  ;;  %v508_v58 = vadd.f32 %v10171_v55, %v9883_v46  ;;  %v502_v59 = vpop.f32.mrb[3].mxu0 }
  0xf1   : > { %v503_v61 = vadd.f32 %v9883_v46, %v502_v59  ;;  %v10178_v3 = vpop.f32.mrb[0].mxu1  ;;  %v11478_v4 = vrot.slane %v2646_v60, %v11457_v47  ;;  %v2654_v11 = vcombine.high %v2646_v60, %v2646_v60  ;;  %v11535_v59 = vpop.permute.xlu1 %664 }
  0xf2   : > { %v2704_v63 = vcombine.high %v2702_v24, %v2702_v24  ;;  %v11469_v0 = vrot.slane %v2702_v24, %v11457_v47  ;;  %v11472_v1 = vrot.slane %v2703_v56, %v11457_v47  ;;  %v729_v6 = vpop.f32.mrb[1].mxu1  ;;  %v2786_v16 = vcombine.high %v508_v58, %v508_v58 }
  0xf3   : > { %v10186_v8 = vpop.f32.mrb[4].mxu0  ;;  %v10179_v9 = vpop.f32.mrb[2].mxu1  ;;  %v2793_v17 = vrot.slane %v508_v58, %v11457_v47  ;;  %v2737_v18 = vcombine.high %v503_v61, %v503_v61  ;;  %v2744_v19 = vrot.slane %v503_v61, %v11457_v47  ;;  %v2838_v22 = vrot.slane %v11478_v4, %v11232_v26 }
  0xf4   : > { %v11475_v2 = vrot.slane %v2704_v63, %v11457_v47  ;;  %v790_v10 = vpop.f32.mrb[5].mxu0  ;;  %v732_v12 = vpop.f32.mrb[3].mxu1  ;;  %v11487_v25 = vadd.f32 %v10178_v3, %v11480_v15  ;;  %v2800_v27 = vrot.slane %v2786_v16, %v11457_v47  ;;  %v11495_v31 = vrot.slane %v2654_v11, %v11457_v47 }
  0xf5   : > { %v10187_v14 = vpop.f32.mrb[6].mxu0  ;;  %v2801_v28 = vcombine.high %v2793_v17, %v2793_v17  ;;  %v11491_v29 = vrot.slane %v2793_v17, %v11457_v47  ;;  %v2751_v30 = vrot.slane %v2737_v18, %v11457_v47  ;;  %v2752_v33 = vcombine.high %v2744_v19, %v2744_v19  ;;  %v11540_v63 = vpop.permute.xlu0 %654 }
  0xf6   : > { %v793_v21 = vpop.f32.mrb[7].mxu0  ;;  %18221 = vst [vmem:[#allocation11_spill] sm:$0xff] %v11487_v25  ;;  %v11500_v35 = vrot.slane %v2744_v19, %v11457_v47  ;;  %v2802_v36 = vcombine.high %v2800_v27, %v2800_v27  ;;  %v11503_v37 = vrot.slane %v2800_v27, %v11457_v47  ;;  %v11509_v39 = vadd.f32 %v729_v6, %v11497_v32 }
  0xf7   : > { %18222 = vst [vmem:[#allocation12_spill] sm:$0xff] %v11491_v29  ;;  %v11506_v38 = vrot.slane %v2801_v28, %v11457_v47  ;;  %v2753_v42 = vcombine.high %v2751_v30, %v2751_v30  ;;  %v11512_v43 = vrot.slane %v2751_v30, %v11457_v47  ;;  %v11515_v44 = vrot.slane %v2752_v33, %v11457_v47 }
  0xf8   : > { %18223 = vst [vmem:[#allocation13_spill] sm:$0xff] %v11500_v35  ;;  %18224 = vst [vmem:[#allocation14_spill] sm:$0xff] %v11503_v37  ;;  %v11518_v49 = vrot.slane %v2802_v36, %v11457_v47  ;;  %v2997_v5 = vadd.f32 %v2838_v22, %v11487_v25  ;;  %v2842_v53 = vrot.slane %v11495_v31, %v11232_v26 }
  0xf9   : > { %18225 = vst [vmem:[#allocation15_spill] sm:$0xff] %v11506_v38  ;;  %18226 = vst [vmem:[#allocation16_spill] sm:$0xff] %v11509_v39  ;;  %v10194_v41 = vpop.f32.mrb[4].mxu1  ;;  %v11526_v55 = vrot.slane %v2753_v42, %v11457_v47  ;;  %v11529_v24 = vadd.f32 %v10186_v8, %v11480_v15  ;;  %v2995_v60 = vadd.f32 %v2838_v22, %v11509_v39 }
  0xfa   : > { %18227 = vst [vmem:[#allocation17_spill] sm:$0xff] %v11512_v43  ;;  %18228 = vst [vmem:[#allocation18_spill] sm:$0xff] %v11515_v44  ;;  %v851_v45 = vpop.f32.mrb[5].mxu1  ;;  %10514 = vtanh.f32 %v2997_v5  ;;  %v11543_v3 = vadd.f32 %v790_v10, %v11497_v32  ;;  %v11547_v8 = vadd.f32 %v10179_v9, %v11535_v59  ;;  %v11551_v16 = vadd.f32 %v732_v12, %v11540_v63 }
  0xfb   : > { %v10202_v46 = vpop.f32.mrb[8].mxu0  ;;  %18229 = vst [vmem:[#allocation19_spill] sm:$0xff] %v11518_v49  ;;  %v10195_v50 = vpop.f32.mrb[6].mxu1  ;;  %18230 = vst [vmem:[#allocation20_spill] sm:$0xff] %v11526_v55  ;;  %v3001_v6 = vadd.f32 %v2842_v53, %v11529_v24  ;;  %10516 = vtanh.f32 %v2995_v60  ;;  %v2684_v18 = vcombine.high %v11478_v4, %v11478_v4  ;;  %v11558_v19 = vadd.f32 %v10187_v14, %v11535_v59 }
  0xfc   : > { %v11521_v52 = vpop.f32.mrb[9].mxu0  ;;  %18231 = vst [vmem:[#allocation21_spill] sm:$0xff] %v11529_v24  ;;  %v11531_v56 = vpop.f32.mrb[7].mxu1  ;;  %18232 = vst [vmem:[#allocation22_spill] sm:$0xff] %v11543_v3  ;;  %v2999_v11 = vadd.f32 %v2842_v53, %v11543_v3  ;;  %v2998_v12 = vadd.f32 %v2838_v22, %v11547_v8  ;;  %v11570_v30 = vadd.f32 %v10194_v41, %v11480_v15 }
  0xfd   : > { %v11533_v58 = vpop.f32.mrb[10].mxu0  ;;  %18233 = vst [vmem:[#allocation23_spill] sm:$0xff] %v11547_v8  ;;  %18234 = vst [vmem:[#allocation24_spill] sm:$0xff] %v11551_v16  ;;  %v2996_v14 = vadd.f32 %v2838_v22, %v11551_v16  ;;  %v2846_v42 = vrot.slane %v2684_v18, %v11232_v26  ;;  %v3002_v5 = vadd.f32 %v2842_v53, %v11558_v19  ;;  %v11591_v22 = vld [vmem:[%s17722_s7] ss:$0 sm:$0xff] }
  0xfe   : > { %v11538_v61 = vpop.f32.mrb[11].mxu0  ;;  %18235 = vst [vmem:[#allocation25_spill] sm:$0xff] %v11558_v19  ;;  %10518 = vtanh.f32 %v2999_v11  ;;  %18236 = vst [vmem:[#allocation26_spill] sm:$0xff] %v11570_v30  ;;  %v11582_v60 = vadd.f32 %v793_v21, %v11540_v63  ;;  %v11586_v11 = vadd.f32 %v851_v45, %v11497_v32  ;;  %v11596_v18 = vadd.f32 %v10195_v50, %v11535_v59 }
  0xff   : > { %10520 = vtanh.f32 %v3001_v6  ;;  %v3005_v6 = vadd.f32 %v2846_v42, %v11570_v30  ;;  %v2639_v45 = vcombine.high %v11459_v51, %v11459_v51  ;;  %v11618_v51 = vadd.f32 %v10202_v46, %v11480_v15 }
 0x100   : > { %10522 = vtanh.f32 %v2998_v12  ;;  %18237 = vst [vmem:[#allocation27_spill] sm:$0xff] %v11582_v60  ;;  %18238 = vst [vmem:[#allocation28_spill] sm:$0xff] %v11586_v11  ;;  %v3003_v25 = vadd.f32 %v2846_v42, %v11586_v11  ;;  %v3006_v23 = vadd.f32 %v2846_v42, %v11596_v18  ;;  %v11632_v46 = vadd.f32 %v11531_v56, %v11540_v63 }
 0x101   : > { %v11553_v17 = vpop.f32.mrb[8].mxu1  ;;  %10524 = vtanh.f32 %v2996_v14  ;;  %18239 = vst [vmem:[#allocation29_spill] sm:$0xff] %v11596_v18  ;;  %v2686_v14 = vcombine.high %v11495_v31, %v11495_v31  ;;  %18240 = vst [vmem:[#allocation30_spill] sm:$0xff] %v11618_v51  ;;  %v11646_v56 = vadd.f32 %v11533_v58, %v11535_v59 }
 0x102   : > { %v11560_v10 = vpop.f32.mrb[9].mxu1  ;;  %10526 = vtanh.f32 %v3002_v5  ;;  %v3000_v5 = vadd.f32 %v2842_v53, %v11582_v60  ;;  %v2653_v60 = vrot.slane %v2639_v45, %v11457_v47  ;;  %18241 = vst [vmem:[#allocation31_spill] sm:$0xff] %v11632_v46 }
 0x103   : > { %v11562_v27 = vpop.f32.mrb[12].mxu0  ;;  %v11564_v9 = vpop.f32.mrb[10].mxu1  ;;  %10528 = vtanh.f32 %v3005_v6  ;;  %v11628_v13 = vrot.slane %v2686_v14, %v11232_v26  ;;  %18243 = vst [vmem:[#allocation33_spill] sm:$0xff] %v11646_v56 }
 0x104   : > { %v11566_v28 = vpop.f32.mrb[13].mxu0  ;;  %v11572_v33 = vpop.f32.mrb[11].mxu1  ;;  %10530 = vtanh.f32 %v3000_v5  ;;  %v2655_v48 = vcombine.high %v2653_v60, %v2653_v60 }
 0x105   : > { %v11574_v4 = vpop.f32.mrb[14].mxu0  ;;  %v10515_v41 = vpop.eup %10514  ;;  %10532 = vtanh.f32 %v3003_v25 }
 0x106   : > { %v11577_v36 = vpop.f32.mrb[15].mxu0  ;;  %v10517_v30 = vpop.eup %10516  ;;  %v3260_v50 = vmul.f32 %v10515_v41, %v11591_v22  ;;  %10534 = vtanh.f32 %v3006_v23 }
 0x107   : > { %v3258_v41 = vmul.f32 %v10517_v30, %v11591_v22 }
 0x108   : > { %v10519_v8 = vpop.eup %10518  ;;  %v3392_v53 = vsel %vm413_vm0, %v3260_v50, 0.0  ;;  %v3009_v50 = vadd.f32 %v11628_v13, %v11618_v51  ;;  %v3004_v51 = vadd.f32 %v2846_v42, %v11632_v46 }
 0x109   : > { %v11593_v20 = vpop.f32.mrb[12].mxu1  ;;  %v10521_v39 = vpop.eup %10520  ;;  %v3262_v6 = vmul.f32 %v10519_v8, %v11591_v22  ;;  %3393 = vadd.xlane.f32.xlu0 %v3392_v53  ;;  %v11639_v8 = vadd.f32 %v11521_v52, %v11497_v32  ;;  %v3386_v25 = vsel %vm413_vm0, %v3258_v41, 0.0  ;;  %v11654_v52 = vrot.slane %v2653_v60, %v11457_v47 }
 0x10a   : > { %v11598_v21 = vpop.f32.mrb[13].mxu1  ;;  %v3264_v30 = vmul.f32 %v10521_v39, %v11591_v22  ;;  %v10523_v14 = vpop.eup %10522  ;;  %10536 = vtanh.f32 %v3009_v50  ;;  %v11696_v60 = vadd.f32 %v11560_v10, %v11497_v32 }
 0x10b   : > { %v11600_v12 = vpop.f32.mrb[16].mxu0  ;;  %v11606_v24 = vpop.f32.mrb[14].mxu1  ;;  %v3398_v11 = vsel %vm413_vm0, %v3262_v6, 0.0  ;;  %18242 = vst [vmem:[#allocation32_spill] sm:$0xff] %v11639_v8  ;;  %v3007_v7 = vadd.f32 %v11628_v13, %v11639_v8  ;;  %v3261_v62 = vmul.f32 %v10523_v14, %v11591_v22  ;;  %v11680_v50 = vrot.slane %v11654_v52, %v11232_v26 }
 0x10c   : > { %v11608_v3 = vpop.f32.mrb[17].mxu0  ;;  %v11612_v16 = vpop.f32.mrb[15].mxu1  ;;  %3399 = vadd.xlane.f32.xlu1 %v3398_v11  ;;  %v3404_v58 = vsel %vm413_vm0, %v3264_v30, 0.0  ;;  %v3010_v30 = vadd.f32 %v11628_v13, %v11646_v56  ;;  %10538 = vtanh.f32 %v3004_v51  ;;  %18246 = vst [vmem:[#allocation36_spill] sm:$0xff] %v11696_v60 }
 0x10d   : > { %v11614_v19 = vpop.f32.mrb[18].mxu0  ;;  %v10525_v6 = vpop.eup %10524  ;;  %3387 = vadd.xlane.f32.xlu0 %v3386_v25  ;;  %v11670_v25 = vadd.f32 %v11553_v17, %v11480_v15  ;;  %v3395_v8 = vsel %vm413_vm0, %v3261_v62, 0.0  ;;  %10540 = vtanh.f32 %v3007_v7 }
 0x10e   : > { %v11620_v31 = vpop.f32.mrb[19].mxu0  ;;  %v10527_v23 = vpop.eup %10526  ;;  %v3259_v46 = vmul.f32 %v10525_v6, %v11591_v22  ;;  %10542 = vtanh.f32 %v3010_v30 }
 0x10f   : > { %18244 = vst [vmem:[#allocation34_spill] sm:$0xff] %v11670_v25  ;;  %v10529_v42 = vpop.eup %10528  ;;  %v3265_v17 = vmul.f32 %v10527_v23, %v11591_v22  ;;  %v3013_v6 = vadd.f32 %v11680_v50, %v11670_v25 }
 0x110   : > { %3405 = vadd.xlane.f32.xlu1 %v3404_v58  ;;  %v3389_v14 = vsel %vm413_vm0, %v3259_v46, 0.0  ;;  %v11687_v58 = vadd.f32 %v11538_v61, %v11540_v63  ;;  %v3268_v56 = vmul.f32 %v10529_v42, %v11591_v22  ;;  %v10531_v62 = vpop.eup %10530  ;;  %v11704_v46 = vadd.f32 %v11564_v9, %v11535_v59 }
 0x111   : > { %v11642_v45 = vpop.f32.mrb[16].mxu1  ;;  %3396 = vadd.xlane.f32.xlu0 %v3395_v8  ;;  %v10533_v61 = vpop.eup %10532  ;;  %v3407_v8 = vsel %vm413_vm0, %v3265_v17, 0.0  ;;  %10544 = vtanh.f32 %v3013_v6  ;;  %v3263_v17 = vmul.f32 %v10531_v62, %v11591_v22 }
 0x112   : > { %v11649_v5 = vpop.f32.mrb[17].mxu1  ;;  %18245 = vst [vmem:[#allocation35_spill] sm:$0xff] %v11687_v58  ;;  %18247 = vst [vmem:[#allocation37_spill] sm:$0xff] %v11704_v46  ;;  %v10535_v30 = vpop.eup %10534  ;;  %v3416_v10 = vsel %vm413_vm0, %v3268_v56, 0.0  ;;  %v3008_v9 = vadd.f32 %v11628_v13, %v11687_v58  ;;  %v3266_v56 = vmul.f32 %v10533_v61, %v11591_v22  ;;  %v3014_v37 = vadd.f32 %v11680_v50, %v11704_v46 }
 0x113   : > { %v11651_v53 = vpop.f32.mrb[20].mxu0  ;;  %v11656_v39 = vpop.f32.mrb[18].mxu1  ;;  %v3401_v13 = vsel %vm413_vm0, %v3263_v17, 0.0  ;;  %v3269_v6 = vmul.f32 %v10535_v30, %v11591_v22  ;;  %v11750_v17 = vadd.f32 %v11566_v28, %v11497_v32 }
 0x114   : > { %v11658_v11 = vpop.f32.mrb[21].mxu0  ;;  %v11662_v18 = vpop.f32.mrb[19].mxu1  ;;  %3390 = vadd.xlane.f32.xlu1 %v3389_v14  ;;  %v11712_v14 = vrot.slane %v2655_v48, %v11457_v47  ;;  %v3011_v48 = vadd.f32 %v11680_v50, %v11696_v60  ;;  %v11728_v47 = vadd.f32 %v11562_v27, %v11480_v15  ;;  %10546 = vtanh.f32 %v3008_v9 }
 0x115   : > { %v11664_v41 = vpop.f32.mrb[22].mxu0  ;;  %3408 = vadd.xlane.f32.xlu0 %v3407_v8  ;;  %v10537_v8 = vpop.eup %10536  ;;  %v11742_v27 = vadd.f32 %v11572_v33, %v11540_v63  ;;  %18250 = vst [vmem:[#allocation40_spill] sm:$0xff] %v11750_v17 }
 0x116   : > { %v11673_v54 = vpop.f32.mrb[23].mxu0  ;;  %18248 = vst [vmem:[#allocation38_spill] sm:$0xff] %v11728_v47  ;;  %v11737_v62 = vrot.slane %v11712_v14, %v11232_v26  ;;  %v10539_v60 = vpop.eup %10538  ;;  %10548 = vtanh.f32 %v3011_v48  ;;  %v3419_v48 = vsel %vm413_vm0, %v3269_v6, 0.0 }
 0x117   : > { %18249 = vst [vmem:[#allocation39_spill] sm:$0xff] %v11742_v27  ;;  %v10541_v33 = vpop.eup %10540  ;;  %10550 = vtanh.f32 %v3014_v37  ;;  %v3267_v6 = vmul.f32 %v10539_v60, %v11591_v22 }
 0x118   : > { %3417 = vadd.xlane.f32.xlu1 %v3416_v10  ;;  %v3410_v10 = vsel %vm413_vm0, %v3266_v56, 0.0  ;;  %v3017_v30 = vadd.f32 %v11737_v62, %v11728_v47  ;;  %v10543_v28 = vpop.eup %10542  ;;  %v3015_v55 = vadd.f32 %v11737_v62, %v11750_v17 }
 0x119   : > { %v11692_v40 = vpop.f32.mrb[20].mxu1  ;;  %3402 = vadd.xlane.f32.xlu0 %v3401_v13  ;;  %v3272_v13 = vmul.f32 %v10537_v8, %v11591_v22  ;;  %v2685_v8 = vcombine.high %v11654_v52, %v11654_v52  ;;  %v11782_v52 = vadd.f32 %v11593_v20, %v11480_v15  ;;  %v11795_v20 = vadd.f32 %v11577_v36, %v11540_v63 }
 0x11a   : > { %v11698_v51 = vpop.f32.mrb[21].mxu1  ;;  %10552 = vtanh.f32 %v3017_v30 }
 0x11b   : > { %v11700_v7 = vpop.f32.mrb[24].mxu0  ;;  %v11707_v23 = vpop.f32.mrb[22].mxu1  ;;  %v3428_v58 = vsel %vm413_vm0, %v3272_v13, 0.0  ;;  %18252 = vst [vmem:[#allocation42_spill] sm:$0xff] %v11782_v52  ;;  %v3270_v13 = vmul.f32 %v10541_v33, %v11591_v22  ;;  %v11790_v60 = vrot.slane %v2685_v8, %v11232_v26  ;;  %18253 = vst [vmem:[#allocation43_spill] sm:$0xff] %v11795_v20  ;;  %v11805_v8 = vadd.f32 %v11598_v21, %v11497_v32 }
 0x11c   : > { %v11709_v42 = vpop.f32.mrb[25].mxu0  ;;  %v11715_v25 = vpop.f32.mrb[23].mxu1  ;;  %3411 = vadd.xlane.f32.xlu1 %v3410_v10  ;;  %v11759_v10 = vadd.f32 %v11574_v4, %v11535_v59  ;;  %v3012_v4 = vadd.f32 %v11680_v50, %v11742_v27  ;;  %v3413_v50 = vsel %vm413_vm0, %v3267_v6, 0.0 }
 0x11d   : > { %v11717_v34 = vpop.f32.mrb[26].mxu0  ;;  %3420 = vadd.xlane.f32.xlu0 %v3419_v48  ;;  %v10545_v48 = vpop.eup %10544  ;;  %v3422_v30 = vsel %vm413_vm0, %v3270_v13, 0.0  ;;  %18255 = vst [vmem:[#allocation45_spill] sm:$0xff] %v11805_v8  ;;  %v3019_v44 = vadd.f32 %v11790_v60, %v11805_v8 }
 0x11e   : > { %v11722_v49 = vpop.f32.mrb[27].mxu0  ;;  %18251 = vst [vmem:[#allocation41_spill] sm:$0xff] %v11759_v10  ;;  %v3018_v43 = vadd.f32 %v11737_v62, %v11759_v10  ;;  %10554 = vtanh.f32 %v3012_v4  ;;  %v11797_v33 = vpop.permute.xlu1 %3783  ;;  %v3276_v6 = vmul.f32 %v10545_v48, %v11591_v22  ;;  %v2687_v48 = vcombine.high %v11712_v14, %v11712_v14 }
 0x11f   : > { %18254 = vst [vmem:[#allocation44_spill] sm:$0xff] %v11797_v33  ;;  %10556 = vtanh.f32 %v3015_v55  ;;  %v10547_v36 = vpop.eup %10546  ;;  %v11836_v14 = vadd.f32 %v11600_v12, %v11480_v15 }
 0x120   : > { %3429 = vadd.xlane.f32.xlu1 %v3428_v58  ;;  %v3273_v58 = vmul.f32 %v10543_v28, %v11591_v22  ;;  %v3021_v28 = vadd.f32 %v11790_v60, %v11782_v52  ;;  %10558 = vtanh.f32 %v3018_v43  ;;  %v10549_v21 = vpop.eup %10548  ;;  %v3440_v10 = vsel %vm413_vm0, %v3276_v6, 0.0 }
 0x121   : > { %v11744_v61 = vpop.f32.mrb[24].mxu1  ;;  %3414 = vadd.xlane.f32.xlu0 %v3413_v50  ;;  %v11814_v50 = vadd.f32 %v11606_v24, %v11535_v59  ;;  %v10551_v33 = vpop.eup %10550  ;;  %v3016_v24 = vadd.f32 %v11737_v62, %v11795_v20  ;;  %18258 = vst [vmem:[#allocation48_spill] sm:$0xff] %v11836_v14  ;;  %v3271_v6 = vmul.f32 %v10547_v36, %v11591_v22 }
 0x122   : > { %v11753_v56 = vpop.f32.mrb[25].mxu1  ;;  %v3431_v55 = vsel %vm413_vm0, %v3273_v58, 0.0  ;;  %10560 = vtanh.f32 %v3021_v28  ;;  %v3274_v35 = vmul.f32 %v10549_v21, %v11591_v22  ;;  %v11843_v62 = vrot.slane %v2687_v48, %v11232_v26  ;;  %v11847_v8 = vpop.permute.xlu1 %3791 }
 0x123   : > { %v11755_v9 = vpop.f32.mrb[28].mxu0  ;;  %v11762_v46 = vpop.f32.mrb[26].mxu1  ;;  %18256 = vst [vmem:[#allocation46_spill] sm:$0xff] %v11814_v50  ;;  %v3277_v28 = vmul.f32 %v10551_v33, %v11591_v22  ;;  %10562 = vtanh.f32 %v3016_v24  ;;  %18259 = vst [vmem:[#allocation49_spill] sm:$0xff] %v11847_v8  ;;  %v11856_v48 = vadd.f32 %v11612_v16, %v11540_v63  ;;  %v11873_v16 = vadd.f32 %v11614_v19, %v11535_v59 }
 0x124   : > { %v11764_v47 = vpop.f32.mrb[29].mxu0  ;;  %v11769_v38 = vpop.f32.mrb[27].mxu1  ;;  %3423 = vadd.xlane.f32.xlu1 %v3422_v30  ;;  %v3434_v12 = vsel %vm413_vm0, %v3274_v35, 0.0  ;;  %10564 = vtanh.f32 %v3019_v44  ;;  %v3025_v21 = vadd.f32 %v11843_v62, %v11836_v14  ;;  %v11864_v35 = vadd.f32 %v11608_v3, %v11497_v32 }
 0x125   : > { %v11771_v37 = vpop.f32.mrb[30].mxu0  ;;  %3432 = vadd.xlane.f32.xlu0 %v3431_v55  ;;  %v3022_v55 = vadd.f32 %v11790_v60, %v11814_v50  ;;  %18260 = vst [vmem:[#allocation50_spill] sm:$0xff] %v11856_v48  ;;  %18263 = vst [vmem:[#allocation53_spill] sm:$0xff] %v11873_v16 }
 0x126   : > { %v11776_v29 = vpop.f32.mrb[31].mxu0  ;;  %18261 = vst [vmem:[#allocation51_spill] sm:$0xff] %v11864_v35 }
 0x127   : > { %10566 = vtanh.f32 %v3022_v55 }
 0x128   : > { %3441 = vadd.xlane.f32.xlu1 %v3440_v10  ;;  %v3425_v10 = vsel %vm413_vm0, %v3271_v6, 0.0  ;;  %10568 = vtanh.f32 %v3025_v21  ;;  %v11895_v21 = vpop.permute.xlu0 %3787 }
 0x129   : > { %v11799_v17 = vpop.f32.mrb[28].mxu1  ;;  %3426 = vadd.xlane.f32.xlu0 %v3425_v10  ;;  %18267 = vst [vmem:[#allocation57_spill] sm:$0xff] %v11895_v21  ;;  %v11929_v21 = vadd.f32 %v11656_v39, %v11535_v59 }
 0x12a   : > { %v11808_v4 = vpop.f32.mrb[29].mxu1 }
 0x12b   : > { %v11810_v13 = vpop.f32.mrb[32].mxu0  ;;  %v11817_v30 = vpop.f32.mrb[30].mxu1  ;;  %18274 = vst [vmem:[#allocation64_spill] sm:$0xff] %v11929_v21 }
 0x12c   : > { %v11819_v52 = vpop.f32.mrb[33].mxu0  ;;  %v11824_v27 = vpop.f32.mrb[31].mxu1  ;;  %3435 = vadd.xlane.f32.xlu1 %v3434_v12  ;;  %v3443_v12 = vsel %vm413_vm0, %v3277_v28, 0.0  ;;  %v3023_v28 = vadd.f32 %v11843_v62, %v11864_v35 }
 0x12d   : > { %v11826_v43 = vpop.f32.mrb[34].mxu0  ;;  %3444 = vadd.xlane.f32.xlu0 %v3443_v12  ;;  %v11903_v35 = vpop.permute.xlu1 %3795 }
 0x12e   : > { %18257 = vst [vmem:[#allocation47_spill] sm:$0xff] %v11826_v43  ;;  %v11830_v58 = vpop.f32.mrb[35].mxu0  ;;  %v10553_v43 = vpop.eup %10552  ;;  %18268 = vst [vmem:[#allocation58_spill] sm:$0xff] %v11903_v35 }
 0x12f   : > { %v10555_v24 = vpop.eup %10554  ;;  %v3280_v44 = vmul.f32 %v10553_v43, %v11591_v22 }
 0x130   : > { %v10557_v50 = vpop.eup %10556  ;;  %v3275_v19 = vmul.f32 %v10555_v24, %v11591_v22  ;;  %v11901_v24 = vrot.slane %v11464_v57, %v11232_v26 }
 0x131   : > { %v11850_v36 = vpop.f32.mrb[32].mxu1  ;;  %v10559_v8 = vpop.eup %10558  ;;  %v3452_v3 = vsel %vm413_vm0, %v3280_v44, 0.0  ;;  %v3278_v12 = vmul.f32 %v10557_v50, %v11591_v22  ;;  %v3026_v44 = vadd.f32 %v11843_v62, %v11873_v16  ;;  %v11910_v16 = vadd.f32 %v11620_v31, %v11540_v63 }
 0x132   : > { %v11858_v6 = vpop.f32.mrb[33].mxu1  ;;  %3453 = vadd.xlane.f32.xlu1 %v3452_v3  ;;  %v3281_v3 = vmul.f32 %v10559_v8, %v11591_v22 }
 0x133   : > { %v11860_v33 = vpop.f32.mrb[36].mxu0  ;;  %v11867_v10 = vpop.f32.mrb[34].mxu1  ;;  %18269 = vst [vmem:[#allocation59_spill] sm:$0xff] %v11910_v16 }
 0x134   : > { %v11869_v14 = vpop.f32.mrb[37].mxu0  ;;  %v11876_v20 = vpop.f32.mrb[35].mxu1 }
 0x135   : > { %18262 = vst [vmem:[#allocation52_spill] sm:$0xff] %v11869_v14  ;;  %18264 = vst [vmem:[#allocation54_spill] sm:$0xff] %v11876_v20  ;;  %v11878_v55 = vpop.f32.mrb[38].mxu0  ;;  %v3020_v14 = vadd.f32 %v11790_v60, %v11856_v48  ;;  %v11890_v20 = vadd.f32 %v11642_v45, %v11480_v15  ;;  %v3437_v60 = vsel %vm413_vm0, %v3275_v19, 0.0  ;;  %v3446_v45 = vsel %vm413_vm0, %v3278_v12, 0.0 }
 0x136   : > { %18265 = vst [vmem:[#allocation55_spill] sm:$0xff] %v11878_v55  ;;  %v11881_v43 = vpop.f32.mrb[39].mxu0  ;;  %v10561_v55 = vpop.eup %10560  ;;  %3438 = vadd.xlane.f32.xlu0 %v3437_v60  ;;  %3447 = vadd.xlane.f32.xlu1 %v3446_v45  ;;  %v11920_v12 = vadd.f32 %v11649_v5, %v11497_v32 }
 0x137   : > { %18266 = vst [vmem:[#allocation56_spill] sm:$0xff] %v11890_v20  ;;  %10570 = vtanh.f32 %v3020_v14  ;;  %v10563_v48 = vpop.eup %10562  ;;  %v3029_v35 = vadd.f32 %v11901_v24, %v11890_v20  ;;  %v3284_v14 = vmul.f32 %v10561_v55, %v11591_v22 }
 0x138   : > { %10572 = vtanh.f32 %v3023_v28  ;;  %18272 = vst [vmem:[#allocation62_spill] sm:$0xff] %v11920_v12  ;;  %v10565_v45 = vpop.eup %10564  ;;  %v3455_v28 = vsel %vm413_vm0, %v3281_v3, 0.0  ;;  %v3027_v39 = vadd.f32 %v11901_v24, %v11920_v12  ;;  %v11946_v3 = vadd.f32 %v11651_v53, %v11480_v15 }
 0x139   : > { %v11906_v50 = vpop.f32.mrb[36].mxu1  ;;  %10574 = vtanh.f32 %v3026_v44  ;;  %v10567_v5 = vpop.eup %10566  ;;  %v3464_v55 = vsel %vm413_vm0, %v3284_v14, 0.0  ;;  %v3279_v44 = vmul.f32 %v10563_v48, %v11591_v22  ;;  %v3030_v14 = vadd.f32 %v11901_v24, %v11929_v21 }
 0x13a   : > { %v11912_v19 = vpop.f32.mrb[37].mxu1  ;;  %3456 = vadd.xlane.f32.xlu0 %v3455_v28  ;;  %3465 = vadd.xlane.f32.xlu1 %v3464_v55  ;;  %10576 = vtanh.f32 %v3029_v35  ;;  %18277 = vst [vmem:[#allocation67_spill] sm:$0xff] %v11946_v3  ;;  %v3282_v28 = vmul.f32 %v10565_v45, %v11591_v22  ;;  %v3285_v48 = vmul.f32 %v10567_v5, %v11591_v22  ;;  %v11959_v55 = vpop.permute.xlu1 %3806 }
 0x13b   : > { %18270 = vst [vmem:[#allocation60_spill] sm:$0xff] %v11912_v19  ;;  %v11914_v8 = vpop.f32.mrb[40].mxu0  ;;  %v11923_v60 = vpop.f32.mrb[38].mxu1  ;;  %v11957_v35 = vrot.slane %v11472_v1, %v11232_v26  ;;  %18279 = vst [vmem:[#allocation69_spill] sm:$0xff] %v11959_v55  ;;  %v11966_v12 = vadd.f32 %v11658_v11, %v11497_v32 }
 0x13c   : > { %18271 = vst [vmem:[#allocation61_spill] sm:$0xff] %v11914_v8  ;;  %v11925_v31 = vpop.f32.mrb[41].mxu0  ;;  %v11932_v8 = vpop.f32.mrb[39].mxu1  ;;  %v3458_v53 = vsel %vm413_vm0, %v3282_v28, 0.0 }
 0x13d   : > { %18273 = vst [vmem:[#allocation63_spill] sm:$0xff] %v11925_v31  ;;  %v11934_v20 = vpop.f32.mrb[42].mxu0  ;;  %v3024_v31 = vadd.f32 %v11843_v62, %v11910_v16  ;;  %v3449_v62 = vsel %vm413_vm0, %v3279_v44, 0.0  ;;  %18280 = vst [vmem:[#allocation70_spill] sm:$0xff] %v11966_v12  ;;  %v3033_v21 = vadd.f32 %v11957_v35, %v11946_v3  ;;  %v2733_v3 = vcombine.high %v11464_v57, %v11464_v57 }
 0x13e   : > { %18275 = vst [vmem:[#allocation65_spill] sm:$0xff] %v11934_v20  ;;  %v11937_v19 = vpop.f32.mrb[43].mxu0  ;;  %v10569_v20 = vpop.eup %10568  ;;  %3450 = vadd.xlane.f32.xlu0 %v3449_v62  ;;  %3459 = vadd.xlane.f32.xlu1 %v3458_v53  ;;  %v11976_v62 = vadd.f32 %v11662_v18, %v11540_v63  ;;  %v3467_v53 = vsel %vm413_vm0, %v3285_v48, 0.0  ;;  %v11992_v18 = vadd.f32 %v11664_v41, %v11535_v59 }
 0x13f   : > { %18276 = vst [vmem:[#allocation66_spill] sm:$0xff] %v11937_v19  ;;  %v11951_v19 = vpop.permute.xlu0 %3802  ;;  %10578 = vtanh.f32 %v3024_v31  ;;  %v3288_v28 = vmul.f32 %v10569_v20, %v11591_v22  ;;  %v3031_v48 = vadd.f32 %v11957_v35, %v11966_v12  ;;  %v12003_v57 = vadd.f32 %v11692_v40, %v11480_v15 }
 0x140   : > { %18278 = vst [vmem:[#allocation68_spill] sm:$0xff] %v11951_v19  ;;  %10580 = vtanh.f32 %v3027_v39  ;;  %18281 = vst [vmem:[#allocation71_spill] sm:$0xff] %v11976_v62 }
 0x141   : > { %v11962_v45 = vpop.f32.mrb[40].mxu1  ;;  %v10571_v11 = vpop.eup %10570  ;;  %10582 = vtanh.f32 %v3030_v14  ;;  %18285 = vst [vmem:[#allocation75_spill] sm:$0xff] %v11992_v18  ;;  %v3476_v20 = vsel %vm413_vm0, %v3288_v28, 0.0  ;;  %18287 = vst [vmem:[#allocation77_spill] sm:$0xff] %v12003_v57 }
 0x142   : > { %v11968_v44 = vpop.f32.mrb[41].mxu1  ;;  %v10573_v55 = vpop.eup %10572  ;;  %3468 = vadd.xlane.f32.xlu0 %v3467_v53  ;;  %3477 = vadd.xlane.f32.xlu1 %v3476_v20  ;;  %10584 = vtanh.f32 %v3033_v21  ;;  %v3283_v41 = vmul.f32 %v10571_v11, %v11591_v22  ;;  %v3034_v21 = vadd.f32 %v11957_v35, %v11992_v18  ;;  %v12022_v11 = vadd.f32 %v11673_v54, %v11540_v63 }
 0x143   : > { %v11970_v5 = vpop.f32.mrb[44].mxu0  ;;  %v11979_v31 = vpop.f32.mrb[42].mxu1  ;;  %v3286_v28 = vmul.f32 %v10573_v55, %v11591_v22  ;;  %10586 = vtanh.f32 %v3031_v48 }
 0x144   : > { %v11981_v16 = vpop.f32.mrb[45].mxu0  ;;  %v11984_v19 = vpop.f32.mrb[43].mxu1  ;;  %18290 = vst [vmem:[#allocation80_spill] sm:$0xff] %v12022_v11 }
 0x145   : > { %18282 = vst [vmem:[#allocation72_spill] sm:$0xff] %v11981_v16  ;;  %18283 = vst [vmem:[#allocation73_spill] sm:$0xff] %v11984_v19  ;;  %v11986_v39 = vpop.f32.mrb[46].mxu0  ;;  %v10575_v14 = vpop.eup %10574  ;;  %v12010_v19 = vrot.slane %v2733_v3, %v11232_v26  ;;  %v3470_v3 = vsel %vm413_vm0, %v3286_v28, 0.0 }
 0x146   : > { %18284 = vst [vmem:[#allocation74_spill] sm:$0xff] %v11986_v39  ;;  %v11995_v16 = vpop.f32.mrb[47].mxu0  ;;  %v3028_v39 = vadd.f32 %v11901_v24, %v11976_v62  ;;  %v12006_v53 = vpop.permute.xlu0 %3810  ;;  %v3461_v24 = vsel %vm413_vm0, %v3283_v41, 0.0  ;;  %v3289_v40 = vmul.f32 %v10575_v14, %v11591_v22  ;;  %v12033_v14 = vadd.f32 %v11698_v51, %v11497_v32  ;;  %3471 = vadd.xlane.f32.xlu1 %v3470_v3 }
 0x147   : > { %18286 = vst [vmem:[#allocation76_spill] sm:$0xff] %v11995_v16  ;;  %18288 = vst [vmem:[#allocation78_spill] sm:$0xff] %v12006_v53  ;;  %v10577_v16 = vpop.eup %10576  ;;  %v12014_v20 = vpop.permute.xlu1 %3814  ;;  %3462 = vadd.xlane.f32.xlu0 %v3461_v24  ;;  %v3037_v41 = vadd.f32 %v12010_v19, %v12003_v57  ;;  %v2735_v57 = vcombine.high %v11472_v1, %v11472_v1  ;;  %v12048_v51 = vadd.f32 %v11707_v23, %v11535_v59 }
 0x148   : > { %18289 = vst [vmem:[#allocation79_spill] sm:$0xff] %v12014_v20  ;;  %10588 = vtanh.f32 %v3028_v39  ;;  %18291 = vst [vmem:[#allocation81_spill] sm:$0xff] %v12033_v14  ;;  %v3292_v28 = vmul.f32 %v10577_v16, %v11591_v22  ;;  %v3479_v3 = vsel %vm413_vm0, %v3289_v40, 0.0  ;;  %v3032_v16 = vadd.f32 %v11957_v35, %v12022_v11 }
 0x149   : > { %v12018_v12 = vpop.f32.mrb[44].mxu1  ;;  %v10579_v24 = vpop.eup %10578  ;;  %10590 = vtanh.f32 %v3034_v21  ;;  %18295 = vst [vmem:[#allocation85_spill] sm:$0xff] %v12048_v51  ;;  %v3035_v1 = vadd.f32 %v12010_v19, %v12033_v14  ;;  %v12060_v21 = vadd.f32 %v11700_v7, %v11480_v15  ;;  %v12067_v35 = vrot.slane %v2735_v57, %v11232_v26 }
 0x14a   : > { %v12025_v55 = vpop.f32.mrb[45].mxu1  ;;  %v10581_v39 = vpop.eup %10580  ;;  %10592 = vtanh.f32 %v3037_v41  ;;  %v3287_v23 = vmul.f32 %v10579_v24, %v11591_v22  ;;  %v3038_v41 = vadd.f32 %v12010_v19, %v12048_v51  ;;  %v12086_v51 = vadd.f32 %v11715_v25, %v11540_v63 }
 0x14b   : > { %v12027_v62 = vpop.f32.mrb[48].mxu0  ;;  %v12035_v48 = vpop.f32.mrb[46].mxu1  ;;  %3480 = vadd.xlane.f32.xlu0 %v3479_v3  ;;  %18297 = vst [vmem:[#allocation87_spill] sm:$0xff] %v12060_v21  ;;  %10594 = vtanh.f32 %v3032_v16  ;;  %v3041_v57 = vadd.f32 %v12067_v35, %v12060_v21  ;;  %v12103_v25 = vadd.f32 %v11717_v34, %v11535_v59  ;;  %v12115_v34 = vadd.f32 %v11744_v61, %v11480_v15 }
 0x14c   : > { %v12037_v54 = vpop.f32.mrb[49].mxu0  ;;  %v12040_v18 = vpop.f32.mrb[47].mxu1  ;;  %v3473_v3 = vsel %vm413_vm0, %v3287_v23, 0.0  ;;  %10596 = vtanh.f32 %v3035_v1  ;;  %18300 = vst [vmem:[#allocation90_spill] sm:$0xff] %v12086_v51 }
 0x14d   : > { %18292 = vst [vmem:[#allocation82_spill] sm:$0xff] %v12037_v54  ;;  %18293 = vst [vmem:[#allocation83_spill] sm:$0xff] %v12040_v18  ;;  %v12042_v53 = vpop.f32.mrb[50].mxu0  ;;  %v10583_v54 = vpop.eup %10582  ;;  %10598 = vtanh.f32 %v3038_v41 }
 0x14e   : > { %18294 = vst [vmem:[#allocation84_spill] sm:$0xff] %v12042_v53  ;;  %v12051_v20 = vpop.f32.mrb[51].mxu0  ;;  %v3488_v53 = vsel %vm413_vm0, %v3292_v28, 0.0  ;;  %v12063_v40 = vpop.permute.xlu0 %3821  ;;  %v3293_v7 = vmul.f32 %v10583_v54, %v11591_v22  ;;  %18303 = vst [vmem:[#allocation93_spill] sm:$0xff] %v12103_v25  ;;  %10600 = vtanh.f32 %v3041_v57  ;;  %v3042_v57 = vadd.f32 %v12067_v35, %v12103_v25 }
 0x14f   : > { %18296 = vst [vmem:[#allocation86_spill] sm:$0xff] %v12051_v20  ;;  %3489 = vadd.xlane.f32.xlu1 %v3488_v53  ;;  %18298 = vst [vmem:[#allocation88_spill] sm:$0xff] %v12063_v40  ;;  %v3290_v20 = vmul.f32 %v10581_v39, %v11591_v22  ;;  %v10585_v18 = vpop.eup %10584  ;;  %v12071_v28 = vpop.permute.xlu1 %3825  ;;  %3474 = vadd.xlane.f32.xlu0 %v3473_v3  ;;  %v12140_v25 = vadd.f32 %v11722_v49, %v11540_v63 }
 0x150   : > { %18299 = vst [vmem:[#allocation89_spill] sm:$0xff] %v12071_v28  ;;  %v10587_v16 = vpop.eup %10586  ;;  %v3296_v3 = vmul.f32 %v10585_v18, %v11591_v22  ;;  %v3036_v18 = vadd.f32 %v12010_v19, %v12086_v51  ;;  %18305 = vst [vmem:[#allocation95_spill] sm:$0xff] %v12115_v34 }
 0x151   : > { %v12075_v53 = vpop.f32.mrb[48].mxu1  ;;  %v3482_v24 = vsel %vm413_vm0, %v3290_v20, 0.0  ;;  %v12094_v20 = vadd.f32 %v11709_v42, %v11497_v32  ;;  %18309 = vst [vmem:[#allocation99_spill] sm:$0xff] %v12140_v25 }
 0x152   : > { %v12078_v39 = vpop.f32.mrb[49].mxu1  ;;  %v10589_v21 = vpop.eup %10588  ;;  %v3500_v42 = vsel %vm413_vm0, %v3296_v3, 0.0  ;;  %10602 = vtanh.f32 %v3036_v18 }
 0x153   : > { %v12080_v14 = vpop.f32.mrb[52].mxu0  ;;  %3483 = vadd.xlane.f32.xlu1 %v3482_v24  ;;  %v12088_v54 = vpop.f32.mrb[50].mxu1  ;;  %18301 = vst [vmem:[#allocation91_spill] sm:$0xff] %v12094_v20  ;;  %v3491_v24 = vsel %vm413_vm0, %v3293_v7, 0.0  ;;  %v3039_v41 = vadd.f32 %v12067_v35, %v12094_v20  ;;  %v3291_v7 = vmul.f32 %v10589_v21, %v11591_v22 }
 0x154   : > { %v12090_v23 = vpop.f32.mrb[53].mxu0  ;;  %v12097_v1 = vpop.f32.mrb[51].mxu1  ;;  %3492 = vadd.xlane.f32.xlu0 %v3491_v24  ;;  %v3294_v24 = vmul.f32 %v10587_v16, %v11591_v22 }
 0x155   : > { %v12099_v11 = vpop.f32.mrb[54].mxu0  ;;  %v10591_v28 = vpop.eup %10590  ;;  %v3485_v61 = vsel %vm413_vm0, %v3291_v7, 0.0  ;;  %10604 = vtanh.f32 %v3039_v41 }
 0x156   : > { %18302 = vst [vmem:[#allocation92_spill] sm:$0xff] %v12099_v11  ;;  %v12106_v40 = vpop.f32.mrb[55].mxu0  ;;  %v12117_v11 = vpop.permute.xlu0 %3829  ;;  %v3494_v20 = vsel %vm413_vm0, %v3294_v24, 0.0  ;;  %v3297_v21 = vmul.f32 %v10591_v28, %v11591_v22  ;;  %v12150_v24 = vadd.f32 %v11753_v56, %v11497_v32  ;;  %10606 = vtanh.f32 %v3042_v57 }
 0x157   : > { %18304 = vst [vmem:[#allocation94_spill] sm:$0xff] %v12106_v40  ;;  %3501 = vadd.xlane.f32.xlu1 %v3500_v42  ;;  %18306 = vst [vmem:[#allocation96_spill] sm:$0xff] %v12117_v11  ;;  %v10593_v3 = vpop.eup %10592  ;;  %v12123_v40 = vpop.permute.xlu1 %3833  ;;  %v12129_v42 = vrot.slane %v11469_v0, %v11232_v26 }
 0x158   : > { %18307 = vst [vmem:[#allocation97_spill] sm:$0xff] %v12123_v40  ;;  %3486 = vadd.xlane.f32.xlu0 %v3485_v61  ;;  %v10595_v7 = vpop.eup %10594  ;;  %18311 = vst [vmem:[#allocation101_spill] sm:$0xff] %v12150_v24  ;;  %v3300_v18 = vmul.f32 %v10593_v3, %v11591_v22  ;;  %v12159_v61 = vadd.f32 %v11762_v46, %v11535_v59  ;;  %v3040_v3 = vadd.f32 %v12067_v35, %v12140_v25 }
 0x159   : > { %v12125_v19 = vpop.f32.mrb[52].mxu1  ;;  %v3045_v28 = vadd.f32 %v12129_v42, %v12115_v34  ;;  %v3503_v34 = vsel %vm413_vm0, %v3297_v21, 0.0  ;;  %v3043_v46 = vadd.f32 %v12129_v42, %v12150_v24  ;;  %v3295_v21 = vmul.f32 %v10595_v7, %v11591_v22 }
 0x15a   : > { %v12134_v51 = vpop.f32.mrb[53].mxu1  ;;  %18313 = vst [vmem:[#allocation103_spill] sm:$0xff] %v12159_v61  ;;  %v12173_v57 = vpop.permute.xlu0 %3840  ;;  %v3046_v35 = vadd.f32 %v12129_v42, %v12159_v61 }
 0x15b   : > { %v12136_v16 = vpop.f32.mrb[56].mxu0  ;;  %3495 = vadd.xlane.f32.xlu1 %v3494_v20  ;;  %v12142_v11 = vpop.f32.mrb[54].mxu1  ;;  %10608 = vtanh.f32 %v3045_v28  ;;  %18316 = vst [vmem:[#allocation106_spill] sm:$0xff] %v12173_v57 }
 0x15c   : > { %18308 = vst [vmem:[#allocation98_spill] sm:$0xff] %v12136_v16  ;;  %v12144_v40 = vpop.f32.mrb[57].mxu0  ;;  %v12153_v16 = vpop.f32.mrb[55].mxu1  ;;  %3504 = vadd.xlane.f32.xlu0 %v3503_v34  ;;  %v3497_v34 = vsel %vm413_vm0, %v3295_v21, 0.0  ;;  %10610 = vtanh.f32 %v3040_v3  ;;  %v12202_v21 = vadd.f32 %v11769_v38, %v11540_v63  ;;  %v12219_v38 = vadd.f32 %v11771_v37, %v11535_v59 }
 0x15d   : > { %18310 = vst [vmem:[#allocation100_spill] sm:$0xff] %v12144_v40  ;;  %18312 = vst [vmem:[#allocation102_spill] sm:$0xff] %v12153_v16  ;;  %v12155_v49 = vpop.f32.mrb[58].mxu0  ;;  %v10597_v20 = vpop.eup %10596  ;;  %v3512_v40 = vsel %vm413_vm0, %v3300_v18, 0.0  ;;  %v12169_v16 = vadd.f32 %v11755_v9, %v11480_v15  ;;  %10612 = vtanh.f32 %v3043_v46  ;;  %v12213_v46 = vadd.f32 %v11764_v47, %v11497_v32 }
 0x15e   : > { %v12161_v41 = vpop.f32.mrb[59].mxu0  ;;  %v10599_v56 = vpop.eup %10598  ;;  %v3298_v18 = vmul.f32 %v10597_v20, %v11591_v22  ;;  %18320 = vst [vmem:[#allocation110_spill] sm:$0xff] %v12202_v21  ;;  %10614 = vtanh.f32 %v3046_v35  ;;  %18325 = vst [vmem:[#allocation115_spill] sm:$0xff] %v12219_v38  ;;  %v3044_v47 = vadd.f32 %v12129_v42, %v12202_v21  ;;  %v12244_v42 = vadd.f32 %v11776_v29, %v11540_v63 }
 0x15f   : > { %18314 = vst [vmem:[#allocation104_spill] sm:$0xff] %v12161_v41  ;;  %18315 = vst [vmem:[#allocation105_spill] sm:$0xff] %v12169_v16  ;;  %3513 = vadd.xlane.f32.xlu1 %v3512_v40  ;;  %v10601_v41 = vpop.eup %10600  ;;  %v12179_v25 = vpop.permute.xlu1 %3844  ;;  %v12185_v40 = vrot.slane %v11475_v2, %v11232_v26  ;;  %v3301_v7 = vmul.f32 %v10599_v56, %v11591_v22  ;;  %v12255_v21 = vadd.f32 %v11808_v4, %v11497_v32 }
 0x160   : > { %18317 = vst [vmem:[#allocation107_spill] sm:$0xff] %v12179_v25  ;;  %v3506_v28 = vsel %vm413_vm0, %v3298_v18, 0.0  ;;  %3498 = vadd.xlane.f32.xlu0 %v3497_v34  ;;  %v3304_v56 = vmul.f32 %v10601_v41, %v11591_v22  ;;  %v10603_v3 = vpop.eup %10602  ;;  %v2734_v34 = vcombine.high %v11469_v0, %v11469_v0  ;;  %18323 = vst [vmem:[#allocation113_spill] sm:$0xff] %v12213_v46  ;;  %v12229_v35 = vpop.permute.xlu0 %3848 }
 0x161   : > { %v12181_v9 = vpop.f32.mrb[56].mxu1  ;;  %v3049_v25 = vadd.f32 %v12185_v40, %v12169_v16  ;;  %v10605_v16 = vpop.eup %10604  ;;  %v3515_v41 = vsel %vm413_vm0, %v3301_v7, 0.0  ;;  %v12225_v0 = vadd.f32 %v11799_v17, %v11480_v15  ;;  %18327 = vst [vmem:[#allocation117_spill] sm:$0xff] %v12229_v35  ;;  %v3299_v37 = vmul.f32 %v10603_v3, %v11591_v22  ;;  %18329 = vst [vmem:[#allocation119_spill] sm:$0xff] %v12244_v42 }
 0x162   : > { %v12190_v24 = vpop.f32.mrb[57].mxu1  ;;  %v3047_v7 = vadd.f32 %v12185_v40, %v12213_v46  ;;  %v3302_v17 = vmul.f32 %v10605_v16, %v11591_v22  ;;  %18330 = vst [vmem:[#allocation120_spill] sm:$0xff] %v12255_v21 }
 0x163   : > { %v12192_v20 = vpop.f32.mrb[60].mxu0  ;;  %3507 = vadd.xlane.f32.xlu1 %v3506_v28  ;;  %v12194_v61 = vpop.f32.mrb[58].mxu1  ;;  %18326 = vst [vmem:[#allocation116_spill] sm:$0xff] %v12225_v0  ;;  %10616 = vtanh.f32 %v3049_v25  ;;  %v3050_v25 = vadd.f32 %v12185_v40, %v12219_v38  ;;  %v3509_v3 = vsel %vm413_vm0, %v3299_v37, 0.0 }
 0x164   : > { %18318 = vst [vmem:[#allocation108_spill] sm:$0xff] %v12192_v20  ;;  %v12196_v57 = vpop.f32.mrb[61].mxu0  ;;  %v12205_v18 = vpop.f32.mrb[59].mxu1  ;;  %3516 = vadd.xlane.f32.xlu0 %v3515_v41  ;;  %v3518_v38 = vsel %vm413_vm0, %v3302_v17, 0.0  ;;  %10618 = vtanh.f32 %v3044_v47 }
 0x165   : > { %18319 = vst [vmem:[#allocation109_spill] sm:$0xff] %v12196_v57  ;;  %18321 = vst [vmem:[#allocation111_spill] sm:$0xff] %v12205_v18  ;;  %v12207_v20 = vpop.f32.mrb[62].mxu0  ;;  %v10607_v18 = vpop.eup %10606  ;;  %10620 = vtanh.f32 %v3047_v7  ;;  %v12283_v7 = vadd.f32 %v11810_v13, %v11480_v15 }
 0x166   : > { %18322 = vst [vmem:[#allocation112_spill] sm:$0xff] %v12207_v20  ;;  %v12215_v28 = vpop.f32.mrb[63].mxu0  ;;  %v3524_v20 = vsel %vm413_vm0, %v3304_v56, 0.0  ;;  %v2894_v56 = vrot.slane %v2734_v34, %v11232_v26  ;;  %v3305_v41 = vmul.f32 %v10607_v18, %v11591_v22  ;;  %10622 = vtanh.f32 %v3050_v25  ;;  %v12277_v47 = vpop.permute.xlu0 %3859 }
 0x167   : > { %18324 = vst [vmem:[#allocation114_spill] sm:$0xff] %v12215_v28  ;;  %3525 = vadd.xlane.f32.xlu1 %v3524_v20  ;;  %v12235_v28 = vpop.permute.xlu1 %3852  ;;  %v10609_v20 = vpop.eup %10608  ;;  %18335 = vst [vmem:[#allocation125_spill] sm:$0xff] %v12277_v47 }
 0x168   : > { %18328 = vst [vmem:[#allocation118_spill] sm:$0xff] %v12235_v28  ;;  %v3053_v16 = vadd.f32 %v2894_v56, %v12225_v0  ;;  %3510 = vadd.xlane.f32.xlu0 %v3509_v3  ;;  %v10611_v28 = vpop.eup %10610  ;;  %v2736_v0 = vcombine.high %v11475_v2, %v11475_v2  ;;  %v3308_v4 = vmul.f32 %v10609_v20, %v11591_v22  ;;  %18336 = vst [vmem:[#allocation126_spill] sm:$0xff] %v12283_v7 }
 0x169   : > { %v12238_v57 = vpop.f32.mrb[60].mxu1  ;;  %v10613_v17 = vpop.eup %10612  ;;  %v3051_v2 = vadd.f32 %v2894_v56, %v12255_v21 }
 0x16a   : > { %v12248_v46 = vpop.f32.mrb[61].mxu1  ;;  %10624 = vtanh.f32 %v3053_v16  ;;  %v3536_v20 = vsel %vm413_vm0, %v3308_v4, 0.0  ;;  %v2898_v25 = vrot.slane %v2736_v0, %v11232_v26  ;;  %v3306_v16 = vmul.f32 %v10613_v17, %v11591_v22  ;;  %v12304_v0 = vpop.permute.xlu0 %3867 }
 0x16b   : > { %v12250_v34 = vpop.f32.mrb[64].mxu0  ;;  %v12258_v35 = vpop.f32.mrb[62].mxu1  ;;  %3519 = vadd.xlane.f32.xlu1 %v3518_v38  ;;  %v12275_v38 = vadd.f32 %v11817_v30, %v11535_v59  ;;  %v3303_v30 = vmul.f32 %v10611_v28, %v11591_v22  ;;  %v12301_v28 = vadd.f32 %v11819_v52, %v11497_v32  ;;  %18339 = vst [vmem:[#allocation129_spill] sm:$0xff] %v12304_v0 }
 0x16c   : > { %v12260_v29 = vpop.f32.mrb[65].mxu0  ;;  %v12262_v18 = vpop.f32.mrb[63].mxu1 }
 0x16d   : > { %18331 = vst [vmem:[#allocation121_spill] sm:$0xff] %v12260_v29  ;;  %18332 = vst [vmem:[#allocation122_spill] sm:$0xff] %v12262_v18  ;;  %v12264_v37 = vpop.f32.mrb[66].mxu0  ;;  %v3048_v29 = vadd.f32 %v12185_v40, %v12244_v42  ;;  %v10615_v18 = vpop.eup %10614  ;;  %v3054_v13 = vadd.f32 %v2894_v56, %v12275_v38 }
 0x16e   : > { %18333 = vst [vmem:[#allocation123_spill] sm:$0xff] %v12264_v37  ;;  %v12269_v3 = vpop.f32.mrb[67].mxu0  ;;  %18334 = vst [vmem:[#allocation124_spill] sm:$0xff] %v12275_v38  ;;  %v3527_v37 = vsel %vm413_vm0, %v3305_v41, 0.0  ;;  %v12286_v40 = vpop.permute.xlu1 %3863  ;;  %v12292_v41 = vadd.f32 %v11824_v27, %v11540_v63  ;;  %v3309_v4 = vmul.f32 %v10615_v18, %v11591_v22  ;;  %v3530_v27 = vsel %vm413_vm0, %v3306_v16, 0.0 }
 0x16f   : > { %3528 = vadd.xlane.f32.xlu0 %v3527_v37  ;;  %3537 = vadd.xlane.f32.xlu1 %v3536_v20  ;;  %v10617_v21 = vpop.eup %10616  ;;  %10626 = vtanh.f32 %v3048_v29  ;;  %v3521_v37 = vsel %vm413_vm0, %v3303_v30, 0.0  ;;  %v3057_v20 = vadd.f32 %v2898_v25, %v12283_v7  ;;  %18338 = vst [vmem:[#allocation128_spill] sm:$0xff] %v12301_v28  ;;  %v18340_v29 = vld [vmem:[#allocation47_spill] sm:$0xff]  ;;  %v3055_v16 = vadd.f32 %v2898_v25, %v12301_v28 }
 0x170   : > { %18337 = vst [vmem:[#allocation127_spill] sm:$0xff] %v12292_v41  ;;  %10628 = vtanh.f32 %v3051_v2  ;;  %v12308_v17 = vadd.f32 %v18340_v29, %v11535_v59  ;;  %v3312_v30 = vmul.f32 %v10617_v21, %v11591_v22  ;;  %v10619_v18 = vpop.eup %10618  ;;  %v3052_v2 = vadd.f32 %v2894_v56, %v12292_v41  ;;  %v18343_v56 = vld [vmem:[#allocation13_spill] sm:$0xff] }
 0x171   : > { %10630 = vtanh.f32 %v3054_v13  ;;  %v3539_v52 = vsel %vm413_vm0, %v3309_v4, 0.0  ;;  %v2902_v13 = vrot.slane %v18343_v56, %v11232_v26  ;;  %v12327_v4 = vld [vmem:[%s17722_s7] ss:$0 sm:$0xff] }
 0x172   : > { %18341 = vst [vmem:[#allocation47_spill] sm:$0xff] %v12308_v17  ;;  %v12312_v7 = vpop.permute.xlu1 %3871  ;;  %10632 = vtanh.f32 %v3057_v20  ;;  %v3548_v29 = vsel %vm413_vm0, %v3312_v30, 0.0  ;;  %v3058_v38 = vadd.f32 %v2898_v25, %v12308_v17  ;;  %v3307_v20 = vmul.f32 %v12327_v4, %v10619_v18 }
 0x173   : > { %3522 = vadd.xlane.f32.xlu0 %v3521_v37  ;;  %3531 = vadd.xlane.f32.xlu1 %v3530_v27  ;;  %v10621_v37 = vpop.eup %10620  ;;  %v12318_v27 = vadd.f32 %v11850_v36, %v11480_v15  ;;  %10634 = vtanh.f32 %v3052_v2  ;;  %v12332_v36 = vadd.f32 %v11830_v58, %v11540_v63  ;;  %v12336_v30 = vadd.f32 %v11858_v6, %v11497_v32 }
 0x174   : > { %v10623_v22 = vpop.eup %10622  ;;  %10636 = vtanh.f32 %v3055_v16  ;;  %v3533_v17 = vsel %vm413_vm0, %v3307_v20, 0.0  ;;  %v12351_v16 = vadd.f32 %v11860_v33, %v11480_v15 }
 0x175   : > { %18342 = vst [vmem:[#allocation130_spill] sm:$0xff] %v12318_v27  ;;  %v10625_v21 = vpop.eup %10624  ;;  %18344 = vst [vmem:[#allocation13_spill] sm:$0xff] %v12332_v36  ;;  %v3061_v28 = vadd.f32 %v2902_v13, %v12318_v27  ;;  %v3313_v18 = vmul.f32 %v12327_v4, %v10623_v22  ;;  %10638 = vtanh.f32 %v3058_v38  ;;  %v12355_v22 = vadd.f32 %v11867_v10, %v11535_v59  ;;  %v18350_v27 = vld [vmem:[#allocation18_spill] sm:$0xff] }
 0x176   : > { %18345 = vst [vmem:[#allocation131_spill] sm:$0xff] %v12336_v30  ;;  %v12344_v41 = vpop.permute.xlu1 %3882  ;;  %v3316_v6 = vmul.f32 %v12327_v4, %v10625_v21  ;;  %18347 = vst [vmem:[#allocation133_spill] sm:$0xff] %v12351_v16  ;;  %v2906_v10 = vrot.slane %v18350_v27, %v11232_v26 }
 0x177   : > { %3540 = vadd.xlane.f32.xlu0 %v3539_v52  ;;  %3549 = vadd.xlane.f32.xlu1 %v3548_v29  ;;  %v12338_v52 = vpop.permute.xlu0 %3878  ;;  %v3310_v29 = vmul.f32 %v12327_v4, %v10621_v37  ;;  %v3056_v37 = vadd.f32 %v2898_v25, %v12332_v36  ;;  %18348 = vst [vmem:[#allocation134_spill] sm:$0xff] %v12355_v22  ;;  %10640 = vtanh.f32 %v3061_v28  ;;  %v3551_v20 = vsel %vm413_vm0, %v3313_v18, 0.0  ;;  %v18351_v18 = vld [vmem:[#allocation52_spill] sm:$0xff] }
 0x178   : > { %18346 = vst [vmem:[#allocation132_spill] sm:$0xff] %v12338_v52  ;;  %v3560_v38 = vsel %vm413_vm0, %v3316_v6, 0.0  ;;  %v3062_v28 = vadd.f32 %v2902_v13, %v12355_v22 }
 0x179   : > { %v10627_v2 = vpop.eup %10626  ;;  %v3542_v58 = vsel %vm413_vm0, %v3310_v29, 0.0  ;;  %10642 = vtanh.f32 %v3056_v37 }
 0x17a   : > { %v10629_v42 = vpop.eup %10628  ;;  %v3311_v21 = vmul.f32 %v12327_v4, %v10627_v2  ;;  %v18353_v2 = vld [vmem:[#allocation54_spill] sm:$0xff] }
 0x17b   : > { %3534 = vadd.xlane.f32.xlu0 %v3533_v17  ;;  %3543 = vadd.xlane.f32.xlu1 %v3542_v58  ;;  %v3059_v17 = vadd.f32 %v2902_v13, %v12336_v30  ;;  %v10631_v29 = vpop.eup %10630  ;;  %v12360_v58 = vpop.permute.xlu0 %3886  ;;  %v3314_v33 = vmul.f32 %v12327_v4, %v10629_v42  ;;  %v12369_v30 = vadd.f32 %v18351_v18, %v11497_v32 }
 0x17c   : > { %18349 = vst [vmem:[#allocation135_spill] sm:$0xff] %v12360_v58  ;;  %v10633_v25 = vpop.eup %10632  ;;  %v12373_v36 = vadd.f32 %v18353_v2, %v11540_v63  ;;  %v3065_v42 = vadd.f32 %v2906_v10, %v12351_v16  ;;  %v3545_v6 = vsel %vm413_vm0, %v3311_v21, 0.0  ;;  %v2782_v2 = vcombine.high %v18343_v56, %v18343_v56  ;;  %v18356_v21 = vld [vmem:[#allocation55_spill] sm:$0xff] }
 0x17d   : > { %18352 = vst [vmem:[#allocation18_spill] sm:$0xff] %v12369_v30  ;;  %10644 = vtanh.f32 %v3059_v17  ;;  %v10635_v37 = vpop.eup %10634  ;;  %v3554_v22 = vsel %vm413_vm0, %v3314_v33, 0.0  ;;  %v3320_v18 = vmul.f32 %v12327_v4, %v10633_v25  ;;  %v3063_v17 = vadd.f32 %v2906_v10, %v12369_v30 }
 0x17e   : > { %18354 = vst [vmem:[#allocation52_spill] sm:$0xff] %v12373_v36  ;;  %v10637_v58 = vpop.eup %10636  ;;  %10646 = vtanh.f32 %v3062_v28  ;;  %v3060_v16 = vadd.f32 %v2902_v13, %v12373_v36  ;;  %v12388_v52 = vadd.f32 %v18356_v21, %v11535_v59  ;;  %v12394_v33 = vadd.f32 %v11906_v50, %v11480_v15 }
 0x17f   : > { %3552 = vadd.xlane.f32.xlu0 %v3551_v20  ;;  %3561 = vadd.xlane.f32.xlu1 %v3560_v38  ;;  %v12375_v20 = vpop.permute.xlu1 %3890  ;;  %v3317_v38 = vmul.f32 %v12327_v4, %v10631_v29  ;;  %v12390_v29 = vpop.permute.xlu0 %3897  ;;  %10648 = vtanh.f32 %v3065_v42  ;;  %v3315_v56 = vmul.f32 %v12327_v4, %v10635_v37  ;;  %v3572_v13 = vsel %vm413_vm0, %v3320_v18, 0.0 }
 0x180   : > { %18355 = vst [vmem:[#allocation54_spill] sm:$0xff] %v12375_v20  ;;  %18357 = vst [vmem:[#allocation55_spill] sm:$0xff] %v12388_v52  ;;  %v2910_v30 = vrot.slane %v2782_v2, %v11232_v26  ;;  %10650 = vtanh.f32 %v3060_v16  ;;  %v3066_v50 = vadd.f32 %v2906_v10, %v12388_v52  ;;  %v12406_v42 = vadd.f32 %v11881_v43, %v11540_v63 }
 0x181   : > { %18358 = vst [vmem:[#allocation136_spill] sm:$0xff] %v12390_v29  ;;  %18359 = vst [vmem:[#allocation137_spill] sm:$0xff] %v12394_v33  ;;  %v3563_v25 = vsel %vm413_vm0, %v3317_v38, 0.0  ;;  %v18362_v38 = vld [vmem:[#allocation60_spill] sm:$0xff]  ;;  %10652 = vtanh.f32 %v3063_v17 }
 0x182   : > { %18361 = vst [vmem:[#allocation139_spill] sm:$0xff] %v12406_v42  ;;  %v12410_v37 = vadd.f32 %v18362_v38, %v11497_v32  ;;  %v3069_v18 = vadd.f32 %v2910_v30, %v12394_v33  ;;  %v2784_v38 = vcombine.high %v18350_v27, %v18350_v27  ;;  %10654 = vtanh.f32 %v3066_v50 }
 0x183   : > { %3546 = vadd.xlane.f32.xlu0 %v3545_v6  ;;  %3555 = vadd.xlane.f32.xlu1 %v3554_v22  ;;  %v10639_v22 = vpop.eup %10638  ;;  %v12398_v28 = vpop.permute.xlu1 %3901  ;;  %v3318_v6 = vmul.f32 %v12327_v4, %v10637_v58  ;;  %v3557_v58 = vsel %vm413_vm0, %v3315_v56, 0.0  ;;  %v3064_v17 = vadd.f32 %v2906_v10, %v12406_v42  ;;  %v18365_v56 = vld [vmem:[#allocation61_spill] sm:$0xff] }
 0x184   : > { %18360 = vst [vmem:[#allocation138_spill] sm:$0xff] %v12398_v28  ;;  %v10641_v21 = vpop.eup %10640  ;;  %18363 = vst [vmem:[#allocation60_spill] sm:$0xff] %v12410_v37  ;;  %v12424_v33 = vadd.f32 %v18365_v56, %v11480_v15  ;;  %10656 = vtanh.f32 %v3069_v18  ;;  %v2914_v42 = vrot.slane %v2784_v38, %v11232_v26  ;;  %v18369_v18 = vld [vmem:[#allocation63_spill] sm:$0xff] }
 0x185   : > { %v10643_v2 = vpop.eup %10642  ;;  %v3566_v16 = vsel %vm413_vm0, %v3318_v6, 0.0  ;;  %v3324_v43 = vmul.f32 %v12327_v4, %v10641_v21  ;;  %v3067_v6 = vadd.f32 %v2910_v30, %v12410_v37  ;;  %10658 = vtanh.f32 %v3064_v17 }
 0x186   : > { %18366 = vst [vmem:[#allocation61_spill] sm:$0xff] %v12424_v33  ;;  %v3319_v27 = vmul.f32 %v12327_v4, %v10643_v2  ;;  %v12441_v37 = vadd.f32 %v18369_v18, %v11497_v32 }
 0x187   : > { %3564 = vadd.xlane.f32.xlu0 %v3563_v25  ;;  %3573 = vadd.xlane.f32.xlu1 %v3572_v13  ;;  %v3321_v25 = vmul.f32 %v12327_v4, %v10639_v22  ;;  %v12415_v13 = vpop.permute.xlu0 %3905  ;;  %v10645_v52 = vpop.eup %10644  ;;  %v12428_v22 = vadd.f32 %v11923_v60, %v11535_v59  ;;  %v3584_v10 = vsel %vm413_vm0, %v3324_v43, 0.0  ;;  %10660 = vtanh.f32 %v3067_v6 }
 0x188   : > { %18364 = vst [vmem:[#allocation140_spill] sm:$0xff] %v12415_v13  ;;  %v10647_v50 = vpop.eup %10646  ;;  %18370 = vst [vmem:[#allocation63_spill] sm:$0xff] %v12441_v37  ;;  %v3569_v43 = vsel %vm413_vm0, %v3319_v27, 0.0 }
 0x189   : > { %18367 = vst [vmem:[#allocation141_spill] sm:$0xff] %v12428_v22  ;;  %v3575_v21 = vsel %vm413_vm0, %v3321_v25, 0.0  ;;  %v10649_v56 = vpop.eup %10648  ;;  %v3070_v60 = vadd.f32 %v2910_v30, %v12428_v22  ;;  %v12445_v25 = vadd.f32 %v11932_v8, %v11540_v63  ;;  %v3325_v38 = vmul.f32 %v12327_v4, %v10647_v50 }
 0x18a   : > { %v10651_v17 = vpop.eup %10650  ;;  %v3328_v18 = vmul.f32 %v12327_v4, %v10649_v56  ;;  %v3071_v8 = vadd.f32 %v2914_v42, %v12441_v37  ;;  %v12464_v50 = vadd.f32 %v11962_v45, %v11480_v15 }
 0x18b   : > { %3558 = vadd.xlane.f32.xlu0 %v3557_v58  ;;  %3567 = vadd.xlane.f32.xlu1 %v3566_v16  ;;  %v12430_v58 = vpop.permute.xlu1 %3909  ;;  %v3322_v16 = vmul.f32 %v12327_v4, %v10645_v52  ;;  %18371 = vst [vmem:[#allocation143_spill] sm:$0xff] %v12445_v25  ;;  %v12447_v2 = vpop.permute.xlu0 %3916  ;;  %v3073_v52 = vadd.f32 %v2914_v42, %v12424_v33  ;;  %10662 = vtanh.f32 %v3070_v60  ;;  %v18374_v33 = vld [vmem:[#allocation65_spill] sm:$0xff] }
 0x18c   : > { %18368 = vst [vmem:[#allocation142_spill] sm:$0xff] %v12430_v58  ;;  %18372 = vst [vmem:[#allocation144_spill] sm:$0xff] %v12447_v2  ;;  %v10653_v22 = vpop.eup %10652  ;;  %v3068_v6 = vadd.f32 %v2910_v30, %v12445_v25  ;;  %v12460_v27 = vadd.f32 %v18374_v33, %v11535_v59  ;;  %v3323_v56 = vmul.f32 %v12327_v4, %v10651_v17  ;;  %v3596_v60 = vsel %vm413_vm0, %v3328_v18, 0.0  ;;  %v18377_v33 = vld [vmem:[#allocation17_spill] sm:$0xff] }
 0x18d   : > { %10664 = vtanh.f32 %v3073_v52  ;;  %18376 = vst [vmem:[#allocation146_spill] sm:$0xff] %v12464_v50  ;;  %v3326_v30 = vmul.f32 %v12327_v4, %v10653_v22  ;;  %v2918_v52 = vrot.slane %v18377_v33, %v11232_v26  ;;  %v12481_v17 = vadd.f32 %v11968_v44, %v11497_v32 }
 0x18e   : > { %18375 = vst [vmem:[#allocation65_spill] sm:$0xff] %v12460_v27  ;;  %10666 = vtanh.f32 %v3068_v6  ;;  %v3074_v45 = vadd.f32 %v2914_v42, %v12460_v27  ;;  %v3581_v18 = vsel %vm413_vm0, %v3323_v56, 0.0  ;;  %v12496_v56 = vadd.f32 %v11979_v31, %v11535_v59 }
 0x18f   : > { %3576 = vadd.xlane.f32.xlu0 %v3575_v21  ;;  %3585 = vadd.xlane.f32.xlu1 %v3584_v10  ;;  %v12452_v21 = vpop.permute.xlu1 %3920  ;;  %v3578_v10 = vsel %vm413_vm0, %v3322_v16, 0.0  ;;  %v3587_v16 = vsel %vm413_vm0, %v3325_v38, 0.0  ;;  %v18378_v38 = vld [vmem:[#allocation66_spill] sm:$0xff]  ;;  %10668 = vtanh.f32 %v3071_v8  ;;  %v3077_v22 = vadd.f32 %v2918_v52, %v12464_v50 }
 0x190   : > { %18373 = vst [vmem:[#allocation145_spill] sm:$0xff] %v12452_v21  ;;  %v12477_v25 = vadd.f32 %v18378_v38, %v11540_v63  ;;  %18380 = vst [vmem:[#allocation66_spill] sm:$0xff] %v12481_v17  ;;  %v3590_v27 = vsel %vm413_vm0, %v3326_v30, 0.0  ;;  %10670 = vtanh.f32 %v3074_v45  ;;  %v3075_v8 = vadd.f32 %v2918_v52, %v12481_v17  ;;  %v18383_v17 = vld [vmem:[#allocation20_spill] sm:$0xff] }
 0x191   : > { %18381 = vst [vmem:[#allocation147_spill] sm:$0xff] %v12496_v56  ;;  %10672 = vtanh.f32 %v3077_v22  ;;  %v12502_v30 = vadd.f32 %v11970_v5, %v11480_v15  ;;  %v2922_v22 = vrot.slane %v18383_v17, %v11232_v26 }
 0x192   : > { %18379 = vst [vmem:[#allocation17_spill] sm:$0xff] %v12477_v25  ;;  %v3072_v44 = vadd.f32 %v2914_v42, %v12477_v25  ;;  %v18384_v25 = vld [vmem:[#allocation72_spill] sm:$0xff] }
 0x193   : > { %3570 = vadd.xlane.f32.xlu0 %v3569_v43  ;;  %3579 = vadd.xlane.f32.xlu1 %v3578_v10  ;;  %v10655_v43 = vpop.eup %10654  ;;  %v12468_v10 = vpop.permute.xlu0 %3924  ;;  %18382 = vst [vmem:[#allocation148_spill] sm:$0xff] %v12502_v30  ;;  %v12514_v5 = vadd.f32 %v18384_v25, %v11497_v32 }
 0x194   : > { %v10657_v37 = vpop.eup %10656  ;;  %10674 = vtanh.f32 %v3072_v44 }
 0x195   : > { %v10659_v6 = vpop.eup %10658  ;;  %v3332_v38 = vmul.f32 %v12327_v4, %v10657_v37  ;;  %18385 = vst [vmem:[#allocation20_spill] sm:$0xff] %v12514_v5  ;;  %10676 = vtanh.f32 %v3075_v8 }
 0x196   : > { %v10661_v2 = vpop.eup %10660 }
 0x197   : > { %3588 = vadd.xlane.f32.xlu0 %v3587_v16  ;;  %3597 = vadd.xlane.f32.xlu1 %v3596_v60  ;;  %v12483_v16 = vpop.permute.xlu1 %3928  ;;  %v3329_v60 = vmul.f32 %v12327_v4, %v10655_v43  ;;  %v12489_v36 = vpop.xlane.xlu0 %3393  ;;  %v3608_v42 = vsel %vm413_vm0, %v3332_v38, 0.0  ;;  %v3330_v31 = vmul.f32 %v12327_v4, %v10661_v2  ;;  %v3081_v2 = vadd.f32 %v2922_v22, %v12502_v30 }
 0x198   : > { %v10663_v45 = vpop.eup %10662 }
 0x199   : > { %v3599_v37 = vsel %vm413_vm0, %v3329_v60, 0.0  ;;  %v10665_v50 = vpop.eup %10664  ;;  %v3078_v60 = vadd.f32 %v2918_v52, %v12496_v56  ;;  %v3333_v29 = vmul.f32 %v12327_v4, %v10663_v45  ;;  %v3602_v25 = vsel %vm413_vm0, %v3330_v31, 0.0  ;;  %v18388_v45 = vld [vmem:[#allocation74_spill] sm:$0xff] }
 0x19a   : > { %v10667_v21 = vpop.eup %10666  ;;  %v3336_v44 = vmul.f32 %v12327_v4, %v10665_v50  ;;  %v3079_v56 = vadd.f32 %v2922_v22, %v12514_v5  ;;  %v12536_v30 = vadd.f32 %v18388_v45, %v11535_v59  ;;  %v12542_v50 = vadd.f32 %v12018_v12, %v11480_v15 }
 0x19b   : > { %3582 = vadd.xlane.f32.xlu0 %v3581_v18  ;;  %3591 = vadd.xlane.f32.xlu1 %v3590_v27  ;;  %v12498_v43 = vpop.xlane.xlu1 %3399  ;;  %v3327_v27 = vmul.f32 %v12327_v4, %v10659_v6  ;;  %v12507_v18 = vpop.xlane.xlu0 %3387  ;;  %v18386_v6 = vld [vmem:[#allocation73_spill] sm:$0xff]  ;;  %10678 = vtanh.f32 %v3078_v60  ;;  %v3331_v31 = vmul.f32 %v12327_v4, %v10667_v21 }
 0x19c   : > { %18389 = vst [vmem:[#allocation73_spill] sm:$0xff] %v12536_v30  ;;  %10680 = vtanh.f32 %v3081_v2  ;;  %18390 = vst [vmem:[#allocation74_spill] sm:$0xff] %v12542_v50  ;;  %v3620_v60 = vsel %vm413_vm0, %v3336_v44, 0.0  ;;  %v3082_v12 = vadd.f32 %v2922_v22, %v12536_v30  ;;  %v2785_v30 = vcombine.high %v18383_v17, %v18383_v17 }
 0x19d   : > { %v3593_v13 = vsel %vm413_vm0, %v3327_v27, 0.0  ;;  %10682 = vtanh.f32 %v3079_v56  ;;  %v3605_v56 = vsel %vm413_vm0, %v3331_v31, 0.0  ;;  %v12574_v31 = vadd.f32 %v12027_v62, %v11480_v15 }
 0x19f   : > { %3600 = vadd.xlane.f32.xlu0 %v3599_v37  ;;  %3609 = vadd.xlane.f32.xlu1 %v3608_v42  ;;  %v12519_v37 = vadd.f32 %v18386_v6, %v11540_v63  ;;  %v12521_v38 = vpop.xlane.xlu1 %3405  ;;  %v10669_v42 = vpop.eup %10668  ;;  %v2783_v6 = vcombine.high %v18377_v33, %v18377_v33  ;;  %v3611_v33 = vsel %vm413_vm0, %v3333_v29, 0.0  ;;  %v18391_v29 = vld [vmem:[#allocation76_spill] sm:$0xff]  ;;  %18394 = vst [vmem:[#allocation150_spill] sm:$0xff] %v12574_v31 }
 0x1a0   : > { %v12531_v8 = vpop.xlane.xlu0 %3396 }
 0x1a1   : > { %18387 = vst [vmem:[#allocation72_spill] sm:$0xff] %v12519_v37  ;;  %v3076_v27 = vadd.f32 %v2918_v52, %v12519_v37  ;;  %v3334_v52 = vmul.f32 %v12327_v4, %v10669_v42  ;;  %v2926_v45 = vrot.slane %v2783_v6, %v11232_v26  ;;  %v12554_v37 = vadd.f32 %v18391_v29, %v11540_v63 }
 0x1a2   : > { %v12561_v42 = vadd.f32 %v12025_v55, %v11497_v32 }
 0x1a3   : > { %3594 = vadd.xlane.f32.xlu0 %v3593_v13  ;;  %3603 = vadd.xlane.f32.xlu1 %v3602_v25  ;;  %v12538_v13 = vpop.xlane.xlu1 %3390  ;;  %v10671_v25 = vpop.eup %10670  ;;  %10684 = vtanh.f32 %v3076_v27  ;;  %18392 = vst [vmem:[#allocation76_spill] sm:$0xff] %v12554_v37  ;;  %v3085_v44 = vadd.f32 %v2926_v45, %v12542_v50  ;;  %v3614_v27 = vsel %vm413_vm0, %v3334_v52, 0.0  ;;  %v3080_v55 = vadd.f32 %v2922_v22, %v12554_v37 }
 0x1a4   : > { %v10673_v5 = vpop.eup %10672  ;;  %v12549_v2 = vpop.xlane.xlu0 %3408  ;;  %18393 = vst [vmem:[#allocation149_spill] sm:$0xff] %v12561_v42  ;;  %v3337_v6 = vmul.f32 %v12327_v4, %v10671_v25  ;;  %10686 = vtanh.f32 %v3082_v12  ;;  %v12578_v25 = vadd.f32 %v12035_v48, %v11535_v59  ;;  %v2930_v37 = vrot.slane %v2785_v30, %v11232_v26  ;;  %v18396_v48 = vld [vmem:[#allocation82_spill] sm:$0xff] }
 0x1a5   : > { %10688 = vtanh.f32 %v3085_v44  ;;  %v12590_v58 = vadd.f32 %v18396_v48, %v11497_v32 }
 0x1a6   : > { %18395 = vst [vmem:[#allocation151_spill] sm:$0xff] %v12578_v25  ;;  %v3623_v17 = vsel %vm413_vm0, %v3337_v6, 0.0  ;;  %10690 = vtanh.f32 %v3080_v55  ;;  %v3086_v6 = vadd.f32 %v2926_v45, %v12578_v25  ;;  %v3089_v30 = vadd.f32 %v2930_v37, %v12574_v31  ;;  %v18400_v31 = vld [vmem:[#allocation84_spill] sm:$0xff] }
 0x1a7   : > { %3612 = vadd.xlane.f32.xlu0 %v3611_v33  ;;  %3621 = vadd.xlane.f32.xlu1 %v3620_v60  ;;  %v12556_v21 = vpop.xlane.xlu1 %3417  ;;  %v10675_v33 = vpop.eup %10674  ;;  %v3340_v60 = vmul.f32 %v12327_v4, %v10673_v5  ;;  %v3083_v5 = vadd.f32 %v2926_v45, %v12561_v42  ;;  %18397 = vst [vmem:[#allocation82_spill] sm:$0xff] %v12590_v58 }
 0x1a8   : > { %v10677_v29 = vpop.eup %10676  ;;  %v12569_v50 = vpop.xlane.xlu0 %3402  ;;  %v3087_v28 = vadd.f32 %v2930_v37, %v12590_v58  ;;  %v12612_v0 = vadd.f32 %v18400_v31, %v11535_v59  ;;  %v18403_v31 = vld [vmem:[#allocation12_spill] sm:$0xff] }
 0x1a9   : > { %v10679_v12 = vpop.eup %10678  ;;  %v3632_v22 = vsel %vm413_vm0, %v3340_v60, 0.0  ;;  %v3338_v62 = vmul.f32 %v12327_v4, %v10677_v29  ;;  %10692 = vtanh.f32 %v3083_v5  ;;  %v2934_v58 = vrot.slane %v18403_v31, %v11232_v26 }
 0x1aa   : > { %v3341_v48 = vmul.f32 %v12327_v4, %v10679_v12  ;;  %10694 = vtanh.f32 %v3086_v6  ;;  %18401 = vst [vmem:[#allocation84_spill] sm:$0xff] %v12612_v0 }
 0x1ab   : > { %3606 = vadd.xlane.f32.xlu0 %v3605_v56  ;;  %3615 = vadd.xlane.f32.xlu1 %v3614_v27  ;;  %v12580_v52 = vpop.xlane.xlu1 %3411  ;;  %v3335_v56 = vmul.f32 %v12327_v4, %v10675_v33  ;;  %v10681_v27 = vpop.eup %10680  ;;  %v18398_v33 = vld [vmem:[#allocation83_spill] sm:$0xff]  ;;  %v3626_v55 = vsel %vm413_vm0, %v3338_v62, 0.0  ;;  %10696 = vtanh.f32 %v3089_v30 }
 0x1ac   : > { %v12592_v44 = vpop.xlane.xlu0 %3420  ;;  %v10683_v29 = vpop.eup %10682  ;;  %v3344_v25 = vmul.f32 %v12327_v4, %v10681_v27  ;;  %v3635_v12 = vsel %vm413_vm0, %v3341_v48, 0.0  ;;  %10698 = vtanh.f32 %v3087_v28  ;;  %v18404_v48 = vld [vmem:[#allocation86_spill] sm:$0xff] }
 0x1ad   : > { %v3617_v42 = vsel %vm413_vm0, %v3335_v56, 0.0 }
 0x1ae   : > { %v3644_v6 = vsel %vm413_vm0, %v3344_v25, 0.0 }
 0x1af   : > { %3624 = vadd.xlane.f32.xlu0 %v3623_v17  ;;  %3633 = vadd.xlane.f32.xlu1 %v3632_v22  ;;  %v12597_v17 = vadd.f32 %v18398_v33, %v11540_v63  ;;  %v12599_v60 = vpop.xlane.xlu1 %3429  ;;  %v10685_v22 = vpop.eup %10684 }
 0x1b0   : > { %v12607_v33 = vpop.xlane.xlu0 %3414  ;;  %v3339_v62 = vmul.f32 %v12327_v4, %v10685_v22  ;;  %v10687_v27 = vpop.eup %10686  ;;  %v12631_v22 = vadd.f32 %v18404_v48, %v11540_v63 }
 0x1b1   : > { %18399 = vst [vmem:[#allocation83_spill] sm:$0xff] %v12597_v17  ;;  %v3084_v5 = vadd.f32 %v2926_v45, %v12597_v17  ;;  %v3342_v45 = vmul.f32 %v12327_v4, %v10683_v29  ;;  %v12638_v29 = vadd.f32 %v12078_v39, %v11497_v32  ;;  %v12651_v39 = vadd.f32 %v12088_v54, %v11535_v59  ;;  %v18410_v54 = vld [vmem:[#allocation15_spill] sm:$0xff] }
 0x1b2   : > { %18405 = vst [vmem:[#allocation12_spill] sm:$0xff] %v12631_v22  ;;  %v3629_v28 = vsel %vm413_vm0, %v3339_v62, 0.0 }
 0x1b3   : > { %3618 = vadd.xlane.f32.xlu0 %v3617_v42  ;;  %3627 = vadd.xlane.f32.xlu1 %v3626_v55  ;;  %v12614_v56 = vpop.xlane.xlu1 %3423  ;;  %v12618_v42 = vadd.f32 %v12075_v53, %v11480_v15  ;;  %v10689_v55 = vpop.eup %10688  ;;  %10700 = vtanh.f32 %v3084_v5  ;;  %v3090_v53 = vadd.f32 %v2930_v37, %v12612_v0  ;;  %18407 = vst [vmem:[#allocation153_spill] sm:$0xff] %v12638_v29  ;;  %v3638_v5 = vsel %vm413_vm0, %v3342_v45, 0.0 }
 0x1b4   : > { %v12626_v30 = vpop.xlane.xlu0 %3432  ;;  %v10691_v17 = vpop.eup %10690  ;;  %v3348_v0 = vmul.f32 %v12327_v4, %v10689_v55  ;;  %18409 = vst [vmem:[#allocation155_spill] sm:$0xff] %v12651_v39 }
 0x1b5   : > { %18402 = vst [vmem:[#allocation152_spill] sm:$0xff] %v12618_v42  ;;  %v3093_v25 = vadd.f32 %v2934_v58, %v12618_v42  ;;  %v10693_v48 = vpop.eup %10692  ;;  %10702 = vtanh.f32 %v3090_v53  ;;  %v12647_v42 = vadd.f32 %v12080_v14, %v11480_v15  ;;  %v3343_v53 = vmul.f32 %v12327_v4, %v10691_v17 }
 0x1b6   : > { %v3656_v14 = vsel %vm413_vm0, %v3348_v0, 0.0  ;;  %v12671_v17 = vadd.f32 %v12097_v1, %v11540_v63  ;;  %v2831_v1 = vcombine.high %v18403_v31, %v18403_v31 }
 0x1b7   : > { %3636 = vadd.xlane.f32.xlu0 %v3635_v12  ;;  %3645 = vadd.xlane.f32.xlu1 %v3644_v6  ;;  %v12633_v12 = vpop.xlane.xlu1 %3441  ;;  %v3345_v6 = vmul.f32 %v12327_v4, %v10687_v27  ;;  %18408 = vst [vmem:[#allocation154_spill] sm:$0xff] %v12647_v42  ;;  %10704 = vtanh.f32 %v3093_v25  ;;  %v3091_v27 = vadd.f32 %v2934_v58, %v12638_v29  ;;  %v3641_v29 = vsel %vm413_vm0, %v3343_v53, 0.0  ;;  %v18414_v53 = vld [vmem:[#allocation92_spill] sm:$0xff] }
 0x1b8   : > { %18406 = vst [vmem:[#allocation86_spill] sm:$0xff] %v12633_v12  ;;  %v3088_v12 = vadd.f32 %v2930_v37, %v12631_v22  ;;  %v12653_v62 = vpop.xlane.xlu0 %3426  ;;  %v10695_v37 = vpop.eup %10694  ;;  %v2938_v22 = vrot.slane %v18410_v54, %v11232_v26  ;;  %v12666_v25 = vadd.f32 %v12090_v23, %v11497_v32  ;;  %18412 = vst [vmem:[#allocation156_spill] sm:$0xff] %v12671_v17 }
 0x1b9   : > { %v3647_v45 = vsel %vm413_vm0, %v3345_v6, 0.0  ;;  %v3094_v6 = vadd.f32 %v2934_v58, %v12651_v39  ;;  %v3349_v23 = vmul.f32 %v12327_v4, %v10695_v37 }
 0x1ba   : > { %18411 = vst [vmem:[#allocation15_spill] sm:$0xff] %v12666_v25  ;;  %10706 = vtanh.f32 %v3088_v12  ;;  %v3095_v47 = vadd.f32 %v2938_v22, %v12666_v25  ;;  %v2942_v25 = vrot.slane %v2831_v1, %v11232_v26 }
 0x1bb   : > { %3630 = vadd.xlane.f32.xlu0 %v3629_v28  ;;  %3639 = vadd.xlane.f32.xlu1 %v3638_v5  ;;  %v12657_v55 = vpop.xlane.xlu1 %3435  ;;  %v3346_v28 = vmul.f32 %v12327_v4, %v10693_v48  ;;  %v10697_v5 = vpop.eup %10696  ;;  %10708 = vtanh.f32 %v3091_v27  ;;  %v3097_v48 = vadd.f32 %v2938_v22, %v12647_v42  ;;  %v3092_v27 = vadd.f32 %v2934_v58, %v12671_v17 }
 0x1bc   : > { %v10699_v0 = vpop.eup %10698  ;;  %v3352_v39 = vmul.f32 %v12327_v4, %v10697_v5  ;;  %10710 = vtanh.f32 %v3094_v6  ;;  %v12688_v42 = vadd.f32 %v18414_v53, %v11535_v59 }
 0x1bd   : > { %v3650_v12 = vsel %vm413_vm0, %v3346_v28, 0.0  ;;  %10712 = vtanh.f32 %v3097_v48  ;;  %v3659_v28 = vsel %vm413_vm0, %v3349_v23, 0.0  ;;  %v18417_v48 = vld [vmem:[#allocation94_spill] sm:$0xff] }
 0x1be   : > { %18415 = vst [vmem:[#allocation92_spill] sm:$0xff] %v12688_v42  ;;  %v3668_v58 = vsel %vm413_vm0, %v3352_v39, 0.0  ;;  %10714 = vtanh.f32 %v3095_v47  ;;  %v12706_v23 = vadd.f32 %v18417_v48, %v11540_v63  ;;  %v12713_v39 = vadd.f32 %v12134_v51, %v11497_v32 }
 0x1bf   : > { %3648 = vadd.xlane.f32.xlu0 %v3647_v45  ;;  %3657 = vadd.xlane.f32.xlu1 %v3656_v14  ;;  %v12673_v45 = vpop.xlane.xlu0 %3444  ;;  %v12677_v20 = vpop.xlane.xlu1 %3453  ;;  %10716 = vtanh.f32 %v3092_v27 }
 0x1c0   : > { %18413 = vst [vmem:[#allocation157_spill] sm:$0xff] %v12677_v20  ;;  %v10701_v14 = vpop.eup %10700  ;;  %18418 = vst [vmem:[#allocation94_spill] sm:$0xff] %v12706_v23  ;;  %v3096_v51 = vadd.f32 %v2938_v22, %v12706_v23 }
 0x1c1   : > { %v3347_v5 = vmul.f32 %v12327_v4, %v10701_v14  ;;  %v10703_v6 = vpop.eup %10702  ;;  %18419 = vst [vmem:[#allocation159_spill] sm:$0xff] %v12713_v39 }
 0x1c2   : > { %v10705_v53 = vpop.eup %10704  ;;  %v3353_v47 = vmul.f32 %v12327_v4, %v10703_v6  ;;  %v12730_v6 = vadd.f32 %v12142_v11, %v11535_v59 }
 0x1c3   : > { %3642 = vadd.xlane.f32.xlu0 %v3641_v29  ;;  %3651 = vadd.xlane.f32.xlu1 %v3650_v12  ;;  %v12690_v37 = vpop.xlane.xlu0 %3438  ;;  %v12694_v29 = vadd.f32 %v12125_v19, %v11480_v15  ;;  %v12697_v31 = vpop.xlane.xlu1 %3447  ;;  %v3350_v12 = vmul.f32 %v12327_v4, %v10699_v0  ;;  %v3098_v19 = vadd.f32 %v2938_v22, %v12688_v42  ;;  %v3653_v0 = vsel %vm413_vm0, %v3347_v5, 0.0  ;;  %v18421_v5 = vld [vmem:[#allocation98_spill] sm:$0xff] }
 0x1c4   : > { %v10707_v27 = vpop.eup %10706  ;;  %v12726_v42 = vadd.f32 %v18421_v5, %v11480_v15  ;;  %18423 = vst [vmem:[#allocation161_spill] sm:$0xff] %v12730_v6 }
 0x1c5   : > { %18416 = vst [vmem:[#allocation158_spill] sm:$0xff] %v12694_v29  ;;  %v3101_v14 = vadd.f32 %v2942_v25, %v12694_v29  ;;  %v10709_v48 = vpop.eup %10708  ;;  %v2833_v29 = vcombine.high %v18410_v54, %v18410_v54  ;;  %10718 = vtanh.f32 %v3098_v19  ;;  %v3351_v19 = vmul.f32 %v12327_v4, %v10707_v27 }
 0x1c6   : > { %18422 = vst [vmem:[#allocation98_spill] sm:$0xff] %v12726_v42  ;;  %v10711_v22 = vpop.eup %10710  ;;  %v3354_v5 = vmul.f32 %v12327_v4, %v10709_v48 }
 0x1c7   : > { %3660 = vadd.xlane.f32.xlu0 %v3659_v28  ;;  %3669 = vadd.xlane.f32.xlu1 %v3668_v58  ;;  %v12708_v17 = vpop.xlane.xlu0 %3456  ;;  %v12716_v1 = vpop.xlane.xlu1 %3465  ;;  %v3662_v28 = vsel %vm413_vm0, %v3350_v12, 0.0  ;;  %v3356_v58 = vmul.f32 %v12327_v4, %v10705_v53  ;;  %10720 = vtanh.f32 %v3101_v14  ;;  %v3099_v12 = vadd.f32 %v2942_v25, %v12713_v39  ;;  %v18427_v39 = vld [vmem:[#allocation102_spill] sm:$0xff] }
 0x1c8   : > { %18420 = vst [vmem:[#allocation160_spill] sm:$0xff] %v12716_v1  ;;  %v3671_v53 = vsel %vm413_vm0, %v3353_v47, 0.0  ;;  %v10713_v23 = vpop.eup %10712  ;;  %v2946_v11 = vrot.slane %v2833_v29, %v11232_v26  ;;  %v18425_v1 = vld [vmem:[#allocation100_spill] sm:$0xff]  ;;  %10722 = vtanh.f32 %v3096_v51  ;;  %v3102_v47 = vadd.f32 %v2942_v25, %v12730_v6 }
 0x1c9   : > { %v12744_v14 = vadd.f32 %v18425_v1, %v11497_v32  ;;  %v12749_v27 = vadd.f32 %v18427_v39, %v11540_v63  ;;  %10724 = vtanh.f32 %v3099_v12  ;;  %v3665_v29 = vsel %vm413_vm0, %v3351_v19, 0.0 }
 0x1ca   : > { %v3105_v48 = vadd.f32 %v2946_v11, %v12726_v42  ;;  %v3357_v1 = vmul.f32 %v12327_v4, %v10711_v22  ;;  %v3674_v51 = vsel %vm413_vm0, %v3354_v5, 0.0  ;;  %v3360_v39 = vmul.f32 %v12327_v4, %v10713_v23 }
 0x1cb   : > { %3654 = vadd.xlane.f32.xlu0 %v3653_v0  ;;  %3663 = vadd.xlane.f32.xlu1 %v3662_v28  ;;  %v12732_v0 = vpop.xlane.xlu0 %3450  ;;  %v12736_v54 = vpop.xlane.xlu1 %3459  ;;  %v3680_v28 = vsel %vm413_vm0, %v3356_v58, 0.0  ;;  %18426 = vst [vmem:[#allocation100_spill] sm:$0xff] %v12744_v14  ;;  %18428 = vst [vmem:[#allocation102_spill] sm:$0xff] %v12749_v27  ;;  %v3103_v6 = vadd.f32 %v2946_v11, %v12744_v14  ;;  %10726 = vtanh.f32 %v3102_v47 }
 0x1cc   : > { %18424 = vst [vmem:[#allocation162_spill] sm:$0xff] %v12736_v54  ;;  %v10715_v58 = vpop.eup %10714  ;;  %v3100_v12 = vadd.f32 %v2942_v25, %v12749_v27  ;;  %v12765_v19 = vadd.f32 %v12155_v49, %v11535_v59  ;;  %10728 = vtanh.f32 %v3105_v48  ;;  %v12769_v22 = vadd.f32 %v12181_v9, %v11480_v15  ;;  %v18432_v48 = vld [vmem:[#allocation14_spill] sm:$0xff] }
 0x1cd   : > { %v10717_v20 = vpop.eup %10716  ;;  %v3692_v47 = vsel %vm413_vm0, %v3360_v39, 0.0  ;;  %v3358_v49 = vmul.f32 %v12327_v4, %v10715_v58  ;;  %10730 = vtanh.f32 %v3103_v6  ;;  %v12789_v39 = vadd.f32 %v12190_v24, %v11497_v32 }
 0x1ce   : > { %18430 = vst [vmem:[#allocation164_spill] sm:$0xff] %v12765_v19  ;;  %18431 = vst [vmem:[#allocation165_spill] sm:$0xff] %v12769_v22  ;;  %v3355_v23 = vmul.f32 %v12327_v4, %v10717_v20  ;;  %10732 = vtanh.f32 %v3100_v12  ;;  %v3106_v9 = vadd.f32 %v2946_v11, %v12765_v19 }
 0x1cf   : > { %3672 = vadd.xlane.f32.xlu0 %v3671_v53  ;;  %3681 = vadd.xlane.f32.xlu1 %v3680_v28  ;;  %v12751_v53 = vpop.xlane.xlu0 %3468  ;;  %v3478_v54 = vpop.xlane.xlu1 %3477 }
 0x1d0   : > { %v12758_v28 = vadd.f32 %v12468_v10, %v3478_v54  ;;  %v3683_v10 = vsel %vm413_vm0, %v3357_v1, 0.0  ;;  %v10719_v5 = vpop.eup %10718  ;;  %v18433_v1 = vld [vmem:[#allocation104_spill] sm:$0xff]  ;;  %v3677_v58 = vsel %vm413_vm0, %v3355_v23, 0.0  ;;  %10734 = vtanh.f32 %v3106_v9 }
 0x1d1   : > { %v12784_v20 = vadd.f32 %v18433_v1, %v11540_v63  ;;  %18435 = vst [vmem:[#allocation104_spill] sm:$0xff] %v12789_v39  ;;  %v3361_v42 = vmul.f32 %v12327_v4, %v10719_v5  ;;  %v18438_v23 = vld [vmem:[#allocation108_spill] sm:$0xff]  ;;  %v12807_v5 = vadd.f32 %v12194_v61, %v11535_v59  ;;  %v18442_v61 = vld [vmem:[#allocation19_spill] sm:$0xff] }
 0x1d2   : > { %18429 = vst [vmem:[#allocation163_spill] sm:$0xff] %v12758_v28  ;;  %v12803_v27 = vadd.f32 %v18438_v23, %v11480_v15 }
 0x1d3   : > { %3666 = vadd.xlane.f32.xlu0 %v3665_v29  ;;  %3675 = vadd.xlane.f32.xlu1 %v3674_v51  ;;  %v12776_v25 = vpop.xlane.xlu1 %3471  ;;  %v10721_v29 = vpop.eup %10720  ;;  %v2950_v51 = vrot.slane %v18432_v48, %v11232_v26  ;;  %18434 = vst [vmem:[#allocation14_spill] sm:$0xff] %v12784_v20  ;;  %v3104_v24 = vadd.f32 %v2946_v11, %v12784_v20  ;;  %18440 = vst [vmem:[#allocation168_spill] sm:$0xff] %v12807_v5 }
 0x1d4   : > { %v12772_v54 = vpop.xlane.xlu0 %3462  ;;  %v10723_v6 = vpop.eup %10722  ;;  %v3364_v19 = vmul.f32 %v12327_v4, %v10721_v29  ;;  %18439 = vst [vmem:[#allocation108_spill] sm:$0xff] %v12803_v27 }
 0x1d5   : > { %v3359_v29 = vmul.f32 %v12327_v4, %v10723_v6  ;;  %v18445_v6 = vld [vmem:[#allocation111_spill] sm:$0xff] }
 0x1d6   : > { %v3704_v11 = vsel %vm413_vm0, %v3364_v19, 0.0 }
 0x1d7   : > { %3684 = vadd.xlane.f32.xlu0 %v3683_v10  ;;  %3693 = vadd.xlane.f32.xlu1 %v3692_v47  ;;  %v3109_v10 = vadd.f32 %v2950_v51, %v12769_v22  ;;  %v3686_v47 = vsel %vm413_vm0, %v3358_v49, 0.0  ;;  %v10725_v22 = vpop.eup %10724 }
 0x1d8   : > { %v3481_v14 = vpop.xlane.xlu0 %3480  ;;  %v10727_v9 = vpop.eup %10726 }
 0x1d9   : > { %v12794_v12 = vadd.f32 %v12483_v16, %v3481_v14  ;;  %10736 = vtanh.f32 %v3109_v10  ;;  %v3107_v16 = vadd.f32 %v2950_v51, %v12789_v39  ;;  %v3695_v14 = vsel %vm413_vm0, %v3361_v42, 0.0  ;;  %v10729_v23 = vpop.eup %10728  ;;  %v18443_v39 = vld [vmem:[#allocation109_spill] sm:$0xff] }
 0x1da   : > { %v2954_v10 = vrot.slane %v18442_v61, %v11232_v26  ;;  %v12822_v20 = vadd.f32 %v18443_v39, %v11497_v32  ;;  %10738 = vtanh.f32 %v3104_v24  ;;  %v3110_v42 = vadd.f32 %v2950_v51, %v12807_v5  ;;  %v10731_v19 = vpop.eup %10730 }
 0x1db   : > { %3678 = vadd.xlane.f32.xlu0 %v3677_v58  ;;  %18436 = vst [vmem:[#allocation166_spill] sm:$0xff] %v12794_v12  ;;  %3687 = vadd.xlane.f32.xlu1 %v3686_v47  ;;  %v3362_v47 = vmul.f32 %v12327_v4, %v10725_v22  ;;  %10740 = vtanh.f32 %v3107_v16  ;;  %v3365_v28 = vmul.f32 %v12327_v4, %v10727_v9  ;;  %v10733_v39 = vpop.eup %10732 }
 0x1dc   : > { %v12797_v1 = vpop.xlane.xlu1 %3489  ;;  %v12811_v49 = vpop.xlane.xlu0 %3474  ;;  %18444 = vst [vmem:[#allocation19_spill] sm:$0xff] %v12822_v20  ;;  %v3113_v22 = vadd.f32 %v2954_v10, %v12803_v27  ;;  %v3368_v5 = vmul.f32 %v12327_v4, %v10729_v23  ;;  %v3111_v16 = vadd.f32 %v2954_v10, %v12822_v20  ;;  %10742 = vtanh.f32 %v3110_v42  ;;  %v18447_v27 = vld [vmem:[#allocation112_spill] sm:$0xff] }
 0x1dd   : > { %18437 = vst [vmem:[#allocation167_spill] sm:$0xff] %v12797_v1  ;;  %v3689_v1 = vsel %vm413_vm0, %v3359_v29, 0.0  ;;  %v3698_v24 = vsel %vm413_vm0, %v3362_v47, 0.0  ;;  %v12844_v9 = vadd.f32 %v18447_v27, %v11535_v59  ;;  %v3707_v47 = vsel %vm413_vm0, %v3365_v28, 0.0  ;;  %v18450_v28 = vld [vmem:[#allocation114_spill] sm:$0xff] }
 0x1de   : > { %10744 = vtanh.f32 %v3113_v22  ;;  %v3363_v23 = vmul.f32 %v12327_v4, %v10733_v39  ;;  %v3716_v42 = vsel %vm413_vm0, %v3368_v5, 0.0  ;;  %v3366_v27 = vmul.f32 %v12327_v4, %v10731_v19 }
 0x1df   : > { %3696 = vadd.xlane.f32.xlu0 %v3695_v14  ;;  %3705 = vadd.xlane.f32.xlu1 %v3704_v11  ;;  %v12827_v14 = vadd.f32 %v18445_v6, %v11540_v63  ;;  %v2832_v6 = vcombine.high %v18432_v48, %v18432_v48  ;;  %18448 = vst [vmem:[#allocation111_spill] sm:$0xff] %v12844_v9  ;;  %v10735_v48 = vpop.eup %10734  ;;  %10746 = vtanh.f32 %v3111_v16 }
 0x1e0   : > { %v12815_v58 = vpop.xlane.xlu1 %3483  ;;  %v12862_v39 = vadd.f32 %v18450_v28, %v11540_v63  ;;  %v12867_v5 = vadd.f32 %v12248_v46, %v11497_v32  ;;  %v3701_v19 = vsel %vm413_vm0, %v3363_v23, 0.0  ;;  %v3369_v16 = vmul.f32 %v12327_v4, %v10735_v48 }
 0x1e1   : > { %18441 = vst [vmem:[#allocation169_spill] sm:$0xff] %v12815_v58  ;;  %18446 = vst [vmem:[#allocation109_spill] sm:$0xff] %v12827_v14  ;;  %v12831_v58 = vpop.xlane.xlu0 %3492  ;;  %v3108_v29 = vadd.f32 %v2950_v51, %v12827_v14  ;;  %v2958_v22 = vrot.slane %v2832_v6, %v11232_v26  ;;  %v12882_v23 = vadd.f32 %v12250_v34, %v11480_v15 }
 0x1e2   : > { %18451 = vst [vmem:[#allocation114_spill] sm:$0xff] %v12862_v39  ;;  %18452 = vst [vmem:[#allocation170_spill] sm:$0xff] %v12867_v5  ;;  %v3112_v46 = vadd.f32 %v2954_v10, %v12862_v39  ;;  %v12886_v48 = vadd.f32 %v12258_v35, %v11535_v59 }
 0x1e3   : > { %3690 = vadd.xlane.f32.xlu0 %v3689_v1  ;;  %3699 = vadd.xlane.f32.xlu1 %v3698_v24  ;;  %v12848_v1 = vadd.f32 %v12238_v57, %v11480_v15  ;;  %v10737_v24 = vpop.eup %10736  ;;  %10748 = vtanh.f32 %v3108_v29  ;;  %v3114_v57 = vadd.f32 %v2954_v10, %v12844_v9  ;;  %v3710_v29 = vsel %vm413_vm0, %v3366_v27, 0.0  ;;  %18454 = vst [vmem:[#allocation172_spill] sm:$0xff] %v12882_v23 }
 0x1e4   : > { %v12835_v11 = vpop.xlane.xlu1 %3501  ;;  %v10739_v14 = vpop.eup %10738  ;;  %v3372_v28 = vmul.f32 %v12327_v4, %v10737_v24  ;;  %18455 = vst [vmem:[#allocation173_spill] sm:$0xff] %v12886_v48  ;;  %v3115_v27 = vadd.f32 %v2958_v22, %v12867_v5  ;;  %v3719_v24 = vsel %vm413_vm0, %v3369_v16, 0.0  ;;  %v18457_v16 = vld [vmem:[#allocation121_spill] sm:$0xff] }
 0x1e5   : > { %18449 = vst [vmem:[#allocation112_spill] sm:$0xff] %v12848_v1  ;;  %v12852_v20 = vpop.xlane.xlu0 %3486  ;;  %v10741_v9 = vpop.eup %10740  ;;  %10750 = vtanh.f32 %v3114_v57 }
 0x1e6   : > { %v3728_v10 = vsel %vm413_vm0, %v3372_v28, 0.0  ;;  %v3370_v15 = vmul.f32 %v12327_v4, %v10741_v9 }
 0x1e7   : > { %3708 = vadd.xlane.f32.xlu0 %v3707_v47  ;;  %3717 = vadd.xlane.f32.xlu1 %v3716_v42  ;;  %v3117_v47 = vadd.f32 %v2958_v22, %v12848_v1  ;;  %v2834_v1 = vcombine.high %v18442_v61, %v18442_v61  ;;  %v10743_v61 = vpop.eup %10742 }
 0x1e8   : > { %v12855_v51 = vpop.xlane.xlu1 %3495  ;;  %v10745_v34 = vpop.eup %10744 }
 0x1e9   : > { %v12871_v6 = vpop.xlane.xlu0 %3504  ;;  %10752 = vtanh.f32 %v3117_v47  ;;  %v2962_v35 = vrot.slane %v2834_v1, %v11232_v26  ;;  %v3118_v47 = vadd.f32 %v2958_v22, %v12886_v48  ;;  %v10747_v28 = vpop.eup %10746  ;;  %v3373_v1 = vmul.f32 %v12327_v4, %v10743_v61 }
 0x1ea   : > { %10754 = vtanh.f32 %v3112_v46  ;;  %v3722_v48 = vsel %vm413_vm0, %v3370_v15, 0.0 }
 0x1eb   : > { %3702 = vadd.xlane.f32.xlu0 %v3701_v19  ;;  %3711 = vadd.xlane.f32.xlu1 %v3710_v29  ;;  %v3367_v19 = vmul.f32 %v12327_v4, %v10739_v14  ;;  %v12901_v14 = vadd.f32 %v18457_v16, %v11497_v32  ;;  %10756 = vtanh.f32 %v3115_v27  ;;  %v3121_v39 = vadd.f32 %v2962_v35, %v12882_v23  ;;  %v12918_v16 = vld [vmem:[%s17722_s7] ss:$0 sm:$0xff]  ;;  %v18462_v4 = vld [vmem:[#allocation123_spill] sm:$0xff] }
 0x1ec   : > { %v12874_v42 = vpop.xlane.xlu1 %3513  ;;  %v3376_v27 = vmul.f32 %v12918_v16, %v10745_v34  ;;  %10758 = vtanh.f32 %v3118_v47  ;;  %v12924_v61 = vadd.f32 %v18462_v4, %v11535_v59  ;;  %v3374_v34 = vmul.f32 %v12918_v16, %v10747_v28 }
 0x1ed   : > { %18453 = vst [vmem:[#allocation171_spill] sm:$0xff] %v12874_v42  ;;  %v12891_v57 = vpop.xlane.xlu0 %3498  ;;  %18458 = vst [vmem:[#allocation121_spill] sm:$0xff] %v12901_v14  ;;  %v3713_v9 = vsel %vm413_vm0, %v3367_v19, 0.0  ;;  %10760 = vtanh.f32 %v3121_v39  ;;  %v3119_v15 = vadd.f32 %v2962_v35, %v12901_v14  ;;  %v12938_v39 = vadd.f32 %v12269_v3, %v11540_v63 }
 0x1ee   : > { %18463 = vst [vmem:[#allocation123_spill] sm:$0xff] %v12924_v61  ;;  %v3122_v59 = vadd.f32 %v2962_v35, %v12924_v61  ;;  %v3734_v28 = vsel %vm413_vm0, %v3374_v34, 0.0 }
 0x1ef   : > { %3720 = vadd.xlane.f32.xlu0 %v3719_v24  ;;  %3729 = vadd.xlane.f32.xlu1 %v3728_v10  ;;  %v18459_v24 = vld [vmem:[#allocation122_spill] sm:$0xff]  ;;  %v10749_v10 = vpop.eup %10748  ;;  %18465 = vst [vmem:[#allocation177_spill] sm:$0xff] %v12938_v39 }
 0x1f0   : > { %v12894_v29 = vpop.xlane.xlu1 %3507  ;;  %v12905_v5 = vadd.f32 %v18459_v24, %v11540_v63  ;;  %v3731_v24 = vsel %vm413_vm0, %v3373_v1, 0.0  ;;  %v10751_v23 = vpop.eup %10750  ;;  %v3120_v63 = vadd.f32 %v2962_v35, %v12938_v39 }
 0x1f1   : > { %18456 = vst [vmem:[#allocation174_spill] sm:$0xff] %v12894_v29  ;;  %v12910_v46 = vpop.xlane.xlu0 %3516 }
 0x1f2   : > { %18460 = vst [vmem:[#allocation122_spill] sm:$0xff] %v12905_v5  ;;  %v3116_v19 = vadd.f32 %v2958_v22, %v12905_v5  ;;  %v12992_v5 = vld [vmem:[%s11213_s21 + $0x8] sm:$0xff] }
 0x1f3   : > { %3714 = vadd.xlane.f32.xlu0 %v3713_v9  ;;  %3723 = vadd.xlane.f32.xlu1 %v3722_v48  ;;  %v3371_v9 = vmul.f32 %v12918_v16, %v10749_v10  ;;  %v3740_v48 = vsel %vm413_vm0, %v3376_v27, 0.0  ;;  %v10753_v22 = vpop.eup %10752  ;;  %v3377_v10 = vmul.f32 %v12918_v16, %v10751_v23 }
 0x1f4   : > { %v12913_v32 = vpop.xlane.xlu1 %3525  ;;  %10762 = vtanh.f32 %v3116_v19  ;;  %v10755_v4 = vpop.eup %10754 }
 0x1f5   : > { %18461 = vst [vmem:[#allocation175_spill] sm:$0xff] %v12913_v32  ;;  %v12929_v32 = vpop.xlane.xlu0 %3510  ;;  %10764 = vtanh.f32 %v3119_v15  ;;  %v3725_v1 = vsel %vm413_vm0, %v3371_v9, 0.0  ;;  %v10757_v19 = vpop.eup %10756  ;;  %v3743_v3 = vsel %vm413_vm0, %v3377_v10, 0.0  ;;  %v3375_v15 = vmul.f32 %v12918_v16, %v10755_v4 }
 0x1f6   : > { %10766 = vtanh.f32 %v3122_v59  ;;  %v10759_v23 = vpop.eup %10758  ;;  %v3378_v34 = vmul.f32 %v12918_v16, %v10757_v19 }
 0x1f7   : > { %3732 = vadd.xlane.f32.xlu0 %v3731_v24  ;;  %3741 = vadd.xlane.f32.xlu1 %v3740_v48  ;;  %v3380_v24 = vmul.f32 %v12918_v16, %v10753_v22  ;;  %v10761_v22 = vpop.eup %10760  ;;  %10768 = vtanh.f32 %v3120_v63  ;;  %v3737_v59 = vsel %vm413_vm0, %v3375_v15, 0.0  ;;  %v3381_v35 = vmul.f32 %v12918_v16, %v10759_v23 }
 0x1f8   : > { %v12933_v47 = vpop.xlane.xlu1 %3519  ;;  %v3384_v14 = vmul.f32 %v12918_v16, %v10761_v22 }
 0x1f9   : > { %18464 = vst [vmem:[#allocation176_spill] sm:$0xff] %v12933_v47 }
 0x1fa   : > { %v3764_v15 = vsel %vm413_vm0, %v3384_v14, 0.0 }
 0x1fb   : > { %3726 = vadd.xlane.f32.xlu0 %v3725_v1  ;;  %3735 = vadd.xlane.f32.xlu1 %v3734_v28  ;;  %v3752_v1 = vsel %vm413_vm0, %v3380_v24, 0.0 }
 0x1fc   : > { %v12942_v27 = vpop.xlane.xlu0 %3528  ;;  %v12946_v48 = vpop.xlane.xlu1 %3537 }
 0x1fd   : > { %18466 = vst [vmem:[#allocation178_spill] sm:$0xff] %v12942_v27  ;;  %18467 = vst [vmem:[#allocation179_spill] sm:$0xff] %v12946_v48 }
 0x1fe   : > { %v10763_v10 = vpop.eup %10762 }
 0x1ff   : > { %3744 = vadd.xlane.f32.xlu0 %v3743_v3  ;;  %3753 = vadd.xlane.f32.xlu1 %v3752_v1  ;;  %v3746_v3 = vsel %vm413_vm0, %v3378_v34, 0.0  ;;  %v10765_v24 = vpop.eup %10764  ;;  %v3755_v1 = vsel %vm413_vm0, %v3381_v35, 0.0  ;;  %v3379_v63 = vmul.f32 %v12918_v16, %v10763_v10 }
 0x200   : > { %v12951_v9 = vpop.xlane.xlu0 %3522  ;;  %v12955_v28 = vpop.xlane.xlu1 %3531  ;;  %v3382_v23 = vmul.f32 %v12918_v16, %v10765_v24 }
 0x201   : > { %18468 = vst [vmem:[#allocation180_spill] sm:$0xff] %v12955_v28  ;;  %v10767_v61 = vpop.eup %10766  ;;  %v3749_v22 = vsel %vm413_vm0, %v3379_v63, 0.0 }
 0x202   : > { %v10769_v39 = vpop.eup %10768  ;;  %v3758_v35 = vsel %vm413_vm0, %v3382_v23, 0.0 }
 0x203   : > { %3738 = vadd.xlane.f32.xlu0 %v3737_v59  ;;  %3747 = vadd.xlane.f32.xlu1 %v3746_v3  ;;  %v3385_v3 = vmul.f32 %v12918_v16, %v10767_v61 }
 0x204   : > { %v12959_v4 = vpop.xlane.xlu0 %3540  ;;  %v12963_v19 = vpop.xlane.xlu1 %3549 }
 0x205   : > { %18469 = vst [vmem:[#allocation181_spill] sm:$0xff] %v12959_v4  ;;  %18470 = vst [vmem:[#allocation182_spill] sm:$0xff] %v12963_v19  ;;  %v3767_v24 = vsel %vm413_vm0, %v3385_v3, 0.0 }
 0x207   : > { %3756 = vadd.xlane.f32.xlu0 %v3755_v1  ;;  %3765 = vadd.xlane.f32.xlu1 %v3764_v15  ;;  %v3383_v1 = vmul.f32 %v12918_v16, %v10769_v39  ;;  %v3933_v16 = vrot.slane %v12992_v5, %v11232_v26 }
 0x208   : > { %v12969_v59 = vpop.xlane.xlu0 %3534  ;;  %v12971_v34 = vpop.xlane.xlu1 %3543 }
 0x209   : > { %18471 = vst [vmem:[#allocation183_spill] sm:$0xff] %v12969_v59  ;;  %18472 = vst [vmem:[#allocation184_spill] sm:$0xff] %v12971_v34  ;;  %v3761_v61 = vsel %vm413_vm0, %v3383_v1, 0.0 }
 0x20b   : > { %3750 = vadd.xlane.f32.xlu0 %v3749_v22  ;;  %3759 = vadd.xlane.f32.xlu1 %v3758_v35 }
 0x20c   : > { %v12976_v10 = vpop.xlane.xlu0 %3552  ;;  %v12978_v14 = vpop.xlane.xlu1 %3561 }
 0x20d   : > { %18473 = vst [vmem:[#allocation185_spill] sm:$0xff] %v12976_v10  ;;  %18474 = vst [vmem:[#allocation186_spill] sm:$0xff] %v12978_v14 }
 0x20f   : > { %3768 = vadd.xlane.f32.xlu0 %v3767_v24 }
 0x210   : > { %v12982_v15 = vpop.xlane.xlu0 %3546  ;;  %v12984_v63 = vpop.xlane.xlu1 %3555 }
 0x211   : > { %18475 = vst [vmem:[#allocation187_spill] sm:$0xff] %v12982_v15  ;;  %18476 = vst [vmem:[#allocation188_spill] sm:$0xff] %v12984_v63 }
 0x213   : > { %3762 = vadd.xlane.f32.xlu0 %v3761_v61  ;;  %v18485_v61 = vld [vmem:[#allocation4_spill] sm:$0xff] }
 0x214   : > { %v12987_v22 = vpop.xlane.xlu0 %3564  ;;  %v12989_v23 = vpop.xlane.xlu1 %3573 }
 0x215   : > { %18477 = vst [vmem:[#allocation189_spill] sm:$0xff] %v12987_v22  ;;  %18478 = vst [vmem:[#allocation190_spill] sm:$0xff] %v12989_v23  ;;  %v3952_v23 = vrot.slane %v12992_v5, %v18485_v61 }
 0x218   : > { %v12994_v35 = vpop.xlane.xlu0 %3558  ;;  %v12996_v14 = vpop.xlane.xlu1 %3567 }
 0x219   : > { %18479 = vst [vmem:[#allocation191_spill] sm:$0xff] %v12994_v35  ;;  %18480 = vst [vmem:[#allocation192_spill] sm:$0xff] %v12996_v14 }
 0x21c   : > { %v13000_v39 = vpop.xlane.xlu0 %3576  ;;  %3939 = vbcast.lane.b32.xlu1 %v3933_v16, 264  ;;  %v13002_v3 = vpop.xlane.xlu1 %3585 }
 0x21d   : > { %18481 = vst [vmem:[#allocation193_spill] sm:$0xff] %v13000_v39  ;;  %18482 = vst [vmem:[#allocation194_spill] sm:$0xff] %v13002_v3  ;;  %v18490_v3 = vld [vmem:[#allocation5_spill] sm:$0xff] }
 0x220   : > { %v13004_v24 = vpop.xlane.xlu0 %3570  ;;  %3947 = vbcast.lane.b32.xlu1 %v3933_v16, 280  ;;  %v13006_v1 = vpop.xlane.xlu1 %3579 }
 0x221   : > { %18483 = vst [vmem:[#allocation195_spill] sm:$0xff] %v13004_v24  ;;  %18484 = vst [vmem:[#allocation196_spill] sm:$0xff] %v13006_v1  ;;  %v3971_v24 = vrot.slane %v12992_v5, %v18490_v3 }
 0x224   : > { %v13010_v63 = vpop.xlane.xlu0 %3588  ;;  %3958 = vbcast.lane.b32.xlu1 %v3952_v23, 264  ;;  %v13012_v14 = vpop.xlane.xlu1 %3597 }
 0x225   : > { %18486 = vst [vmem:[#allocation197_spill] sm:$0xff] %v13010_v63  ;;  %18487 = vst [vmem:[#allocation198_spill] sm:$0xff] %v13012_v14 }
 0x228   : > { %v13014_v19 = vpop.xlane.xlu0 %3582  ;;  %3966 = vbcast.lane.b32.xlu1 %v3952_v23, 280  ;;  %v13016_v39 = vpop.xlane.xlu1 %3591 }
 0x229   : > { %18488 = vst [vmem:[#allocation199_spill] sm:$0xff] %v13014_v19  ;;  %3935 = vbcast.lane.b32.xlu0 %v3933_v16, 256  ;;  %18489 = vst [vmem:[#allocation200_spill] sm:$0xff] %v13016_v39  ;;  %v18495_v19 = vld [vmem:[#allocation6_spill] sm:$0xff] }
 0x22a   : > { %v3990_v14 = vrot.slane %v12992_v5, %v18495_v19 }
 0x22c   : > { %v13020_v22 = vpop.xlane.xlu0 %3600  ;;  %3977 = vbcast.lane.b32.xlu1 %v3971_v24, 264  ;;  %v13022_v1 = vpop.xlane.xlu1 %3609 }
 0x22d   : > { %18491 = vst [vmem:[#allocation201_spill] sm:$0xff] %v13020_v22  ;;  %3943 = vbcast.lane.b32.xlu0 %v3933_v16, 272  ;;  %18492 = vst [vmem:[#allocation202_spill] sm:$0xff] %v13022_v1 }
 0x230   : > { %v13024_v34 = vpop.xlane.xlu0 %3594  ;;  %3985 = vbcast.lane.b32.xlu1 %v3971_v24, 280  ;;  %v13026_v63 = vpop.xlane.xlu1 %3603 }
 0x231   : > { %18493 = vst [vmem:[#allocation203_spill] sm:$0xff] %v13024_v34  ;;  %3954 = vbcast.lane.b32.xlu0 %v3952_v23, 256  ;;  %18494 = vst [vmem:[#allocation204_spill] sm:$0xff] %v13026_v63  ;;  %v18500_v34 = vld [vmem:[#allocation7_spill] sm:$0xff] }
 0x232   : > { %v4009_v1 = vrot.slane %v12992_v5, %v18500_v34 }
 0x234   : > { %v13030_v35 = vpop.xlane.xlu0 %3612  ;;  %3996 = vbcast.lane.b32.xlu1 %v3990_v14, 264  ;;  %v13032_v39 = vpop.xlane.xlu1 %3621 }
 0x235   : > { %18496 = vst [vmem:[#allocation205_spill] sm:$0xff] %v13030_v35  ;;  %3962 = vbcast.lane.b32.xlu0 %v3952_v23, 272  ;;  %18497 = vst [vmem:[#allocation206_spill] sm:$0xff] %v13032_v39 }
 0x238   : > { %v13034_v22 = vpop.xlane.xlu0 %3606  ;;  %4004 = vbcast.lane.b32.xlu1 %v3990_v14, 280  ;;  %v13036_v16 = vpop.xlane.xlu1 %3615 }
 0x239   : > { %18498 = vst [vmem:[#allocation207_spill] sm:$0xff] %v13034_v22  ;;  %3973 = vbcast.lane.b32.xlu0 %v3971_v24, 256  ;;  %18499 = vst [vmem:[#allocation208_spill] sm:$0xff] %v13036_v16  ;;  %v18505_v22 = vld [vmem:[#allocation8_spill] sm:$0xff] }
 0x23a   : > { %v4028_v39 = vrot.slane %v12992_v5, %v18505_v22 }
 0x23c   : > { %v13040_v48 = vpop.xlane.xlu0 %3624  ;;  %4015 = vbcast.lane.b32.xlu1 %v4009_v1, 264  ;;  %v13042_v63 = vpop.xlane.xlu1 %3633 }
 0x23d   : > { %18501 = vst [vmem:[#allocation209_spill] sm:$0xff] %v13040_v48  ;;  %3981 = vbcast.lane.b32.xlu0 %v3971_v24, 272  ;;  %18502 = vst [vmem:[#allocation210_spill] sm:$0xff] %v13042_v63 }
 0x240   : > { %v13044_v35 = vpop.xlane.xlu0 %3618  ;;  %4023 = vbcast.lane.b32.xlu1 %v4009_v1, 280  ;;  %v13046_v23 = vpop.xlane.xlu1 %3627 }
 0x241   : > { %18503 = vst [vmem:[#allocation211_spill] sm:$0xff] %v13044_v35  ;;  %3992 = vbcast.lane.b32.xlu0 %v3990_v14, 256  ;;  %18504 = vst [vmem:[#allocation212_spill] sm:$0xff] %v13046_v23  ;;  %v18510_v35 = vld [vmem:[#allocation9_spill] sm:$0xff] }
 0x242   : > { %v4047_v63 = vrot.slane %v12992_v5, %v18510_v35 }
 0x244   : > { %v13050_v10 = vpop.xlane.xlu0 %3636  ;;  %4034 = vbcast.lane.b32.xlu1 %v4028_v39, 264  ;;  %v13052_v16 = vpop.xlane.xlu1 %3645 }
 0x245   : > { %18506 = vst [vmem:[#allocation213_spill] sm:$0xff] %v13050_v10  ;;  %4000 = vbcast.lane.b32.xlu0 %v3990_v14, 272  ;;  %18507 = vst [vmem:[#allocation214_spill] sm:$0xff] %v13052_v16 }
 0x248   : > { %v13054_v48 = vpop.xlane.xlu0 %3630  ;;  %4042 = vbcast.lane.b32.xlu1 %v4028_v39, 280  ;;  %v13056_v24 = vpop.xlane.xlu1 %3639 }
 0x249   : > { %18508 = vst [vmem:[#allocation215_spill] sm:$0xff] %v13054_v48  ;;  %4011 = vbcast.lane.b32.xlu0 %v4009_v1, 256  ;;  %18509 = vst [vmem:[#allocation216_spill] sm:$0xff] %v13056_v24  ;;  %v18515_v48 = vld [vmem:[#allocation10_spill] sm:$0xff] }
 0x24a   : > { %v4066_v16 = vrot.slane %v12992_v5, %v18515_v48 }
 0x24c   : > { %v13060_v23 = vpop.xlane.xlu0 %3648  ;;  %4053 = vbcast.lane.b32.xlu1 %v4047_v63, 264  ;;  %v13062_v28 = vpop.xlane.xlu1 %3657 }
 0x24d   : > { %18511 = vst [vmem:[#allocation217_spill] sm:$0xff] %v13060_v23  ;;  %4019 = vbcast.lane.b32.xlu0 %v4009_v1, 272  ;;  %18512 = vst [vmem:[#allocation218_spill] sm:$0xff] %v13062_v28  ;;  %v13075_v23 = vld [vmem:[%s11213_s21 + $0x10] sm:$0xff] }
 0x24e   : > { %v4085_v28 = vrot.slane %v13075_v23, %v11232_v26 }
 0x250   : > { %v13064_v14 = vpop.xlane.xlu0 %3642  ;;  %4061 = vbcast.lane.b32.xlu1 %v4047_v63, 280  ;;  %v13066_v10 = vpop.xlane.xlu1 %3651 }
 0x251   : > { %18513 = vst [vmem:[#allocation219_spill] sm:$0xff] %v13064_v14  ;;  %4030 = vbcast.lane.b32.xlu0 %v4028_v39, 256  ;;  %18514 = vst [vmem:[#allocation220_spill] sm:$0xff] %v13066_v10 }
 0x254   : > { %v13070_v15 = vpop.xlane.xlu0 %3660  ;;  %4072 = vbcast.lane.b32.xlu1 %v4066_v16, 264  ;;  %v13072_v24 = vpop.xlane.xlu1 %3669 }
 0x255   : > { %18516 = vst [vmem:[#allocation221_spill] sm:$0xff] %v13070_v15  ;;  %4038 = vbcast.lane.b32.xlu0 %v4028_v39, 272  ;;  %18517 = vst [vmem:[#allocation222_spill] sm:$0xff] %v13072_v24 }
 0x258   : > { %v13077_v1 = vpop.xlane.xlu0 %3654  ;;  %4080 = vbcast.lane.b32.xlu1 %v4066_v16, 280  ;;  %v13079_v14 = vpop.xlane.xlu1 %3663 }
 0x259   : > { %18518 = vst [vmem:[#allocation223_spill] sm:$0xff] %v13077_v1  ;;  %4049 = vbcast.lane.b32.xlu0 %v4047_v63, 256  ;;  %18519 = vst [vmem:[#allocation224_spill] sm:$0xff] %v13079_v14  ;;  %v4104_v1 = vrot.slane %v13075_v23, %v18485_v61 }
 0x25c   : > { %v13083_v10 = vpop.xlane.xlu0 %3672  ;;  %4091 = vbcast.lane.b32.xlu1 %v4085_v28, 264  ;;  %v13085_v5 = vpop.xlane.xlu1 %3681 }
 0x25d   : > { %18520 = vst [vmem:[#allocation225_spill] sm:$0xff] %v13083_v10  ;;  %4057 = vbcast.lane.b32.xlu0 %v4047_v63, 272  ;;  %18521 = vst [vmem:[#allocation226_spill] sm:$0xff] %v13085_v5 }
 0x260   : > { %v13087_v39 = vpop.xlane.xlu0 %3666  ;;  %4099 = vbcast.lane.b32.xlu1 %v4085_v28, 280  ;;  %v13089_v15 = vpop.xlane.xlu1 %3675 }
 0x261   : > { %18522 = vst [vmem:[#allocation227_spill] sm:$0xff] %v13087_v39  ;;  %4068 = vbcast.lane.b32.xlu0 %v4066_v16, 256  ;;  %18523 = vst [vmem:[#allocation228_spill] sm:$0xff] %v13089_v15  ;;  %v4123_v39 = vrot.slane %v13075_v23, %v18490_v3 }
 0x264   : > { %v13093_v24 = vpop.xlane.xlu0 %3684  ;;  %4110 = vbcast.lane.b32.xlu1 %v4104_v1, 264  ;;  %v13095_v14 = vpop.xlane.xlu1 %3693 }
 0x265   : > { %18524 = vst [vmem:[#allocation229_spill] sm:$0xff] %v13093_v24  ;;  %4076 = vbcast.lane.b32.xlu0 %v4066_v16, 272  ;;  %18525 = vst [vmem:[#allocation230_spill] sm:$0xff] %v13095_v14 }
 0x268   : > { %v13097_v10 = vpop.xlane.xlu0 %3678  ;;  %4118 = vbcast.lane.b32.xlu1 %v4104_v1, 280  ;;  %v13099_v63 = vpop.xlane.xlu1 %3687 }
 0x269   : > { %18526 = vst [vmem:[#allocation231_spill] sm:$0xff] %v13097_v10  ;;  %4087 = vbcast.lane.b32.xlu0 %v4085_v28, 256  ;;  %18527 = vst [vmem:[#allocation232_spill] sm:$0xff] %v13099_v63  ;;  %v4142_v10 = vrot.slane %v13075_v23, %v18495_v19 }
 0x26c   : > { %v13103_v5 = vpop.xlane.xlu0 %3696  ;;  %4129 = vbcast.lane.b32.xlu1 %v4123_v39, 264  ;;  %v13105_v15 = vpop.xlane.xlu1 %3705 }
 0x26d   : > { %18528 = vst [vmem:[#allocation233_spill] sm:$0xff] %v13103_v5  ;;  %4095 = vbcast.lane.b32.xlu0 %v4085_v28, 272  ;;  %18529 = vst [vmem:[#allocation234_spill] sm:$0xff] %v13105_v15 }
 0x270   : > { %v13107_v24 = vpop.xlane.xlu0 %3690  ;;  %4137 = vbcast.lane.b32.xlu1 %v4123_v39, 280  ;;  %v13109_v16 = vpop.xlane.xlu1 %3699 }
 0x271   : > { %18530 = vst [vmem:[#allocation235_spill] sm:$0xff] %v13107_v24  ;;  %4106 = vbcast.lane.b32.xlu0 %v4104_v1, 256  ;;  %18531 = vst [vmem:[#allocation236_spill] sm:$0xff] %v13109_v16  ;;  %v4161_v24 = vrot.slane %v13075_v23, %v18500_v34 }
 0x274   : > { %v13113_v14 = vpop.xlane.xlu0 %3708  ;;  %4148 = vbcast.lane.b32.xlu1 %v4142_v10, 264  ;;  %v13115_v63 = vpop.xlane.xlu1 %3717 }
 0x275   : > { %18532 = vst [vmem:[#allocation237_spill] sm:$0xff] %v13113_v14  ;;  %4114 = vbcast.lane.b32.xlu0 %v4104_v1, 272  ;;  %18533 = vst [vmem:[#allocation238_spill] sm:$0xff] %v13115_v63 }
 0x278   : > { %v13117_v5 = vpop.xlane.xlu0 %3702  ;;  %4156 = vbcast.lane.b32.xlu1 %v4142_v10, 280  ;;  %v13119_v28 = vpop.xlane.xlu1 %3711 }
 0x279   : > { %18534 = vst [vmem:[#allocation239_spill] sm:$0xff] %v13117_v5  ;;  %4125 = vbcast.lane.b32.xlu0 %v4123_v39, 256  ;;  %18535 = vst [vmem:[#allocation240_spill] sm:$0xff] %v13119_v28  ;;  %v4180_v5 = vrot.slane %v13075_v23, %v18505_v22 }
 0x27c   : > { %v13123_v15 = vpop.xlane.xlu0 %3720  ;;  %4167 = vbcast.lane.b32.xlu1 %v4161_v24, 264  ;;  %v13125_v16 = vpop.xlane.xlu1 %3729 }
 0x27d   : > { %18536 = vst [vmem:[#allocation241_spill] sm:$0xff] %v13123_v15  ;;  %4133 = vbcast.lane.b32.xlu0 %v4123_v39, 272  ;;  %18537 = vst [vmem:[#allocation242_spill] sm:$0xff] %v13125_v16 }
 0x280   : > { %v13127_v14 = vpop.xlane.xlu0 %3714  ;;  %4175 = vbcast.lane.b32.xlu1 %v4161_v24, 280  ;;  %v13129_v1 = vpop.xlane.xlu1 %3723 }
 0x281   : > { %18538 = vst [vmem:[#allocation243_spill] sm:$0xff] %v13127_v14  ;;  %4144 = vbcast.lane.b32.xlu0 %v4142_v10, 256  ;;  %18539 = vst [vmem:[#allocation244_spill] sm:$0xff] %v13129_v1  ;;  %v4199_v14 = vrot.slane %v13075_v23, %v18510_v35 }
 0x284   : > { %v13133_v63 = vpop.xlane.xlu0 %3732  ;;  %4186 = vbcast.lane.b32.xlu1 %v4180_v5, 264  ;;  %v13135_v28 = vpop.xlane.xlu1 %3741 }
 0x285   : > { %18540 = vst [vmem:[#allocation245_spill] sm:$0xff] %v13133_v63  ;;  %4152 = vbcast.lane.b32.xlu0 %v4142_v10, 272  ;;  %18541 = vst [vmem:[#allocation246_spill] sm:$0xff] %v13135_v28 }
 0x288   : > { %v13137_v15 = vpop.xlane.xlu0 %3726  ;;  %4194 = vbcast.lane.b32.xlu1 %v4180_v5, 280  ;;  %v13139_v39 = vpop.xlane.xlu1 %3735 }
 0x289   : > { %18542 = vst [vmem:[#allocation247_spill] sm:$0xff] %v13137_v15  ;;  %4163 = vbcast.lane.b32.xlu0 %v4161_v24, 256  ;;  %18543 = vst [vmem:[#allocation248_spill] sm:$0xff] %v13139_v39  ;;  %v4218_v15 = vrot.slane %v13075_v23, %v18515_v48 }
 0x28c   : > { %v13143_v16 = vpop.xlane.xlu0 %3744  ;;  %4205 = vbcast.lane.b32.xlu1 %v4199_v14, 264  ;;  %v13145_v1 = vpop.xlane.xlu1 %3753 }
 0x28d   : > { %18544 = vst [vmem:[#allocation249_spill] sm:$0xff] %v13143_v16  ;;  %4171 = vbcast.lane.b32.xlu0 %v4161_v24, 272  ;;  %18545 = vst [vmem:[#allocation250_spill] sm:$0xff] %v13145_v1  ;;  %v13158_v16 = vld [vmem:[%s11213_s21 + $0x18] sm:$0xff] }
 0x28e   : > { %v4237_v1 = vrot.slane %v13158_v16, %v11232_v26  ;;  %v4294_v47 = vrot.slane %v13158_v16, %v18495_v19  ;;  %v4313_v27 = vrot.slane %v13158_v16, %v18500_v34 }
 0x290   : > { %v13147_v10 = vpop.xlane.xlu0 %3738  ;;  %4213 = vbcast.lane.b32.xlu1 %v4199_v14, 280  ;;  %v13149_v63 = vpop.xlane.xlu1 %3747 }
 0x291   : > { %18546 = vst [vmem:[#allocation251_spill] sm:$0xff] %v13147_v10  ;;  %4182 = vbcast.lane.b32.xlu0 %v4180_v5, 256  ;;  %18547 = vst [vmem:[#allocation252_spill] sm:$0xff] %v13149_v63 }
 0x294   : > { %v13153_v28 = vpop.xlane.xlu0 %3756  ;;  %4224 = vbcast.lane.b32.xlu1 %v4218_v15, 264  ;;  %v13155_v39 = vpop.xlane.xlu1 %3765 }
 0x295   : > { %18548 = vst [vmem:[#allocation253_spill] sm:$0xff] %v13153_v28  ;;  %4190 = vbcast.lane.b32.xlu0 %v4180_v5, 272  ;;  %18549 = vst [vmem:[#allocation254_spill] sm:$0xff] %v13155_v39 }
 0x298   : > { %v13160_v24 = vpop.xlane.xlu0 %3750  ;;  %4232 = vbcast.lane.b32.xlu1 %v4218_v15, 280  ;;  %v13162_v10 = vpop.xlane.xlu1 %3759 }
 0x299   : > { %18550 = vst [vmem:[#allocation255_spill] sm:$0xff] %v13160_v24  ;;  %4201 = vbcast.lane.b32.xlu0 %v4199_v14, 256  ;;  %18551 = vst [vmem:[#allocation256_spill] sm:$0xff] %v13162_v10  ;;  %v4256_v24 = vrot.slane %v13158_v16, %v18485_v61 }
 0x29c   : > { %v13166_v63 = vpop.xlane.xlu0 %3768  ;;  %4243 = vbcast.lane.b32.xlu1 %v4237_v1, 264  ;;  %v13168_v23 = vpop.permute.xlu1 %3939 }
 0x29d   : > { %18552 = vst [vmem:[#allocation257_spill] sm:$0xff] %v13166_v63  ;;  %4209 = vbcast.lane.b32.xlu0 %v4199_v14, 272 }
 0x2a0   : > { %v13170_v5 = vpop.xlane.xlu0 %3762  ;;  %4251 = vbcast.lane.b32.xlu1 %v4237_v1, 280  ;;  %v13172_v28 = vpop.permute.xlu1 %3947 }
 0x2a1   : > { %18553 = vst [vmem:[#allocation258_spill] sm:$0xff] %v13170_v5  ;;  %4220 = vbcast.lane.b32.xlu0 %v4218_v15, 256  ;;  %v4275_v5 = vrot.slane %v13158_v16, %v18490_v3 }
 0x2a4   : > { %v13176_v39 = vpop.permute.xlu0 %3935  ;;  %4262 = vbcast.lane.b32.xlu1 %v4256_v24, 264  ;;  %v13178_v26 = vpop.permute.xlu1 %3958 }
 0x2a5   : > { %4228 = vbcast.lane.b32.xlu0 %v4218_v15, 272 }
 0x2a8   : > { %v13180_v63 = vpop.permute.xlu0 %3943  ;;  %4270 = vbcast.lane.b32.xlu1 %v4256_v24, 280  ;;  %v13182_v14 = vpop.permute.xlu1 %3966 }
 0x2a9   : > { %4239 = vbcast.lane.b32.xlu0 %v4237_v1, 256 }
 0x2ac   : > { %v13186_v10 = vpop.permute.xlu0 %3954  ;;  %4281 = vbcast.lane.b32.xlu1 %v4275_v5, 264  ;;  %v13188_v61 = vpop.permute.xlu1 %3977 }
 0x2ad   : > { %4247 = vbcast.lane.b32.xlu0 %v4237_v1, 272 }
 0x2b0   : > { %v13190_v4 = vpop.permute.xlu0 %3962  ;;  %4289 = vbcast.lane.b32.xlu1 %v4275_v5, 280  ;;  %v13192_v15 = vpop.permute.xlu1 %3985 }
 0x2b1   : > { %4258 = vbcast.lane.b32.xlu0 %v4256_v24, 256 }
 0x2b4   : > { %v13196_v59 = vpop.permute.xlu0 %3973  ;;  %4300 = vbcast.lane.b32.xlu1 %v4294_v47, 264  ;;  %v13198_v3 = vpop.permute.xlu1 %3996 }
 0x2b5   : > { %18554 = vst [vmem:[#allocation259_spill] sm:$0xff] %v13196_v59  ;;  %4266 = vbcast.lane.b32.xlu0 %v4256_v24, 272  ;;  %18555 = vst [vmem:[#allocation260_spill] sm:$0xff] %v13198_v3 }
 0x2b8   : > { %v13200_v42 = vpop.permute.xlu0 %3981  ;;  %4308 = vbcast.lane.b32.xlu1 %v4294_v47, 280  ;;  %v13202_v1 = vpop.permute.xlu1 %4004 }
 0x2b9   : > { %18556 = vst [vmem:[#allocation261_spill] sm:$0xff] %v13200_v42  ;;  %4277 = vbcast.lane.b32.xlu0 %v4275_v5, 256  ;;  %v4332_v42 = vrot.slane %v13158_v16, %v18505_v22 }
 0x2bc   : > { %v13206_v29 = vpop.permute.xlu0 %3992  ;;  %4319 = vbcast.lane.b32.xlu1 %v4313_v27, 264  ;;  %v13208_v19 = vpop.permute.xlu1 %4015 }
 0x2bd   : > { %18557 = vst [vmem:[#allocation262_spill] sm:$0xff] %v13206_v29  ;;  %4285 = vbcast.lane.b32.xlu0 %v4275_v5, 272  ;;  %18558 = vst [vmem:[#allocation263_spill] sm:$0xff] %v13208_v19 }
 0x2c0   : > { %v13210_v59 = vpop.permute.xlu0 %4000  ;;  %4327 = vbcast.lane.b32.xlu1 %v4313_v27, 280  ;;  %v13212_v24 = vpop.permute.xlu1 %4023 }
 0x2c1   : > { %18559 = vst [vmem:[#allocation264_spill] sm:$0xff] %v13210_v59  ;;  %4296 = vbcast.lane.b32.xlu0 %v4294_v47, 256  ;;  %v4351_v59 = vrot.slane %v13158_v16, %v18510_v35 }
 0x2c4   : > { %v13216_v3 = vpop.permute.xlu0 %4011  ;;  %4338 = vbcast.lane.b32.xlu1 %v4332_v42, 264  ;;  %v13218_v34 = vpop.permute.xlu1 %4034 }
 0x2c5   : > { %18560 = vst [vmem:[#allocation265_spill] sm:$0xff] %v13216_v3  ;;  %4304 = vbcast.lane.b32.xlu0 %v4294_v47, 272  ;;  %18561 = vst [vmem:[#allocation266_spill] sm:$0xff] %v13218_v34 }
 0x2c8   : > { %v13220_v29 = vpop.permute.xlu0 %4019  ;;  %4346 = vbcast.lane.b32.xlu1 %v4332_v42, 280  ;;  %v13222_v5 = vpop.permute.xlu1 %4042 }
 0x2c9   : > { %18562 = vst [vmem:[#allocation267_spill] sm:$0xff] %v13220_v29  ;;  %4315 = vbcast.lane.b32.xlu0 %v4313_v27, 256  ;;  %v4370_v29 = vrot.slane %v13158_v16, %v18515_v48 }
 0x2cc   : > { %v13226_v19 = vpop.permute.xlu0 %4030  ;;  %4357 = vbcast.lane.b32.xlu1 %v4351_v59, 264  ;;  %v13228_v22 = vpop.permute.xlu1 %4053 }
 0x2cd   : > { %18563 = vst [vmem:[#allocation268_spill] sm:$0xff] %v13226_v19  ;;  %4323 = vbcast.lane.b32.xlu0 %v4313_v27, 272  ;;  %18564 = vst [vmem:[#allocation269_spill] sm:$0xff] %v13228_v22 }
 0x2d0   : > { %v13230_v3 = vpop.permute.xlu0 %4038  ;;  %4365 = vbcast.lane.b32.xlu1 %v4351_v59, 280  ;;  %v13232_v47 = vpop.permute.xlu1 %4061 }
 0x2d1   : > { %18565 = vst [vmem:[#allocation270_spill] sm:$0xff] %v13230_v3  ;;  %4334 = vbcast.lane.b32.xlu0 %v4332_v42, 256  ;;  %18566 = vst [vmem:[#allocation271_spill] sm:$0xff] %v13232_v47  ;;  %v18569_v3 = vld [vmem:[#allocation57_spill] sm:$0xff] }
 0x2d2   : > { %v13246_v22 = vadd.f32 %v18569_v3, %v12538_v13  ;;  %v18575_v13 = vld [vmem:[#allocation69_spill] sm:$0xff] }
 0x2d3   : > { %v13264_v3 = vadd.f32 %v18575_v13, %v12569_v50 }
 0x2d4   : > { %v13236_v34 = vpop.permute.xlu0 %4049  ;;  %4376 = vbcast.lane.b32.xlu1 %v4370_v29, 264  ;;  %v13238_v35 = vpop.permute.xlu1 %4072  ;;  %18570 = vst [vmem:[#allocation57_spill] sm:$0xff] %v13246_v22 }
 0x2d5   : > { %4342 = vbcast.lane.b32.xlu0 %v4332_v42, 272  ;;  %v18572_v42 = vld [vmem:[#allocation58_spill] sm:$0xff]  ;;  %18576 = vst [vmem:[#allocation69_spill] sm:$0xff] %v13264_v3 }
 0x2d6   : > { %v13255_v48 = vadd.f32 %v18572_v42, %v12531_v8  ;;  %v18578_v8 = vld [vmem:[#allocation44_spill] sm:$0xff] }
 0x2d7   : > { %v13273_v42 = vadd.f32 %v18578_v8, %v12507_v18 }
 0x2d8   : > { %v13240_v19 = vpop.permute.xlu0 %4057  ;;  %4384 = vbcast.lane.b32.xlu1 %v4370_v29, 280  ;;  %v13242_v27 = vpop.permute.xlu1 %4080  ;;  %18573 = vst [vmem:[#allocation58_spill] sm:$0xff] %v13255_v48 }
 0x2d9   : > { %18567 = vst [vmem:[#allocation272_spill] sm:$0xff] %v13240_v19  ;;  %4353 = vbcast.lane.b32.xlu0 %v4351_v59, 256  ;;  %18568 = vst [vmem:[#allocation273_spill] sm:$0xff] %v13242_v27 }
 0x2da   : > { %18579 = vst [vmem:[#allocation44_spill] sm:$0xff] %v13273_v42 }
 0x2dc   : > { %v13248_v47 = vpop.permute.xlu0 %4068  ;;  %4774 = vperm.xlu1 %10447, %v13246_v22   ;;  %v13251_v16 = vpop.permute.xlu1 %4091 }
 0x2dd   : > { %4361 = vbcast.lane.b32.xlu0 %v4351_v59, 272  ;;  %18571 = vst [vmem:[#allocation274_spill] sm:$0xff] %v13251_v16  ;;  %v18580_v16 = vld [vmem:[#allocation79_spill] sm:$0xff] }
 0x2e0   : > { %v13257_v19 = vpop.permute.xlu0 %4076  ;;  %4780 = vperm.xlu1 %10447, %v13255_v48   ;;  %v13260_v27 = vpop.permute.xlu1 %4099  ;;  %v13277_v48 = vadd.f32 %v18580_v16, %v12549_v2  ;;  %v18588_v16 = vld [vmem:[#allocation68_spill] sm:$0xff] }
 0x2e1   : > { %4372 = vbcast.lane.b32.xlu0 %v4370_v29, 256  ;;  %18574 = vst [vmem:[#allocation275_spill] sm:$0xff] %v13260_v27 }
 0x2e2   : > { %18581 = vst [vmem:[#allocation79_spill] sm:$0xff] %v13277_v48 }
 0x2e4   : > { %v13266_v59 = vpop.permute.xlu0 %4087  ;;  %4786 = vperm.xlu1 %10447, %v13264_v3   ;;  %v13269_v22 = vpop.permute.xlu1 %4110  ;;  %v18585_v3 = vld [vmem:[#allocation89_spill] sm:$0xff] }
 0x2e5   : > { %4380 = vbcast.lane.b32.xlu0 %v4370_v29, 272  ;;  %18577 = vst [vmem:[#allocation276_spill] sm:$0xff] %v13269_v22  ;;  %v18583_v29 = vld [vmem:[#allocation49_spill] sm:$0xff]  ;;  %v13291_v18 = vadd.f32 %v18585_v3, %v12607_v33  ;;  %v18593_v3 = vld [vmem:[#allocation78_spill] sm:$0xff]  ;;  %v18789_v22 = vld [vmem:[#allocation240_spill] sm:$0xff] }
 0x2e6   : > { %v13287_v13 = vadd.f32 %v18583_v29, %v12489_v36 }
 0x2e7   : > { %18586 = vst [vmem:[#allocation89_spill] sm:$0xff] %v13291_v18 }
 0x2e8   : > { %v13279_v27 = vpop.permute.xlu0 %4095  ;;  %4792 = vperm.xlu1 %10447, %v13277_v48   ;;  %v13283_v50 = vpop.permute.xlu1 %4118  ;;  %18584 = vst [vmem:[#allocation49_spill] sm:$0xff] %v13287_v13  ;;  %v13301_v48 = vadd.f32 %v18588_v16, %v12498_v43 }
 0x2e9   : > { %4771 = vperm.xlu0 %10446, %v13273_v42   ;;  %18582 = vst [vmem:[#allocation277_spill] sm:$0xff] %v13283_v50  ;;  %v18590_v42 = vld [vmem:[#allocation97_spill] sm:$0xff]  ;;  %v18787_v50 = vld [vmem:[#allocation234_spill] sm:$0xff] }
 0x2ea   : > { %18589 = vst [vmem:[#allocation68_spill] sm:$0xff] %v13301_v48  ;;  %v13305_v36 = vadd.f32 %v18590_v42, %v12592_v44  ;;  %v18598_v42 = vld [vmem:[#allocation88_spill] sm:$0xff] }
 0x2ec   : > { %v13293_v8 = vpop.permute.xlu0 %4106  ;;  %4798 = vperm.xlu1 %10447, %v13291_v18   ;;  %v13297_v2 = vpop.permute.xlu1 %4129  ;;  %18591 = vst [vmem:[#allocation97_spill] sm:$0xff] %v13305_v36  ;;  %v13315_v18 = vadd.f32 %v18593_v3, %v12521_v38 }
 0x2ed   : > { %4777 = vperm.xlu0 %10446, %v13287_v13   ;;  %18587 = vst [vmem:[#allocation278_spill] sm:$0xff] %v13297_v2  ;;  %v18595_v13 = vld [vmem:[#allocation107_spill] sm:$0xff] }
 0x2ee   : > { %18594 = vst [vmem:[#allocation78_spill] sm:$0xff] %v13315_v18  ;;  %v13319_v43 = vadd.f32 %v18595_v13, %v12653_v62  ;;  %v18603_v13 = vld [vmem:[#allocation96_spill] sm:$0xff] }
 0x2f0   : > { %v13307_v29 = vpop.permute.xlu0 %4114  ;;  %4804 = vperm.xlu1 %10447, %v13305_v36   ;;  %v13311_v33 = vpop.permute.xlu1 %4137  ;;  %18596 = vst [vmem:[#allocation107_spill] sm:$0xff] %v13319_v43  ;;  %v18600_v36 = vld [vmem:[#allocation118_spill] sm:$0xff] }
 0x2f1   : > { %4783 = vperm.xlu0 %10446, %v13301_v48   ;;  %18592 = vst [vmem:[#allocation279_spill] sm:$0xff] %v13311_v33  ;;  %v13329_v48 = vadd.f32 %v18598_v42, %v12580_v52  ;;  %v13333_v38 = vadd.f32 %v18600_v36, %v12626_v30  ;;  %v13347_v52 = vadd.f32 %v12286_v40, %v12690_v37  ;;  %v18607_v36 = vld [vmem:[#allocation106_spill] sm:$0xff]  ;;  %v18611_v37 = vld [vmem:[#allocation117_spill] sm:$0xff] }
 0x2f3   : > { %18599 = vst [vmem:[#allocation88_spill] sm:$0xff] %v13329_v48  ;;  %18601 = vst [vmem:[#allocation118_spill] sm:$0xff] %v13333_v38 }
 0x2f4   : > { %v13321_v16 = vpop.permute.xlu0 %4125  ;;  %4810 = vperm.xlu1 %10447, %v13319_v43   ;;  %v13325_v44 = vpop.permute.xlu1 %4148  ;;  %18605 = vst [vmem:[#allocation282_spill] sm:$0xff] %v13347_v52 }
 0x2f5   : > { %4789 = vperm.xlu0 %10446, %v13315_v18   ;;  %18597 = vst [vmem:[#allocation280_spill] sm:$0xff] %v13325_v44  ;;  %v13343_v18 = vadd.f32 %v18603_v13, %v12556_v21  ;;  %v13361_v21 = vadd.f32 %v12312_v7, %v12673_v45  ;;  %v18615_v45 = vld [vmem:[#allocation125_spill] sm:$0xff] }
 0x2f7   : > { %18604 = vst [vmem:[#allocation96_spill] sm:$0xff] %v13343_v18  ;;  %18609 = vst [vmem:[#allocation284_spill] sm:$0xff] %v13361_v21 }
 0x2f8   : > { %v13335_v3 = vpop.permute.xlu0 %4133  ;;  %4816 = vperm.xlu1 %10447, %v13333_v38   ;;  %v13339_v62 = vpop.permute.xlu1 %4156  ;;  %v18634_v38 = vld [vmem:[#allocation145_spill] sm:$0xff] }
 0x2f9   : > { %4795 = vperm.xlu0 %10446, %v13329_v48   ;;  %18602 = vst [vmem:[#allocation281_spill] sm:$0xff] %v13339_v62  ;;  %v13357_v48 = vadd.f32 %v18607_v36, %v12614_v56  ;;  %v13375_v56 = vadd.f32 %v12344_v41, %v12732_v0  ;;  %v18620_v0 = vld [vmem:[#allocation86_spill] sm:$0xff] }
 0x2fa   : > { %v18779_v62 = vld [vmem:[#allocation226_spill] sm:$0xff] }
 0x2fb   : > { %18608 = vst [vmem:[#allocation106_spill] sm:$0xff] %v13357_v48  ;;  %18613 = vst [vmem:[#allocation286_spill] sm:$0xff] %v13375_v56 }
 0x2fc   : > { %v13349_v42 = vpop.permute.xlu0 %4144  ;;  %4822 = vperm.xlu1 %10447, %v13347_v52   ;;  %v13353_v30 = vpop.permute.xlu1 %4167  ;;  %v18623_v52 = vld [vmem:[#allocation138_spill] sm:$0xff] }
 0x2fd   : > { %4801 = vperm.xlu0 %10446, %v13343_v18   ;;  %18606 = vst [vmem:[#allocation283_spill] sm:$0xff] %v13353_v30  ;;  %v13371_v18 = vadd.f32 %v18611_v37, %v12599_v60  ;;  %v18777_v30 = vld [vmem:[#allocation228_spill] sm:$0xff] }
 0x2ff   : > { %18612 = vst [vmem:[#allocation117_spill] sm:$0xff] %v13371_v18 }
 0x300   : > { %v13363_v13 = vpop.permute.xlu0 %4152  ;;  %4828 = vperm.xlu1 %10447, %v13361_v21   ;;  %v13367_v40 = vpop.permute.xlu1 %4175  ;;  %v18617_v21 = vld [vmem:[#allocation54_spill] sm:$0xff] }
 0x301   : > { %4807 = vperm.xlu0 %10446, %v13357_v48   ;;  %18610 = vst [vmem:[#allocation285_spill] sm:$0xff] %v13367_v40  ;;  %v13385_v48 = vadd.f32 %v18615_v45, %v12657_v55  ;;  %v13389_v60 = vadd.f32 %v18617_v21, %v12708_v17  ;;  %v13403_v55 = vadd.f32 %v18623_v52, %v12772_v54  ;;  %v18626_v21 = vld [vmem:[#allocation132_spill] sm:$0xff]  ;;  %v18631_v52 = vld [vmem:[#allocation157_spill] sm:$0xff]  ;;  %v18774_v40 = vld [vmem:[#allocation222_spill] sm:$0xff] }
 0x303   : > { %18616 = vst [vmem:[#allocation125_spill] sm:$0xff] %v13385_v48  ;;  %18618 = vst [vmem:[#allocation54_spill] sm:$0xff] %v13389_v60 }
 0x304   : > { %v13377_v36 = vpop.permute.xlu0 %4163  ;;  %4834 = vperm.xlu1 %10447, %v13375_v56   ;;  %v13381_v7 = vpop.permute.xlu1 %4186 }
 0x305   : > { %4813 = vperm.xlu0 %10446, %v13371_v18   ;;  %18614 = vst [vmem:[#allocation287_spill] sm:$0xff] %v13381_v7  ;;  %v18621_v18 = vld [vmem:[#allocation129_spill] sm:$0xff]  ;;  %v18771_v7 = vld [vmem:[#allocation224_spill] sm:$0xff] }
 0x306   : > { %v13399_v56 = vadd.f32 %v18621_v18, %v18620_v0  ;;  %18624 = vst [vmem:[#allocation129_spill] sm:$0xff] %v13403_v55 }
 0x308   : > { %v13391_v37 = vpop.permute.xlu0 %4171  ;;  %4840 = vperm.xlu1 %10447, %v13389_v60   ;;  %v13395_v41 = vpop.permute.xlu1 %4194  ;;  %18622 = vst [vmem:[#allocation86_spill] sm:$0xff] %v13399_v56  ;;  %v18628_v60 = vld [vmem:[#allocation142_spill] sm:$0xff] }
 0x309   : > { %4819 = vperm.xlu0 %10446, %v13385_v48   ;;  %18619 = vst [vmem:[#allocation288_spill] sm:$0xff] %v13395_v41  ;;  %v13413_v48 = vadd.f32 %v18626_v21, %v12697_v31  ;;  %v13417_v18 = vadd.f32 %v18628_v60, %v12751_v53  ;;  %v13431_v31 = vadd.f32 %v18634_v38, %v12811_v49  ;;  %v18637_v60 = vld [vmem:[#allocation162_spill] sm:$0xff]  ;;  %v18641_v38 = vld [vmem:[#allocation160_spill] sm:$0xff] }
 0x30a   : > { %v18768_v41 = vld [vmem:[#allocation218_spill] sm:$0xff] }
 0x30b   : > { %18627 = vst [vmem:[#allocation132_spill] sm:$0xff] %v13413_v48  ;;  %18629 = vst [vmem:[#allocation142_spill] sm:$0xff] %v13417_v18 }
 0x30c   : > { %v13405_v45 = vpop.permute.xlu0 %4182  ;;  %4846 = vperm.xlu1 %10447, %v13403_v55   ;;  %v13409_v17 = vpop.permute.xlu1 %4205 }
 0x30d   : > { %4825 = vperm.xlu0 %10446, %v13399_v56   ;;  %18625 = vst [vmem:[#allocation138_spill] sm:$0xff] %v13409_v17  ;;  %v18632_v56 = vld [vmem:[#allocation135_spill] sm:$0xff]  ;;  %v18764_v17 = vld [vmem:[#allocation220_spill] sm:$0xff] }
 0x30e   : > { %v13427_v55 = vadd.f32 %v18632_v56, %v18631_v52  ;;  %18635 = vst [vmem:[#allocation135_spill] sm:$0xff] %v13431_v31  ;;  %v18642_v56 = vld [vmem:[#allocation140_spill] sm:$0xff] }
 0x30f   : > { %v13451_v52 = vadd.f32 %v18642_v56, %v18641_v38  ;;  %v13469_v38 = vadd.f32 %v13172_v28, %v12831_v58  ;;  %v18653_v28 = vld [vmem:[#allocation169_spill] sm:$0xff] }
 0x310   : > { %v13419_v0 = vpop.permute.xlu0 %4190  ;;  %4852 = vperm.xlu1 %10447, %v13417_v18   ;;  %v13423_v54 = vpop.permute.xlu1 %4213  ;;  %18633 = vst [vmem:[#allocation157_spill] sm:$0xff] %v13427_v55 }
 0x311   : > { %4831 = vperm.xlu0 %10446, %v13413_v48   ;;  %18630 = vst [vmem:[#allocation289_spill] sm:$0xff] %v13423_v54  ;;  %v18638_v48 = vld [vmem:[#allocation136_spill] sm:$0xff]  ;;  %18643 = vst [vmem:[#allocation160_spill] sm:$0xff] %v13451_v52  ;;  %v18761_v54 = vld [vmem:[#allocation214_spill] sm:$0xff] }
 0x312   : > { %v13441_v18 = vadd.f32 %v18638_v48, %v18637_v60  ;;  %v18646_v60 = vld [vmem:[#allocation144_spill] sm:$0xff]  ;;  %18648 = vst [vmem:[#allocation291_spill] sm:$0xff] %v13469_v38 }
 0x314   : > { %v13433_v21 = vpop.permute.xlu0 %4201  ;;  %4858 = vperm.xlu1 %10447, %v13431_v31   ;;  %v13437_v53 = vpop.permute.xlu1 %4224  ;;  %18639 = vst [vmem:[#allocation162_spill] sm:$0xff] %v13441_v18 }
 0x315   : > { %4837 = vperm.xlu0 %10446, %v13427_v55   ;;  %18636 = vst [vmem:[#allocation145_spill] sm:$0xff] %v13437_v53  ;;  %v13455_v55 = vadd.f32 %v13168_v23, %v12852_v20  ;;  %v13479_v23 = vadd.f32 %v13178_v26, %v12891_v57  ;;  %v18657_v57 = vld [vmem:[#allocation167_spill] sm:$0xff]  ;;  %v18758_v53 = vld [vmem:[#allocation216_spill] sm:$0xff] }
 0x317   : > { %18644 = vst [vmem:[#allocation140_spill] sm:$0xff] %v13455_v55  ;;  %18650 = vst [vmem:[#allocation293_spill] sm:$0xff] %v13479_v23 }
 0x318   : > { %v13443_v43 = vpop.permute.xlu0 %4209  ;;  %4864 = vperm.xlu1 %10447, %v12794_v12   ;;  %v13447_v49 = vpop.permute.xlu1 %4232  ;;  %v18691_v12 = vld [vmem:[#allocation266_spill] sm:$0xff] }
 0x319   : > { %4843 = vperm.xlu0 %10446, %v13441_v18   ;;  %18640 = vst [vmem:[#allocation136_spill] sm:$0xff] %v13447_v49  ;;  %v13465_v18 = vadd.f32 %v18646_v60, %v12776_v25  ;;  %v18651_v25 = vld [vmem:[#allocation163_spill] sm:$0xff]  ;;  %v13489_v60 = vadd.f32 %v13176_v39, %v18653_v28  ;;  %v13507_v39 = vadd.f32 %v13188_v61, %v12929_v32  ;;  %v18755_v49 = vld [vmem:[#allocation210_spill] sm:$0xff] }
 0x31a   : > { %v13531_v61 = vadd.f32 %v13190_v4, %v12835_v11 }
 0x31b   : > { %18647 = vst [vmem:[#allocation144_spill] sm:$0xff] %v13465_v18  ;;  %18654 = vst [vmem:[#allocation169_spill] sm:$0xff] %v13489_v60 }
 0x31c   : > { %v13457_v31 = vpop.permute.xlu0 %4220  ;;  %4870 = vperm.xlu1 %10447, %v13455_v55   ;;  %v13461_v48 = vpop.permute.xlu1 %4243  ;;  %18659 = vst [vmem:[#allocation297_spill] sm:$0xff] %v13507_v39  ;;  %18664 = vst [vmem:[#allocation302_spill] sm:$0xff] %v13531_v61  ;;  %v18690_v55 = vld [vmem:[#allocation187_spill] sm:$0xff] }
 0x31d   : > { %4849 = vperm.xlu0 %10446, %v13451_v52   ;;  %18645 = vst [vmem:[#allocation290_spill] sm:$0xff] %v13461_v48  ;;  %v18752_v48 = vld [vmem:[#allocation212_spill] sm:$0xff] }
 0x320   : > { %v13471_v56 = vpop.permute.xlu0 %4228  ;;  %4876 = vperm.xlu1 %10447, %v13469_v38   ;;  %v13475_v20 = vpop.permute.xlu1 %4251 }
 0x321   : > { %4855 = vperm.xlu0 %10446, %v13465_v18   ;;  %18649 = vst [vmem:[#allocation292_spill] sm:$0xff] %v13475_v20  ;;  %v13493_v18 = vadd.f32 %v13182_v14, %v12871_v6  ;;  %v13517_v14 = vadd.f32 %v13186_v10, %v12855_v51  ;;  %v18749_v20 = vld [vmem:[#allocation206_spill] sm:$0xff] }
 0x323   : > { %18655 = vst [vmem:[#allocation295_spill] sm:$0xff] %v13493_v18  ;;  %18661 = vst [vmem:[#allocation299_spill] sm:$0xff] %v13517_v14 }
 0x324   : > { %v13481_v52 = vpop.permute.xlu0 %4239  ;;  %4882 = vperm.xlu1 %10447, %v13479_v23   ;;  %v13485_v58 = vpop.permute.xlu1 %4262  ;;  %v18684_v23 = vld [vmem:[#allocation181_spill] sm:$0xff] }
 0x325   : > { %4861 = vperm.xlu0 %10446, %v18651_v25   ;;  %18652 = vst [vmem:[#allocation294_spill] sm:$0xff] %v13485_v58  ;;  %v13503_v25 = vadd.f32 %v13180_v63, %v18657_v57  ;;  %v13521_v63 = vadd.f32 %v13192_v15, %v12910_v46  ;;  %v18668_v15 = vld [vmem:[#allocation174_spill] sm:$0xff]  ;;  %v18746_v58 = vld [vmem:[#allocation208_spill] sm:$0xff] }
 0x327   : > { %18658 = vst [vmem:[#allocation167_spill] sm:$0xff] %v13503_v25  ;;  %18662 = vst [vmem:[#allocation300_spill] sm:$0xff] %v13521_v63 }
 0x328   : > { %v13495_v38 = vpop.permute.xlu0 %4247  ;;  %4888 = vperm.xlu1 %10447, %v13493_v18   ;;  %v13499_v26 = vpop.permute.xlu1 %4270  ;;  %v18678_v18 = vld [vmem:[#allocation263_spill] sm:$0xff] }
 0x329   : > { %4867 = vperm.xlu0 %10446, %v13489_v60   ;;  %18656 = vst [vmem:[#allocation296_spill] sm:$0xff] %v13499_v26  ;;  %v18744_v26 = vld [vmem:[#allocation202_spill] sm:$0xff]  ;;  %v13847_v44 = vadd.f32 %v13495_v38, %v18779_v62 }
 0x32b   : > { %18780 = vst [vmem:[#allocation226_spill] sm:$0xff] %v13847_v44 }
 0x32c   : > { %v13509_v28 = vpop.permute.xlu0 %4258  ;;  %4894 = vperm.xlu1 %10447, %v13507_v39   ;;  %v13513_v6 = vpop.permute.xlu1 %4281  ;;  %v18677_v39 = vld [vmem:[#allocation183_spill] sm:$0xff] }
 0x32d   : > { %4873 = vperm.xlu0 %10446, %v13503_v25   ;;  %18660 = vst [vmem:[#allocation298_spill] sm:$0xff] %v13513_v6  ;;  %v18665_v25 = vld [vmem:[#allocation260_spill] sm:$0xff] }
 0x32e   : > { %v13535_v51 = vadd.f32 %v18665_v25, %v12951_v9  ;;  %v18674_v25 = vld [vmem:[#allocation171_spill] sm:$0xff]  ;;  %v18741_v6 = vld [vmem:[#allocation204_spill] sm:$0xff] }
 0x330   : > { %v13523_v57 = vpop.permute.xlu0 %4266  ;;  %4900 = vperm.xlu1 %10447, %v13521_v63   ;;  %v13527_v32 = vpop.permute.xlu1 %4289  ;;  %18666 = vst [vmem:[#allocation260_spill] sm:$0xff] %v13535_v51  ;;  %v18671_v63 = vld [vmem:[#allocation178_spill] sm:$0xff] }
 0x331   : > { %4879 = vperm.xlu0 %10446, %v13517_v14   ;;  %18663 = vst [vmem:[#allocation301_spill] sm:$0xff] %v13527_v32  ;;  %v18669_v14 = vld [vmem:[#allocation259_spill] sm:$0xff]  ;;  %v13549_v11 = vadd.f32 %v13202_v1, %v18671_v63  ;;  %v18681_v63 = vld [vmem:[#allocation176_spill] sm:$0xff]  ;;  %v18739_v32 = vld [vmem:[#allocation198_spill] sm:$0xff] }
 0x332   : > { %v13545_v60 = vadd.f32 %v18669_v14, %v18668_v15  ;;  %v13563_v14 = vadd.f32 %v18678_v18, %v18677_v39  ;;  %v18687_v39 = vld [vmem:[#allocation175_spill] sm:$0xff] }
 0x333   : > { %18672 = vst [vmem:[#allocation259_spill] sm:$0xff] %v13549_v11 }
 0x334   : > { %v13537_v10 = vpop.permute.xlu0 %4277  ;;  %4906 = vperm.xlu1 %10447, %v13535_v51   ;;  %v13541_v46 = vpop.permute.xlu1 %4300  ;;  %18670 = vst [vmem:[#allocation174_spill] sm:$0xff] %v13545_v60 }
 0x335   : > { %4885 = vperm.xlu0 %10446, %v13531_v61   ;;  %18667 = vst [vmem:[#allocation303_spill] sm:$0xff] %v13541_v46  ;;  %v18675_v61 = vld [vmem:[#allocation261_spill] sm:$0xff]  ;;  %v18737_v46 = vld [vmem:[#allocation200_spill] sm:$0xff] }
 0x336   : > { %v13559_v51 = vadd.f32 %v18675_v61, %v18674_v25  ;;  %18679 = vst [vmem:[#allocation261_spill] sm:$0xff] %v13563_v14  ;;  %v13577_v61 = vadd.f32 %v13212_v24, %v18684_v23  ;;  %v18694_v23 = vld [vmem:[#allocation180_spill] sm:$0xff] }
 0x338   : > { %v13551_v4 = vpop.permute.xlu0 %4285  ;;  %4912 = vperm.xlu1 %10447, %v13549_v11   ;;  %v13555_v9 = vpop.permute.xlu1 %4308  ;;  %18676 = vst [vmem:[#allocation171_spill] sm:$0xff] %v13559_v51  ;;  %18685 = vst [vmem:[#allocation176_spill] sm:$0xff] %v13577_v61 }
 0x339   : > { %4891 = vperm.xlu0 %10446, %v13545_v60   ;;  %18673 = vst [vmem:[#allocation178_spill] sm:$0xff] %v13555_v9  ;;  %v18682_v60 = vld [vmem:[#allocation262_spill] sm:$0xff]  ;;  %v18711_v9 = vld [vmem:[#allocation271_spill] sm:$0xff] }
 0x33a   : > { %v13573_v11 = vadd.f32 %v18682_v60, %v18681_v63  ;;  %v13591_v60 = vadd.f32 %v18691_v12, %v18690_v55  ;;  %v18700_v55 = vld [vmem:[#allocation179_spill] sm:$0xff] }
 0x33c   : > { %v13565_v15 = vpop.permute.xlu0 %4296  ;;  %4918 = vperm.xlu1 %10447, %v13563_v14   ;;  %v13569_v1 = vpop.permute.xlu1 %4319  ;;  %18683 = vst [vmem:[#allocation263_spill] sm:$0xff] %v13573_v11  ;;  %18692 = vst [vmem:[#allocation175_spill] sm:$0xff] %v13591_v60 }
 0x33d   : > { %4897 = vperm.xlu0 %10446, %v13559_v51   ;;  %18680 = vst [vmem:[#allocation183_spill] sm:$0xff] %v13569_v1  ;;  %v18688_v51 = vld [vmem:[#allocation264_spill] sm:$0xff]  ;;  %v18704_v1 = vld [vmem:[#allocation269_spill] sm:$0xff] }
 0x33e   : > { %v13587_v14 = vadd.f32 %v18688_v51, %v18687_v39 }
 0x340   : > { %v13579_v25 = vpop.permute.xlu0 %4304  ;;  %4924 = vperm.xlu1 %10447, %v13577_v61   ;;  %v13583_v18 = vpop.permute.xlu1 %4327  ;;  %18689 = vst [vmem:[#allocation181_spill] sm:$0xff] %v13587_v14 }
 0x341   : > { %4903 = vperm.xlu0 %10446, %v13573_v11   ;;  %18686 = vst [vmem:[#allocation262_spill] sm:$0xff] %v13583_v18  ;;  %v18695_v11 = vld [vmem:[#allocation265_spill] sm:$0xff] }
 0x342   : > { %v13601_v61 = vadd.f32 %v18695_v11, %v18694_v23  ;;  %v18697_v18 = vld [vmem:[#allocation185_spill] sm:$0xff] }
 0x343   : > { %v13605_v51 = vadd.f32 %v13222_v5, %v18697_v18  ;;  %v18707_v18 = vld [vmem:[#allocation184_spill] sm:$0xff] }
 0x344   : > { %v13593_v63 = vpop.permute.xlu0 %4315  ;;  %4930 = vperm.xlu1 %10447, %v13591_v60   ;;  %v13597_v24 = vpop.permute.xlu1 %4338  ;;  %18696 = vst [vmem:[#allocation187_spill] sm:$0xff] %v13601_v61 }
 0x345   : > { %4909 = vperm.xlu0 %10446, %v13587_v14   ;;  %18693 = vst [vmem:[#allocation264_spill] sm:$0xff] %v13597_v24  ;;  %18698 = vst [vmem:[#allocation266_spill] sm:$0xff] %v13605_v51  ;;  %v18701_v14 = vld [vmem:[#allocation267_spill] sm:$0xff] }
 0x346   : > { %v13615_v60 = vadd.f32 %v18701_v14, %v18700_v55  ;;  %v18703_v24 = vld [vmem:[#allocation191_spill] sm:$0xff] }
 0x347   : > { %v13619_v11 = vadd.f32 %v18704_v1, %v18703_v24  ;;  %v18714_v24 = vld [vmem:[#allocation182_spill] sm:$0xff] }
 0x348   : > { %v13607_v39 = vpop.permute.xlu0 %4323  ;;  %4936 = vperm.xlu1 %10447, %v13605_v51   ;;  %v13611_v12 = vpop.permute.xlu1 %4346  ;;  %18702 = vst [vmem:[#allocation265_spill] sm:$0xff] %v13615_v60 }
 0x349   : > { %4915 = vperm.xlu0 %10446, %v13601_v61   ;;  %18699 = vst [vmem:[#allocation180_spill] sm:$0xff] %v13611_v12  ;;  %18705 = vst [vmem:[#allocation185_spill] sm:$0xff] %v13619_v11  ;;  %v18708_v61 = vld [vmem:[#allocation268_spill] sm:$0xff]  ;;  %v18710_v12 = vld [vmem:[#allocation189_spill] sm:$0xff] }
 0x34a   : > { %v13629_v51 = vadd.f32 %v18708_v61, %v18707_v18  ;;  %v13633_v14 = vadd.f32 %v18711_v9, %v18710_v12  ;;  %v18720_v12 = vld [vmem:[#allocation188_spill] sm:$0xff] }
 0x34c   : > { %v13621_v23 = vpop.permute.xlu0 %4334  ;;  %4942 = vperm.xlu1 %10447, %v13619_v11   ;;  %v13625_v5 = vpop.permute.xlu1 %4357  ;;  %18709 = vst [vmem:[#allocation267_spill] sm:$0xff] %v13629_v51  ;;  %18712 = vst [vmem:[#allocation191_spill] sm:$0xff] %v13633_v14 }
 0x34d   : > { %4921 = vperm.xlu0 %10446, %v13615_v60   ;;  %18706 = vst [vmem:[#allocation179_spill] sm:$0xff] %v13625_v5  ;;  %v18715_v60 = vld [vmem:[#allocation270_spill] sm:$0xff]  ;;  %v18717_v5 = vld [vmem:[#allocation195_spill] sm:$0xff] }
 0x34e   : > { %v13643_v11 = vadd.f32 %v18715_v60, %v18714_v24  ;;  %v13647_v61 = vadd.f32 %v13238_v35, %v18717_v5  ;;  %v18726_v5 = vld [vmem:[#allocation186_spill] sm:$0xff] }
 0x350   : > { %v13635_v55 = vpop.permute.xlu0 %4342  ;;  %4948 = vperm.xlu1 %10447, %v13633_v14   ;;  %v13639_v1 = vpop.permute.xlu1 %4365  ;;  %18716 = vst [vmem:[#allocation184_spill] sm:$0xff] %v13643_v11  ;;  %18718 = vst [vmem:[#allocation268_spill] sm:$0xff] %v13647_v61  ;;  %v18722_v14 = vld [vmem:[#allocation193_spill] sm:$0xff] }
 0x351   : > { %4927 = vperm.xlu0 %10446, %v13629_v51   ;;  %18713 = vst [vmem:[#allocation269_spill] sm:$0xff] %v13639_v1  ;;  %v13657_v51 = vadd.f32 %v13236_v34, %v18720_v12  ;;  %v18723_v1 = vld [vmem:[#allocation273_spill] sm:$0xff] }
 0x352   : > { %v13661_v60 = vadd.f32 %v18723_v1, %v18722_v14  ;;  %v18729_v14 = vld [vmem:[#allocation192_spill] sm:$0xff] }
 0x353   : > { %18721 = vst [vmem:[#allocation271_spill] sm:$0xff] %v13657_v51  ;;  %v13680_v1 = vadd.f32 %v13248_v47, %v18729_v14 }
 0x354   : > { %v13649_v18 = vpop.permute.xlu0 %4353  ;;  %4954 = vperm.xlu1 %10447, %v13647_v61   ;;  %v13653_v9 = vpop.permute.xlu1 %4376  ;;  %18724 = vst [vmem:[#allocation182_spill] sm:$0xff] %v13661_v60 }
 0x355   : > { %4933 = vperm.xlu0 %10446, %v13643_v11   ;;  %18719 = vst [vmem:[#allocation189_spill] sm:$0xff] %v13653_v9  ;;  %v18727_v11 = vld [vmem:[#allocation272_spill] sm:$0xff]  ;;  %18730 = vst [vmem:[#allocation188_spill] sm:$0xff] %v13680_v1 }
 0x356   : > { %v13671_v61 = vadd.f32 %v18727_v11, %v18726_v5 }
 0x358   : > { %v13663_v24 = vpop.permute.xlu0 %4361  ;;  %4960 = vperm.xlu1 %10447, %v13661_v60   ;;  %v13667_v35 = vpop.permute.xlu1 %4384  ;;  %18728 = vst [vmem:[#allocation195_spill] sm:$0xff] %v13671_v61  ;;  %v18731_v60 = vld [vmem:[#allocation190_spill] sm:$0xff] }
 0x359   : > { %4939 = vperm.xlu0 %10446, %v13657_v51   ;;  %18725 = vst [vmem:[#allocation270_spill] sm:$0xff] %v13667_v35  ;;  %v13687_v35 = vadd.f32 %v13257_v19, %v18731_v60 }
 0x35b   : > { %18732 = vst [vmem:[#allocation193_spill] sm:$0xff] %v13687_v35 }
 0x35c   : > { %v13674_v34 = vpop.permute.xlu1 %4774  ;;  %v13676_v12 = vpop.permute.xlu0 %4372 }
 0x35d   : > { %4945 = vperm.xlu0 %10446, %v13671_v61   ;;  %v18733_v61 = vld [vmem:[#allocation196_spill] sm:$0xff] }
 0x35e   : > { %v13696_v9 = vadd.f32 %v13266_v59, %v18733_v61  ;;  %v13714_v59 = vadd.f32 %v13293_v8, %v18737_v46  ;;  %v13732_v8 = vadd.f32 %v13321_v16, %v18741_v6  ;;  %v13750_v16 = vadd.f32 %v13349_v42, %v18746_v58 }
 0x35f   : > { %v13768_v42 = vadd.f32 %v13377_v36, %v18752_v48  ;;  %v13786_v36 = vadd.f32 %v13405_v45, %v18758_v53  ;;  %v13804_v45 = vadd.f32 %v13433_v21, %v18764_v17  ;;  %v13822_v17 = vadd.f32 %v13457_v31, %v18771_v7 }
 0x360   : > { %v13683_v51 = vpop.permute.xlu1 %4780  ;;  %v13689_v11 = vpop.permute.xlu0 %4380  ;;  %18734 = vst [vmem:[#allocation273_spill] sm:$0xff] %v13696_v9  ;;  %18738 = vst [vmem:[#allocation272_spill] sm:$0xff] %v13714_v59  ;;  %v13840_v7 = vadd.f32 %v13481_v52, %v18777_v30 }
 0x361   : > { %4951 = vperm.xlu0 %10446, %v13680_v1   ;;  %v18735_v1 = vld [vmem:[#allocation194_spill] sm:$0xff]  ;;  %18742 = vst [vmem:[#allocation190_spill] sm:$0xff] %v13732_v8  ;;  %18747 = vst [vmem:[#allocation200_spill] sm:$0xff] %v13750_v16 }
 0x362   : > { %v13705_v19 = vadd.f32 %v13279_v27, %v18735_v1  ;;  %v13723_v27 = vadd.f32 %v13307_v29, %v18739_v32  ;;  %v13741_v29 = vadd.f32 %v13335_v3, %v18744_v26  ;;  %v13759_v3 = vadd.f32 %v13363_v13, %v18749_v20  ;;  %18753 = vst [vmem:[#allocation208_spill] sm:$0xff] %v13768_v42 }
 0x363   : > { %v13777_v13 = vadd.f32 %v13391_v37, %v18755_v49  ;;  %18759 = vst [vmem:[#allocation216_spill] sm:$0xff] %v13786_v36  ;;  %v13795_v37 = vadd.f32 %v13419_v0, %v18761_v54  ;;  %18765 = vst [vmem:[#allocation220_spill] sm:$0xff] %v13804_v45  ;;  %v13813_v0 = vadd.f32 %v13443_v43, %v18768_v41 }
 0x364   : > { %v13692_v5 = vpop.permute.xlu1 %4786  ;;  %18736 = vst [vmem:[#allocation186_spill] sm:$0xff] %v13705_v19  ;;  %18740 = vst [vmem:[#allocation192_spill] sm:$0xff] %v13723_v27  ;;  %v13831_v43 = vadd.f32 %v13471_v56, %v18774_v40 }
 0x365   : > { %4957 = vperm.xlu0 %10446, %v13687_v35   ;;  %18745 = vst [vmem:[#allocation194_spill] sm:$0xff] %v13741_v29  ;;  %18750 = vst [vmem:[#allocation204_spill] sm:$0xff] %v13759_v3 }
 0x366   : > { %18756 = vst [vmem:[#allocation212_spill] sm:$0xff] %v13777_v13  ;;  %18762 = vst [vmem:[#allocation214_spill] sm:$0xff] %v13795_v37 }
 0x367   : > { %18769 = vst [vmem:[#allocation218_spill] sm:$0xff] %v13813_v0  ;;  %18772 = vst [vmem:[#allocation224_spill] sm:$0xff] %v13822_v17 }
 0x368   : > { %v13698_v47 = vpop.permute.xlu0 %4771  ;;  %v13701_v14 = vpop.permute.xlu1 %4792  ;;  %18775 = vst [vmem:[#allocation222_spill] sm:$0xff] %v13831_v43  ;;  %18778 = vst [vmem:[#allocation228_spill] sm:$0xff] %v13840_v7 }
 0x369   : > { %4963 = vperm.xlu0 %10446, %v13696_v9  }
 0x36c   : > { %v13707_v60 = vpop.permute.xlu0 %4777  ;;  %v13710_v35 = vpop.permute.xlu1 %4798 }
 0x36d   : > { %4969 = vperm.xlu0 %10446, %v13705_v19  }
 0x370   : > { %v13716_v61 = vpop.permute.xlu0 %4783  ;;  %v13719_v9 = vpop.permute.xlu1 %4804 }
 0x371   : > { %4975 = vperm.xlu0 %10446, %v13714_v59  }
 0x374   : > { %v13725_v1 = vpop.permute.xlu0 %4789  ;;  %v13728_v19 = vpop.permute.xlu1 %4810 }
 0x375   : > { %4981 = vperm.xlu0 %10446, %v13723_v27  }
 0x378   : > { %v13734_v46 = vpop.permute.xlu0 %4795  ;;  %v13737_v59 = vpop.permute.xlu1 %4816 }
 0x379   : > { %4987 = vperm.xlu0 %10446, %v13732_v8   ;;  %18743 = vst [vmem:[#allocation196_spill] sm:$0xff] %v13737_v59 }
 0x37c   : > { %v13743_v32 = vpop.permute.xlu0 %4801  ;;  %v13746_v27 = vpop.permute.xlu1 %4822 }
 0x37d   : > { %4993 = vperm.xlu0 %10446, %v13741_v29  }
 0x380   : > { %v13752_v6 = vpop.permute.xlu0 %4807  ;;  %v13755_v8 = vpop.permute.xlu1 %4828 }
 0x381   : > { %4999 = vperm.xlu0 %10446, %v13750_v16   ;;  %18748 = vst [vmem:[#allocation198_spill] sm:$0xff] %v13755_v8  ;;  %v18796_v8 = vld [vmem:[#allocation242_spill] sm:$0xff] }
 0x384   : > { %v13761_v26 = vpop.permute.xlu0 %4813  ;;  %v13764_v29 = vpop.permute.xlu1 %4834 }
 0x385   : > { %5005 = vperm.xlu0 %10446, %v13759_v3   ;;  %18751 = vst [vmem:[#allocation202_spill] sm:$0xff] %v13764_v29 }
 0x388   : > { %v13770_v58 = vpop.permute.xlu0 %4819  ;;  %v13773_v16 = vpop.permute.xlu1 %4840 }
 0x389   : > { %5011 = vperm.xlu0 %10446, %v13768_v42   ;;  %18754 = vst [vmem:[#allocation206_spill] sm:$0xff] %v13773_v16 }
 0x38c   : > { %v13779_v20 = vpop.permute.xlu0 %4825  ;;  %v13782_v3 = vpop.permute.xlu1 %4846 }
 0x38d   : > { %5017 = vperm.xlu0 %10446, %v13777_v13   ;;  %18757 = vst [vmem:[#allocation210_spill] sm:$0xff] %v13782_v3 }
 0x390   : > { %v13788_v48 = vpop.permute.xlu0 %4831  ;;  %v13791_v42 = vpop.permute.xlu1 %4852 }
 0x391   : > { %5023 = vperm.xlu0 %10446, %v13786_v36   ;;  %18760 = vst [vmem:[#allocation304_spill] sm:$0xff] %v13791_v42  ;;  %v18793_v42 = vld [vmem:[#allocation244_spill] sm:$0xff] }
 0x394   : > { %v13797_v49 = vpop.permute.xlu0 %4837  ;;  %v13800_v13 = vpop.permute.xlu1 %4858 }
 0x395   : > { %5029 = vperm.xlu0 %10446, %v13795_v37   ;;  %18763 = vst [vmem:[#allocation305_spill] sm:$0xff] %v13800_v13 }
 0x398   : > { %v13806_v53 = vpop.permute.xlu0 %4843  ;;  %v13809_v36 = vpop.permute.xlu1 %4864 }
 0x399   : > { %18766 = vst [vmem:[#allocation306_spill] sm:$0xff] %v13806_v53  ;;  %5035 = vperm.xlu0 %10446, %v13804_v45   ;;  %18767 = vst [vmem:[#allocation307_spill] sm:$0xff] %v13809_v36  ;;  %v18791_v36 = vld [vmem:[#allocation238_spill] sm:$0xff] }
 0x39c   : > { %v13815_v54 = vpop.permute.xlu0 %4849  ;;  %v13818_v37 = vpop.permute.xlu1 %4870 }
 0x39d   : > { %18770 = vst [vmem:[#allocation308_spill] sm:$0xff] %v13815_v54  ;;  %5041 = vperm.xlu0 %10446, %v13813_v0  }
 0x3a0   : > { %v13824_v21 = vpop.permute.xlu0 %4855  ;;  %v13827_v45 = vpop.permute.xlu1 %4876 }
 0x3a1   : > { %18773 = vst [vmem:[#allocation309_spill] sm:$0xff] %v13824_v21  ;;  %5047 = vperm.xlu0 %10446, %v13822_v17   ;;  %v18802_v21 = vld [vmem:[#allocation246_spill] sm:$0xff] }
 0x3a4   : > { %v13833_v41 = vpop.permute.xlu0 %4861  ;;  %v13836_v0 = vpop.permute.xlu1 %4882 }
 0x3a5   : > { %18776 = vst [vmem:[#allocation310_spill] sm:$0xff] %v13833_v41  ;;  %5053 = vperm.xlu0 %10446, %v13831_v43   ;;  %v18781_v43 = vld [vmem:[#allocation232_spill] sm:$0xff] }
 0x3a6   : > { %v13854_v33 = vadd.f32 %v13509_v28, %v18781_v43 }
 0x3a8   : > { %v4868_v31 = vpop.permute.xlu0 %4867  ;;  %v13843_v17 = vpop.permute.xlu1 %4888  ;;  %18782 = vst [vmem:[#allocation232_spill] sm:$0xff] %v13854_v33 }
 0x3a9   : > { %5059 = vperm.xlu0 %10446, %v13840_v7   ;;  %v18783_v7 = vld [vmem:[#allocation230_spill] sm:$0xff] }
 0x3aa   : > { %v13863_v2 = vadd.f32 %v13523_v57, %v18783_v7  ;;  %v13881_v57 = vadd.f32 %v13551_v4, %v18787_v50  ;;  %v13899_v50 = vadd.f32 %v13579_v25, %v18791_v36  ;;  %v13916_v25 = vadd.f32 %v13607_v39, %v18796_v8 }
 0x3ac   : > { %v4874_v40 = vpop.permute.xlu0 %4873  ;;  %v13850_v56 = vpop.permute.xlu1 %4894  ;;  %18784 = vst [vmem:[#allocation230_spill] sm:$0xff] %v13863_v2  ;;  %18788 = vst [vmem:[#allocation234_spill] sm:$0xff] %v13881_v57 }
 0x3ad   : > { %5065 = vperm.xlu0 %10446, %v13847_v44   ;;  %v18785_v44 = vld [vmem:[#allocation236_spill] sm:$0xff]  ;;  %18792 = vst [vmem:[#allocation238_spill] sm:$0xff] %v13899_v50  ;;  %18797 = vst [vmem:[#allocation242_spill] sm:$0xff] %v13916_v25 }
 0x3ae   : > { %v13872_v28 = vadd.f32 %v13537_v10, %v18785_v44  ;;  %v13890_v44 = vadd.f32 %v13565_v15, %v18789_v22  ;;  %v13908_v22 = vadd.f32 %v13593_v63, %v18793_v42  ;;  %v18798_v63 = vld [vmem:[#allocation248_spill] sm:$0xff] }
 0x3af   : > { %v13925_v42 = vadd.f32 %v13621_v23, %v18798_v63  ;;  %v13943_v23 = vadd.f32 %v13635_v55, %v18802_v21 }
 0x3b0   : > { %v13856_v30 = vpop.permute.xlu0 %4879  ;;  %v13859_v52 = vpop.permute.xlu1 %4900  ;;  %18786 = vst [vmem:[#allocation236_spill] sm:$0xff] %v13872_v28  ;;  %18790 = vst [vmem:[#allocation240_spill] sm:$0xff] %v13890_v44 }
 0x3b1   : > { %5071 = vperm.xlu0 %10446, %v13854_v33   ;;  %18794 = vst [vmem:[#allocation244_spill] sm:$0xff] %v13908_v22  ;;  %18799 = vst [vmem:[#allocation248_spill] sm:$0xff] %v13925_v42 }
 0x3b2   : > { %18803 = vst [vmem:[#allocation246_spill] sm:$0xff] %v13943_v23 }
 0x3b4   : > { %v13865_v62 = vpop.permute.xlu0 %4885  ;;  %v13868_v38 = vpop.permute.xlu1 %4906 }
 0x3b5   : > { %5077 = vperm.xlu0 %10446, %v13863_v2  }
 0x3b8   : > { %v13874_v43 = vpop.permute.xlu0 %4891  ;;  %v13877_v33 = vpop.permute.xlu1 %4912 }
 0x3b9   : > { %5083 = vperm.xlu0 %10446, %v13872_v28  }
 0x3bc   : > { %v13883_v7 = vpop.permute.xlu0 %4897  ;;  %v13886_v2 = vpop.permute.xlu1 %4918 }
 0x3bd   : > { %5089 = vperm.xlu0 %10446, %v13881_v57  }
 0x3c0   : > { %v13892_v10 = vpop.permute.xlu0 %4903  ;;  %v13895_v28 = vpop.permute.xlu1 %4924 }
 0x3c1   : > { %5095 = vperm.xlu0 %10446, %v13890_v44   ;;  %v18795_v44 = vlaneseq }
 0x3c3   : > { %v5155_v16 = vand.u32 127, %v18795_v44 }
 0x3c4   : > { %v13901_v4 = vpop.permute.xlu0 %4909  ;;  %v13904_v57 = vpop.permute.xlu1 %4930 }
 0x3c5   : > { %5101 = vperm.xlu0 %10446, %v13899_v50   ;;  %v5167_v50 = vadd.s32 4294967280, %v5155_v16  ;;  %v5160_v59 = vadd.s32 4294967288, %v5155_v16  ;;  %v5174_v8 = vadd.s32 4294967272, %v5155_v16 }
 0x3c8   : > { %v13910_v15 = vpop.permute.xlu0 %4915  ;;  %v13918_v36 = vpop.permute.xlu1 %4936 }
 0x3c9   : > { %5107 = vperm.xlu0 %10446, %v13908_v22   ;;  %v18800_v22 = vld [vmem:[#allocation2_spill] sm:$0xff] }
 0x3ca   : > { %v13930_v44 = vsub.s32 %v5155_v16, %v18800_v22  ;;  %v13936_v39 = vsub.s32 %v5167_v50, %v18800_v22  ;;  %v13951_v50 = vsub.s32 %v5174_v8, %v18800_v22 }
 0x3cc   : > { %v13920_v13 = vpop.permute.xlu0 %4921  ;;  %18801 = vst [vmem:[#allocation2_spill] sm:$0xff] %v13930_v44  ;;  %v13932_v3 = vpop.permute.xlu1 %4942  ;;  %v5317_v63 = vrot.slane %v4868_v31, %v13930_v44  ;;  %v5326_v54 = vrot.slane %v4874_v40, %v13936_v39  ;;  %v5336_v21 = vrot.slane %v13856_v30, %v13930_v44  ;;  %v18806_v40 = vld [vmem:[#allocation250_spill] sm:$0xff]  ;;  %v5345_v8 = vrot.slane %v13865_v62, %v13936_v39 }
 0x3cd   : > { %5113 = vperm.xlu0 %10446, %v13916_v25   ;;  %v13939_v25 = vsub.s32 %v5160_v59, %v18800_v22  ;;  %v18804_v59 = vld [vmem:[#allocation252_spill] sm:$0xff] }
 0x3ce   : > { %v13955_v16 = vadd.f32 %v13649_v18, %v18804_v59  ;;  %v18808_v59 = vld [vmem:[#allocation256_spill] sm:$0xff] }
 0x3cf   : > { %v5321_v53 = vrot.slane %v13818_v37, %v13939_v25  ;;  %v13964_v37 = vadd.f32 %v13663_v24, %v18806_v40  ;;  %v5340_v30 = vrot.slane %v13836_v0, %v13939_v25  ;;  %v5355_v24 = vrot.slane %v13874_v43, %v13930_v44 }
 0x3d0   : > { %v13927_v41 = vpop.permute.xlu0 %4927  ;;  %18805 = vst [vmem:[#allocation252_spill] sm:$0xff] %v13955_v16  ;;  %v13960_v31 = vpop.permute.xlu1 %4948  ;;  %v5359_v62 = vrot.slane %v13850_v56, %v13939_v25  ;;  %v5378_v56 = vrot.slane %v13868_v38, %v13939_v25 }
 0x3d1   : > { %5119 = vperm.xlu0 %10446, %v13925_v42   ;;  %v5322_v55 = vsel %vm5165_vm1, %v5321_v53, %v5317_v63  ;;  %18807 = vst [vmem:[#allocation250_spill] sm:$0xff] %v13964_v37  ;;  %v5331_v53 = vrot.slane %v13827_v45, %v13951_v50  ;;  %v5374_v45 = vrot.slane %v13892_v10, %v13930_v44 }
 0x3d2   : > { %v5327_v22 = vsel %vm5172_vm2, %v5326_v54, %v5322_v55  ;;  %v5350_v54 = vrot.slane %v13843_v17, %v13951_v50  ;;  %v5341_v43 = vsel %vm5165_vm1, %v5340_v30, %v5336_v21  ;;  %v5383_v63 = vrot.slane %v13901_v4, %v13936_v39 }
 0x3d3   : > { %v5332_v0 = vsel %vm5179_vm3, %v5331_v53, %v5327_v22  ;;  %v5393_v17 = vrot.slane %v13910_v15, %v13930_v44  ;;  %v5346_v55 = vsel %vm5172_vm2, %v5345_v8, %v5341_v43  ;;  %v5412_v10 = vrot.slane %v13927_v41, %v13930_v44 }
 0x3d4   : > { %v4934_v29 = vpop.permute.xlu0 %4933  ;;  %v5360_v21 = vsel %vm5165_vm1, %v5359_v62, %v5355_v24  ;;  %v5397_v4 = vrot.slane %v13886_v2, %v13939_v25  ;;  %v4955_v15 = vpop.permute.xlu1 %4954  ;;  %v5416_v41 = vrot.slane %v13904_v57, %v13939_v25  ;;  %v5369_v53 = vrot.slane %v13859_v52, %v13951_v50 }
 0x3d5   : > { %5125 = vperm.xlu0 %10446, %v13943_v23   ;;  %v13971_v23 = vadd.f32 %v13676_v12, %v18808_v59  ;;  %v5364_v12 = vrot.slane %v13883_v7, %v13936_v39  ;;  %v5402_v7 = vrot.slane %v13920_v13, %v13936_v39  ;;  %v5421_v22 = vrot.slane %v4934_v29, %v13936_v39 }
 0x3d6   : > { %v5379_v13 = vsel %vm5165_vm1, %v5378_v56, %v5374_v45  ;;  %v5398_v29 = vsel %vm5165_vm1, %v5397_v4, %v5393_v17  ;;  %v5351_v30 = vsel %vm5179_vm3, %v5350_v54, %v5346_v55  ;;  %v5388_v24 = vrot.slane %v13877_v33, %v13951_v50  ;;  %v18810_v55 = vld [vmem:[#allocation254_spill] sm:$0xff] }
 0x3d7   : > { %18809 = vst [vmem:[#allocation256_spill] sm:$0xff] %v13971_v23  ;;  %v5365_v38 = vsel %vm5172_vm2, %v5364_v12, %v5360_v21  ;;  %v5384_v2 = vsel %vm5172_vm2, %v5383_v63, %v5379_v13  ;;  %v5403_v62 = vsel %vm5172_vm2, %v5402_v7, %v5398_v29  ;;  %v5417_v57 = vsel %vm5165_vm1, %v5416_v41, %v5412_v10 }
 0x3d8   : > { %v4940_v18 = vpop.permute.xlu0 %4939  ;;  %v5370_v45 = vsel %vm5179_vm3, %v5369_v53, %v5365_v38  ;;  %v5407_v52 = vrot.slane %v13895_v28, %v13951_v50  ;;  %v5422_v43 = vsel %vm5172_vm2, %v5421_v22, %v5417_v57  ;;  %v5426_v33 = vrot.slane %v13918_v36, %v13951_v50 }
 0x3d9   : > { %5131 = vperm.xlu0 %10446, %v13955_v16   ;;  %v5431_v8 = vrot.slane %v4940_v18, %v13930_v44  ;;  %v5435_v18 = vrot.slane %v13932_v3, %v13939_v25  ;;  %v5389_v3 = vsel %vm5179_vm3, %v5388_v24, %v5384_v2  ;;  %v14036_v56 = vadd.f32 %v13689_v11, %v18810_v55 }
 0x3da   : > { %v5784_v28 = vsel %vm5770_vm4, %v5351_v30, %v5332_v0  ;;  %v5408_v7 = vsel %vm5179_vm3, %v5407_v52, %v5403_v62  ;;  %v5445_v10 = vrot.slane %v13960_v31, %v13951_v50  ;;  %v5427_v36 = vsel %vm5179_vm3, %v5426_v33, %v5422_v43 }
 0x3db   : > { %v5436_v63 = vsel %vm5165_vm1, %v5435_v18, %v5431_v8  ;;  %18811 = vst [vmem:[#allocation254_spill] sm:$0xff] %v14036_v56  ;;  %v5785_v21 = vsel %vm5772_vm5, %v5370_v45, %v5784_v28  ;;  %v5454_v4 = vrot.slane %v4955_v15, %v13939_v25  ;;  %v5159_v29 = vrot.slane %v13698_v47, %v13930_v44 }
 0x3dc   : > { %v4946_v40 = vpop.permute.xlu0 %4945  ;;  %v5786_v8 = vsel %vm5774_vm6, %v5389_v3, %v5785_v21  ;;  %v5171_v30 = vrot.slane %v13707_v60, %v13936_v39  ;;  %v5164_v62 = vrot.slane %v13674_v34, %v13939_v25  ;;  %v5184_v57 = vrot.slane %v13716_v61, %v13930_v44  ;;  %v18813_v3 = vld [vmem:[#allocation274_spill] sm:$0xff] }
 0x3dd   : > { %5137 = vperm.xlu0 %10446, %v13964_v37   ;;  %v5440_v59 = vrot.slane %v4946_v40, %v13936_v39  ;;  %v4961_v40 = vpop.permute.xlu1 %4960  ;;  %v5787_v13 = vsel %vm5776_vm7, %v5408_v7, %v5786_v8  ;;  %v5188_v47 = vrot.slane %v13692_v5, %v13939_v25  ;;  %v5178_v43 = vrot.slane %v13683_v51, %v13951_v50 }
 0x3de   : > { %v5464_v31 = vrot.slane %v4961_v40, %v13951_v50  ;;  %v5788_v15 = vsel %vm5778_vm8, %v5427_v36, %v5787_v13  ;;  %v5166_v52 = vsel %vm5165_vm1, %v5164_v62, %v5159_v29  ;;  %v5203_v61 = vrot.slane %v13734_v46, %v13930_v44  ;;  %v18820_v13 = vld [vmem:[#allocation310_spill] sm:$0xff] }
 0x3df   : > { %v5441_v54 = vsel %vm5172_vm2, %v5440_v59, %v5436_v63  ;;  %v5173_v60 = vsel %vm5172_vm2, %v5171_v30, %v5166_v52  ;;  %v5189_v34 = vsel %vm5165_vm1, %v5188_v47, %v5184_v57  ;;  %v18812_v63 = vld [vmem:[#allocation199_spill] sm:$0xff]  ;;  %v5212_v5 = vrot.slane %v13743_v32, %v13936_v39  ;;  %v18823_v62 = vld [vmem:[#allocation198_spill] sm:$0xff] }
 0x3e0   : > { %v4952_v12 = vpop.permute.xlu0 %4951  ;;  %v5446_v0 = vsel %vm5179_vm3, %v5445_v10, %v5441_v54  ;;  %v5180_v51 = vsel %vm5179_vm3, %v5178_v43, %v5173_v60  ;;  %v5207_v55 = vrot.slane %v13710_v35, %v13939_v25  ;;  %v5222_v46 = vrot.slane %v13752_v6, %v13930_v44  ;;  %v18824_v43 = vld [vmem:[#allocation206_spill] sm:$0xff] }
 0x3e1   : > { %5143 = vperm.xlu0 %10446, %v13971_v23   ;;  %v5450_v17 = vrot.slane %v4952_v12, %v13930_v44  ;;  %v5789_v2 = vsel %vm5780_vm9, %v5446_v0, %v5788_v15  ;;  %v5193_v12 = vrot.slane %v13725_v1, %v13936_v39  ;;  %v14083_v1 = vadd.f32 %v18813_v3, %v18812_v63  ;;  %v18821_v15 = vld [vmem:[#allocation196_spill] sm:$0xff] }
 0x3e2   : > { %v5217_v28 = vrot.slane %v13719_v9, %v13951_v50  ;;  %v5226_v7 = vrot.slane %v13728_v19, %v13939_v25  ;;  %v5231_v32 = vrot.slane %v13761_v26, %v13936_v39  ;;  %v5208_v40 = vsel %vm5165_vm1, %v5207_v55, %v5203_v61 }
 0x3e3   : > { %v5455_v38 = vsel %vm5165_vm1, %v5454_v4, %v5450_v17  ;;  %18814 = vst [vmem:[#allocation199_spill] sm:$0xff] %v14083_v1  ;;  %v5194_v33 = vsel %vm5172_vm2, %v5193_v12, %v5189_v34  ;;  %v5198_v17 = vrot.slane %v13701_v14, %v13951_v50  ;;  %v5241_v14 = vrot.slane %v13770_v58, %v13930_v44  ;;  %v18815_v58 = vld [vmem:[#allocation306_spill] sm:$0xff] }
 0x3e4   : > { %v4958_v22 = vpop.permute.xlu0 %4957  ;;  %v5250_v35 = vrot.slane %v13779_v20, %v13936_v39  ;;  %v5260_v6 = vrot.slane %v13788_v48, %v13930_v44  ;;  %v5213_v9 = vsel %vm5172_vm2, %v5212_v5, %v5208_v40  ;;  %v5245_v19 = vrot.slane %v13746_v27, %v13939_v25  ;;  %v18816_v20 = vld [vmem:[#allocation202_spill] sm:$0xff]  ;;  %v18817_v48 = vld [vmem:[#allocation308_spill] sm:$0xff] }
 0x3e5   : > { %v5459_v11 = vrot.slane %v4958_v22, %v13936_v39  ;;  %5149 = vperm.xlu0 %10446, %v14036_v56   ;;  %v5199_v10 = vsel %vm5179_vm3, %v5198_v17, %v5194_v33  ;;  %v5269_v26 = vrot.slane %v13797_v49, %v13936_v39  ;;  %v5279_v21 = vrot.slane %v18815_v58, %v13930_v44  ;;  %v18825_v5 = vld [vmem:[#allocation304_spill] sm:$0xff] }
 0x3e6   : > { %v5227_v4 = vsel %vm5165_vm1, %v5226_v7, %v5222_v46  ;;  %v5264_v22 = vrot.slane %v18816_v20, %v13939_v25  ;;  %v5288_v8 = vrot.slane %v18817_v48, %v13936_v39  ;;  %v5246_v49 = vsel %vm5165_vm1, %v5245_v19, %v5241_v14  ;;  %v18826_v7 = vld [vmem:[#allocation307_spill] sm:$0xff] }
 0x3e7   : > { %v5460_v41 = vsel %vm5172_vm2, %v5459_v11, %v5455_v38  ;;  %v18818_v11 = vld [vmem:[#allocation309_spill] sm:$0xff]  ;;  %v5232_v27 = vsel %vm5172_vm2, %v5231_v32, %v5227_v4  ;;  %v5255_v57 = vrot.slane %v18823_v62, %v13951_v50  ;;  %v5274_v34 = vrot.slane %v18824_v43, %v13951_v50  ;;  %v18830_v20 = vld [vmem:[#allocation203_spill] sm:$0xff] }
 0x3e8   : > { %v14054_v59 = vpop.permute.xlu0 %4963  ;;  %v5465_v53 = vsel %vm5179_vm3, %v5464_v31, %v5460_v41  ;;  %v5298_v0 = vrot.slane %v18818_v11, %v13930_v44  ;;  %v18819_v31 = vld [vmem:[#allocation210_spill] sm:$0xff]  ;;  %v5307_v41 = vrot.slane %v18820_v13, %v13936_v39  ;;  %v5265_v29 = vsel %vm5165_vm1, %v5264_v22, %v5260_v6  ;;  %v18827_v6 = vld [vmem:[#allocation197_spill] sm:$0xff]  ;;  %v18831_v22 = vld [vmem:[#allocation276_spill] sm:$0xff] }
 0x3e9   : > { %v5790_v18 = vsel %vm5782_vm10, %v5465_v53, %v5789_v2  ;;  %v5283_v38 = vrot.slane %v18819_v31, %v13939_v25  ;;  %v5236_v53 = vrot.slane %v18821_v15, %v13951_v50  ;;  %v5251_v2 = vsel %vm5172_vm2, %v5250_v35, %v5246_v49  ;;  %v18837_v13 = vld [vmem:[#allocation278_spill] sm:$0xff]  ;;  %v18839_v15 = vld [vmem:[#allocation205_spill] sm:$0xff]  ;;  %v18849_v43 = vld [vmem:[#allocation283_spill] sm:$0xff] }
 0x3ea   : > { %v5812_v24 = vsel %vm413_vm0, %v5790_v18, -inf  ;;  %v18822_v18 = vld [vmem:[#allocation305_spill] sm:$0xff]  ;;  %v5270_v12 = vsel %vm5172_vm2, %v5269_v26, %v5265_v29  ;;  %v5771_v3 = vsel %vm5770_vm4, %v5199_v10, %v5180_v51  ;;  %v5256_v33 = vsel %vm5179_vm3, %v5255_v57, %v5251_v2 }
 0x3eb   : > { %5813 = vmax.xlane.f32.xlu1 %v5812_v24  ;;  %v5302_v30 = vrot.slane %v18822_v18, %v13939_v25  ;;  %v5218_v24 = vsel %vm5179_vm3, %v5217_v28, %v5213_v9  ;;  %v5284_v47 = vsel %vm5165_vm1, %v5283_v38, %v5279_v21  ;;  %v5237_v60 = vsel %vm5179_vm3, %v5236_v53, %v5232_v27  ;;  %v18828_v9 = vld [vmem:[#allocation275_spill] sm:$0xff]  ;;  %v18834_v27 = vld [vmem:[#allocation277_spill] sm:$0xff] }
 0x3ec   : > { %v14070_v45 = vpop.permute.xlu0 %4969  ;;  %v5289_v61 = vsel %vm5172_vm2, %v5288_v8, %v5284_v47  ;;  %v5293_v17 = vrot.slane %v18825_v5, %v13951_v50  ;;  %v5773_v46 = vsel %vm5772_vm5, %v5218_v24, %v5771_v3  ;;  %v5275_v28 = vsel %vm5179_vm3, %v5274_v34, %v5270_v12  ;;  %v18836_v38 = vld [vmem:[#allocation207_spill] sm:$0xff]  ;;  %v18845_v57 = vld [vmem:[#allocation209_spill] sm:$0xff] }
 0x3ed   : > { %v5303_v63 = vsel %vm5165_vm1, %v5302_v30, %v5298_v0  ;;  %v5312_v32 = vrot.slane %v18826_v7, %v13951_v50  ;;  %v5775_v14 = vsel %vm5774_vm6, %v5237_v60, %v5773_v46  ;;  %v14169_v19 = vadd.f32 %v18828_v9, %v18827_v6  ;;  %v18833_v0 = vld [vmem:[#allocation201_spill] sm:$0xff]  ;;  %v18840_v53 = vld [vmem:[#allocation279_spill] sm:$0xff]  ;;  %v18843_v30 = vld [vmem:[#allocation280_spill] sm:$0xff] }
 0x3ee   : > { %v5308_v55 = vsel %vm5172_vm2, %v5307_v41, %v5303_v63  ;;  %v5294_v51 = vsel %vm5179_vm3, %v5293_v17, %v5289_v61  ;;  %v5777_v35 = vsel %vm5776_vm7, %v5256_v33, %v5775_v14  ;;  %v14179_v48 = vadd.f32 %v18831_v22, %v18830_v20  ;;  %v18842_v18 = vld [vmem:[#allocation211_spill] sm:$0xff]  ;;  %v18846_v12 = vld [vmem:[#allocation281_spill] sm:$0xff]  ;;  %v18858_v7 = vld [vmem:[#allocation288_spill] sm:$0xff] }
 0x3ef   : > { %v5313_v10 = vsel %vm5179_vm3, %v5312_v32, %v5308_v55  ;;  %18829 = vst [vmem:[#allocation274_spill] sm:$0xff] %v14169_v19  ;;  %v5779_v26 = vsel %vm5778_vm8, %v5275_v28, %v5777_v35  ;;  %v14187_v49 = vadd.f32 %v18834_v27, %v18833_v0  ;;  %v14194_v41 = vadd.f32 %v18837_v13, %v18836_v38  ;;  %v18848_v60 = vld [vmem:[#allocation215_spill] sm:$0xff]  ;;  %v18851_v63 = vld [vmem:[#allocation213_spill] sm:$0xff]  ;;  %v18870_v27 = vld [vmem:[#allocation136_spill] sm:$0xff] }
 0x3f0   : > { %v14088_v54 = vpop.permute.xlu0 %4975  ;;  %v5781_v58 = vsel %vm5780_vm9, %v5294_v51, %v5779_v26  ;;  %18832 = vst [vmem:[#allocation306_spill] sm:$0xff] %v14179_v48  ;;  %v14199_v2 = vadd.f32 %v18840_v53, %v18839_v15  ;;  %v14206_v24 = vadd.f32 %v18843_v30, %v18842_v18  ;;  %v14213_v47 = vadd.f32 %v18846_v12, %v18845_v57  ;;  %v18852_v3 = vld [vmem:[#allocation285_spill] sm:$0xff]  ;;  %v18854_v17 = vld [vmem:[#allocation219_spill] sm:$0xff]  ;;  %v18873_v53 = vld [vmem:[#allocation290_spill] sm:$0xff] }
 0x3f1   : > { %v5783_v4 = vsel %vm5782_vm10, %v5313_v10, %v5781_v58  ;;  %18835 = vst [vmem:[#allocation202_spill] sm:$0xff] %v14187_v49  ;;  %18838 = vst [vmem:[#allocation308_spill] sm:$0xff] %v14194_v41  ;;  %v14218_v34 = vadd.f32 %v18849_v43, %v18848_v60  ;;  %v14225_v33 = vadd.f32 %v18852_v3, %v18851_v63  ;;  %v18855_v55 = vld [vmem:[#allocation287_spill] sm:$0xff]  ;;  %v18857_v28 = vld [vmem:[#allocation217_spill] sm:$0xff] }
 0x3f2   : > { %v5809_v8 = vsel %vm413_vm0, %v5783_v4, -inf  ;;  %18841 = vst [vmem:[#allocation309_spill] sm:$0xff] %v14199_v2  ;;  %18844 = vst [vmem:[#allocation210_spill] sm:$0xff] %v14206_v24  ;;  %v14232_v46 = vadd.f32 %v18855_v55, %v18854_v17  ;;  %v14237_v32 = vadd.f32 %v18858_v7, %v18857_v28  ;;  %v18860_v51 = vld [vmem:[#allocation223_spill] sm:$0xff]  ;;  %v18861_v10 = vld [vmem:[#allocation138_spill] sm:$0xff]  ;;  %v5478_v37 = vrot.slane %v14070_v45, %v13936_v39 }
 0x3f3   : > { %18847 = vst [vmem:[#allocation310_spill] sm:$0xff] %v14213_v47  ;;  %18850 = vst [vmem:[#allocation196_spill] sm:$0xff] %v14218_v34  ;;  %v14244_v35 = vadd.f32 %v18861_v10, %v18860_v51  ;;  %v18863_v9 = vld [vmem:[#allocation221_spill] sm:$0xff]  ;;  %v18866_v4 = vld [vmem:[#allocation227_spill] sm:$0xff] }
 0x3f4   : > { %v14118_v36 = vpop.permute.xlu0 %4981  ;;  %18853 = vst [vmem:[#allocation305_spill] sm:$0xff] %v14225_v33  ;;  %18856 = vst [vmem:[#allocation198_spill] sm:$0xff] %v14232_v46  ;;  %v18864_v26 = vld [vmem:[#allocation289_spill] sm:$0xff]  ;;  %v18872_v15 = vld [vmem:[#allocation231_spill] sm:$0xff] }
 0x3f5   : > { %18859 = vst [vmem:[#allocation206_spill] sm:$0xff] %v14237_v32  ;;  %18862 = vst [vmem:[#allocation304_spill] sm:$0xff] %v14244_v35  ;;  %v14251_v58 = vadd.f32 %v18864_v26, %v18863_v9  ;;  %v18867_v20 = vld [vmem:[#allocation145_spill] sm:$0xff]  ;;  %v14270_v18 = vadd.f32 %v18873_v53, %v18872_v15  ;;  %v18876_v57 = vld [vmem:[#allocation292_spill] sm:$0xff]  ;;  %v5497_v16 = vrot.slane %v14118_v36, %v13936_v39 }
 0x3f6   : > { %v14256_v22 = vadd.f32 %v18867_v20, %v18866_v4  ;;  %v18869_v0 = vld [vmem:[#allocation225_spill] sm:$0xff]  ;;  %v18878_v43 = vld [vmem:[#allocation235_spill] sm:$0xff]  ;;  %v18879_v63 = vld [vmem:[#allocation294_spill] sm:$0xff] }
 0x3f7   : > { %18865 = vst [vmem:[#allocation307_spill] sm:$0xff] %v14251_v58  ;;  %v14263_v38 = vadd.f32 %v18870_v27, %v18869_v0  ;;  %18874 = vst [vmem:[#allocation203_spill] sm:$0xff] %v14270_v18  ;;  %v18875_v30 = vld [vmem:[#allocation229_spill] sm:$0xff]  ;;  %v14282_v3 = vadd.f32 %v18879_v63, %v18878_v43  ;;  %v18882_v28 = vld [vmem:[#allocation296_spill] sm:$0xff] }
 0x3f8   : > { %v14144_v52 = vpop.permute.xlu0 %4987  ;;  %18868 = vst [vmem:[#allocation197_spill] sm:$0xff] %v14256_v22  ;;  %v14275_v12 = vadd.f32 %v18876_v57, %v18875_v30  ;;  %v18881_v55 = vld [vmem:[#allocation233_spill] sm:$0xff]  ;;  %v18884_v51 = vld [vmem:[#allocation239_spill] sm:$0xff]  ;;  %v18885_v10 = vld [vmem:[#allocation298_spill] sm:$0xff] }
 0x3f9   : > { %18871 = vst [vmem:[#allocation275_spill] sm:$0xff] %v14263_v38  ;;  %18880 = vst [vmem:[#allocation201_spill] sm:$0xff] %v14282_v3  ;;  %v14289_v7 = vadd.f32 %v18882_v28, %v18881_v55  ;;  %v14294_v9 = vadd.f32 %v18885_v10, %v18884_v51  ;;  %v18887_v4 = vld [vmem:[#allocation237_spill] sm:$0xff]  ;;  %v18890_v15 = vld [vmem:[#allocation243_spill] sm:$0xff]  ;;  %v5507_v42 = vrot.slane %v14144_v52, %v13930_v44 }
 0x3fa   : > { %18877 = vst [vmem:[#allocation276_spill] sm:$0xff] %v14275_v12  ;;  %v18888_v20 = vld [vmem:[#allocation301_spill] sm:$0xff]  ;;  %v18891_v53 = vld [vmem:[#allocation303_spill] sm:$0xff]  ;;  %v18894_v43 = vld [vmem:[#allocation178_spill] sm:$0xff] }
 0x3fb   : > { %18883 = vst [vmem:[#allocation277_spill] sm:$0xff] %v14289_v7  ;;  %18886 = vst [vmem:[#allocation207_spill] sm:$0xff] %v14294_v9  ;;  %v14301_v0 = vadd.f32 %v18888_v20, %v18887_v4  ;;  %v14308_v30 = vadd.f32 %v18891_v53, %v18890_v15  ;;  %v18893_v57 = vld [vmem:[#allocation241_spill] sm:$0xff]  ;;  %v18896_v28 = vld [vmem:[#allocation247_spill] sm:$0xff] }
 0x3fc   : > { %v14161_v40 = vpop.permute.xlu0 %4993  ;;  %4966 = vperm.xlu1 %10447, %v14083_v1   ;;  %v14313_v63 = vadd.f32 %v18894_v43, %v18893_v57  ;;  %v18897_v51 = vld [vmem:[#allocation183_spill] sm:$0xff]  ;;  %v18899_v20 = vld [vmem:[#allocation245_spill] sm:$0xff]  ;;  %v18900_v15 = vld [vmem:[#allocation262_spill] sm:$0xff] }
 0x3fd   : > { %18889 = vst [vmem:[#allocation278_spill] sm:$0xff] %v14301_v0  ;;  %18892 = vst [vmem:[#allocation205_spill] sm:$0xff] %v14308_v30  ;;  %v14320_v10 = vadd.f32 %v18897_v51, %v18896_v28  ;;  %v14327_v53 = vadd.f32 %v18900_v15, %v18899_v20  ;;  %v18902_v57 = vld [vmem:[#allocation251_spill] sm:$0xff]  ;;  %v18903_v43 = vld [vmem:[#allocation264_spill] sm:$0xff] }
 0x3fe   : > { %18895 = vst [vmem:[#allocation279_spill] sm:$0xff] %v14313_v63  ;;  %v18905_v28 = vld [vmem:[#allocation249_spill] sm:$0xff]  ;;  %v18906_v51 = vld [vmem:[#allocation180_spill] sm:$0xff]  ;;  %v18908_v20 = vld [vmem:[#allocation255_spill] sm:$0xff] }
 0x3ff   : > { %18898 = vst [vmem:[#allocation211_spill] sm:$0xff] %v14320_v10  ;;  %18901 = vst [vmem:[#allocation280_spill] sm:$0xff] %v14327_v53  ;;  %v18909_v15 = vld [vmem:[#allocation179_spill] sm:$0xff]  ;;  %v18927_v1 = vld [vmem:[#allocation58_spill] sm:$0xff] }
 0x400   : > { %v14173_v21 = vpop.permute.xlu0 %4999  ;;  %4972 = vperm.xlu1 %10447, %v14169_v19   ;;  %v18928_v45 = vld [vmem:[#allocation69_spill] sm:$0xff] }
 0x401   : > { %v5526_v36 = vrot.slane %v14173_v21, %v13930_v44 }
 0x404   : > { %v14182_v11 = vpop.permute.xlu0 %5005  ;;  %5810 = vmax.xlane.f32.xlu0 %v5809_v8  ;;  %4978 = vperm.xlu1 %10447, %v14179_v48   ;;  %v18926_v48 = vld [vmem:[#allocation4_spill] sm:$0xff] }
 0x405   : > { %v5535_v52 = vrot.slane %v14182_v11, %v13936_v39 }
 0x408   : > { %v14189_v31 = vpop.permute.xlu0 %5011  ;;  %4984 = vperm.xlu1 %10447, %v14187_v49  }
 0x40c   : > { %4990 = vperm.xlu1 %10447, %v14194_v41   ;;  %v14201_v29 = vpop.permute.xlu0 %5017 }
 0x410   : > { %4996 = vperm.xlu1 %10447, %v14199_v2   ;;  %v14208_v62 = vpop.permute.xlu0 %5023 }
 0x414   : > { %5002 = vperm.xlu1 %10447, %v14206_v24   ;;  %v14220_v61 = vpop.permute.xlu0 %5029  ;;  %v18925_v24 = vld [vmem:[#allocation49_spill] sm:$0xff] }
 0x418   : > { %5008 = vperm.xlu1 %10447, %v14213_v47   ;;  %v14227_v5 = vpop.permute.xlu0 %5035 }
 0x419   : > { %v5583_v21 = vrot.slane %v14227_v5, %v13930_v44 }
 0x41c   : > { %5014 = vperm.xlu1 %10447, %v14218_v34   ;;  %v14239_v14 = vpop.permute.xlu0 %5041 }
 0x420   : > { %5020 = vperm.xlu1 %10447, %v14225_v33   ;;  %v14246_v6 = vpop.permute.xlu0 %5047  ;;  %v18924_v33 = vld [vmem:[#allocation44_spill] sm:$0xff] }
 0x424   : > { %5026 = vperm.xlu1 %10447, %v14232_v46   ;;  %v14258_v8 = vpop.permute.xlu0 %5053 }
 0x428   : > { %5032 = vperm.xlu1 %10447, %v14237_v32   ;;  %v14265_v13 = vpop.permute.xlu0 %5059 }
 0x42c   : > { %5038 = vperm.xlu1 %10447, %v14244_v35   ;;  %v14277_v60 = vpop.permute.xlu0 %5065  ;;  %v18922_v35 = vld [vmem:[#allocation3_spill] sm:$0xff] }
 0x430   : > { %5044 = vperm.xlu1 %10447, %v14251_v58   ;;  %v14284_v17 = vpop.permute.xlu0 %5071 }
 0x434   : > { %5050 = vperm.xlu1 %10447, %v14256_v22   ;;  %v14296_v26 = vpop.permute.xlu0 %5077 }
 0x438   : > { %5056 = vperm.xlu1 %10447, %v14263_v38   ;;  %v14303_v27 = vpop.permute.xlu0 %5083 }
 0x43c   : > { %5062 = vperm.xlu1 %10447, %v14270_v18   ;;  %v14315_v55 = vpop.permute.xlu0 %5089 }
 0x440   : > { %5068 = vperm.xlu1 %10447, %v14275_v12   ;;  %v14322_v4 = vpop.permute.xlu0 %5095 }
 0x444   : > { %5074 = vperm.xlu1 %10447, %v14282_v3  }
 0x448   : > { %5080 = vperm.xlu1 %10447, %v14289_v7  }
 0x44c   : > { %5086 = vperm.xlu1 %10447, %v14294_v9  }
 0x450   : > { %5092 = vperm.xlu1 %10447, %v14301_v0   ;;  %v14334_v0 = vpop.permute.xlu0 %5101 }
 0x454   : > { %5098 = vperm.xlu1 %10447, %v14308_v30   ;;  %v14332_v30 = vadd.f32 %v18903_v43, %v18902_v57  ;;  %v14341_v9 = vpop.permute.xlu0 %5107  ;;  %v18911_v57 = vld [vmem:[#allocation253_spill] sm:$0xff] }
 0x455   : > { %v18912_v43 = vld [vmem:[#allocation269_spill] sm:$0xff] }
 0x456   : > { %18904 = vst [vmem:[#allocation209_spill] sm:$0xff] %v14332_v30 }
 0x458   : > { %5104 = vperm.xlu1 %10447, %v14313_v63   ;;  %v14339_v63 = vadd.f32 %v18906_v51, %v18905_v28  ;;  %v14353_v7 = vpop.permute.xlu0 %5113  ;;  %v18914_v28 = vld [vmem:[#allocation258_spill] sm:$0xff]  ;;  %v18915_v51 = vld [vmem:[#allocation189_spill] sm:$0xff] }
 0x45a   : > { %18907 = vst [vmem:[#allocation281_spill] sm:$0xff] %v14339_v63 }
 0x45c   : > { %5110 = vperm.xlu1 %10447, %v14320_v10   ;;  %v14346_v10 = vadd.f32 %v18909_v15, %v18908_v20  ;;  %v14360_v3 = vpop.permute.xlu0 %5119  ;;  %v18917_v20 = vld [vmem:[#allocation257_spill] sm:$0xff]  ;;  %v18918_v15 = vld [vmem:[#allocation270_spill] sm:$0xff] }
 0x45e   : > { %18910 = vst [vmem:[#allocation215_spill] sm:$0xff] %v14346_v10 }
 0x460   : > { %5116 = vperm.xlu1 %10447, %v14327_v53   ;;  %v14351_v53 = vadd.f32 %v18912_v43, %v18911_v57  ;;  %v14370_v43 = vpop.permute.xlu0 %5125 }
 0x462   : > { %18913 = vst [vmem:[#allocation283_spill] sm:$0xff] %v14351_v53 }
 0x464   : > { %5122 = vperm.xlu1 %10447, %v14332_v30   ;;  %v14358_v30 = vadd.f32 %v18915_v51, %v18914_v28 }
 0x466   : > { %18916 = vst [vmem:[#allocation213_spill] sm:$0xff] %v14358_v30 }
 0x468   : > { %5128 = vperm.xlu1 %10447, %v14339_v63   ;;  %v14365_v63 = vadd.f32 %v18918_v15, %v18917_v20 }
 0x46a   : > { %18919 = vst [vmem:[#allocation285_spill] sm:$0xff] %v14365_v63 }
 0x46c   : > { %5134 = vperm.xlu1 %10447, %v14346_v10  }
 0x470   : > { %5140 = vperm.xlu1 %10447, %v14351_v53   ;;  %v14372_v53 = vpop.permute.xlu0 %5131 }
 0x474   : > { %5146 = vperm.xlu1 %10447, %v14358_v30   ;;  %v14374_v51 = vpop.permute.xlu0 %5137 }
 0x478   : > { %5152 = vperm.xlu1 %10447, %v14365_v63   ;;  %v14368_v57 = vpop.xlane.xlu1 %5813  ;;  %v14378_v30 = vpop.permute.xlu0 %5143 }
 0x479   : > { %18920 = vst [vmem:[#allocation219_spill] sm:$0xff] %v14378_v30 }
 0x47c   : > { %v4967_v10 = vpop.permute.xlu1 %4966  ;;  %v14382_v15 = vpop.permute.xlu0 %5149 }
 0x47d   : > { %18921 = vst [vmem:[#allocation287_spill] sm:$0xff] %v14382_v15 }
 0x480   : > { %v4973_v12 = vpop.permute.xlu1 %4972 }
 0x484   : > { %v4979_v28 = vpop.permute.xlu1 %4978 }
 0x488   : > { %v14376_v18 = vpop.permute.xlu1 %4984 }
 0x489   : > { %v5502_v5 = vrot.slane %v14376_v18, %v13951_v50 }
 0x48c   : > { %v4991_v38 = vpop.permute.xlu1 %4990 }
 0x490   : > { %v14380_v20 = vpop.permute.xlu1 %4996 }
 0x491   : > { %v14386_v22 = vpop.xlane.xlu0 %5810 }
 0x492   : > { %v14392_v32 = vrot.slane %v14386_v22, %v18922_v35  ;;  %v14406_v19 = vrot.slane %v14386_v22, %v18926_v48 }
 0x494   : > { %v14384_v63 = vpop.permute.xlu1 %5002  ;;  %18923 = vst [vmem:[#allocation217_spill] sm:$0xff] %v14392_v32  ;;  %v5985_v34 = vsub.f32 %v18924_v33, %v14392_v32  ;;  %v5987_v2 = vsub.f32 %v18925_v24, %v14392_v32  ;;  %v5988_v56 = vsub.f32 %v18927_v1, %v14392_v32  ;;  %v5469_v33 = vrot.slane %v14054_v59, %v13930_v44  ;;  %v18929_v32 = vld [vmem:[#allocation5_spill] sm:$0xff] }
 0x495   : > { %v5488_v24 = vrot.slane %v14088_v54, %v13930_v44  ;;  %v5492_v1 = vrot.slane %v4979_v28, %v13939_v25  ;;  %v5516_v59 = vrot.slane %v14161_v40, %v13936_v39  ;;  %v5990_v54 = vsub.f32 %v18928_v45, %v14406_v19 }
 0x496   : > { %v6113_v41 = vmul.f32 1.442695, %v5985_v34  ;;  %v6117_v23 = vmul.f32 1.442695, %v5987_v2  ;;  %v5473_v34 = vrot.slane %v4967_v10, %v13939_v25  ;;  %v6119_v10 = vmul.f32 1.442695, %v5988_v56 }
 0x497   : > { %v5545_v28 = vrot.slane %v14189_v31, %v13930_v44  ;;  %v5564_v40 = vrot.slane %v14208_v62, %v13930_v44  ;;  %v5573_v45 = vrot.slane %v14220_v61, %v13936_v39  ;;  %v5483_v56 = vrot.slane %v4973_v12, %v13951_v50  ;;  %v18930_v62 = vld [vmem:[#allocation79_spill] sm:$0xff] }
 0x498   : > { %v14388_v58 = vpop.permute.xlu1 %5008  ;;  %10770 = vpow2.f32 %v6113_v41  ;;  %v5511_v41 = vrot.slane %v4991_v38, %v13939_v25  ;;  %v5554_v38 = vrot.slane %v14201_v29, %v13936_v39  ;;  %v5493_v11 = vsel %vm5165_vm1, %v5492_v1, %v5488_v24 }
 0x499   : > { %10772 = vpow2.f32 %v6117_v23  ;;  %v5474_v23 = vsel %vm5165_vm1, %v5473_v34, %v5469_v33  ;;  %v14449_v29 = vrot.slane %v14386_v22, %v18929_v32  ;;  %v5992_v30 = vsub.f32 %v18930_v62, %v14406_v19 }
 0x49a   : > { %v5512_v31 = vsel %vm5165_vm1, %v5511_v41, %v5507_v42  ;;  %10774 = vpow2.f32 %v6119_v10  ;;  %v6123_v61 = vmul.f32 1.442695, %v5990_v54  ;;  %v5530_v12 = vrot.slane %v14384_v63, %v13939_v25  ;;  %v18932_v54 = vld [vmem:[#allocation89_spill] sm:$0xff] }
 0x49b   : > { %v5479_v33 = vsel %vm5172_vm2, %v5478_v37, %v5474_v23  ;;  %v5521_v42 = vrot.slane %v14380_v20, %v13951_v50  ;;  %v5592_v1 = vrot.slane %v14239_v14, %v13936_v39  ;;  %v5602_v41 = vrot.slane %v14246_v6, %v13930_v44 }
 0x49c   : > { %v14394_v46 = vpop.permute.xlu1 %5014  ;;  %v5484_v63 = vsel %vm5179_vm3, %v5483_v56, %v5479_v33  ;;  %v5498_v18 = vsel %vm5172_vm2, %v5497_v16, %v5493_v11  ;;  %v5517_v20 = vsel %vm5172_vm2, %v5516_v59, %v5512_v31  ;;  %10776 = vpow2.f32 %v6123_v61 }
 0x49d   : > { %v5549_v24 = vrot.slane %v14394_v46, %v13939_v25  ;;  %v5994_v46 = vsub.f32 %v18932_v54, %v14449_v29  ;;  %v6127_v23 = vmul.f32 1.442695, %v5992_v30  ;;  %v5531_v6 = vsel %vm5165_vm1, %v5530_v12, %v5526_v36  ;;  %v18935_v30 = vld [vmem:[#allocation97_spill] sm:$0xff] }
 0x49e   : > { %v5540_v56 = vrot.slane %v14388_v58, %v13951_v50  ;;  %v5522_v16 = vsel %vm5179_vm3, %v5521_v42, %v5517_v20  ;;  %v5996_v36 = vsub.f32 %v18935_v30, %v14449_v29 }
 0x49f   : > { %v5550_v59 = vsel %vm5165_vm1, %v5549_v24, %v5545_v28  ;;  %v6131_v12 = vmul.f32 1.442695, %v5994_v46  ;;  %v5536_v28 = vsel %vm5172_vm2, %v5535_v52, %v5531_v6  ;;  %10778 = vpow2.f32 %v6127_v23 }
 0x4a0   : > { %v14398_v47 = vpop.permute.xlu1 %5020  ;;  %v5541_v42 = vsel %vm5179_vm3, %v5540_v56, %v5536_v28  ;;  %v5555_v24 = vsel %vm5172_vm2, %v5554_v38, %v5550_v59  ;;  %v5611_v38 = vrot.slane %v14258_v8, %v13936_v39  ;;  %v6135_v6 = vmul.f32 1.442695, %v5996_v36 }
 0x4a1   : > { %v5559_v11 = vrot.slane %v14398_v47, %v13951_v50  ;;  %10780 = vpow2.f32 %v6131_v12 }
 0x4a2   : > { %v14462_v34 = vpop.eup %10770  ;;  %10782 = vpow2.f32 %v6135_v6 }
 0x4a3   : > { %18931 = vst [vmem:[#allocation288_spill] sm:$0xff] %v14462_v34  ;;  %6498 = vperm.xlu1 %10447, %v14462_v34   ;;  %v14485_v31 = vpop.eup %10772 }
 0x4a4   : > { %v14402_v49 = vpop.permute.xlu1 %5026  ;;  %18933 = vst [vmem:[#allocation223_spill] sm:$0xff] %v14485_v31 }
 0x4a5   : > { %v5568_v37 = vrot.slane %v14402_v49, %v13939_v25  ;;  %v5503_v49 = vsel %vm5179_vm3, %v5502_v5, %v5498_v18  ;;  %v14506_v18 = vpop.eup %10774 }
 0x4a6   : > { %18936 = vst [vmem:[#allocation138_spill] sm:$0xff] %v14506_v18 }
 0x4a7   : > { %v5569_v58 = vsel %vm5165_vm1, %v5568_v37, %v5564_v40  ;;  %6504 = vperm.xlu1 %10447, %v14485_v31   ;;  %v5791_v37 = vsel %vm5770_vm4, %v5503_v49, %v5484_v63  ;;  %v14523_v49 = vpop.eup %10776 }
 0x4a8   : > { %v14423_v2 = vpop.permute.xlu1 %5032  ;;  %v5574_v52 = vsel %vm5172_vm2, %v5573_v45, %v5569_v58  ;;  %18938 = vst [vmem:[#allocation221_spill] sm:$0xff] %v14523_v49 }
 0x4a9   : > { %v5578_v61 = vrot.slane %v14423_v2, %v13951_v50  ;;  %v5560_v2 = vsel %vm5179_vm3, %v5559_v11, %v5555_v24  ;;  %v18939_v11 = vld [vmem:[#allocation7_spill] sm:$0xff] }
 0x4aa   : > { %v14529_v30 = vrot.slane %v14386_v22, %v18939_v11 }
 0x4ab   : > { %v5579_v20 = vsel %vm5179_vm3, %v5578_v61, %v5574_v52  ;;  %6507 = vperm.xlu1 %10447, %v14506_v18   ;;  %v18940_v61 = vld [vmem:[#allocation118_spill] sm:$0xff]  ;;  %v18944_v52 = vld [vmem:[#allocation8_spill] sm:$0xff] }
 0x4ac   : > { %v5039_v15 = vpop.permute.xlu1 %5038 }
 0x4ad   : > { %v5587_v10 = vrot.slane %v5039_v15, %v13939_v25  ;;  %v18934_v15 = vld [vmem:[#allocation6_spill] sm:$0xff] }
 0x4ae   : > { %v14489_v62 = vrot.slane %v14386_v22, %v18934_v15 }
 0x4af   : > { %v5588_v47 = vsel %vm5165_vm1, %v5587_v10, %v5583_v21  ;;  %v5792_v21 = vsel %vm5772_vm5, %v5522_v16, %v5791_v37  ;;  %v18937_v10 = vld [vmem:[#allocation107_spill] sm:$0xff]  ;;  %6513 = vperm.xlu1 %10447, %v14523_v49  }
 0x4b0   : > { %v5045_v14 = vpop.permute.xlu1 %5044  ;;  %v5593_v54 = vsel %vm5172_vm2, %v5592_v1, %v5588_v47  ;;  %v5998_v63 = vsub.f32 %v18937_v10, %v14489_v62  ;;  %v6000_v12 = vsub.f32 %v18940_v61, %v14489_v62  ;;  %v18952_v61 = vld [vmem:[#allocation129_spill] sm:$0xff] }
 0x4b1   : > { %v5597_v33 = vrot.slane %v5045_v14, %v13951_v50  ;;  %v5793_v14 = vsel %vm5774_vm6, %v5541_v42, %v5792_v21  ;;  %v18942_v42 = vld [vmem:[#allocation282_spill] sm:$0xff]  ;;  %v14552_v21 = vrot.slane %v14386_v22, %v18944_v52 }
 0x4b2   : > { %v5794_v56 = vsel %vm5776_vm7, %v5560_v2, %v5793_v14  ;;  %v6139_v28 = vmul.f32 1.442695, %v5998_v63  ;;  %v6002_v24 = vsub.f32 %v18942_v42, %v14529_v30  ;;  %v18947_v63 = vld [vmem:[#allocation286_spill] sm:$0xff] }
 0x4b3   : > { %v5598_v45 = vsel %vm5179_vm3, %v5597_v33, %v5593_v54  ;;  %v5795_v8 = vsel %vm5778_vm8, %v5579_v20, %v5794_v56  ;;  %v14538_v33 = vpop.eup %10778  ;;  %v18945_v20 = vld [vmem:[#allocation284_spill] sm:$0xff]  ;;  %v6006_v14 = vsub.f32 %v18947_v63, %v14552_v21  ;;  %v18949_v56 = vld [vmem:[#allocation9_spill] sm:$0xff] }
 0x4b4   : > { %v5051_v5 = vpop.permute.xlu1 %5050  ;;  %v5796_v59 = vsel %vm5780_vm9, %v5598_v45, %v5795_v8  ;;  %18941 = vst [vmem:[#allocation289_spill] sm:$0xff] %v14538_v33  ;;  %6519 = vperm.xlu1 %10447, %v14538_v33   ;;  %10784 = vpow2.f32 %v6139_v28  ;;  %v14545_v37 = vpop.eup %10780  ;;  %v6004_v54 = vsub.f32 %v18945_v20, %v14529_v30  ;;  %v18955_v20 = vld [vmem:[#allocation142_spill] sm:$0xff] }
 0x4b5   : > { %v5606_v40 = vrot.slane %v5051_v5, %v13939_v25  ;;  %18943 = vst [vmem:[#allocation227_spill] sm:$0xff] %v14545_v37 }
 0x4b6   : > { %v6151_v45 = vmul.f32 1.442695, %v6004_v54 }
 0x4b7   : > { %v5607_v46 = vsel %vm5165_vm1, %v5606_v40, %v5602_v41  ;;  %v6143_v40 = vmul.f32 1.442695, %v6000_v12 }
 0x4b8   : > { %v5057_v23 = vpop.permute.xlu1 %5056  ;;  %v5612_v41 = vsel %vm5172_vm2, %v5611_v38, %v5607_v46  ;;  %6525 = vperm.xlu1 %10447, %v14545_v37   ;;  %v6147_v46 = vmul.f32 1.442695, %v6002_v24  ;;  %v14556_v38 = vpop.eup %10782  ;;  %v18954_v24 = vld [vmem:[#allocation10_spill] sm:$0xff] }
 0x4b9   : > { %v5616_v1 = vrot.slane %v5057_v23, %v13951_v50  ;;  %10786 = vpow2.f32 %v6143_v40  ;;  %18946 = vst [vmem:[#allocation145_spill] sm:$0xff] %v14556_v38  ;;  %v14588_v40 = vrot.slane %v14386_v22, %v18954_v24 }
 0x4ba   : > { %10788 = vpow2.f32 %v6147_v46 }
 0x4bb   : > { %v5617_v16 = vsel %vm5179_vm3, %v5616_v1, %v5612_v41  ;;  %v14570_v1 = vrot.slane %v14386_v22, %v18949_v56  ;;  %v18950_v41 = vld [vmem:[#allocation54_spill] sm:$0xff]  ;;  %10790 = vpow2.f32 %v6151_v45  ;;  %v18957_v45 = vld [vmem:[#allocation135_spill] sm:$0xff] }
 0x4bc   : > { %v14532_v36 = vpop.permute.xlu1 %5062  ;;  %v5797_v58 = vsel %vm5782_vm10, %v5617_v16, %v5796_v59  ;;  %6531 = vperm.xlu1 %10447, %v14556_v38   ;;  %v6008_v8 = vsub.f32 %v18950_v41, %v14552_v21  ;;  %v6155_v16 = vmul.f32 1.442695, %v6006_v14  ;;  %v6014_v41 = vsub.f32 %v18957_v45, %v14588_v40  ;;  %v18965_v38 = vld [vmem:[#allocation293_spill] sm:$0xff] }
 0x4bd   : > { %v5815_v47 = vsel %vm413_vm0, %v5797_v58, -inf  ;;  %v6010_v12 = vsub.f32 %v18952_v61, %v14570_v1  ;;  %v6012_v54 = vsub.f32 %v18955_v20, %v14570_v1  ;;  %v14606_v61 = vrot.slane %v14368_v57, %v18922_v35 }
 0x4be   : > { %5816 = vmax.xlane.f32.xlu0 %v5815_v47  ;;  %v14563_v23 = vpop.eup %10784  ;;  %10792 = vpow2.f32 %v6155_v16  ;;  %v6159_v28 = vmul.f32 1.442695, %v6008_v8  ;;  %v6171_v20 = vmul.f32 1.442695, %v6014_v41 }
 0x4bf   : > { %18948 = vst [vmem:[#allocation225_spill] sm:$0xff] %v14563_v23  ;;  %v6163_v46 = vmul.f32 1.442695, %v6010_v12  ;;  %v6167_v8 = vmul.f32 1.442695, %v6012_v54  ;;  %v18959_v12 = vld [vmem:[#allocation166_spill] sm:$0xff] }
 0x4c0   : > { %v14541_v5 = vpop.permute.xlu1 %5068  ;;  %6537 = vperm.xlu1 %10447, %v14563_v23   ;;  %10794 = vpow2.f32 %v6159_v28  ;;  %v6016_v28 = vsub.f32 %v18959_v12, %v14588_v40  ;;  %v5630_v23 = vrot.slane %v14277_v60, %v13936_v39  ;;  %v5678_v60 = vrot.slane %v14322_v4, %v13930_v44 }
 0x4c1   : > { %10796 = vpow2.f32 %v6163_v46  ;;  %v18961_v46 = vld [vmem:[#allocation140_spill] sm:$0xff]  ;;  %v5716_v4 = vrot.slane %v14360_v3, %v13930_v44 }
 0x4c2   : > { %10798 = vpow2.f32 %v6167_v8  ;;  %v6018_v45 = vsub.f32 %v18961_v46, %v14606_v61  ;;  %v18963_v8 = vld [vmem:[#allocation291_spill] sm:$0xff]  ;;  %v14630_v46 = vrot.slane %v14368_v57, %v18929_v32 }
 0x4c3   : > { %v14574_v59 = vpop.eup %10786  ;;  %10800 = vpow2.f32 %v6171_v20  ;;  %v6020_v12 = vsub.f32 %v18963_v8, %v14606_v61  ;;  %v5621_v20 = vrot.slane %v14265_v13, %v13930_v44  ;;  %v5649_v8 = vrot.slane %v14296_v26, %v13936_v39 }
 0x4c4   : > { %v14548_v2 = vpop.permute.xlu1 %5074  ;;  %18951 = vst [vmem:[#allocation136_spill] sm:$0xff] %v14574_v59  ;;  %6543 = vperm.xlu1 %10447, %v14574_v59   ;;  %v14581_v47 = vpop.eup %10788  ;;  %v14621_v59 = vrot.slane %v14368_v57, %v18926_v48 }
 0x4c5   : > { %18953 = vst [vmem:[#allocation231_spill] sm:$0xff] %v14581_v47  ;;  %v14592_v63 = vpop.eup %10790  ;;  %v6183_v26 = vmul.f32 1.442695, %v6020_v12  ;;  %v5744_v12 = vrot.slane %v14374_v51, %v13936_v39  ;;  %v18970_v51 = vld [vmem:[#allocation300_spill] sm:$0xff] }
 0x4c6   : > { %18956 = vst [vmem:[#allocation290_spill] sm:$0xff] %v14592_v63  ;;  %v6022_v37 = vsub.f32 %v18965_v38, %v14621_v59  ;;  %v5706_v38 = vrot.slane %v14353_v7, %v13936_v39  ;;  %v5735_v7 = vrot.slane %v14372_v53, %v13930_v44  ;;  %v14686_v53 = vrot.slane %v14368_v57, %v18934_v15 }
 0x4c8   : > { %v14559_v10 = vpop.permute.xlu1 %5080  ;;  %6549 = vperm.xlu1 %10447, %v14581_v47   ;;  %v14599_v16 = vpop.eup %10792 }
 0x4c9   : > { %18958 = vst [vmem:[#allocation229_spill] sm:$0xff] %v14599_v16 }
 0x4cc   : > { %v14566_v6 = vpop.permute.xlu1 %5086  ;;  %6555 = vperm.xlu1 %10447, %v14592_v63   ;;  %v14610_v63 = vpop.eup %10794 }
 0x4cd   : > { %18960 = vst [vmem:[#allocation292_spill] sm:$0xff] %v14610_v63  ;;  %v14617_v47 = vpop.eup %10796 }
 0x4ce   : > { %18962 = vst [vmem:[#allocation235_spill] sm:$0xff] %v14617_v47 }
 0x4d0   : > { %v14577_v58 = vpop.permute.xlu1 %5092  ;;  %6561 = vperm.xlu1 %10447, %v14599_v16   ;;  %v6175_v16 = vmul.f32 1.442695, %v6016_v28  ;;  %v14632_v28 = vpop.eup %10798 }
 0x4d1   : > { %18964 = vst [vmem:[#allocation294_spill] sm:$0xff] %v14632_v28  ;;  %v14663_v18 = vpop.eup %10800 }
 0x4d2   : > { %10802 = vpow2.f32 %v6175_v16  ;;  %v5659_v16 = vrot.slane %v14303_v27, %v13930_v44  ;;  %v5687_v27 = vrot.slane %v14334_v0, %v13936_v39  ;;  %18968 = vst [vmem:[#allocation233_spill] sm:$0xff] %v14663_v18  ;;  %v5625_v0 = vrot.slane %v14532_v36, %v13939_v25 }
 0x4d4   : > { %v14584_v42 = vpop.permute.xlu1 %5098  ;;  %6567 = vperm.xlu1 %10447, %v14610_v63   ;;  %v6179_v63 = vmul.f32 1.442695, %v6018_v45  ;;  %v5668_v45 = vrot.slane %v14315_v55, %v13936_v39  ;;  %v5697_v55 = vrot.slane %v14341_v9, %v13930_v44  ;;  %v5644_v9 = vrot.slane %v14548_v2, %v13939_v25 }
 0x4d5   : > { %v5682_v2 = vrot.slane %v14584_v42, %v13939_v25  ;;  %v5654_v42 = vrot.slane %v14559_v10, %v13951_v50 }
 0x4d6   : > { %10804 = vpow2.f32 %v6179_v63  ;;  %v5725_v63 = vrot.slane %v14370_v43, %v13936_v39  ;;  %v18969_v43 = vld [vmem:[#allocation219_spill] sm:$0xff] }
 0x4d7   : > { %v5754_v31 = vrot.slane %v18969_v43, %v13930_v44  ;;  %10806 = vpow2.f32 %v6183_v26  ;;  %v5626_v43 = vsel %vm5165_vm1, %v5625_v0, %v5621_v20  ;;  %v5683_v10 = vsel %vm5165_vm1, %v5682_v2, %v5678_v60 }
 0x4d8   : > { %v14595_v14 = vpop.permute.xlu1 %5104  ;;  %6573 = vperm.xlu1 %10447, %v14617_v47   ;;  %v5640_v47 = vrot.slane %v14284_v17, %v13930_v44  ;;  %v18966_v17 = vld [vmem:[#allocation295_spill] sm:$0xff]  ;;  %v5631_v20 = vsel %vm5172_vm2, %v5630_v23, %v5626_v43 }
 0x4d9   : > { %v6024_v33 = vsub.f32 %v18966_v17, %v14621_v59  ;;  %v5663_v17 = vrot.slane %v14566_v6, %v13939_v25 }
 0x4db   : > { %v6191_v36 = vmul.f32 1.442695, %v6024_v33  ;;  %v5645_v33 = vsel %vm5165_vm1, %v5644_v9, %v5640_v47  ;;  %v5664_v44 = vsel %vm5165_vm1, %v5663_v17, %v5659_v16  ;;  %v5635_v47 = vrot.slane %v14541_v5, %v13951_v50 }
 0x4dc   : > { %v14602_v22 = vpop.permute.xlu1 %5110  ;;  %6579 = vperm.xlu1 %10447, %v14632_v28   ;;  %v18967_v28 = vld [vmem:[#allocation297_spill] sm:$0xff]  ;;  %v5650_v16 = vsel %vm5172_vm2, %v5649_v8, %v5645_v33  ;;  %v5669_v5 = vsel %vm5172_vm2, %v5668_v45, %v5664_v44  ;;  %v5688_v8 = vsel %vm5172_vm2, %v5687_v27, %v5683_v10 }
 0x4dd   : > { %v6026_v49 = vsub.f32 %v18967_v28, %v14630_v46  ;;  %v6187_v28 = vmul.f32 1.442695, %v6022_v37  ;;  %v6028_v37 = vsub.f32 %v18970_v51, %v14630_v46  ;;  %v5701_v6 = vrot.slane %v14602_v22, %v13939_v25 }
 0x4df   : > { %v6195_v34 = vmul.f32 1.442695, %v6026_v49  ;;  %10808 = vpow2.f32 %v6187_v28  ;;  %v5673_v49 = vrot.slane %v14577_v58, %v13951_v50  ;;  %v5702_v58 = vsel %vm5165_vm1, %v5701_v6, %v5697_v55 }
 0x4e0   : > { %v14613_v54 = vpop.permute.xlu1 %5116  ;;  %6585 = vperm.xlu1 %10447, %v14663_v18   ;;  %v14692_v18 = vpop.eup %10802  ;;  %10810 = vpow2.f32 %v6191_v36  ;;  %v5655_v28 = vsel %vm5179_vm3, %v5654_v42, %v5650_v16  ;;  %v5707_v45 = vsel %vm5172_vm2, %v5706_v38, %v5702_v58  ;;  %v18974_v38 = vld [vmem:[#allocation287_spill] sm:$0xff] }
 0x4e1   : > { %18971 = vst [vmem:[#allocation296_spill] sm:$0xff] %v14692_v18  ;;  %v5711_v0 = vrot.slane %v14613_v54, %v13951_v50  ;;  %v14715_v9 = vpop.eup %10804  ;;  %v5674_v23 = vsel %vm5179_vm3, %v5673_v49, %v5669_v5  ;;  %v5763_v42 = vrot.slane %v18974_v38, %v13936_v39  ;;  %10812 = vpow2.f32 %v6195_v34 }
 0x4e2   : > { %18972 = vst [vmem:[#allocation239_spill] sm:$0xff] %v14715_v9  ;;  %v14734_v2 = vpop.eup %10806  ;;  %v14759_v34 = vrot.slane %v14368_v57, %v18939_v11 }
 0x4e3   : > { %v5712_v36 = vsel %vm5179_vm3, %v5711_v0, %v5707_v45  ;;  %18973 = vst [vmem:[#allocation298_spill] sm:$0xff] %v14734_v2  ;;  %v14775_v45 = vrot.slane %v14368_v57, %v18944_v52 }
 0x4e4   : > { %v14624_v41 = vpop.permute.xlu1 %5122  ;;  %6591 = vperm.xlu1 %10447, %v14692_v18   ;;  %v19112_v18 = vld [vmem:[#allocation232_spill] sm:$0xff] }
 0x4e5   : > { %v5720_v26 = vrot.slane %v14624_v41, %v13939_v25  ;;  %v5692_v41 = vrot.slane %v14595_v14, %v13951_v50 }
 0x4e7   : > { %v5721_v60 = vsel %vm5165_vm1, %v5720_v26, %v5716_v4  ;;  %v5693_v44 = vsel %vm5179_vm3, %v5692_v41, %v5688_v8  ;;  %v18975_v26 = vld [vmem:[#allocation260_spill] sm:$0xff] }
 0x4e8   : > { %v14649_v13 = vpop.permute.xlu1 %5128  ;;  %6597 = vperm.xlu1 %10447, %v14715_v9   ;;  %v5726_v27 = vsel %vm5172_vm2, %v5725_v63, %v5721_v60  ;;  %v6030_v49 = vsub.f32 %v18975_v26, %v14686_v53  ;;  %v18987_v26 = vld [vmem:[#allocation78_spill] sm:$0xff] }
 0x4e9   : > { %v5730_v14 = vrot.slane %v14649_v13, %v13951_v50 }
 0x4ea   : > { %v6203_v60 = vmul.f32 1.442695, %v6030_v49  ;;  %v5991_v49 = vsub.f32 %v18987_v26, %v14406_v19 }
 0x4eb   : > { %v5731_v6 = vsel %vm5179_vm3, %v5730_v14, %v5726_v27  ;;  %v18984_v27 = vld [vmem:[#allocation68_spill] sm:$0xff] }
 0x4ec   : > { %v5135_v3 = vpop.permute.xlu1 %5134  ;;  %6603 = vperm.xlu1 %10447, %v14734_v2   ;;  %v19109_v2 = vld [vmem:[#allocation226_spill] sm:$0xff] }
 0x4ed   : > { %v5739_v22 = vrot.slane %v5135_v3, %v13939_v25  ;;  %v5636_v3 = vsel %vm5179_vm3, %v5635_v47, %v5631_v20  ;;  %v6199_v47 = vmul.f32 1.442695, %v6028_v37 }
 0x4ee   : > { %v5798_v13 = vsel %vm5770_vm4, %v5655_v28, %v5636_v3  ;;  %v18978_v28 = vld [vmem:[#allocation259_spill] sm:$0xff] }
 0x4ef   : > { %v5740_v55 = vsel %vm5165_vm1, %v5739_v22, %v5735_v7  ;;  %v5799_v7 = vsel %vm5772_vm5, %v5674_v23, %v5798_v13  ;;  %v6032_v5 = vsub.f32 %v18978_v28, %v14686_v53  ;;  %10814 = vpow2.f32 %v6199_v47  ;;  %v18979_v23 = vld [vmem:[#allocation261_spill] sm:$0xff]  ;;  %v18989_v47 = vld [vmem:[#allocation266_spill] sm:$0xff] }
 0x4f0   : > { %v5141_v51 = vpop.permute.xlu1 %5140  ;;  %v5745_v43 = vsel %vm5172_vm2, %v5744_v12, %v5740_v55  ;;  %v5800_v22 = vsel %vm5774_vm6, %v5693_v44, %v5799_v7  ;;  %v6034_v8 = vsub.f32 %v18979_v23, %v14759_v34  ;;  %10816 = vpow2.f32 %v6203_v60 }
 0x4f1   : > { %v5749_v54 = vrot.slane %v5141_v51, %v13951_v50  ;;  %v5801_v10 = vsel %vm5776_vm7, %v5712_v36, %v5800_v22  ;;  %v6207_v55 = vmul.f32 1.442695, %v6032_v5  ;;  %v5989_v7 = vsub.f32 %v18984_v27, %v14406_v19  ;;  %v18993_v5 = vld [vmem:[#allocation96_spill] sm:$0xff] }
 0x4f2   : > { %v5802_v20 = vsel %vm5778_vm8, %v5731_v6, %v5801_v10  ;;  %v6211_v36 = vmul.f32 1.442695, %v6034_v8  ;;  %v6040_v10 = vsub.f32 %v18989_v47, %v14775_v45  ;;  %v6125_v19 = vmul.f32 1.442695, %v5991_v49 }
 0x4f3   : > { %v5750_v63 = vsel %vm5179_vm3, %v5749_v54, %v5745_v43  ;;  %v18980_v54 = vld [vmem:[#allocation217_spill] sm:$0xff]  ;;  %10818 = vpow2.f32 %v6207_v55  ;;  %v6121_v22 = vmul.f32 1.442695, %v5989_v7  ;;  %v5995_v60 = vsub.f32 %v18993_v5, %v14449_v29 }
 0x4f4   : > { %v5147_v17 = vpop.permute.xlu1 %5146  ;;  %v5803_v0 = vsel %vm5780_vm9, %v5750_v63, %v5802_v20  ;;  %10820 = vpow2.f32 %v6211_v36  ;;  %v6223_v28 = vmul.f32 1.442695, %v6040_v10  ;;  %v14813_v55 = vrot.slane %v14368_v57, %v18954_v24 }
 0x4f5   : > { %v5758_v4 = vrot.slane %v5147_v17, %v13939_v25  ;;  %v18981_v17 = vld [vmem:[#allocation57_spill] sm:$0xff] }
 0x4f6   : > { %v5986_v3 = vsub.f32 %v18981_v17, %v18980_v54  ;;  %v18996_v54 = vld [vmem:[#allocation191_spill] sm:$0xff] }
 0x4f7   : > { %v5759_v33 = vsel %vm5165_vm1, %v5758_v4, %v5754_v31  ;;  %v14749_v31 = vpop.eup %10808  ;;  %v18983_v4 = vld [vmem:[#allocation176_spill] sm:$0xff] }
 0x4f8   : > { %v5153_v51 = vpop.permute.xlu1 %5152  ;;  %18976 = vst [vmem:[#allocation237_spill] sm:$0xff] %v14749_v31  ;;  %v5764_v41 = vsel %vm5172_vm2, %v5763_v42, %v5759_v33  ;;  %v14753_v16 = vpop.eup %10810  ;;  %6609 = vperm.xlu1 %10447, %v14749_v31   ;;  %v6036_v13 = vsub.f32 %v18983_v4, %v14759_v34  ;;  %v6115_v6 = vmul.f32 1.442695, %v5986_v3  ;;  %v18986_v33 = vld [vmem:[#allocation175_spill] sm:$0xff] }
 0x4f9   : > { %v5768_v12 = vrot.slane %v5153_v51, %v13951_v50  ;;  %18977 = vst [vmem:[#allocation301_spill] sm:$0xff] %v14753_v16  ;;  %v14771_v44 = vpop.eup %10812  ;;  %v6038_v38 = vsub.f32 %v18986_v33, %v14775_v45  ;;  %v14793_v51 = vrot.slane %v14368_v57, %v18949_v56  ;;  %v19000_v57 = vld [vmem:[#allocation268_spill] sm:$0xff]  ;;  %v19001_v33 = vld [vmem:[#allocation117_spill] sm:$0xff] }
 0x4fa   : > { %18982 = vst [vmem:[#allocation243_spill] sm:$0xff] %v14771_v44  ;;  %v14782_v43 = vpop.eup %10814  ;;  %v6215_v42 = vmul.f32 1.442695, %v6036_v13  ;;  %10822 = vpow2.f32 %v6115_v6  ;;  %v6133_v13 = vmul.f32 1.442695, %v5995_v60  ;;  %v6046_v7 = vsub.f32 %v19000_v57, %v14813_v55 }
 0x4fb   : > { %v5769_v58 = vsel %vm5179_vm3, %v5768_v12, %v5764_v41  ;;  %18985 = vst [vmem:[#allocation303_spill] sm:$0xff] %v14782_v43  ;;  %v14789_v63 = vpop.eup %10816  ;;  %v6219_v12 = vmul.f32 1.442695, %v6038_v38  ;;  %v18990_v41 = vld [vmem:[#allocation88_spill] sm:$0xff]  ;;  %v6044_v17 = vsub.f32 %v18996_v54, %v14793_v51  ;;  %v5999_v38 = vsub.f32 %v19001_v33, %v14489_v62  ;;  %v19017_v33 = vld [vmem:[#allocation162_spill] sm:$0xff] }
 0x4fc   : > { %v5804_v37 = vsel %vm5782_vm10, %v5769_v58, %v5803_v0  ;;  %6615 = vperm.xlu1 %10447, %v14753_v16   ;;  %18988 = vst [vmem:[#allocation241_spill] sm:$0xff] %v14789_v63  ;;  %10824 = vpow2.f32 %v6215_v42  ;;  %v5993_v20 = vsub.f32 %v18990_v41, %v14449_v29  ;;  %v18992_v0 = vld [vmem:[#allocation185_spill] sm:$0xff]  ;;  %v18997_v29 = vld [vmem:[#allocation106_spill] sm:$0xff]  ;;  %v6235_v10 = vmul.f32 1.442695, %v6046_v7  ;;  %v19011_v54 = vld [vmem:[#allocation132_spill] sm:$0xff] }
 0x4fd   : > { %v5818_v14 = vsel %vm413_vm0, %v5804_v37, -inf  ;;  %10826 = vpow2.f32 %v6121_v22  ;;  %v14800_v58 = vpop.eup %10818  ;;  %v6042_v37 = vsub.f32 %v18992_v0, %v14793_v51  ;;  %v5997_v4 = vsub.f32 %v18997_v29, %v14489_v62  ;;  %v19004_v22 = vld [vmem:[#allocation182_spill] sm:$0xff] }
 0x4fe   : > { %5819 = vmax.xlane.f32.xlu0 %v5818_v14  ;;  %18991 = vst [vmem:[#allocation178_spill] sm:$0xff] %v14800_v58  ;;  %10828 = vpow2.f32 %v6219_v12  ;;  %v6129_v14 = vmul.f32 1.442695, %v5993_v20  ;;  %v14807_v23 = vpop.eup %10820  ;;  %v6231_v6 = vmul.f32 1.442695, %v6044_v17  ;;  %v6048_v47 = vsub.f32 %v19004_v22, %v14813_v55  ;;  %v19005_v12 = vld [vmem:[#allocation125_spill] sm:$0xff] }
 0x4ff   : > { %10830 = vpow2.f32 %v6125_v19  ;;  %18994 = vst [vmem:[#allocation247_spill] sm:$0xff] %v14807_v23  ;;  %v6227_v3 = vmul.f32 1.442695, %v6042_v37  ;;  %v6137_v42 = vmul.f32 1.442695, %v5997_v4  ;;  %v6001_v41 = vsub.f32 %v19005_v12, %v14529_v30  ;;  %v19008_v37 = vld [vmem:[#allocation86_spill] sm:$0xff] }
 0x500   : > { %6621 = vperm.xlu1 %10447, %v14771_v44   ;;  %10832 = vpow2.f32 %v6223_v28  ;;  %v6141_v62 = vmul.f32 1.442695, %v5999_v38  ;;  %v6239_v0 = vmul.f32 1.442695, %v6048_v47  ;;  %v6003_v28 = vsub.f32 %v19008_v37, %v14529_v30  ;;  %v19014_v30 = vld [vmem:[#allocation157_spill] sm:$0xff] }
 0x501   : > { %10834 = vpow2.f32 %v6129_v14  ;;  %v6145_v5 = vmul.f32 1.442695, %v6001_v41  ;;  %v6005_v17 = vsub.f32 %v19011_v54, %v14552_v21  ;;  %v6009_v38 = vsub.f32 %v19017_v33, %v14570_v1  ;;  %v19028_v33 = vld [vmem:[#allocation167_spill] sm:$0xff] }
 0x502   : > { %10836 = vpow2.f32 %v6227_v3  ;;  %v6149_v3 = vmul.f32 1.442695, %v6003_v28 }
 0x503   : > { %10838 = vpow2.f32 %v6133_v13  ;;  %v6007_v13 = vsub.f32 %v19014_v30, %v14552_v21  ;;  %v6153_v57 = vmul.f32 1.442695, %v6005_v17  ;;  %v19020_v21 = vld [vmem:[#allocation160_spill] sm:$0xff]  ;;  %v6161_v12 = vmul.f32 1.442695, %v6009_v38 }
 0x504   : > { %6627 = vperm.xlu1 %10447, %v14782_v43   ;;  %v14809_v8 = vpop.eup %10822  ;;  %10840 = vpow2.f32 %v6231_v6  ;;  %v6019_v38 = vsub.f32 %v19028_v33, %v14606_v61 }
 0x505   : > { %18995 = vst [vmem:[#allocation183_spill] sm:$0xff] %v14809_v8  ;;  %10842 = vpow2.f32 %v6137_v42  ;;  %v6157_v42 = vmul.f32 1.442695, %v6007_v13 }
 0x506   : > { %v14821_v36 = vpop.eup %10824  ;;  %10844 = vpow2.f32 %v6235_v10  ;;  %v6011_v10 = vsub.f32 %v19020_v21, %v14570_v1  ;;  %v19030_v21 = vld [vmem:[#allocation299_spill] sm:$0xff] }
 0x507   : > { %18998 = vst [vmem:[#allocation245_spill] sm:$0xff] %v14821_v36  ;;  %v14823_v27 = vpop.eup %10826  ;;  %10846 = vpow2.f32 %v6141_v62  ;;  %v19022_v62 = vld [vmem:[#allocation144_spill] sm:$0xff] }
 0x508   : > { %6633 = vperm.xlu1 %10447, %v14789_v63   ;;  %18999 = vst [vmem:[#allocation262_spill] sm:$0xff] %v14823_v27  ;;  %v14831_v26 = vpop.eup %10828  ;;  %10848 = vpow2.f32 %v6239_v0  ;;  %v6013_v0 = vsub.f32 %v19022_v62, %v14588_v40  ;;  %v6165_v37 = vmul.f32 1.442695, %v6011_v10  ;;  %v6021_v10 = vsub.f32 %v19030_v21, %v14621_v59 }
 0x509   : > { %19002 = vst [vmem:[#allocation251_spill] sm:$0xff] %v14831_v26  ;;  %v14833_v49 = vpop.eup %10830  ;;  %10850 = vpow2.f32 %v6145_v5  ;;  %v19024_v5 = vld [vmem:[#allocation163_spill] sm:$0xff] }
 0x50a   : > { %19003 = vst [vmem:[#allocation264_spill] sm:$0xff] %v14833_v49  ;;  %v14841_v20 = vpop.eup %10832  ;;  %10852 = vpow2.f32 %v6149_v3  ;;  %v6015_v54 = vsub.f32 %v19024_v5, %v14588_v40  ;;  %v6169_v1 = vmul.f32 1.442695, %v6013_v0  ;;  %v19026_v3 = vld [vmem:[#allocation169_spill] sm:$0xff]  ;;  %v19032_v0 = vld [vmem:[#allocation302_spill] sm:$0xff] }
 0x50b   : > { %19006 = vst [vmem:[#allocation249_spill] sm:$0xff] %v14841_v20  ;;  %v14843_v19 = vpop.eup %10834  ;;  %10854 = vpow2.f32 %v6153_v57  ;;  %v6017_v30 = vsub.f32 %v19026_v3, %v14606_v61  ;;  %v6185_v61 = vmul.f32 1.442695, %v6021_v10  ;;  %v19038_v10 = vld [vmem:[#allocation263_spill] sm:$0xff] }
 0x50c   : > { %6639 = vperm.xlu1 %10447, %v14800_v58   ;;  %19007 = vst [vmem:[#allocation180_spill] sm:$0xff] %v14843_v19  ;;  %v14849_v60 = vpop.eup %10836  ;;  %10856 = vpow2.f32 %v6157_v42  ;;  %v6173_v13 = vmul.f32 1.442695, %v6015_v54 }
 0x50d   : > { %19009 = vst [vmem:[#allocation255_spill] sm:$0xff] %v14849_v60  ;;  %v14851_v14 = vpop.eup %10838  ;;  %10858 = vpow2.f32 %v6161_v12  ;;  %v6177_v42 = vmul.f32 1.442695, %v6017_v30  ;;  %v6181_v12 = vmul.f32 1.442695, %v6019_v38 }
 0x50e   : > { %19010 = vst [vmem:[#allocation179_spill] sm:$0xff] %v14851_v14  ;;  %v14857_v29 = vpop.eup %10840  ;;  %10860 = vpow2.f32 %v6165_v37  ;;  %v6023_v37 = vsub.f32 %v19032_v0, %v14621_v59  ;;  %v19036_v59 = vld [vmem:[#allocation171_spill] sm:$0xff] }
 0x50f   : > { %19012 = vst [vmem:[#allocation253_spill] sm:$0xff] %v14857_v29  ;;  %v14859_v4 = vpop.eup %10842  ;;  %10862 = vpow2.f32 %v6169_v1  ;;  %v19034_v1 = vld [vmem:[#allocation174_spill] sm:$0xff]  ;;  %v6027_v38 = vsub.f32 %v19036_v59, %v14630_v46 }
 0x510   : > { %6645 = vperm.xlu1 %10447, %v14807_v23   ;;  %19013 = vst [vmem:[#allocation269_spill] sm:$0xff] %v14859_v4  ;;  %v14865_v7 = vpop.eup %10844  ;;  %10864 = vpow2.f32 %v6173_v13  ;;  %v6025_v3 = vsub.f32 %v19034_v1, %v14630_v46  ;;  %v6189_v30 = vmul.f32 1.442695, %v6023_v37  ;;  %v19040_v1 = vld [vmem:[#allocation181_spill] sm:$0xff] }
 0x511   : > { %19015 = vst [vmem:[#allocation258_spill] sm:$0xff] %v14865_v7  ;;  %v14867_v6 = vpop.eup %10846  ;;  %10866 = vpow2.f32 %v6177_v42  ;;  %v6197_v0 = vmul.f32 1.442695, %v6027_v38  ;;  %v6031_v46 = vsub.f32 %v19040_v1, %v14686_v53 }
 0x512   : > { %19016 = vst [vmem:[#allocation189_spill] sm:$0xff] %v14867_v6  ;;  %v14873_v22 = vpop.eup %10848  ;;  %10868 = vpow2.f32 %v6181_v12  ;;  %v6193_v42 = vmul.f32 1.442695, %v6025_v3  ;;  %v6029_v12 = vsub.f32 %v19038_v10, %v14686_v53 }
 0x513   : > { %19018 = vst [vmem:[#allocation257_spill] sm:$0xff] %v14873_v22  ;;  %v14875_v47 = vpop.eup %10850  ;;  %10870 = vpow2.f32 %v6185_v61  ;;  %v6205_v10 = vmul.f32 1.442695, %v6031_v46 }
 0x514   : > { %6501 = vperm.xlu0 %10446, %v14809_v8   ;;  %6651 = vperm.xlu1 %10447, %v14821_v36   ;;  %19019 = vst [vmem:[#allocation270_spill] sm:$0xff] %v14875_v47  ;;  %v14881_v41 = vpop.eup %10852  ;;  %10872 = vpow2.f32 %v6189_v30  ;;  %v6201_v3 = vmul.f32 1.442695, %v6029_v12 }
 0x515   : > { %19021 = vst [vmem:[#allocation44_spill] sm:$0xff] %v14881_v41  ;;  %v14886_v28 = vpop.eup %10854  ;;  %10874 = vpow2.f32 %v6193_v42  ;;  %v19042_v42 = vld [vmem:[#allocation187_spill] sm:$0xff] }
 0x516   : > { %19023 = vst [vmem:[#allocation49_spill] sm:$0xff] %v14886_v28  ;;  %v14891_v17 = vpop.eup %10856  ;;  %10876 = vpow2.f32 %v6197_v0  ;;  %v6033_v38 = vsub.f32 %v19042_v42, %v14759_v34 }
 0x517   : > { %19025 = vst [vmem:[#allocation58_spill] sm:$0xff] %v14891_v17  ;;  %v14896_v57 = vpop.eup %10858  ;;  %10878 = vpow2.f32 %v6201_v3 }
 0x518   : > { %6510 = vperm.xlu0 %10446, %v14823_v27   ;;  %6657 = vperm.xlu1 %10447, %v14831_v26   ;;  %19027 = vst [vmem:[#allocation69_spill] sm:$0xff] %v14896_v57  ;;  %v14901_v40 = vpop.eup %10860  ;;  %10880 = vpow2.f32 %v6205_v10  ;;  %v6209_v12 = vmul.f32 1.442695, %v6033_v38 }
 0x519   : > { %19029 = vst [vmem:[#allocation79_spill] sm:$0xff] %v14901_v40  ;;  %v14906_v62 = vpop.eup %10862 }
 0x51a   : > { %19031 = vst [vmem:[#allocation89_spill] sm:$0xff] %v14906_v62  ;;  %v14913_v54 = vpop.eup %10864  ;;  %10882 = vpow2.f32 %v6209_v12 }
 0x51b   : > { %19033 = vst [vmem:[#allocation97_spill] sm:$0xff] %v14913_v54  ;;  %v14918_v13 = vpop.eup %10866 }
 0x51c   : > { %6516 = vperm.xlu0 %10446, %v14833_v49   ;;  %6663 = vperm.xlu1 %10447, %v14841_v20   ;;  %19035 = vst [vmem:[#allocation107_spill] sm:$0xff] %v14918_v13  ;;  %v14925_v21 = vpop.eup %10868 }
 0x51d   : > { %19037 = vst [vmem:[#allocation118_spill] sm:$0xff] %v14925_v21  ;;  %v14932_v61 = vpop.eup %10870 }
 0x51e   : > { %19039 = vst [vmem:[#allocation282_spill] sm:$0xff] %v14932_v61  ;;  %v14937_v30 = vpop.eup %10872 }
 0x51f   : > { %19041 = vst [vmem:[#allocation284_spill] sm:$0xff] %v14937_v30 }
 0x520   : > { %6522 = vperm.xlu0 %10446, %v14843_v19   ;;  %6669 = vperm.xlu1 %10447, %v14849_v60  }
 0x522   : > { %v14911_v5 = vpop.permute.xlu1 %6498 }
 0x524   : > { %6528 = vperm.xlu0 %10446, %v14851_v14   ;;  %6675 = vperm.xlu1 %10447, %v14857_v29   ;;  %v19084_v29 = vld [vmem:[#allocation216_spill] sm:$0xff] }
 0x526   : > { %v14920_v33 = vpop.permute.xlu1 %6504 }
 0x528   : > { %6534 = vperm.xlu0 %10446, %v14859_v4   ;;  %6681 = vperm.xlu1 %10447, %v14865_v7  }
 0x52a   : > { %v14930_v37 = vpop.permute.xlu1 %6507 }
 0x52c   : > { %6540 = vperm.xlu0 %10446, %v14867_v6   ;;  %6687 = vperm.xlu1 %10447, %v14873_v22  }
 0x52e   : > { %v14939_v59 = vpop.permute.xlu1 %6513 }
 0x530   : > { %6546 = vperm.xlu0 %10446, %v14875_v47  }
 0x533   : > { %v14949_v0 = vpop.permute.xlu1 %6519 }
 0x534   : > { %6552 = vperm.xlu0 %10446, %v14881_v41  }
 0x538   : > { %6558 = vperm.xlu0 %10446, %v14886_v28  }
 0x53c   : > { %6564 = vperm.xlu0 %10446, %v14891_v17  }
 0x540   : > { %6570 = vperm.xlu0 %10446, %v14896_v57  }
 0x544   : > { %6576 = vperm.xlu0 %10446, %v14901_v40  }
 0x548   : > { %6582 = vperm.xlu0 %10446, %v14906_v62  }
 0x54c   : > { %6588 = vperm.xlu0 %10446, %v14913_v54  }
 0x550   : > { %6594 = vperm.xlu0 %10446, %v14918_v13   ;;  %v14958_v13 = vpop.permute.xlu1 %6525 }
 0x554   : > { %6600 = vperm.xlu0 %10446, %v14925_v21   ;;  %v14944_v21 = vpop.eup %10874  ;;  %v14968_v12 = vpop.permute.xlu1 %6531 }
 0x555   : > { %19043 = vst [vmem:[#allocation286_spill] sm:$0xff] %v14944_v21  ;;  %v14951_v1 = vpop.eup %10876 }
 0x556   : > { %19045 = vst [vmem:[#allocation54_spill] sm:$0xff] %v14951_v1  ;;  %v14956_v3 = vpop.eup %10878 }
 0x557   : > { %19047 = vst [vmem:[#allocation129_spill] sm:$0xff] %v14956_v3  ;;  %v14963_v10 = vpop.eup %10880 }
 0x558   : > { %6606 = vperm.xlu0 %10446, %v14932_v61   ;;  %v19044_v61 = vld [vmem:[#allocation265_spill] sm:$0xff]  ;;  %19049 = vst [vmem:[#allocation142_spill] sm:$0xff] %v14963_v10 }
 0x559   : > { %v6035_v53 = vsub.f32 %v19044_v61, %v14759_v34  ;;  %v19048_v34 = vld [vmem:[#allocation184_spill] sm:$0xff] }
 0x55a   : > { %v6039_v61 = vsub.f32 %v19048_v34, %v14775_v45  ;;  %v14977_v34 = vpop.permute.xlu1 %6537 }
 0x55b   : > { %v6213_v46 = vmul.f32 1.442695, %v6035_v53 }
 0x55c   : > { %6612 = vperm.xlu0 %10446, %v14937_v30   ;;  %v19046_v30 = vld [vmem:[#allocation267_spill] sm:$0xff]  ;;  %v6221_v53 = vmul.f32 1.442695, %v6039_v61 }
 0x55d   : > { %v6037_v42 = vsub.f32 %v19046_v30, %v14775_v45  ;;  %10884 = vpow2.f32 %v6213_v46 }
 0x55f   : > { %v6217_v38 = vmul.f32 1.442695, %v6037_v42 }
 0x560   : > { %6618 = vperm.xlu0 %10446, %v14944_v21   ;;  %v14970_v21 = vpop.eup %10882 }
 0x561   : > { %10886 = vpow2.f32 %v6217_v38  ;;  %19051 = vst [vmem:[#allocation135_spill] sm:$0xff] %v14970_v21 }
 0x562   : > { %10888 = vpow2.f32 %v6221_v53 }
 0x564   : > { %6624 = vperm.xlu0 %10446, %v14951_v1   ;;  %v19050_v1 = vld [vmem:[#allocation271_spill] sm:$0xff] }
 0x565   : > { %v6041_v30 = vsub.f32 %v19050_v1, %v14793_v51  ;;  %v19054_v1 = vld [vmem:[#allocation188_spill] sm:$0xff] }
 0x566   : > { %v6045_v61 = vsub.f32 %v19054_v1, %v14813_v55 }
 0x567   : > { %v6225_v42 = vmul.f32 1.442695, %v6041_v30  ;;  %v14975_v46 = vpop.eup %10884 }
 0x568   : > { %6630 = vperm.xlu0 %10446, %v14956_v3   ;;  %v19052_v3 = vld [vmem:[#allocation195_spill] sm:$0xff]  ;;  %19053 = vst [vmem:[#allocation166_spill] sm:$0xff] %v14975_v46  ;;  %v6233_v30 = vmul.f32 1.442695, %v6045_v61 }
 0x569   : > { %v6043_v45 = vsub.f32 %v19052_v3, %v14793_v51  ;;  %10890 = vpow2.f32 %v6225_v42  ;;  %v19056_v51 = vld [vmem:[#allocation193_spill] sm:$0xff] }
 0x56a   : > { %v6047_v3 = vsub.f32 %v19056_v51, %v14813_v55  ;;  %v19058_v42 = vld [vmem:[#allocation273_spill] sm:$0xff] }
 0x56b   : > { %v6229_v38 = vmul.f32 1.442695, %v6043_v45  ;;  %v14984_v54 = vpop.eup %10886 }
 0x56c   : > { %6636 = vperm.xlu0 %10446, %v14963_v10   ;;  %v14982_v10 = vpop.xlane.xlu0 %5816  ;;  %19055 = vst [vmem:[#allocation140_spill] sm:$0xff] %v14984_v54  ;;  %v14995_v1 = vpop.eup %10888  ;;  %v6237_v45 = vmul.f32 1.442695, %v6047_v3  ;;  %v19062_v3 = vld [vmem:[#allocation272_spill] sm:$0xff] }
 0x56d   : > { %10892 = vpow2.f32 %v6229_v38  ;;  %v14991_v53 = vrot.slane %v14982_v10, %v18922_v35  ;;  %19057 = vst [vmem:[#allocation291_spill] sm:$0xff] %v14995_v1  ;;  %v15007_v61 = vrot.slane %v14982_v10, %v18926_v48  ;;  %v19060_v38 = vld [vmem:[#allocation186_spill] sm:$0xff] }
 0x56e   : > { %10894 = vpow2.f32 %v6233_v30 }
 0x56f   : > { %10896 = vpow2.f32 %v6237_v45  ;;  %v6051_v51 = vsub.f32 %v19060_v38, %v14991_v53 }
 0x570   : > { %6642 = vperm.xlu0 %10446, %v14970_v21  }
 0x571   : > { %v6245_v62 = vmul.f32 1.442695, %v6051_v51 }
 0x573   : > { %v15000_v21 = vpop.eup %10890 }
 0x574   : > { %6648 = vperm.xlu0 %10446, %v14975_v46   ;;  %v14993_v46 = vpop.permute.xlu1 %6543  ;;  %19059 = vst [vmem:[#allocation293_spill] sm:$0xff] %v15000_v21 }
 0x577   : > { %v15011_v30 = vpop.eup %10892 }
 0x578   : > { %6654 = vperm.xlu0 %10446, %v14984_v54   ;;  %v6049_v54 = vsub.f32 %v19058_v42, %v14991_v53  ;;  %v15002_v55 = vpop.permute.xlu1 %6549  ;;  %19061 = vst [vmem:[#allocation295_spill] sm:$0xff] %v15011_v30  ;;  %v6053_v42 = vsub.f32 %v19062_v3, %v15007_v61  ;;  %v15018_v45 = vpop.eup %10894 }
 0x579   : > { %19063 = vst [vmem:[#allocation297_spill] sm:$0xff] %v15018_v45  ;;  %v15027_v57 = vpop.eup %10896 }
 0x57a   : > { %19065 = vst [vmem:[#allocation219_spill] sm:$0xff] %v15027_v57 }
 0x57c   : > { %6660 = vperm.xlu0 %10446, %v14995_v1   ;;  %v6241_v1 = vmul.f32 1.442695, %v6049_v54  ;;  %v15016_v40 = vpop.permute.xlu1 %6555  ;;  %v19064_v54 = vld [vmem:[#allocation192_spill] sm:$0xff] }
 0x57d   : > { %v6055_v38 = vsub.f32 %v19064_v54, %v15007_v61 }
 0x57e   : > { %10898 = vpow2.f32 %v6241_v1  ;;  %v19066_v1 = vld [vmem:[#allocation190_spill] sm:$0xff] }
 0x57f   : > { %10900 = vpow2.f32 %v6245_v62  ;;  %v15041_v62 = vrot.slane %v14982_v10, %v18934_v15 }
 0x580   : > { %6666 = vperm.xlu0 %10446, %v15000_v21   ;;  %v15023_v21 = vrot.slane %v14982_v10, %v18929_v32  ;;  %v15029_v3 = vpop.permute.xlu1 %6561 }
 0x581   : > { %19068 = vst [vmem:[#allocation287_spill] sm:$0xff] %v15041_v62 }
 0x582   : > { %v6057_v51 = vsub.f32 %v19066_v1, %v15023_v21 }
 0x584   : > { %6672 = vperm.xlu0 %10446, %v15011_v30   ;;  %v6249_v30 = vmul.f32 1.442695, %v6053_v42  ;;  %v19069_v42 = vld [vmem:[#allocation194_spill] sm:$0xff]  ;;  %v15045_v41 = vpop.permute.xlu1 %6567 }
 0x585   : > { %v6059_v54 = vsub.f32 %v19069_v42, %v15023_v21  ;;  %19070 = vst [vmem:[#allocation260_spill] sm:$0xff] %v15045_v41 }
 0x586   : > { %10902 = vpow2.f32 %v6249_v30 }
 0x587   : > { %v6261_v47 = vmul.f32 1.442695, %v6059_v54  ;;  %v19077_v54 = vld [vmem:[#allocation208_spill] sm:$0xff] }
 0x588   : > { %6678 = vperm.xlu0 %10446, %v15018_v45   ;;  %v6253_v45 = vmul.f32 1.442695, %v6055_v38  ;;  %v15034_v17 = vpop.eup %10898  ;;  %v19072_v38 = vld [vmem:[#allocation200_spill] sm:$0xff]  ;;  %v15058_v42 = vpop.permute.xlu1 %6573 }
 0x589   : > { %19067 = vst [vmem:[#allocation300_spill] sm:$0xff] %v15034_v17  ;;  %v15047_v1 = vpop.eup %10900 }
 0x58a   : > { %10904 = vpow2.f32 %v6253_v45  ;;  %19071 = vst [vmem:[#allocation259_spill] sm:$0xff] %v15047_v1  ;;  %v15063_v45 = vrot.slane %v14982_v10, %v18939_v11 }
 0x58b   : > { %v15036_v28 = vpop.xlane.xlu0 %5819 }
 0x58c   : > { %6684 = vperm.xlu0 %10446, %v15027_v57   ;;  %v6257_v57 = vmul.f32 1.442695, %v6057_v51  ;;  %19074 = vst [vmem:[#allocation217_spill] sm:$0xff] %v15063_v45  ;;  %v19075_v51 = vld [vmem:[#allocation204_spill] sm:$0xff]  ;;  %v6065_v22 = vsub.f32 %v19077_v54, %v15063_v45  ;;  %v15074_v19 = vpop.permute.xlu1 %6579 }
 0x58d   : > { %19078 = vst [vmem:[#allocation176_spill] sm:$0xff] %v15074_v19 }
 0x58e   : > { %10906 = vpow2.f32 %v6257_v57 }
 0x58f   : > { %10908 = vpow2.f32 %v6261_v47  ;;  %v15083_v47 = vrot.slane %v14982_v10, %v18944_v52 }
 0x590   : > { %6690 = vperm.xlu0 %10446, %v15034_v17   ;;  %v6061_v17 = vsub.f32 %v19072_v38, %v15041_v62  ;;  %v15054_v6 = vpop.eup %10902 }
 0x591   : > { %19073 = vst [vmem:[#allocation261_spill] sm:$0xff] %v15054_v6  ;;  %19080 = vst [vmem:[#allocation175_spill] sm:$0xff] %v15083_v47 }
 0x592   : > { %v6265_v14 = vmul.f32 1.442695, %v6061_v17  ;;  %v19081_v17 = vld [vmem:[#allocation212_spill] sm:$0xff] }
 0x593   : > { %v15049_v30 = vpop.permute.xlu0 %6501 }
 0x594   : > { %6696 = vperm.xlu0 %10446, %v15047_v1   ;;  %v6063_v1 = vsub.f32 %v19075_v51, %v15041_v62  ;;  %v15067_v38 = vpop.eup %10904  ;;  %10910 = vpow2.f32 %v6265_v14  ;;  %v6067_v51 = vsub.f32 %v19081_v17, %v15063_v45 }
 0x595   : > { %19076 = vst [vmem:[#allocation57_spill] sm:$0xff] %v15067_v38 }
 0x596   : > { %v6277_v27 = vmul.f32 1.442695, %v6067_v51  ;;  %v19091_v51 = vld [vmem:[#allocation220_spill] sm:$0xff] }
 0x597   : > { %v15056_v4 = vpop.permute.xlu0 %6510 }
 0x598   : > { %6702 = vperm.xlu0 %10446, %v15054_v6   ;;  %v6269_v6 = vmul.f32 1.442695, %v6063_v1  ;;  %v15076_v7 = vpop.eup %10906  ;;  %v15091_v1 = vpop.permute.xlu1 %6585 }
 0x599   : > { %19079 = vst [vmem:[#allocation68_spill] sm:$0xff] %v15076_v7  ;;  %v15087_v54 = vpop.eup %10908  ;;  %19083 = vst [vmem:[#allocation266_spill] sm:$0xff] %v15091_v1 }
 0x59a   : > { %10912 = vpow2.f32 %v6269_v6  ;;  %19082 = vst [vmem:[#allocation78_spill] sm:$0xff] %v15087_v54  ;;  %v15103_v6 = vrot.slane %v14982_v10, %v18949_v56 }
 0x59b   : > { %v15069_v57 = vpop.permute.xlu0 %6516 }
 0x59c   : > { %6708 = vperm.xlu0 %10446, %v15067_v38   ;;  %v6273_v38 = vmul.f32 1.442695, %v6065_v22  ;;  %19086 = vst [vmem:[#allocation185_spill] sm:$0xff] %v15103_v6  ;;  %v19087_v22 = vld [vmem:[#allocation214_spill] sm:$0xff]  ;;  %v15107_v20 = vpop.permute.xlu1 %6591 }
 0x59d   : > { %v6071_v17 = vsub.f32 %v19087_v22, %v15083_v47  ;;  %19088 = vst [vmem:[#allocation96_spill] sm:$0xff] %v15107_v20 }
 0x59e   : > { %10914 = vpow2.f32 %v6273_v38  ;;  %v15096_v60 = vpop.eup %10910 }
 0x59f   : > { %v15078_v49 = vpop.permute.xlu0 %6522  ;;  %19085 = vst [vmem:[#allocation88_spill] sm:$0xff] %v15096_v60  ;;  %10916 = vpow2.f32 %v6277_v27  ;;  %v6285_v26 = vmul.f32 1.442695, %v6071_v17  ;;  %v15125_v27 = vrot.slane %v14982_v10, %v18954_v24  ;;  %v19098_v17 = vld [vmem:[#allocation224_spill] sm:$0xff] }
 0x5a0   : > { %6714 = vperm.xlu0 %10446, %v15076_v7   ;;  %v6069_v7 = vsub.f32 %v19084_v29, %v15083_v47  ;;  %v15120_v22 = vpop.permute.xlu1 %6597 }
 0x5a1   : > { %19094 = vst [vmem:[#allocation182_spill] sm:$0xff] %v15125_v27  ;;  %v6077_v63 = vsub.f32 %v19098_v17, %v15125_v27 }
 0x5a3   : > { %v15089_v14 = vpop.permute.xlu0 %6528 }
 0x5a4   : > { %6720 = vperm.xlu0 %10446, %v15087_v54   ;;  %v6281_v54 = vmul.f32 1.442695, %v6069_v7  ;;  %v15109_v29 = vpop.eup %10912  ;;  %v19095_v7 = vld [vmem:[#allocation218_spill] sm:$0xff]  ;;  %v15136_v43 = vpop.permute.xlu1 %6603 }
 0x5a5   : > { %19089 = vst [vmem:[#allocation191_spill] sm:$0xff] %v15109_v29 }
 0x5a6   : > { %10918 = vpow2.f32 %v6281_v54 }
 0x5a7   : > { %v15098_v8 = vpop.permute.xlu0 %6534  ;;  %10920 = vpow2.f32 %v6285_v26  ;;  %v19101_v26 = vld [vmem:[#allocation222_spill] sm:$0xff] }
 0x5a8   : > { %6726 = vperm.xlu0 %10446, %v15096_v60   ;;  %v6073_v60 = vsub.f32 %v19091_v51, %v15103_v6  ;;  %v15116_v36 = vpop.eup %10914 }
 0x5a9   : > { %19092 = vst [vmem:[#allocation268_spill] sm:$0xff] %v15116_v36  ;;  %v15129_v51 = vpop.eup %10916 }
 0x5aa   : > { %v6289_v58 = vmul.f32 1.442695, %v6073_v60  ;;  %19096 = vst [vmem:[#allocation125_spill] sm:$0xff] %v15129_v51  ;;  %v6079_v60 = vsub.f32 %v19101_v26, %v15125_v27 }
 0x5ab   : > { %v15111_v38 = vpop.permute.xlu0 %6540 }
 0x5ac   : > { %19090 = vst [vmem:[#allocation106_spill] sm:$0xff] %v15111_v38  ;;  %6732 = vperm.xlu0 %10446, %v15109_v29   ;;  %v6075_v29 = vsub.f32 %v19095_v7, %v15103_v6  ;;  %10922 = vpow2.f32 %v6289_v58  ;;  %v6297_v7 = vmul.f32 1.442695, %v6077_v63  ;;  %v6301_v16 = vmul.f32 1.442695, %v6079_v60 }
 0x5af   : > { %v15118_v23 = vpop.permute.xlu0 %6546 }
 0x5b0   : > { %19093 = vst [vmem:[#allocation117_spill] sm:$0xff] %v15118_v23  ;;  %6738 = vperm.xlu0 %10446, %v15116_v36   ;;  %v6293_v36 = vmul.f32 1.442695, %v6075_v29  ;;  %v15138_v10 = vpop.eup %10918  ;;  %v15153_v29 = vpop.permute.xlu1 %6609 }
 0x5b1   : > { %19099 = vst [vmem:[#allocation132_spill] sm:$0xff] %v15138_v10  ;;  %v15149_v17 = vpop.eup %10920 }
 0x5b2   : > { %10924 = vpow2.f32 %v6293_v36  ;;  %19103 = vst [vmem:[#allocation160_spill] sm:$0xff] %v15149_v17  ;;  %v15165_v36 = vrot.slane %v15036_v28, %v18926_v48 }
 0x5b3   : > { %v15131_v54 = vpop.permute.xlu0 %6552  ;;  %10926 = vpow2.f32 %v6297_v7 }
 0x5b4   : > { %19097 = vst [vmem:[#allocation86_spill] sm:$0xff] %v15131_v54  ;;  %6744 = vperm.xlu0 %10446, %v15129_v51   ;;  %v15147_v51 = vrot.slane %v15036_v28, %v18922_v35  ;;  %10928 = vpow2.f32 %v6301_v16  ;;  %19108 = vst [vmem:[#allocation167_spill] sm:$0xff] %v15165_v36  ;;  %v15169_v7 = vpop.permute.xlu1 %6615 }
 0x5b6   : > { %19102 = vst [vmem:[#allocation162_spill] sm:$0xff] %v15147_v51  ;;  %v15158_v26 = vpop.eup %10922  ;;  %v6083_v9 = vsub.f32 %v19109_v2, %v15147_v51  ;;  %v15187_v2 = vrot.slane %v15036_v28, %v18929_v32 }
 0x5b7   : > { %v15140_v44 = vpop.permute.xlu0 %6558  ;;  %19106 = vst [vmem:[#allocation163_spill] sm:$0xff] %v15158_v26 }
 0x5b8   : > { %19100 = vst [vmem:[#allocation157_spill] sm:$0xff] %v15140_v44  ;;  %6750 = vperm.xlu0 %10446, %v15138_v10   ;;  %v19105_v10 = vld [vmem:[#allocation228_spill] sm:$0xff]  ;;  %v6309_v16 = vmul.f32 1.442695, %v6083_v9  ;;  %v15182_v27 = vpop.permute.xlu1 %6621  ;;  %19115 = vst [vmem:[#allocation263_spill] sm:$0xff] %v15187_v2 }
 0x5b9   : > { %v6081_v31 = vsub.f32 %v19105_v10, %v15147_v51 }
 0x5bb   : > { %v15151_v58 = vpop.permute.xlu0 %6564 }
 0x5bc   : > { %19104 = vst [vmem:[#allocation144_spill] sm:$0xff] %v15151_v58  ;;  %6756 = vperm.xlu0 %10446, %v15149_v17   ;;  %v6305_v17 = vmul.f32 1.442695, %v6081_v31  ;;  %v15171_v60 = vpop.eup %10924  ;;  %v19116_v31 = vld [vmem:[#allocation230_spill] sm:$0xff]  ;;  %v15198_v47 = vpop.permute.xlu1 %6627 }
 0x5bd   : > { %19110 = vst [vmem:[#allocation299_spill] sm:$0xff] %v15171_v60  ;;  %v15178_v35 = vpop.eup %10926 }
 0x5be   : > { %10930 = vpow2.f32 %v6305_v17  ;;  %19113 = vst [vmem:[#allocation174_spill] sm:$0xff] %v15178_v35  ;;  %v19119_v17 = vld [vmem:[#allocation236_spill] sm:$0xff] }
 0x5bf   : > { %v15160_v63 = vpop.permute.xlu0 %6570  ;;  %10932 = vpow2.f32 %v6309_v16  ;;  %v6089_v6 = vsub.f32 %v19119_v17, %v15187_v2  ;;  %v19122_v16 = vld [vmem:[#allocation234_spill] sm:$0xff] }
 0x5c0   : > { %19107 = vst [vmem:[#allocation169_spill] sm:$0xff] %v15160_v63  ;;  %6762 = vperm.xlu0 %10446, %v15158_v26   ;;  %v6085_v26 = vsub.f32 %v19112_v18, %v15165_v36  ;;  %v15191_v18 = vpop.eup %10928 }
 0x5c1   : > { %19117 = vst [vmem:[#allocation181_spill] sm:$0xff] %v15191_v18 }
 0x5c2   : > { %v6313_v51 = vmul.f32 1.442695, %v6085_v26  ;;  %v15207_v26 = vrot.slane %v15036_v28, %v18934_v15 }
 0x5c3   : > { %v15173_v10 = vpop.permute.xlu0 %6576 }
 0x5c4   : > { %19111 = vst [vmem:[#allocation302_spill] sm:$0xff] %v15173_v10  ;;  %6768 = vperm.xlu0 %10446, %v15171_v60   ;;  %v6087_v60 = vsub.f32 %v19116_v31, %v15165_v36  ;;  %10934 = vpow2.f32 %v6313_v51  ;;  %19121 = vst [vmem:[#allocation267_spill] sm:$0xff] %v15207_v26  ;;  %v6091_v31 = vsub.f32 %v19122_v16, %v15187_v2  ;;  %v19124_v36 = vld [vmem:[#allocation240_spill] sm:$0xff] }
 0x5c6   : > { %v6325_v62 = vmul.f32 1.442695, %v6091_v31  ;;  %v19129_v31 = vld [vmem:[#allocation244_spill] sm:$0xff] }
 0x5c7   : > { %v15180_v48 = vpop.permute.xlu0 %6582 }
 0x5c8   : > { %19114 = vst [vmem:[#allocation171_spill] sm:$0xff] %v15180_v48  ;;  %6774 = vperm.xlu0 %10446, %v15178_v35   ;;  %v6317_v35 = vmul.f32 1.442695, %v6087_v60  ;;  %v15200_v32 = vpop.eup %10930  ;;  %v15215_v60 = vpop.permute.xlu1 %6633 }
 0x5c9   : > { %19120 = vst [vmem:[#allocation265_spill] sm:$0xff] %v15200_v32  ;;  %v15211_v17 = vpop.eup %10932 }
 0x5ca   : > { %10936 = vpow2.f32 %v6317_v35  ;;  %19123 = vst [vmem:[#allocation184_spill] sm:$0xff] %v15211_v17  ;;  %v15227_v35 = vrot.slane %v15036_v28, %v18939_v11 }
 0x5cb   : > { %v15193_v9 = vpop.permute.xlu0 %6588 }
 0x5cc   : > { %19118 = vst [vmem:[#allocation187_spill] sm:$0xff] %v15193_v9  ;;  %6780 = vperm.xlu0 %10446, %v15191_v18   ;;  %v6321_v18 = vmul.f32 1.442695, %v6089_v6  ;;  %19126 = vst [vmem:[#allocation195_spill] sm:$0xff] %v15227_v35  ;;  %v19127_v6 = vld [vmem:[#allocation238_spill] sm:$0xff]  ;;  %v15231_v2 = vpop.permute.xlu1 %6639 }
 0x5cd   : > { %v6095_v16 = vsub.f32 %v19127_v6, %v15207_v26 }
 0x5ce   : > { %10938 = vpow2.f32 %v6321_v18  ;;  %v15220_v15 = vpop.eup %10934 }
 0x5cf   : > { %v15202_v45 = vpop.permute.xlu0 %6594  ;;  %19125 = vst [vmem:[#allocation271_spill] sm:$0xff] %v15220_v15  ;;  %10940 = vpow2.f32 %v6325_v62  ;;  %v6333_v19 = vmul.f32 1.442695, %v6095_v16  ;;  %v19132_v62 = vld [vmem:[#allocation242_spill] sm:$0xff]  ;;  %v19134_v16 = vld [vmem:[#allocation248_spill] sm:$0xff] }
 0x5d0   : > { %6786 = vperm.xlu0 %10446, %v15200_v32   ;;  %v6093_v32 = vsub.f32 %v19124_v36, %v15207_v26  ;;  %v15244_v6 = vpop.permute.xlu1 %6645 }
 0x5d3   : > { %v15213_v51 = vpop.permute.xlu0 %6600 }
 0x5d4   : > { %6792 = vperm.xlu0 %10446, %v15211_v17   ;;  %v6329_v17 = vmul.f32 1.442695, %v6093_v32  ;;  %v15233_v36 = vpop.eup %10936  ;;  %v15249_v32 = vrot.slane %v15036_v28, %v18944_v52  ;;  %v15260_v9 = vpop.permute.xlu1 %6651 }
 0x5d5   : > { %19128 = vst [vmem:[#allocation188_spill] sm:$0xff] %v15233_v36 }
 0x5d6   : > { %10942 = vpow2.f32 %v6329_v17  ;;  %19131 = vst [vmem:[#allocation273_spill] sm:$0xff] %v15249_v32  ;;  %v6101_v1 = vsub.f32 %v19134_v16, %v15249_v32 }
 0x5d7   : > { %v15222_v20 = vpop.permute.xlu0 %6606  ;;  %10944 = vpow2.f32 %v6333_v19  ;;  %v19137_v19 = vld [vmem:[#allocation246_spill] sm:$0xff] }
 0x5d8   : > { %6798 = vperm.xlu0 %10446, %v15220_v15   ;;  %v6097_v15 = vsub.f32 %v19129_v31, %v15227_v35  ;;  %v15240_v11 = vpop.eup %10938 }
 0x5d9   : > { %19130 = vst [vmem:[#allocation193_spill] sm:$0xff] %v15240_v11  ;;  %v15253_v31 = vpop.eup %10940 }
 0x5da   : > { %v6337_v26 = vmul.f32 1.442695, %v6097_v15  ;;  %19133 = vst [vmem:[#allocation186_spill] sm:$0xff] %v15253_v31  ;;  %v15269_v15 = vrot.slane %v15036_v28, %v18949_v56 }
 0x5db   : > { %v15235_v18 = vpop.permute.xlu0 %6612 }
 0x5dc   : > { %6804 = vperm.xlu0 %10446, %v15233_v36   ;;  %v6099_v36 = vsub.f32 %v19132_v62, %v15227_v35  ;;  %10946 = vpow2.f32 %v6337_v26  ;;  %19136 = vst [vmem:[#allocation192_spill] sm:$0xff] %v15269_v15  ;;  %v6103_v62 = vsub.f32 %v19137_v19, %v15249_v32  ;;  %v19139_v35 = vld [vmem:[#allocation252_spill] sm:$0xff] }
 0x5de   : > { %v6349_v10 = vmul.f32 1.442695, %v6103_v62  ;;  %v19144_v62 = vld [vmem:[#allocation256_spill] sm:$0xff] }
 0x5df   : > { %v15242_v41 = vpop.permute.xlu0 %6618 }
 0x5e0   : > { %6810 = vperm.xlu0 %10446, %v15240_v11   ;;  %v6341_v11 = vmul.f32 1.442695, %v6099_v36  ;;  %v15262_v52 = vpop.eup %10942  ;;  %v15277_v36 = vpop.permute.xlu1 %6657 }
 0x5e1   : > { %19135 = vst [vmem:[#allocation272_spill] sm:$0xff] %v15262_v52  ;;  %v15273_v16 = vpop.eup %10944 }
 0x5e2   : > { %10948 = vpow2.f32 %v6341_v11  ;;  %19138 = vst [vmem:[#allocation190_spill] sm:$0xff] %v15273_v16  ;;  %v15289_v11 = vrot.slane %v15036_v28, %v18954_v24 }
 0x5e3   : > { %v15255_v17 = vpop.permute.xlu0 %6624 }
 0x5e4   : > { %6816 = vperm.xlu0 %10446, %v15253_v31   ;;  %v6345_v31 = vmul.f32 1.442695, %v6101_v1  ;;  %19141 = vst [vmem:[#allocation200_spill] sm:$0xff] %v15289_v11  ;;  %v19142_v1 = vld [vmem:[#allocation250_spill] sm:$0xff]  ;;  %v15293_v32 = vpop.permute.xlu1 %6663 }
 0x5e5   : > { %v6107_v19 = vsub.f32 %v19142_v1, %v15269_v15 }
 0x5e6   : > { %10950 = vpow2.f32 %v6345_v31  ;;  %v15282_v56 = vpop.eup %10946 }
 0x5e7   : > { %v15264_v48 = vpop.permute.xlu0 %6630  ;;  %19140 = vst [vmem:[#allocation194_spill] sm:$0xff] %v15282_v56  ;;  %10952 = vpow2.f32 %v6349_v10  ;;  %v6357_v58 = vmul.f32 1.442695, %v6107_v19  ;;  %v7040_v19 = vrot.slane %v15120_v22, %v13939_v25  ;;  %v19149_v22 = vld [vmem:[#allocation2_spill] sm:$0xff] }
 0x5e8   : > { %6822 = vperm.xlu0 %10446, %v15262_v52   ;;  %v6105_v52 = vsub.f32 %v19139_v35, %v15269_v15  ;;  %v15304_v44 = vpop.permute.xlu1 %6669 }
 0x5eb   : > { %v15275_v26 = vpop.permute.xlu0 %6636 }
 0x5ec   : > { %6828 = vperm.xlu0 %10446, %v15273_v16   ;;  %v6353_v16 = vmul.f32 1.442695, %v6105_v52  ;;  %v15295_v35 = vpop.eup %10948  ;;  %v19146_v52 = vld [vmem:[#allocation254_spill] sm:$0xff]  ;;  %v15318_v54 = vpop.permute.xlu1 %6675 }
 0x5ed   : > { %19143 = vst [vmem:[#allocation204_spill] sm:$0xff] %v15295_v35  ;;  %v6111_v10 = vsub.f32 %v19146_v52, %v15289_v11  ;;  %v7078_v52 = vrot.slane %v15182_v27, %v13939_v25  ;;  %v7093_v27 = vrot.slane %v15264_v48, %v19149_v22 }
 0x5ee   : > { %10954 = vpow2.f32 %v6353_v16 }
 0x5ef   : > { %v15284_v63 = vpop.permute.xlu0 %6642  ;;  %10956 = vpow2.f32 %v6357_v58  ;;  %v6365_v16 = vmul.f32 1.442695, %v6111_v10  ;;  %v7088_v10 = vrot.slane %v15198_v47, %v13951_v50  ;;  %v7036_v47 = vrot.slane %v15202_v45, %v19149_v22 }
 0x5f0   : > { %6834 = vperm.xlu0 %10446, %v15282_v56   ;;  %v6109_v56 = vsub.f32 %v19144_v62, %v15289_v11  ;;  %v15302_v28 = vpop.eup %10950  ;;  %v7050_v62 = vrot.slane %v15136_v43, %v13951_v50  ;;  %v7064_v11 = vrot.slane %v15235_v18, %v13936_v39  ;;  %v7112_v18 = vrot.slane %v15284_v63, %v19149_v22 }
 0x5f1   : > { %19145 = vst [vmem:[#allocation208_spill] sm:$0xff] %v15302_v28  ;;  %v15309_v15 = vpop.eup %10952  ;;  %v7135_v45 = vrot.slane %v15277_v36, %v13939_v25  ;;  %v7041_v36 = vsel %vm5165_vm1, %v7040_v19, %v7036_v47  ;;  %v7126_v19 = vrot.slane %v15260_v9, %v13951_v50 }
 0x5f2   : > { %v6361_v1 = vmul.f32 1.442695, %v6109_v56  ;;  %19147 = vst [vmem:[#allocation212_spill] sm:$0xff] %v15309_v15  ;;  %v7069_v56 = vrot.slane %v15169_v7, %v13951_v50  ;;  %v7074_v7 = vrot.slane %v15242_v41, %v19149_v22  ;;  %v7102_v41 = vrot.slane %v15275_v26, %v13936_v39 }
 0x5f3   : > { %v15297_v31 = vpop.permute.xlu0 %6648 }
 0x5f4   : > { %6840 = vperm.xlu0 %10446, %v15295_v35   ;;  %10958 = vpow2.f32 %v6361_v1  ;;  %v7055_v1 = vrot.slane %v15222_v20, %v19149_v22  ;;  %v7083_v20 = vrot.slane %v15255_v17, %v13936_v39  ;;  %v7121_v48 = vrot.slane %v15297_v31, %v13936_v39 }
 0x5f5   : > { %10960 = vpow2.f32 %v6365_v16  ;;  %v7079_v26 = vsel %vm5165_vm1, %v7078_v52, %v7074_v7 }
 0x5f7   : > { %v6655_v24 = vpop.permute.xlu0 %6654 }
 0x5f8   : > { %6846 = vperm.xlu0 %10446, %v15302_v28   ;;  %v7059_v28 = vrot.slane %v15153_v29, %v13939_v25  ;;  %v15320_v58 = vpop.eup %10954  ;;  %v7097_v29 = vrot.slane %v15215_v60, %v13939_v25  ;;  %v7045_v60 = vrot.slane %v15213_v51, %v13936_v39  ;;  %v6682_v51 = vpop.permute.xlu1 %6681 }
 0x5f9   : > { %19148 = vst [vmem:[#allocation216_spill] sm:$0xff] %v15320_v58  ;;  %v15353_v16 = vpop.eup %10956 }
 0x5fa   : > { %19150 = vst [vmem:[#allocation214_spill] sm:$0xff] %v15353_v16  ;;  %v7060_v17 = vsel %vm5165_vm1, %v7059_v28, %v7055_v1  ;;  %v7084_v28 = vsel %vm5172_vm2, %v7083_v20, %v7079_v26  ;;  %v7098_v31 = vsel %vm5165_vm1, %v7097_v29, %v7093_v27  ;;  %v7154_v1 = vrot.slane %v15304_v44, %v13939_v25 }
 0x5fb   : > { %v6661_v35 = vpop.permute.xlu0 %6660  ;;  %v7065_v23 = vsel %vm5172_vm2, %v7064_v11, %v7060_v17  ;;  %v7046_v11 = vsel %vm5172_vm2, %v7045_v60, %v7041_v36  ;;  %v7103_v52 = vsel %vm5172_vm2, %v7102_v41, %v7098_v31  ;;  %v7145_v44 = vrot.slane %v15293_v32, %v13951_v50 }
 0x5fc   : > { %6852 = vperm.xlu0 %10446, %v15309_v15   ;;  %v7107_v15 = vrot.slane %v15231_v2, %v13951_v50  ;;  %v7116_v2 = vrot.slane %v15244_v6, %v13939_v25  ;;  %v7131_v6 = vrot.slane %v6655_v24, %v19149_v22  ;;  %v7140_v63 = vrot.slane %v6661_v35, %v13936_v39  ;;  %v6688_v32 = vpop.permute.xlu1 %6687 }
 0x5fd   : > { %v7070_v7 = vsel %vm5179_vm3, %v7069_v56, %v7065_v23  ;;  %v7089_v20 = vsel %vm5179_vm3, %v7088_v10, %v7084_v28  ;;  %v7051_v9 = vsel %vm5179_vm3, %v7050_v62, %v7046_v11  ;;  %v7164_v41 = vrot.slane %v15318_v54, %v13951_v50 }
 0x5fe   : > { %v7117_v35 = vsel %vm5165_vm1, %v7116_v2, %v7112_v18  ;;  %v7108_v23 = vsel %vm5179_vm3, %v7107_v15, %v7103_v52  ;;  %v7496_v10 = vsel %vm5770_vm4, %v7070_v7, %v7051_v9  ;;  %v7183_v26 = vrot.slane %v6688_v32, %v13951_v50  ;;  %v19155_v7 = vld [vmem:[#allocation306_spill] sm:$0xff] }
 0x5ff   : > { %v6667_v43 = vpop.permute.xlu0 %6666  ;;  %v7122_v29 = vsel %vm5172_vm2, %v7121_v48, %v7117_v35  ;;  %v7497_v62 = vsel %vm5772_vm5, %v7089_v20, %v7496_v10  ;;  %v19157_v10 = vld [vmem:[#allocation308_spill] sm:$0xff] }
 0x600   : > { %6858 = vperm.xlu0 %10446, %v15320_v58   ;;  %v7150_v38 = vrot.slane %v6667_v43, %v19149_v22  ;;  %v15375_v43 = vpop.eup %10958  ;;  %v7127_v18 = vsel %vm5179_vm3, %v7126_v19, %v7122_v29  ;;  %v7498_v48 = vsel %vm5774_vm6, %v7108_v23, %v7497_v62  ;;  %v6054_v29 = vsub.f32 %v19155_v7, %v15007_v61 }
 0x601   : > { %19151 = vst [vmem:[#allocation220_spill] sm:$0xff] %v15375_v43  ;;  %v7499_v36 = vsel %vm5776_vm7, %v7127_v18, %v7498_v48  ;;  %v6058_v18 = vsub.f32 %v19157_v10, %v15023_v21  ;;  %v7002_v62 = vrot.slane %v15058_v42, %v13939_v25 }
 0x602   : > { %v7155_v2 = vsel %vm5165_vm1, %v7154_v1, %v7150_v38  ;;  %v7173_v38 = vrot.slane %v6682_v51, %v13939_v25  ;;  %v19153_v51 = vld [vmem:[#allocation199_spill] sm:$0xff]  ;;  %v19154_v1 = vld [vmem:[#allocation274_spill] sm:$0xff]  ;;  %v6251_v32 = vmul.f32 1.442695, %v6054_v29 }
 0x603   : > { %v6673_v58 = vpop.permute.xlu0 %6672  ;;  %v6050_v28 = vsub.f32 %v19153_v51, %v14991_v53  ;;  %v6052_v11 = vsub.f32 %v19154_v1, %v14991_v53  ;;  %v6893_v53 = vrot.slane %v14920_v33, %v13936_v39  ;;  %v6936_v33 = vrot.slane %v14968_v12, %v13951_v50  ;;  %v19163_v51 = vld [vmem:[#allocation169_spill] sm:$0xff] }
 0x604   : > { %6864 = vperm.xlu0 %10446, %v15353_v16   ;;  %v7159_v24 = vrot.slane %v6673_v58, %v13936_v39  ;;  %v7136_v58 = vsel %vm5165_vm1, %v7135_v45, %v7131_v6  ;;  %v15396_v45 = vpop.eup %10960  ;;  %v6974_v12 = vrot.slane %v15016_v40, %v13951_v50  ;;  %v6983_v40 = vrot.slane %v15029_v3, %v13939_v25 }
 0x605   : > { %v7141_v27 = vsel %vm5172_vm2, %v7140_v63, %v7136_v58  ;;  %19152 = vst [vmem:[#allocation218_spill] sm:$0xff] %v15396_v45  ;;  %v6243_v20 = vmul.f32 1.442695, %v6050_v28  ;;  %v6247_v9 = vmul.f32 1.442695, %v6052_v11  ;;  %v6998_v28 = vrot.slane %v19163_v51, %v19149_v22  ;;  %v19164_v11 = vld [vmem:[#allocation302_spill] sm:$0xff] }
 0x606   : > { %v7160_v56 = vsel %vm5172_vm2, %v7159_v24, %v7155_v2  ;;  %v7146_v15 = vsel %vm5179_vm3, %v7145_v44, %v7141_v27  ;;  %v6884_v44 = vrot.slane %v14911_v5, %v19149_v22  ;;  %v6898_v27 = vrot.slane %v14930_v37, %v13951_v50 }
 0x607   : > { %v6679_v47 = vpop.permute.xlu0 %6678  ;;  %v7165_v54 = vsel %vm5179_vm3, %v7164_v41, %v7160_v56  ;;  %v7500_v24 = vsel %vm5778_vm8, %v7146_v15, %v7499_v36  ;;  %v6907_v2 = vrot.slane %v14939_v59, %v13939_v25  ;;  %v6917_v56 = vrot.slane %v14949_v0, %v13951_v50 }
 0x608   : > { %6870 = vperm.xlu0 %10446, %v15375_v43   ;;  %v7169_v60 = vrot.slane %v6679_v47, %v19149_v22  ;;  %v7501_v19 = vsel %vm5780_vm9, %v7165_v54, %v7500_v24  ;;  %v6926_v5 = vrot.slane %v14958_v13, %v13939_v25  ;;  %v6945_v37 = vrot.slane %v14977_v34, %v13939_v25 }
 0x609   : > { %v6955_v59 = vrot.slane %v14993_v46, %v13951_v50  ;;  %v6964_v0 = vrot.slane %v15002_v55, %v13939_v25  ;;  %10962 = vpow2.f32 %v6243_v20  ;;  %v6888_v13 = vrot.slane %v15049_v30, %v13939_v25 }
 0x60a   : > { %v7174_v63 = vsel %vm5165_vm1, %v7173_v38, %v7169_v60  ;;  %v19156_v60 = vld [vmem:[#allocation202_spill] sm:$0xff]  ;;  %10964 = vpow2.f32 %v6247_v9  ;;  %v6912_v46 = vrot.slane %v15069_v57, %v13936_v39  ;;  %v6922_v34 = vrot.slane %v15078_v49, %v19149_v22  ;;  %v19159_v49 = vld [vmem:[#allocation117_spill] sm:$0xff] }
 0x60b   : > { %v6685_v17 = vpop.permute.xlu0 %6684  ;;  %v6056_v41 = vsub.f32 %v19156_v60, %v15007_v61  ;;  %v6903_v61 = vrot.slane %v15056_v4, %v19149_v22  ;;  %10966 = vpow2.f32 %v6251_v32  ;;  %v6931_v30 = vrot.slane %v15089_v14, %v13936_v39  ;;  %v19158_v57 = vld [vmem:[#allocation106_spill] sm:$0xff]  ;;  %v19168_v32 = vld [vmem:[#allocation260_spill] sm:$0xff] }
 0x60c   : > { %v7178_v6 = vrot.slane %v6685_v17, %v13936_v39  ;;  %6876 = vperm.xlu0 %10446, %v15396_v45   ;;  %v6941_v4 = vrot.slane %v15098_v8, %v19149_v22  ;;  %v6950_v15 = vrot.slane %v19158_v57, %v13936_v39  ;;  %v6960_v17 = vrot.slane %v19159_v49, %v19149_v22  ;;  %v19160_v14 = vld [vmem:[#allocation86_spill] sm:$0xff]  ;;  %v19161_v8 = vld [vmem:[#allocation157_spill] sm:$0xff] }
 0x60d   : > { %v6255_v55 = vmul.f32 1.442695, %v6056_v41  ;;  %v6889_v48 = vsel %vm5165_vm1, %v6888_v13, %v6884_v44  ;;  %v6969_v54 = vrot.slane %v19160_v14, %v13936_v39  ;;  %v6927_v42 = vsel %vm5165_vm1, %v6926_v5, %v6922_v34  ;;  %v19166_v44 = vld [vmem:[#allocation187_spill] sm:$0xff]  ;;  %v19174_v14 = vld [vmem:[#allocation309_spill] sm:$0xff] }
 0x60e   : > { %v7179_v31 = vsel %vm5172_vm2, %v7178_v6, %v7174_v63  ;;  %v6908_v6 = vsel %vm5165_vm1, %v6907_v2, %v6903_v61  ;;  %v19162_v63 = vld [vmem:[#allocation144_spill] sm:$0xff]  ;;  %v6932_v24 = vsel %vm5172_vm2, %v6931_v30, %v6927_v42  ;;  %v6946_v1 = vsel %vm5165_vm1, %v6945_v37, %v6941_v4  ;;  %v19167_v2 = vld [vmem:[#allocation266_spill] sm:$0xff]  ;;  %v19235_v45 = vld [vmem:[#allocation213_spill] sm:$0xff] }
 0x60f   : > { %v15414_v52 = vpop.permute.xlu0 %6690  ;;  %v7184_v35 = vsel %vm5179_vm3, %v7183_v26, %v7179_v31  ;;  %v6979_v26 = vrot.slane %v19161_v8, %v19149_v22  ;;  %v6913_v3 = vsel %vm5172_vm2, %v6912_v46, %v6908_v6  ;;  %v6988_v36 = vrot.slane %v19162_v63, %v13936_v39 }
 0x610   : > { %v7502_v58 = vsel %vm5782_vm10, %v7184_v35, %v7501_v19  ;;  %v7007_v35 = vrot.slane %v19164_v11, %v13936_v39  ;;  %v19165_v19 = vld [vmem:[#allocation171_spill] sm:$0xff]  ;;  %v6894_v29 = vsel %vm5172_vm2, %v6893_v53, %v6889_v48  ;;  %v7026_v20 = vrot.slane %v19166_v44, %v13936_v39  ;;  %v19180_v44 = vld [vmem:[#allocation196_spill] sm:$0xff] }
 0x611   : > { %v7524_v47 = vsel %vm413_vm0, %v7502_v58, 0.0  ;;  %v7017_v7 = vrot.slane %v19165_v19, %v19149_v22  ;;  %v6951_v58 = vsel %vm5172_vm2, %v6950_v15, %v6946_v1  ;;  %v7021_v9 = vrot.slane %v19167_v2, %v13939_v25  ;;  %v19175_v1 = vld [vmem:[#allocation287_spill] sm:$0xff] }
 0x612   : > { %7525 = vadd.xlane.f32.xlu1 %v7524_v47  ;;  %v6965_v47 = vsel %vm5165_vm1, %v6964_v0, %v6960_v17  ;;  %v6918_v5 = vsel %vm5179_vm3, %v6917_v56, %v6913_v3  ;;  %v6984_v41 = vsel %vm5165_vm1, %v6983_v40, %v6979_v26  ;;  %v6993_v37 = vrot.slane %v19168_v32, %v13951_v50 }
 0x613   : > { %v15430_v23 = vpop.permute.xlu0 %6696  ;;  %v6970_v60 = vsel %vm5172_vm2, %v6969_v54, %v6965_v47  ;;  %v6937_v53 = vsel %vm5179_vm3, %v6936_v33, %v6932_v24  ;;  %v6989_v13 = vsel %vm5172_vm2, %v6988_v36, %v6984_v41  ;;  %v7003_v0 = vsel %vm5165_vm1, %v7002_v62, %v6998_v28  ;;  %v15509_v46 = vpop.eup %10962  ;;  %v19171_v33 = vld [vmem:[#allocation176_spill] sm:$0xff]  ;;  %v19179_v47 = vld [vmem:[#allocation217_spill] sm:$0xff] }
 0x614   : > { %19169 = vst [vmem:[#allocation224_spill] sm:$0xff] %v15509_v46  ;;  %v6899_v34 = vsel %vm5179_vm3, %v6898_v27, %v6894_v29  ;;  %v6956_v56 = vsel %vm5179_vm3, %v6955_v59, %v6951_v58  ;;  %v7008_v30 = vsel %vm5172_vm2, %v7007_v35, %v7003_v0  ;;  %v7022_v4 = vsel %vm5165_vm1, %v7021_v9, %v7017_v7  ;;  %v15515_v40 = vpop.eup %10964  ;;  %v19173_v27 = vld [vmem:[#allocation96_spill] sm:$0xff]  ;;  %v19177_v35 = vld [vmem:[#allocation310_spill] sm:$0xff] }
 0x615   : > { %19170 = vst [vmem:[#allocation222_spill] sm:$0xff] %v15515_v40  ;;  %v7012_v57 = vrot.slane %v19171_v33, %v13951_v50  ;;  %v7489_v15 = vsel %vm5770_vm4, %v6918_v5, %v6899_v34  ;;  %v6975_v62 = vsel %vm5179_vm3, %v6974_v12, %v6970_v60  ;;  %v7027_v49 = vsel %vm5172_vm2, %v7026_v20, %v7022_v4  ;;  %v15522_v17 = vpop.eup %10966  ;;  %v19182_v60 = vld [vmem:[#allocation305_spill] sm:$0xff]  ;;  %v19185_v0 = vld [vmem:[#allocation198_spill] sm:$0xff] }
 0x616   : > { %19172 = vst [vmem:[#allocation228_spill] sm:$0xff] %v15522_v17  ;;  %v7031_v59 = vrot.slane %v19173_v27, %v13951_v50  ;;  %v7490_v48 = vsel %vm5772_vm5, %v6937_v53, %v7489_v15  ;;  %v6994_v6 = vsel %vm5179_vm3, %v6993_v37, %v6989_v13  ;;  %v6060_v54 = vsub.f32 %v19174_v14, %v15023_v21  ;;  %v19184_v13 = vld [vmem:[#allocation175_spill] sm:$0xff]  ;;  %v19187_v4 = vld [vmem:[#allocation206_spill] sm:$0xff]  ;;  %v19190_v27 = vld [vmem:[#allocation304_spill] sm:$0xff] }
 0x617   : > { %v15458_v38 = vpop.permute.xlu0 %6702  ;;  %v7491_v8 = vsel %vm5774_vm6, %v6956_v56, %v7490_v48  ;;  %v7013_v12 = vsel %vm5179_vm3, %v7012_v57, %v7008_v30  ;;  %10968 = vpow2.f32 %v6255_v55  ;;  %v6259_v3 = vmul.f32 1.442695, %v6058_v18  ;;  %v19176_v55 = vld [vmem:[#allocation210_spill] sm:$0xff] }
 0x618   : > { %v7032_v42 = vsel %vm5179_vm3, %v7031_v59, %v7027_v49  ;;  %v7492_v63 = vsel %vm5776_vm7, %v6975_v62, %v7491_v8  ;;  %v6062_v11 = vsub.f32 %v19176_v55, %v19175_v1  ;;  %v6263_v21 = vmul.f32 1.442695, %v6060_v54  ;;  %v19189_v49 = vld [vmem:[#allocation185_spill] sm:$0xff]  ;;  %v19192_v54 = vld [vmem:[#allocation307_spill] sm:$0xff] }
 0x619   : > { %v7493_v36 = vsel %vm5778_vm8, %v6994_v6, %v7492_v63  ;;  %10970 = vpow2.f32 %v6259_v3  ;;  %v6064_v19 = vsub.f32 %v19177_v35, %v19175_v1  ;;  %v6066_v20 = vsub.f32 %v19180_v44, %v19179_v47  ;;  %v19195_v63 = vld [vmem:[#allocation197_spill] sm:$0xff]  ;;  %v19197_v55 = vld [vmem:[#allocation275_spill] sm:$0xff] }
 0x61a   : > { %v7494_v51 = vsel %vm5780_vm9, %v7013_v12, %v7493_v36  ;;  %10972 = vpow2.f32 %v6263_v21  ;;  %v6267_v7 = vmul.f32 1.442695, %v6062_v11  ;;  %v6068_v41 = vsub.f32 %v19182_v60, %v19179_v47  ;;  %v19200_v47 = vld [vmem:[#allocation203_spill] sm:$0xff] }
 0x61b   : > { %v15484_v31 = vpop.permute.xlu0 %6708  ;;  %v7495_v24 = vsel %vm5782_vm10, %v7032_v42, %v7494_v51  ;;  %v6271_v2 = vmul.f32 1.442695, %v6064_v19  ;;  %v6275_v32 = vmul.f32 1.442695, %v6066_v20  ;;  %v6070_v34 = vsub.f32 %v19185_v0, %v19184_v13  ;;  %v19194_v42 = vld [vmem:[#allocation182_spill] sm:$0xff]  ;;  %v19204_v0 = vld [vmem:[#allocation167_spill] sm:$0xff] }
 0x61c   : > { %v7521_v10 = vsel %vm413_vm0, %v7495_v24, 0.0  ;;  %10974 = vpow2.f32 %v6267_v7  ;;  %v6279_v56 = vmul.f32 1.442695, %v6068_v41  ;;  %v6072_v33 = vsub.f32 %v19187_v4, %v19184_v13  ;;  %v19199_v7 = vld [vmem:[#allocation162_spill] sm:$0xff] }
 0x61d   : > { %10976 = vpow2.f32 %v6271_v2  ;;  %v6283_v57 = vmul.f32 1.442695, %v6070_v34  ;;  %v6074_v59 = vsub.f32 %v19190_v27, %v19189_v49  ;;  %v6076_v8 = vsub.f32 %v19192_v54, %v19189_v49  ;;  %v19202_v2 = vld [vmem:[#allocation276_spill] sm:$0xff]  ;;  %v19205_v34 = vld [vmem:[#allocation201_spill] sm:$0xff]  ;;  %v19209_v54 = vld [vmem:[#allocation263_spill] sm:$0xff] }
 0x61e   : > { %10978 = vpow2.f32 %v6275_v32  ;;  %v6287_v48 = vmul.f32 1.442695, %v6072_v33  ;;  %v6078_v36 = vsub.f32 %v19195_v63, %v19194_v42  ;;  %v6080_v11 = vsub.f32 %v19197_v55, %v19194_v42  ;;  %v19207_v49 = vld [vmem:[#allocation277_spill] sm:$0xff] }
 0x61f   : > { %v15507_v61 = vpop.permute.xlu0 %6714  ;;  %10980 = vpow2.f32 %v6279_v56  ;;  %v6291_v12 = vmul.f32 1.442695, %v6074_v59  ;;  %v6295_v51 = vmul.f32 1.442695, %v6076_v8  ;;  %v6082_v44 = vsub.f32 %v19200_v47, %v19199_v7  ;;  %v19210_v8 = vld [vmem:[#allocation207_spill] sm:$0xff]  ;;  %v19215_v47 = vld [vmem:[#allocation205_spill] sm:$0xff] }
 0x620   : > { %10982 = vpow2.f32 %v6283_v57  ;;  %v6299_v21 = vmul.f32 1.442695, %v6078_v36  ;;  %v6303_v19 = vmul.f32 1.442695, %v6080_v11  ;;  %v6084_v60 = vsub.f32 %v19202_v2, %v19199_v7  ;;  %v19214_v7 = vld [vmem:[#allocation267_spill] sm:$0xff] }
 0x621   : > { %v15554_v29 = vpop.eup %10968  ;;  %10984 = vpow2.f32 %v6287_v48  ;;  %v6307_v41 = vmul.f32 1.442695, %v6082_v44  ;;  %v6086_v56 = vsub.f32 %v19205_v34, %v19204_v0  ;;  %v6088_v27 = vsub.f32 %v19207_v49, %v19204_v0  ;;  %v19219_v49 = vld [vmem:[#allocation195_spill] sm:$0xff] }
 0x622   : > { %19178 = vst [vmem:[#allocation226_spill] sm:$0xff] %v15554_v29  ;;  %10986 = vpow2.f32 %v6291_v12  ;;  %v6311_v4 = vmul.f32 1.442695, %v6084_v60  ;;  %v6090_v12 = vsub.f32 %v19210_v8, %v19209_v54  ;;  %v6094_v44 = vsub.f32 %v19215_v47, %v19214_v7  ;;  %v19225_v47 = vld [vmem:[#allocation209_spill] sm:$0xff] }
 0x623   : > { %v15531_v26 = vpop.permute.xlu0 %6720  ;;  %6693 = vperm.xlu1 %10447, %v15509_v46   ;;  %v15561_v9 = vpop.eup %10970  ;;  %10988 = vpow2.f32 %v6295_v51  ;;  %v6315_v59 = vmul.f32 1.442695, %v6086_v56  ;;  %v6319_v42 = vmul.f32 1.442695, %v6088_v27  ;;  %v19212_v51 = vld [vmem:[#allocation278_spill] sm:$0xff]  ;;  %v19220_v27 = vld [vmem:[#allocation211_spill] sm:$0xff] }
 0x624   : > { %19181 = vst [vmem:[#allocation232_spill] sm:$0xff] %v15561_v9  ;;  %v15568_v37 = vpop.eup %10972  ;;  %10990 = vpow2.f32 %v6299_v21  ;;  %v6092_v55 = vsub.f32 %v19212_v51, %v19209_v54  ;;  %v6323_v11 = vmul.f32 1.442695, %v6090_v12  ;;  %v6331_v34 = vmul.f32 1.442695, %v6094_v44  ;;  %v19252_v46 = vld [vmem:[#allocation6_spill] sm:$0xff] }
 0x625   : > { %19183 = vst [vmem:[#allocation230_spill] sm:$0xff] %v15568_v37  ;;  %10992 = vpow2.f32 %v6303_v19 }
 0x626   : > { %v15575_v30 = vpop.eup %10974  ;;  %10994 = vpow2.f32 %v6307_v41  ;;  %v6327_v2 = vmul.f32 1.442695, %v6092_v55  ;;  %v19217_v41 = vld [vmem:[#allocation279_spill] sm:$0xff] }
 0x627   : > { %v15542_v28 = vpop.permute.xlu0 %6726  ;;  %6699 = vperm.xlu1 %10447, %v15515_v40   ;;  %19186 = vst [vmem:[#allocation236_spill] sm:$0xff] %v15575_v30  ;;  %v15582_v62 = vpop.eup %10976  ;;  %10996 = vpow2.f32 %v6311_v4  ;;  %v6096_v0 = vsub.f32 %v19217_v41, %v19214_v7  ;;  %v19224_v7 = vld [vmem:[#allocation273_spill] sm:$0xff]  ;;  %v7207_v40 = vrot.slane %v15458_v38, %v19149_v22 }
 0x628   : > { %19188 = vst [vmem:[#allocation234_spill] sm:$0xff] %v15582_v62  ;;  %v15587_v6 = vpop.eup %10978  ;;  %10998 = vpow2.f32 %v6315_v59  ;;  %v6098_v59 = vsub.f32 %v19220_v27, %v19219_v49  ;;  %v6102_v44 = vsub.f32 %v19225_v47, %v19224_v7  ;;  %v7245_v38 = vrot.slane %v15542_v28, %v19149_v22 }
 0x629   : > { %19191 = vst [vmem:[#allocation240_spill] sm:$0xff] %v15587_v6  ;;  %v15594_v3 = vpop.eup %10980  ;;  %11000 = vpow2.f32 %v6319_v42  ;;  %v6335_v54 = vmul.f32 1.442695, %v6096_v0  ;;  %v19222_v42 = vld [vmem:[#allocation280_spill] sm:$0xff] }
 0x62a   : > { %19193 = vst [vmem:[#allocation238_spill] sm:$0xff] %v15594_v3  ;;  %v15601_v1 = vpop.eup %10982  ;;  %11002 = vpow2.f32 %v6323_v11  ;;  %v6100_v51 = vsub.f32 %v19222_v42, %v19219_v49  ;;  %v6339_v55 = vmul.f32 1.442695, %v6098_v59  ;;  %v6347_v27 = vmul.f32 1.442695, %v6102_v44  ;;  %v19229_v42 = vld [vmem:[#allocation192_spill] sm:$0xff] }
 0x62b   : > { %v15549_v18 = vpop.permute.xlu0 %6732  ;;  %7522 = vadd.xlane.f32.xlu0 %v7521_v10  ;;  %6705 = vperm.xlu1 %10447, %v15522_v17   ;;  %19196 = vst [vmem:[#allocation244_spill] sm:$0xff] %v15601_v1  ;;  %v15606_v10 = vpop.eup %10984  ;;  %11004 = vpow2.f32 %v6327_v2 }
 0x62c   : > { %19198 = vst [vmem:[#allocation242_spill] sm:$0xff] %v15606_v10  ;;  %v15613_v20 = vpop.eup %10986  ;;  %11006 = vpow2.f32 %v6331_v34  ;;  %v6343_v2 = vmul.f32 1.442695, %v6100_v51  ;;  %v19227_v34 = vld [vmem:[#allocation281_spill] sm:$0xff] }
 0x62d   : > { %19201 = vst [vmem:[#allocation248_spill] sm:$0xff] %v15613_v20  ;;  %v15620_v13 = vpop.eup %10988  ;;  %11008 = vpow2.f32 %v6335_v54  ;;  %v6104_v49 = vsub.f32 %v19227_v34, %v19224_v7 }
 0x62e   : > { %19203 = vst [vmem:[#allocation246_spill] sm:$0xff] %v15620_v13  ;;  %v15625_v33 = vpop.eup %10990  ;;  %11010 = vpow2.f32 %v6339_v55  ;;  %v19230_v55 = vld [vmem:[#allocation215_spill] sm:$0xff] }
 0x62f   : > { %v15556_v58 = vpop.permute.xlu0 %6738  ;;  %6711 = vperm.xlu1 %10447, %v15554_v29   ;;  %19206 = vst [vmem:[#allocation252_spill] sm:$0xff] %v15625_v33  ;;  %v15632_v48 = vpop.eup %10992  ;;  %11012 = vpow2.f32 %v6343_v2  ;;  %v6106_v51 = vsub.f32 %v19230_v55, %v19229_v42  ;;  %v6351_v47 = vmul.f32 1.442695, %v6104_v49 }
 0x630   : > { %19208 = vst [vmem:[#allocation250_spill] sm:$0xff] %v15632_v48  ;;  %v15639_v36 = vpop.eup %10994  ;;  %11014 = vpow2.f32 %v6347_v27 }
 0x631   : > { %19211 = vst [vmem:[#allocation256_spill] sm:$0xff] %v15639_v36  ;;  %v15644_v21 = vpop.eup %10996  ;;  %11016 = vpow2.f32 %v6351_v47  ;;  %v6355_v44 = vmul.f32 1.442695, %v6106_v51 }
 0x632   : > { %19213 = vst [vmem:[#allocation254_spill] sm:$0xff] %v15644_v21  ;;  %v15651_v60 = vpop.eup %10998 }
 0x633   : > { %v15563_v5 = vpop.permute.xlu0 %6744  ;;  %6717 = vperm.xlu1 %10447, %v15561_v9   ;;  %19216 = vst [vmem:[#allocation2_spill] sm:$0xff] %v15651_v60  ;;  %v15658_v4 = vpop.eup %11000  ;;  %11018 = vpow2.f32 %v6355_v44  ;;  %v19251_v9 = vld [vmem:[#allocation138_spill] sm:$0xff] }
 0x634   : > { %19218 = vst [vmem:[#allocation199_spill] sm:$0xff] %v15658_v4  ;;  %v15663_v8 = vpop.eup %11002 }
 0x635   : > { %19221 = vst [vmem:[#allocation274_spill] sm:$0xff] %v15663_v8  ;;  %v15670_v11 = vpop.eup %11004 }
 0x636   : > { %19223 = vst [vmem:[#allocation306_spill] sm:$0xff] %v15670_v11  ;;  %v15677_v0 = vpop.eup %11006 }
 0x637   : > { %v15570_v53 = vpop.permute.xlu0 %6750  ;;  %6723 = vperm.xlu1 %10447, %v15568_v37   ;;  %19226 = vst [vmem:[#allocation202_spill] sm:$0xff] %v15677_v0  ;;  %v15682_v59 = vpop.eup %11008 }
 0x638   : > { %19228 = vst [vmem:[#allocation308_spill] sm:$0xff] %v15682_v59  ;;  %v15689_v43 = vpop.eup %11010 }
 0x639   : > { %19231 = vst [vmem:[#allocation106_spill] sm:$0xff] %v15689_v43  ;;  %v15696_v34 = vpop.eup %11012 }
 0x63a   : > { %19233 = vst [vmem:[#allocation117_spill] sm:$0xff] %v15696_v34  ;;  %v15701_v27 = vpop.eup %11014 }
 0x63b   : > { %6729 = vperm.xlu1 %10447, %v15575_v30   ;;  %v15580_v15 = vpop.permute.xlu0 %6756  ;;  %19236 = vst [vmem:[#allocation86_spill] sm:$0xff] %v15701_v27  ;;  %v15708_v47 = vpop.eup %11016 }
 0x63c   : > { %19238 = vst [vmem:[#allocation157_spill] sm:$0xff] %v15708_v47  ;;  %v7292_v28 = vrot.slane %v15580_v15, %v13936_v39 }
 0x63f   : > { %6735 = vperm.xlu1 %10447, %v15582_v62   ;;  %v15589_v14 = vpop.permute.xlu0 %6762 }
 0x643   : > { %6741 = vperm.xlu1 %10447, %v15587_v6   ;;  %v15599_v24 = vpop.permute.xlu0 %6768  ;;  %v19249_v6 = vld [vmem:[#allocation5_spill] sm:$0xff] }
 0x647   : > { %6747 = vperm.xlu1 %10447, %v15594_v3   ;;  %v15608_v35 = vpop.permute.xlu0 %6774 }
 0x64b   : > { %6753 = vperm.xlu1 %10447, %v15601_v1   ;;  %v15618_v32 = vpop.permute.xlu0 %6780 }
 0x64f   : > { %6759 = vperm.xlu1 %10447, %v15606_v10   ;;  %v15627_v57 = vpop.permute.xlu0 %6786  ;;  %v19248_v10 = vld [vmem:[#allocation288_spill] sm:$0xff] }
 0x653   : > { %6765 = vperm.xlu1 %10447, %v15613_v20   ;;  %v15637_v63 = vpop.permute.xlu0 %6792 }
 0x657   : > { %6771 = vperm.xlu1 %10447, %v15620_v13   ;;  %v15646_v19 = vpop.permute.xlu0 %6798 }
 0x65b   : > { %6777 = vperm.xlu1 %10447, %v15625_v33   ;;  %v15656_v56 = vpop.permute.xlu0 %6804 }
 0x65f   : > { %6783 = vperm.xlu1 %10447, %v15632_v48   ;;  %v15665_v12 = vpop.permute.xlu0 %6810  ;;  %v19246_v48 = vld [vmem:[#allocation4_spill] sm:$0xff] }
 0x663   : > { %6789 = vperm.xlu1 %10447, %v15639_v36   ;;  %v15675_v41 = vpop.permute.xlu0 %6816 }
 0x667   : > { %6795 = vperm.xlu1 %10447, %v15644_v21   ;;  %v15684_v54 = vpop.permute.xlu0 %6822 }
 0x66b   : > { %6801 = vperm.xlu1 %10447, %v15651_v60   ;;  %v15694_v2 = vpop.permute.xlu0 %6828 }
 0x66f   : > { %6807 = vperm.xlu1 %10447, %v15658_v4   ;;  %v15703_v16 = vpop.permute.xlu0 %6834  ;;  %v19245_v4 = vld [vmem:[#allocation3_spill] sm:$0xff] }
 0x673   : > { %6813 = vperm.xlu1 %10447, %v15663_v8  }
 0x677   : > { %6819 = vperm.xlu1 %10447, %v15670_v11   ;;  %v19232_v11 = vld [vmem:[#allocation283_spill] sm:$0xff] }
 0x678   : > { %v6108_v7 = vsub.f32 %v19232_v11, %v19229_v42  ;;  %v19237_v11 = vld [vmem:[#allocation285_spill] sm:$0xff] }
 0x67a   : > { %v6359_v49 = vmul.f32 1.442695, %v6108_v7  ;;  %v15713_v7 = vpop.eup %11018 }
 0x67b   : > { %6825 = vperm.xlu1 %10447, %v15677_v0   ;;  %19239 = vst [vmem:[#allocation144_spill] sm:$0xff] %v15713_v7 }
 0x67c   : > { %11020 = vpow2.f32 %v6359_v49 }
 0x67f   : > { %6831 = vperm.xlu1 %10447, %v15682_v59   ;;  %v19234_v59 = vld [vmem:[#allocation200_spill] sm:$0xff] }
 0x680   : > { %v6110_v55 = vsub.f32 %v19235_v45, %v19234_v59  ;;  %v6112_v42 = vsub.f32 %v19237_v11, %v19234_v59  ;;  %v15711_v45 = vpop.permute.xlu0 %6840 }
 0x682   : > { %v6363_v51 = vmul.f32 1.442695, %v6110_v55 }
 0x683   : > { %6837 = vperm.xlu1 %10447, %v15689_v43  }
 0x684   : > { %11022 = vpow2.f32 %v6363_v51  ;;  %v15718_v43 = vpop.permute.xlu0 %6846 }
 0x686   : > { %v15716_v44 = vpop.eup %11020 }
 0x687   : > { %6843 = vperm.xlu1 %10447, %v15696_v34   ;;  %v6367_v34 = vmul.f32 1.442695, %v6112_v42  ;;  %19240 = vst [vmem:[#allocation169_spill] sm:$0xff] %v15716_v44 }
 0x688   : > { %v15724_v55 = vpop.permute.xlu0 %6852 }
 0x689   : > { %11024 = vpow2.f32 %v6367_v34 }
 0x68b   : > { %6849 = vperm.xlu1 %10447, %v15701_v27  }
 0x68c   : > { %v15731_v42 = vpop.permute.xlu0 %6858 }
 0x68e   : > { %v15721_v59 = vpop.eup %11022 }
 0x68f   : > { %6855 = vperm.xlu1 %10447, %v15708_v47   ;;  %19241 = vst [vmem:[#allocation302_spill] sm:$0xff] %v15721_v59 }
 0x690   : > { %v15735_v47 = vpop.permute.xlu0 %6864 }
 0x693   : > { %6861 = vperm.xlu1 %10447, %v15713_v7   ;;  %v15726_v49 = vpop.eup %11024 }
 0x694   : > { %19242 = vst [vmem:[#allocation171_spill] sm:$0xff] %v15726_v49  ;;  %v15737_v7 = vpop.permute.xlu0 %6870 }
 0x695   : > { %19243 = vst [vmem:[#allocation187_spill] sm:$0xff] %v15737_v7 }
 0x697   : > { %6867 = vperm.xlu1 %10447, %v15716_v44  }
 0x698   : > { %v15741_v0 = vpop.permute.xlu0 %6876 }
 0x699   : > { %19244 = vst [vmem:[#allocation266_spill] sm:$0xff] %v15741_v0 }
 0x69b   : > { %6873 = vperm.xlu1 %10447, %v15721_v59  }
 0x69f   : > { %6879 = vperm.xlu1 %10447, %v15726_v49   ;;  %v15729_v11 = vpop.xlane.xlu1 %7525 }
 0x6a3   : > { %v6694_v34 = vpop.permute.xlu1 %6693 }
 0x6a7   : > { %v15733_v51 = vpop.permute.xlu1 %6699 }
 0x6ab   : > { %v6706_v44 = vpop.permute.xlu1 %6705 }
 0x6af   : > { %v15739_v27 = vpop.permute.xlu1 %6711 }
 0x6b3   : > { %v6718_v59 = vpop.permute.xlu1 %6717 }
 0x6b7   : > { %v15743_v8 = vpop.permute.xlu1 %6723 }
 0x6b8   : > { %v15745_v49 = vpop.xlane.xlu0 %7522 }
 0x6b9   : > { %v7540_v60 = vrot.slane %v15745_v49, %v19245_v4  ;;  %v7544_v33 = vrot.slane %v15745_v49, %v19246_v48  ;;  %v7548_v62 = vrot.slane %v15745_v49, %v19249_v6 }
 0x6bb   : > { %11026 = vrcp.f32 %v7540_v60  ;;  %v6730_v21 = vpop.permute.xlu1 %6729  ;;  %v19250_v60 = vld [vmem:[#allocation223_spill] sm:$0xff] }
 0x6bc   : > { %11028 = vrcp.f32 %v7544_v33 }
 0x6bd   : > { %11030 = vrcp.f32 %v7548_v62  ;;  %v7211_v62 = vrot.slane %v6706_v44, %v13939_v25  ;;  %v7230_v44 = vrot.slane %v6718_v59, %v13939_v25 }
 0x6bf   : > { %v15749_v36 = vpop.permute.xlu1 %6735  ;;  %v7212_v59 = vsel %vm5165_vm1, %v7211_v62, %v7207_v40  ;;  %v19254_v62 = vld [vmem:[#allocation289_spill] sm:$0xff] }
 0x6c3   : > { %v6742_v13 = vpop.permute.xlu1 %6741 }
 0x6c4   : > { %v7268_v15 = vrot.slane %v6742_v13, %v13939_v25 }
 0x6c5   : > { %v15753_v20 = vpop.eup %11026 }
 0x6c6   : > { %19247 = vst [vmem:[#allocation260_spill] sm:$0xff] %v15753_v20  ;;  %v7698_v1 = vmul.f32 %v15753_v20, %v19248_v10  ;;  %v7700_v30 = vmul.f32 %v15753_v20, %v19250_v60  ;;  %v7701_v29 = vmul.f32 %v15753_v20, %v19251_v9  ;;  %v15765_v17 = vpop.eup %11028  ;;  %v7188_v10 = vrot.slane %v15414_v52, %v19149_v22 }
 0x6c7   : > { %v15757_v3 = vpop.permute.xlu1 %6747  ;;  %v7226_v9 = vrot.slane %v15507_v61, %v19149_v22  ;;  %v7235_v52 = vrot.slane %v15531_v26, %v13936_v39  ;;  %v7192_v60 = vrot.slane %v6694_v34, %v13939_v25  ;;  %v7264_v61 = vrot.slane %v15556_v58, %v19149_v22 }
 0x6c8   : > { %7859 = vperm.xlu1 %10447, %v7698_v1   ;;  %v7197_v1 = vrot.slane %v15430_v23, %v13936_v39  ;;  %v7552_v23 = vrot.slane %v15745_v49, %v19252_v46  ;;  %v7273_v26 = vrot.slane %v15563_v5, %v13936_v39  ;;  %v7283_v34 = vrot.slane %v15570_v53, %v19149_v22 }
 0x6c9   : > { %v7249_v58 = vrot.slane %v6730_v21, %v13939_v25  ;;  %v7311_v5 = vrot.slane %v15599_v24, %v13936_v39  ;;  %v7193_v53 = vsel %vm5165_vm1, %v7192_v60, %v7188_v10  ;;  %v7231_v7 = vsel %vm5165_vm1, %v7230_v44, %v7226_v9  ;;  %v15816_v21 = vpop.eup %11030  ;;  %v19255_v44 = vld [vmem:[#allocation7_spill] sm:$0xff] }
 0x6ca   : > { %11032 = vrcp.f32 %v7552_v23  ;;  %v7321_v24 = vrot.slane %v15608_v35, %v19149_v22  ;;  %v7259_v23 = vrot.slane %v15749_v36, %v13951_v50  ;;  %v7236_v35 = vsel %vm5172_vm2, %v7235_v52, %v7231_v7 }
 0x6cb   : > { %v6754_v37 = vpop.permute.xlu1 %6753  ;;  %v7250_v60 = vsel %vm5165_vm1, %v7249_v58, %v7245_v38 }
 0x6cc   : > { %7869 = vperm.xlu1 %10447, %v7700_v30   ;;  %v7216_v30 = vrot.slane %v15484_v31, %v13936_v39  ;;  %v7254_v31 = vrot.slane %v15549_v18, %v13936_v39  ;;  %v7302_v18 = vrot.slane %v15589_v14, %v19149_v22  ;;  %v7240_v14 = vrot.slane %v15743_v8, %v13951_v50 }
 0x6cd   : > { %v7287_v40 = vrot.slane %v6754_v37, %v13939_v25  ;;  %v7198_v8 = vsel %vm5172_vm2, %v7197_v1, %v7193_v53 }
 0x6ce   : > { %v7217_v13 = vsel %vm5172_vm2, %v7216_v30, %v7212_v59  ;;  %v7269_v30 = vsel %vm5165_vm1, %v7268_v15, %v7264_v61  ;;  %v7241_v1 = vsel %vm5179_vm3, %v7240_v14, %v7236_v35  ;;  %v7255_v52 = vsel %vm5172_vm2, %v7254_v31, %v7250_v60 }
 0x6cf   : > { %v15769_v33 = vpop.permute.xlu1 %6759  ;;  %v7288_v59 = vsel %vm5165_vm1, %v7287_v40, %v7283_v34  ;;  %v7260_v15 = vsel %vm5179_vm3, %v7259_v23, %v7255_v52  ;;  %v7274_v34 = vsel %vm5172_vm2, %v7273_v26, %v7269_v30 }
 0x6d0   : > { %7874 = vperm.xlu1 %10447, %v7701_v29   ;;  %v19253_v29 = vld [vmem:[#allocation221_spill] sm:$0xff]  ;;  %v7297_v38 = vrot.slane %v15769_v33, %v13951_v50  ;;  %v7293_v31 = vsel %vm5172_vm2, %v7292_v28, %v7288_v59 }
 0x6d1   : > { %v7704_v20 = vmul.f32 %v15765_v17, %v19253_v29  ;;  %v7221_v29 = vrot.slane %v15739_v27, %v13951_v50  ;;  %v7706_v27 = vmul.f32 %v15765_v17, %v19254_v62 }
 0x6d3   : > { %v6766_v0 = vpop.permute.xlu1 %6765  ;;  %v7222_v37 = vsel %vm5179_vm3, %v7221_v29, %v7217_v13  ;;  %v19256_v29 = vld [vmem:[#allocation227_spill] sm:$0xff] }
 0x6d4   : > { %7884 = vperm.xlu1 %10447, %v7704_v20   ;;  %v7202_v20 = vrot.slane %v15733_v51, %v13951_v50  ;;  %v7306_v10 = vrot.slane %v6766_v0, %v13939_v25  ;;  %v7556_v51 = vrot.slane %v15745_v49, %v19255_v44  ;;  %v7278_v0 = vrot.slane %v15757_v3, %v13951_v50  ;;  %v15857_v26 = vpop.eup %11032 }
 0x6d5   : > { %v7709_v36 = vmul.f32 %v15816_v21, %v19256_v29  ;;  %v19260_v29 = vld [vmem:[#allocation136_spill] sm:$0xff] }
 0x6d6   : > { %v7203_v7 = vsel %vm5179_vm3, %v7202_v20, %v7198_v8  ;;  %v7307_v58 = vsel %vm5165_vm1, %v7306_v10, %v7302_v18  ;;  %11034 = vrcp.f32 %v7556_v51  ;;  %v7279_v40 = vsel %vm5179_vm3, %v7278_v0, %v7274_v34  ;;  %v19257_v20 = vld [vmem:[#allocation145_spill] sm:$0xff]  ;;  %v19263_v34 = vld [vmem:[#allocation290_spill] sm:$0xff] }
 0x6d7   : > { %v6772_v9 = vpop.permute.xlu1 %6771  ;;  %v7503_v3 = vsel %vm5770_vm4, %v7222_v37, %v7203_v7  ;;  %v7298_v18 = vsel %vm5179_vm3, %v7297_v38, %v7293_v31  ;;  %v7312_v62 = vsel %vm5172_vm2, %v7311_v5, %v7307_v58  ;;  %v7711_v13 = vmul.f32 %v15816_v21, %v19257_v20  ;;  %v19258_v5 = vld [vmem:[#allocation8_spill] sm:$0xff]  ;;  %v19259_v51 = vld [vmem:[#allocation225_spill] sm:$0xff]  ;;  %v19264_v31 = vld [vmem:[#allocation10_spill] sm:$0xff] }
 0x6d8   : > { %7894 = vperm.xlu1 %10447, %v7706_v27   ;;  %v7316_v61 = vrot.slane %v6772_v9, %v13951_v50  ;;  %v7504_v14 = vsel %vm5772_vm5, %v7241_v1, %v7503_v3  ;;  %v7330_v10 = vrot.slane %v15618_v32, %v13936_v39  ;;  %v7714_v32 = vmul.f32 %v15857_v26, %v19259_v51  ;;  %v19261_v58 = vld [vmem:[#allocation9_spill] sm:$0xff] }
 0x6d9   : > { %v7505_v9 = vsel %vm5774_vm6, %v7260_v15, %v7504_v14 }
 0x6da   : > { %v7317_v8 = vsel %vm5179_vm3, %v7316_v61, %v7312_v62  ;;  %v7506_v28 = vsel %vm5776_vm7, %v7279_v40, %v7505_v9  ;;  %v7564_v61 = vrot.slane %v15745_v49, %v19261_v58  ;;  %v19265_v62 = vld [vmem:[#allocation229_spill] sm:$0xff] }
 0x6db   : > { %v6778_v53 = vpop.permute.xlu1 %6777  ;;  %v7507_v35 = vsel %vm5778_vm8, %v7298_v18, %v7506_v28  ;;  %v7568_v18 = vrot.slane %v15745_v49, %v19264_v31  ;;  %v19267_v28 = vld [vmem:[#allocation235_spill] sm:$0xff] }
 0x6dc   : > { %v7325_v33 = vrot.slane %v6778_v53, %v13939_v25  ;;  %7904 = vperm.xlu1 %10447, %v7709_v36   ;;  %v7508_v0 = vsel %vm5780_vm9, %v7317_v8, %v7507_v35  ;;  %v7716_v36 = vmul.f32 %v15857_v26, %v19260_v29  ;;  %v19262_v53 = vld [vmem:[#allocation231_spill] sm:$0xff] }
 0x6de   : > { %v7326_v27 = vsel %vm5165_vm1, %v7325_v33, %v7321_v24  ;;  %v7560_v24 = vrot.slane %v15745_v49, %v19258_v5 }
 0x6df   : > { %v6784_v37 = vpop.permute.xlu1 %6783  ;;  %v7331_v23 = vsel %vm5172_vm2, %v7330_v10, %v7326_v27 }
 0x6e0   : > { %v7335_v60 = vrot.slane %v6784_v37, %v13951_v50  ;;  %7914 = vperm.xlu1 %10447, %v7711_v13   ;;  %11036 = vrcp.f32 %v7560_v24  ;;  %v15879_v7 = vpop.eup %11034  ;;  %v19266_v13 = vld [vmem:[#allocation292_spill] sm:$0xff]  ;;  %v7572_v37 = vrot.slane %v15729_v11, %v19245_v4  ;;  %v19268_v24 = vld [vmem:[#allocation294_spill] sm:$0xff] }
 0x6e1   : > { %v7719_v3 = vmul.f32 %v15879_v7, %v19262_v53  ;;  %11038 = vrcp.f32 %v7564_v61  ;;  %v7721_v33 = vmul.f32 %v15879_v7, %v19263_v34  ;;  %v7580_v61 = vrot.slane %v15729_v11, %v19249_v6 }
 0x6e2   : > { %v7336_v30 = vsel %vm5179_vm3, %v7335_v60, %v7331_v23  ;;  %11040 = vrcp.f32 %v7568_v18  ;;  %v19272_v18 = vld [vmem:[#allocation298_spill] sm:$0xff] }
 0x6e3   : > { %v15873_v1 = vpop.permute.xlu1 %6789  ;;  %v7509_v59 = vsel %vm5782_vm10, %v7336_v30, %v7508_v0  ;;  %11042 = vrcp.f32 %v7572_v37  ;;  %v19269_v30 = vld [vmem:[#allocation233_spill] sm:$0xff]  ;;  %v7349_v37 = vrot.slane %v15637_v63, %v13936_v39  ;;  %v7584_v63 = vrot.slane %v15729_v11, %v19252_v46 }
 0x6e4   : > { %7924 = vperm.xlu1 %10447, %v7714_v32   ;;  %v7527_v38 = vsel %vm413_vm0, %v7509_v59, 0.0  ;;  %v7576_v32 = vrot.slane %v15729_v11, %v19246_v48 }
 0x6e5   : > { %7528 = vadd.xlane.f32.xlu0 %v7527_v38  ;;  %v19270_v38 = vld [vmem:[#allocation296_spill] sm:$0xff] }
 0x6e6   : > { %11044 = vrcp.f32 %v7576_v32  ;;  %v7406_v32 = vrot.slane %v15694_v2, %v13936_v39  ;;  %v7435_v2 = vrot.slane %v15718_v43, %v19149_v22 }
 0x6e7   : > { %v15881_v52 = vpop.permute.xlu1 %6795  ;;  %11046 = vrcp.f32 %v7580_v61  ;;  %v19274_v61 = vld [vmem:[#allocation187_spill] sm:$0xff] }
 0x6e8   : > { %7934 = vperm.xlu1 %10447, %v7716_v36   ;;  %11048 = vrcp.f32 %v7584_v63 }
 0x6ea   : > { %v15891_v14 = vpop.eup %11036 }
 0x6eb   : > { %v15887_v15 = vpop.permute.xlu1 %6801  ;;  %v7724_v27 = vmul.f32 %v15891_v14, %v19265_v62  ;;  %v7726_v10 = vmul.f32 %v15891_v14, %v19266_v13  ;;  %v15903_v9 = vpop.eup %11038  ;;  %v7340_v13 = vrot.slane %v15627_v57, %v19149_v22  ;;  %v7397_v57 = vrot.slane %v15684_v54, %v19149_v22 }
 0x6ec   : > { %7944 = vperm.xlu1 %10447, %v7719_v3   ;;  %v7729_v49 = vmul.f32 %v15903_v9, %v19267_v28  ;;  %v7731_v23 = vmul.f32 %v15903_v9, %v19268_v24  ;;  %v15915_v35 = vpop.eup %11040  ;;  %v19271_v3 = vld [vmem:[#allocation239_spill] sm:$0xff]  ;;  %v7359_v28 = vrot.slane %v15646_v19, %v19149_v22  ;;  %v7378_v24 = vrot.slane %v15665_v12, %v19149_v22 }
 0x6ed   : > { %v7734_v0 = vmul.f32 %v15915_v35, %v19269_v30  ;;  %v7736_v29 = vmul.f32 %v15915_v35, %v19270_v38  ;;  %v15925_v36 = vpop.eup %11042  ;;  %v7416_v19 = vrot.slane %v15703_v16, %v19149_v22  ;;  %v7363_v12 = vrot.slane %v15887_v15, %v13939_v25  ;;  %v19273_v30 = vld [vmem:[#allocation237_spill] sm:$0xff] }
 0x6ee   : > { %v7739_v34 = vmul.f32 %v15925_v36, %v19271_v3  ;;  %v7741_v62 = vmul.f32 %v15925_v36, %v19272_v18  ;;  %v7425_v54 = vrot.slane %v15711_v45, %v13936_v39  ;;  %v7454_v15 = vrot.slane %v15731_v42, %v19149_v22 }
 0x6ef   : > { %v15893_v40 = vpop.permute.xlu1 %6807  ;;  %v7473_v3 = vrot.slane %v19274_v61, %v19149_v22  ;;  %v7364_v18 = vsel %vm5165_vm1, %v7363_v12, %v7359_v28 }
 0x6f0   : > { %7954 = vperm.xlu1 %10447, %v7721_v33  }
 0x6f3   : > { %v15899_v20 = vpop.permute.xlu1 %6813 }
 0x6f4   : > { %7964 = vperm.xlu1 %10447, %v7724_v27   ;;  %v15935_v27 = vpop.eup %11044  ;;  %v7382_v16 = vrot.slane %v15899_v20, %v13939_v25 }
 0x6f5   : > { %v15981_v43 = vpop.eup %11046 }
 0x6f7   : > { %v15905_v8 = vpop.permute.xlu1 %6819 }
 0x6f8   : > { %7974 = vperm.xlu1 %10447, %v7726_v10   ;;  %v7392_v63 = vrot.slane %v15905_v8, %v13951_v50 }
 0x6fb   : > { %v15911_v60 = vpop.permute.xlu1 %6825 }
 0x6fc   : > { %7984 = vperm.xlu1 %10447, %v7729_v49   ;;  %v7368_v49 = vrot.slane %v15656_v56, %v13936_v39  ;;  %v7344_v56 = vrot.slane %v15873_v1, %v13939_v25  ;;  %v7444_v1 = vrot.slane %v15724_v55, %v13936_v39  ;;  %v7401_v45 = vrot.slane %v15911_v60, %v13939_v25 }
 0x6fe   : > { %v7345_v42 = vsel %vm5165_vm1, %v7344_v56, %v7340_v13  ;;  %v7402_v13 = vsel %vm5165_vm1, %v7401_v45, %v7397_v57  ;;  %v7369_v56 = vsel %vm5172_vm2, %v7368_v49, %v7364_v18  ;;  %v16031_v18 = vpop.eup %11048 }
 0x6ff   : > { %v15917_v51 = vpop.permute.xlu1 %6831 }
 0x700   : > { %7994 = vperm.xlu1 %10447, %v7731_v23   ;;  %v7387_v23 = vrot.slane %v15675_v41, %v13936_v39  ;;  %v7744_v41 = vmul.f32 %v15935_v27, %v19273_v30  ;;  %v7411_v28 = vrot.slane %v15917_v51, %v13951_v50 }
 0x703   : > { %v6838_v59 = vpop.permute.xlu1 %6837 }
 0x704   : > { %8004 = vperm.xlu1 %10447, %v7734_v0   ;;  %v7588_v0 = vrot.slane %v15729_v11, %v19255_v44  ;;  %v7420_v20 = vrot.slane %v6838_v59, %v13939_v25 }
 0x706   : > { %11050 = vrcp.f32 %v7588_v0  ;;  %v7421_v8 = vsel %vm5165_vm1, %v7420_v20, %v7416_v19  ;;  %v19277_v20 = vld [vmem:[#allocation303_spill] sm:$0xff] }
 0x707   : > { %v15929_v53 = vpop.permute.xlu1 %6843 }
 0x708   : > { %8014 = vperm.xlu1 %10447, %v7736_v29   ;;  %v7463_v29 = vrot.slane %v15735_v47, %v13936_v39  ;;  %v7373_v47 = vrot.slane %v15893_v40, %v13951_v50  ;;  %v19276_v40 = vld [vmem:[#allocation243_spill] sm:$0xff]  ;;  %v7430_v12 = vrot.slane %v15929_v53, %v13951_v50 }
 0x70b   : > { %v6850_v33 = vpop.permute.xlu1 %6849 }
 0x70c   : > { %8024 = vperm.xlu1 %10447, %v7739_v34   ;;  %v19275_v34 = vld [vmem:[#allocation301_spill] sm:$0xff]  ;;  %v7439_v60 = vrot.slane %v6850_v33, %v13939_v25  ;;  %v7749_v33 = vmul.f32 %v15981_v43, %v19276_v40 }
 0x70d   : > { %v7746_v55 = vmul.f32 %v15935_v27, %v19275_v34 }
 0x70e   : > { %v7440_v0 = vsel %vm5165_vm1, %v7439_v60, %v7435_v2 }
 0x70f   : > { %v15939_v10 = vpop.permute.xlu1 %6855 }
 0x710   : > { %8034 = vperm.xlu1 %10447, %v7741_v62   ;;  %v7383_v62 = vsel %vm5165_vm1, %v7382_v16, %v7378_v24  ;;  %v7350_v24 = vsel %vm5172_vm2, %v7349_v37, %v7345_v42  ;;  %v7449_v51 = vrot.slane %v15939_v10, %v13951_v50  ;;  %v7407_v37 = vsel %vm5172_vm2, %v7406_v32, %v7402_v13 }
 0x711   : > { %v7388_v57 = vsel %vm5172_vm2, %v7387_v23, %v7383_v62  ;;  %v7412_v45 = vsel %vm5179_vm3, %v7411_v28, %v7407_v37  ;;  %v7426_v23 = vsel %vm5172_vm2, %v7425_v54, %v7421_v8  ;;  %v7445_v32 = vsel %vm5172_vm2, %v7444_v1, %v7440_v0  ;;  %v19279_v28 = vld [vmem:[#allocation241_spill] sm:$0xff]  ;;  %v19281_v0 = vld [vmem:[#allocation247_spill] sm:$0xff] }
 0x712   : > { %v7393_v16 = vsel %vm5179_vm3, %v7392_v63, %v7388_v57  ;;  %v7431_v61 = vsel %vm5179_vm3, %v7430_v12, %v7426_v23  ;;  %v7754_v40 = vmul.f32 %v16031_v18, %v19279_v28  ;;  %v19280_v12 = vld [vmem:[#allocation178_spill] sm:$0xff]  ;;  %v7596_v57 = vrot.slane %v15729_v11, %v19261_v58 }
 0x713   : > { %v6862_v38 = vpop.permute.xlu1 %6861 }
 0x714   : > { %8044 = vperm.xlu1 %10447, %v7744_v41   ;;  %v7458_v59 = vrot.slane %v6862_v38, %v13939_v25  ;;  %v7354_v41 = vrot.slane %v15881_v52, %v13951_v50  ;;  %v7374_v52 = vsel %vm5179_vm3, %v7373_v47, %v7369_v56  ;;  %v19278_v47 = vld [vmem:[#allocation266_spill] sm:$0xff] }
 0x715   : > { %v7482_v60 = vrot.slane %v19278_v47, %v13936_v39  ;;  %v19290_v47 = vld [vmem:[#allocation264_spill] sm:$0xff] }
 0x716   : > { %v7459_v49 = vsel %vm5165_vm1, %v7458_v59, %v7454_v15  ;;  %v7355_v53 = vsel %vm5179_vm3, %v7354_v41, %v7350_v24  ;;  %v7751_v15 = vmul.f32 %v15981_v43, %v19277_v20  ;;  %v16039_v41 = vpop.eup %11050  ;;  %v19287_v20 = vld [vmem:[#allocation255_spill] sm:$0xff] }
 0x717   : > { %v6868_v30 = vpop.permute.xlu1 %6867  ;;  %v7510_v10 = vsel %vm5770_vm4, %v7374_v52, %v7355_v53  ;;  %v7464_v42 = vsel %vm5172_vm2, %v7463_v29, %v7459_v49  ;;  %v7592_v29 = vrot.slane %v15729_v11, %v19258_v5  ;;  %v7756_v52 = vmul.f32 %v16031_v18, %v19280_v12 }
 0x718   : > { %8054 = vperm.xlu1 %10447, %v7746_v55   ;;  %v7468_v19 = vrot.slane %v6868_v30, %v13951_v50  ;;  %v7511_v34 = vsel %vm5772_vm5, %v7393_v16, %v7510_v10  ;;  %v7450_v55 = vsel %vm5179_vm3, %v7449_v51, %v7445_v32  ;;  %v7759_v51 = vmul.f32 %v16039_v41, %v19281_v0  ;;  %v19282_v16 = vld [vmem:[#allocation245_spill] sm:$0xff]  ;;  %v19285_v10 = vld [vmem:[#allocation183_spill] sm:$0xff]  ;;  %v19298_v0 = vld [vmem:[#allocation44_spill] sm:$0xff] }
 0x719   : > { %v7512_v62 = vsel %vm5774_vm6, %v7412_v45, %v7511_v34  ;;  %11052 = vrcp.f32 %v7592_v29  ;;  %v7761_v37 = vmul.f32 %v16039_v41, %v19282_v16  ;;  %v19284_v45 = vld [vmem:[#allocation249_spill] sm:$0xff] }
 0x71a   : > { %v7469_v1 = vsel %vm5179_vm3, %v7468_v19, %v7464_v42  ;;  %v7513_v59 = vsel %vm5776_vm7, %v7431_v61, %v7512_v62  ;;  %11054 = vrcp.f32 %v7596_v57  ;;  %v7600_v19 = vrot.slane %v15729_v11, %v19264_v31  ;;  %v19286_v61 = vld [vmem:[#allocation260_spill] sm:$0xff]  ;;  %v19288_v11 = vld [vmem:[#allocation262_spill] sm:$0xff] }
 0x71b   : > { %v6874_v38 = vpop.permute.xlu1 %6873  ;;  %v7514_v13 = vsel %vm5778_vm8, %v7450_v55, %v7513_v59  ;;  %v7699_v32 = vmul.f32 %v19286_v61, %v19285_v10  ;;  %v7703_v34 = vmul.f32 %v15765_v17, %v19288_v11  ;;  %v19289_v55 = vld [vmem:[#allocation253_spill] sm:$0xff]  ;;  %v19291_v62 = vld [vmem:[#allocation258_spill] sm:$0xff] }
 0x71c   : > { %v7477_v2 = vrot.slane %v6874_v38, %v13939_v25  ;;  %8064 = vperm.xlu1 %10447, %v7749_v33   ;;  %v7515_v24 = vsel %vm5780_vm9, %v7469_v1, %v7514_v13  ;;  %v19283_v38 = vld [vmem:[#allocation251_spill] sm:$0xff]  ;;  %11056 = vrcp.f32 %v7600_v19  ;;  %v19304_v11 = vld [vmem:[#allocation97_spill] sm:$0xff] }
 0x71d   : > { %v19294_v13 = vld [vmem:[#allocation179_spill] sm:$0xff] }
 0x71e   : > { %v7478_v54 = vsel %vm5165_vm1, %v7477_v2, %v7473_v3  ;;  %v7710_v28 = vmul.f32 %v15816_v21, %v19294_v13 }
 0x71f   : > { %v6880_v63 = vpop.permute.xlu1 %6879  ;;  %v7483_v3 = vsel %vm5172_vm2, %v7482_v60, %v7478_v54  ;;  %v7705_v60 = vmul.f32 %v15765_v17, %v19290_v47 }
 0x720   : > { %v7487_v30 = vrot.slane %v6880_v63, %v13951_v50  ;;  %8074 = vperm.xlu1 %10447, %v7751_v15   ;;  %v19292_v63 = vld [vmem:[#allocation180_spill] sm:$0xff] }
 0x721   : > { %v7708_v59 = vmul.f32 %v15816_v21, %v19292_v63  ;;  %v19307_v63 = vld [vmem:[#allocation282_spill] sm:$0xff] }
 0x722   : > { %v7488_v33 = vsel %vm5179_vm3, %v7487_v30, %v7483_v3  ;;  %v19293_v30 = vld [vmem:[#allocation257_spill] sm:$0xff] }
 0x723   : > { %v7516_v56 = vsel %vm5782_vm10, %v7488_v33, %v7515_v24  ;;  %v16059_v49 = vpop.eup %11052 }
 0x724   : > { %8084 = vperm.xlu1 %10447, %v7754_v40   ;;  %v7530_v8 = vsel %vm413_vm0, %v7516_v56, 0.0  ;;  %v7764_v53 = vmul.f32 %v16059_v49, %v19283_v38  ;;  %v7766_v23 = vmul.f32 %v16059_v49, %v19284_v45  ;;  %v16067_v2 = vpop.eup %11054  ;;  %v19295_v40 = vld [vmem:[#allocation269_spill] sm:$0xff]  ;;  %v19300_v38 = vld [vmem:[#allocation58_spill] sm:$0xff] }
 0x725   : > { %7531 = vadd.xlane.f32.xlu0 %v7530_v8  ;;  %v7769_v15 = vmul.f32 %v16067_v2, %v19287_v20  ;;  %v7771_v42 = vmul.f32 %v16067_v2, %v19289_v55  ;;  %v7713_v33 = vmul.f32 %v15857_v26, %v19295_v40  ;;  %v19296_v56 = vld [vmem:[#allocation189_spill] sm:$0xff] }
 0x726   : > { %v16077_v54 = vpop.eup %11056  ;;  %v7715_v8 = vmul.f32 %v15857_v26, %v19296_v56  ;;  %v19301_v45 = vld [vmem:[#allocation69_spill] sm:$0xff] }
 0x727   : > { %v7774_v1 = vmul.f32 %v16077_v54, %v19291_v62  ;;  %v7776_v29 = vmul.f32 %v16077_v54, %v19293_v30  ;;  %v19303_v20 = vld [vmem:[#allocation89_spill] sm:$0xff] }
 0x728   : > { %8094 = vperm.xlu1 %10447, %v7756_v52   ;;  %v19297_v52 = vld [vmem:[#allocation270_spill] sm:$0xff] }
 0x729   : > { %v7718_v57 = vmul.f32 %v15879_v7, %v19297_v52 }
 0x72c   : > { %8104 = vperm.xlu1 %10447, %v7759_v51   ;;  %v7720_v51 = vmul.f32 %v15879_v7, %v19298_v0  ;;  %v19302_v7 = vld [vmem:[#allocation79_spill] sm:$0xff]  ;;  %v19312_v0 = vld [vmem:[#allocation286_spill] sm:$0xff] }
 0x72d   : > { %v7730_v61 = vmul.f32 %v15903_v9, %v19302_v7 }
 0x730   : > { %8114 = vperm.xlu1 %10447, %v7761_v37   ;;  %v19299_v37 = vld [vmem:[#allocation49_spill] sm:$0xff] }
 0x731   : > { %v7723_v19 = vmul.f32 %v15891_v14, %v19299_v37 }
 0x734   : > { %8124 = vperm.xlu1 %10447, %v7764_v53   ;;  %v7725_v53 = vmul.f32 %v15891_v14, %v19300_v38  ;;  %v7735_v14 = vmul.f32 %v15915_v35, %v19304_v11  ;;  %v19314_v38 = vld [vmem:[#allocation54_spill] sm:$0xff] }
 0x738   : > { %8134 = vperm.xlu1 %10447, %v7766_v23   ;;  %v7728_v23 = vmul.f32 %v15903_v9, %v19301_v45  ;;  %v19305_v9 = vld [vmem:[#allocation107_spill] sm:$0xff] }
 0x739   : > { %v7738_v47 = vmul.f32 %v15925_v36, %v19305_v9  ;;  %v19319_v9 = vld [vmem:[#allocation142_spill] sm:$0xff] }
 0x73b   : > { %7864 = vperm.xlu0 %10446, %v7699_v32  }
 0x73c   : > { %8144 = vperm.xlu1 %10447, %v7769_v15   ;;  %v7733_v15 = vmul.f32 %v15915_v35, %v19303_v20  ;;  %v19316_v20 = vld [vmem:[#allocation129_spill] sm:$0xff] }
 0x73f   : > { %7879 = vperm.xlu0 %10446, %v7703_v34  }
 0x740   : > { %8154 = vperm.xlu1 %10447, %v7771_v42  }
 0x743   : > { %7889 = vperm.xlu0 %10446, %v7705_v60  }
 0x744   : > { %8164 = vperm.xlu1 %10447, %v7774_v1   ;;  %v19306_v1 = vld [vmem:[#allocation118_spill] sm:$0xff] }
 0x745   : > { %v7740_v35 = vmul.f32 %v15925_v36, %v19306_v1  ;;  %v19310_v36 = vld [vmem:[#allocation222_spill] sm:$0xff] }
 0x747   : > { %7899 = vperm.xlu0 %10446, %v7708_v59   ;;  %v16087_v3 = vpop.permute.xlu1 %7859  ;;  %v7743_v59 = vmul.f32 %v15935_v27, %v19307_v63  ;;  %v19321_v63 = vld [vmem:[#allocation135_spill] sm:$0xff] }
 0x748   : > { %8174 = vperm.xlu1 %10447, %v7776_v29  }
 0x74b   : > { %7909 = vperm.xlu0 %10446, %v7710_v28   ;;  %v16091_v17 = vpop.permute.xlu1 %7869  ;;  %v19308_v28 = vld [vmem:[#allocation224_spill] sm:$0xff] }
 0x74f   : > { %7919 = vperm.xlu0 %10446, %v7713_v33   ;;  %v16095_v24 = vpop.permute.xlu1 %7874  ;;  %v19309_v33 = vld [vmem:[#allocation284_spill] sm:$0xff] }
 0x750   : > { %v7745_v56 = vmul.f32 %v15935_v27, %v19309_v33  ;;  %v19324_v33 = vld [vmem:[#allocation166_spill] sm:$0xff] }
 0x753   : > { %7929 = vperm.xlu0 %10446, %v7715_v8   ;;  %v16099_v12 = vpop.permute.xlu1 %7884 }
 0x757   : > { %7939 = vperm.xlu0 %10446, %v7718_v57   ;;  %v16103_v21 = vpop.permute.xlu1 %7894 }
 0x75b   : > { %7949 = vperm.xlu0 %10446, %v7720_v51   ;;  %v16107_v16 = vpop.permute.xlu1 %7904  ;;  %v7748_v51 = vmul.f32 %v15981_v43, %v19312_v0 }
 0x75f   : > { %7959 = vperm.xlu0 %10446, %v7723_v19   ;;  %v16111_v26 = vpop.permute.xlu1 %7914  ;;  %v19313_v19 = vld [vmem:[#allocation228_spill] sm:$0xff] }
 0x763   : > { %7969 = vperm.xlu0 %10446, %v7725_v53   ;;  %v16117_v10 = vpop.permute.xlu1 %7924  ;;  %v7750_v53 = vmul.f32 %v15981_v43, %v19314_v38  ;;  %v19328_v38 = vld [vmem:[#allocation240_spill] sm:$0xff] }
 0x767   : > { %7979 = vperm.xlu0 %10446, %v7728_v23   ;;  %v16121_v32 = vpop.permute.xlu1 %7934  ;;  %v19315_v23 = vld [vmem:[#allocation226_spill] sm:$0xff] }
 0x76b   : > { %7989 = vperm.xlu0 %10446, %v7730_v61   ;;  %v16129_v55 = vpop.permute.xlu1 %7944 }
 0x76f   : > { %7999 = vperm.xlu0 %10446, %v7733_v15   ;;  %v16137_v62 = vpop.permute.xlu1 %7954  ;;  %v7753_v15 = vmul.f32 %v16031_v18, %v19316_v20  ;;  %v19331_v20 = vld [vmem:[#allocation238_spill] sm:$0xff] }
 0x772   : > { %v16127_v34 = vpop.xlane.xlu0 %7528 }
 0x773   : > { %v7604_v42 = vrot.slane %v16127_v34, %v19245_v4  ;;  %8009 = vperm.xlu0 %10446, %v7735_v14   ;;  %v7608_v60 = vrot.slane %v16127_v34, %v19246_v48  ;;  %v7612_v29 = vrot.slane %v16127_v34, %v19249_v6  ;;  %v16147_v13 = vpop.permute.xlu1 %7964  ;;  %v7616_v37 = vrot.slane %v16127_v34, %v19252_v46  ;;  %v19317_v14 = vld [vmem:[#allocation232_spill] sm:$0xff] }
 0x774   : > { %v7620_v11 = vrot.slane %v16127_v34, %v19255_v44 }
 0x775   : > { %11058 = vrcp.f32 %v7604_v42 }
 0x776   : > { %11060 = vrcp.f32 %v7608_v60  ;;  %v19320_v60 = vld [vmem:[#allocation230_spill] sm:$0xff] }
 0x777   : > { %8019 = vperm.xlu0 %10446, %v7738_v47   ;;  %11062 = vrcp.f32 %v7612_v29  ;;  %v16157_v57 = vpop.permute.xlu1 %7974  ;;  %v7755_v47 = vmul.f32 %v16031_v18, %v19319_v9  ;;  %v7624_v29 = vrot.slane %v16127_v34, %v19258_v5  ;;  %v7632_v9 = vrot.slane %v16127_v34, %v19264_v31 }
 0x778   : > { %19311 = vst [vmem:[#allocation176_spill] sm:$0xff] %v16157_v57  ;;  %11064 = vrcp.f32 %v7616_v37  ;;  %v19327_v37 = vld [vmem:[#allocation140_spill] sm:$0xff] }
 0x779   : > { %11066 = vrcp.f32 %v7620_v11 }
 0x77a   : > { %11068 = vrcp.f32 %v7624_v29 }
 0x77b   : > { %8029 = vperm.xlu0 %10446, %v7740_v35   ;;  %v16167_v45 = vpop.permute.xlu1 %7984 }
 0x77f   : > { %v16143_v30 = vpop.eup %11058  ;;  %8039 = vperm.xlu0 %10446, %v7743_v59   ;;  %v16179_v42 = vpop.permute.xlu1 %7994  ;;  %v7758_v59 = vmul.f32 %v16039_v41, %v19321_v63 }
 0x780   : > { %v7779_v40 = vmul.f32 %v16143_v30, %v19308_v28  ;;  %v7781_v8 = vmul.f32 %v16143_v30, %v19310_v36  ;;  %v16155_v52 = vpop.eup %11060  ;;  %19318 = vst [vmem:[#allocation96_spill] sm:$0xff] %v16179_v42  ;;  %v19325_v36 = vld [vmem:[#allocation234_spill] sm:$0xff] }
 0x781   : > { %v7784_v27 = vmul.f32 %v16155_v52, %v19313_v19  ;;  %v7786_v7 = vmul.f32 %v16155_v52, %v19315_v23  ;;  %v16171_v61 = vpop.eup %11062  ;;  %v7763_v19 = vmul.f32 %v16059_v49, %v19327_v37 }
 0x782   : > { %8184 = vperm.xlu1 %10447, %v7779_v40   ;;  %v7789_v43 = vmul.f32 %v16171_v61, %v19317_v14  ;;  %v7791_v1 = vmul.f32 %v16171_v61, %v19320_v60  ;;  %v16185_v35 = vpop.eup %11064  ;;  %v19323_v40 = vld [vmem:[#allocation236_spill] sm:$0xff]  ;;  %v19332_v14 = vld [vmem:[#allocation293_spill] sm:$0xff] }
 0x783   : > { %8049 = vperm.xlu0 %10446, %v7745_v56   ;;  %v16191_v28 = vpop.permute.xlu1 %8004  ;;  %v7794_v18 = vmul.f32 %v16185_v35, %v19323_v40  ;;  %v7760_v56 = vmul.f32 %v16039_v41, %v19324_v33  ;;  %v16199_v0 = vpop.eup %11066 }
 0x784   : > { %19322 = vst [vmem:[#allocation309_spill] sm:$0xff] %v16191_v28  ;;  %v7799_v41 = vmul.f32 %v16199_v0, %v19328_v38  ;;  %v16215_v11 = vpop.eup %11068 }
 0x786   : > { %8194 = vperm.xlu1 %10447, %v7781_v8   ;;  %v7796_v8 = vmul.f32 %v16185_v35, %v19325_v36 }
 0x787   : > { %8059 = vperm.xlu0 %10446, %v7748_v51   ;;  %v16201_v51 = vpop.permute.xlu1 %8014 }
 0x788   : > { %19326 = vst [vmem:[#allocation287_spill] sm:$0xff] %v16201_v51 }
 0x78a   : > { %8204 = vperm.xlu1 %10447, %v7784_v27   ;;  %v7628_v27 = vrot.slane %v16127_v34, %v19261_v58 }
 0x78b   : > { %8069 = vperm.xlu0 %10446, %v7750_v53   ;;  %v19329_v53 = vld [vmem:[#allocation291_spill] sm:$0xff] }
 0x78c   : > { %v7765_v23 = vmul.f32 %v16059_v49, %v19329_v53  ;;  %11070 = vrcp.f32 %v7628_v27  ;;  %v19341_v27 = vld [vmem:[#allocation246_spill] sm:$0xff] }
 0x78d   : > { %11072 = vrcp.f32 %v7632_v9 }
 0x78e   : > { %8214 = vperm.xlu1 %10447, %v7786_v7   ;;  %v16211_v7 = vpop.permute.xlu1 %8024 }
 0x78f   : > { %8079 = vperm.xlu0 %10446, %v7753_v15   ;;  %19330 = vst [vmem:[#allocation210_spill] sm:$0xff] %v16211_v7  ;;  %v7801_v15 = vmul.f32 %v16199_v0, %v19331_v20  ;;  %v19379_v7 = vld [vmem:[#allocation274_spill] sm:$0xff] }
 0x792   : > { %8224 = vperm.xlu1 %10447, %v7789_v43   ;;  %v7768_v43 = vmul.f32 %v16067_v2, %v19332_v14  ;;  %v16223_v60 = vpop.permute.xlu1 %8034  ;;  %v19345_v14 = vld [vmem:[#allocation259_spill] sm:$0xff] }
 0x793   : > { %8089 = vperm.xlu0 %10446, %v7755_v47   ;;  %v19333_v47 = vld [vmem:[#allocation244_spill] sm:$0xff]  ;;  %19334 = vst [vmem:[#allocation310_spill] sm:$0xff] %v16223_v60 }
 0x794   : > { %v7804_v49 = vmul.f32 %v16215_v11, %v19333_v47 }
 0x796   : > { %8234 = vperm.xlu1 %10447, %v7791_v1   ;;  %v19335_v1 = vld [vmem:[#allocation295_spill] sm:$0xff]  ;;  %v16229_v40 = vpop.eup %11070  ;;  %v16233_v33 = vpop.permute.xlu1 %8044 }
 0x797   : > { %8099 = vperm.xlu0 %10446, %v7758_v59   ;;  %v7770_v63 = vmul.f32 %v16067_v2, %v19335_v1  ;;  %v19336_v59 = vld [vmem:[#allocation242_spill] sm:$0xff]  ;;  %19338 = vst [vmem:[#allocation217_spill] sm:$0xff] %v16233_v33  ;;  %v7811_v38 = vmul.f32 %v16229_v40, %v19341_v27  ;;  %v19353_v27 = vld [vmem:[#allocation57_spill] sm:$0xff] }
 0x798   : > { %v7806_v29 = vmul.f32 %v16215_v11, %v19336_v59  ;;  %v19377_v33 = vld [vmem:[#allocation46_spill] sm:$0xff] }
 0x79a   : > { %8244 = vperm.xlu1 %10447, %v7794_v18   ;;  %v19337_v18 = vld [vmem:[#allocation297_spill] sm:$0xff]  ;;  %v16247_v53 = vpop.permute.xlu1 %8054 }
 0x79b   : > { %8109 = vperm.xlu0 %10446, %v7760_v56   ;;  %v7773_v34 = vmul.f32 %v16077_v54, %v19337_v18  ;;  %v19339_v56 = vld [vmem:[#allocation248_spill] sm:$0xff]  ;;  %19342 = vst [vmem:[#allocation196_spill] sm:$0xff] %v16247_v53 }
 0x79c   : > { %v7809_v36 = vmul.f32 %v16229_v40, %v19339_v56  ;;  %v19349_v18 = vld [vmem:[#allocation16_spill] sm:$0xff] }
 0x79d   : > { %v19350_v56 = vld [vmem:[#allocation256_spill] sm:$0xff] }
 0x79e   : > { %8254 = vperm.xlu1 %10447, %v7796_v8   ;;  %v19340_v8 = vld [vmem:[#allocation219_spill] sm:$0xff]  ;;  %v16259_v47 = vpop.permute.xlu1 %8064 }
 0x79f   : > { %8119 = vperm.xlu0 %10446, %v7763_v19   ;;  %v7775_v2 = vmul.f32 %v16077_v54, %v19340_v8  ;;  %19346 = vst [vmem:[#allocation305_spill] sm:$0xff] %v16259_v47  ;;  %v19351_v8 = vld [vmem:[#allocation11_spill] sm:$0xff] }
 0x7a0   : > { %v19371_v47 = vld [vmem:[#allocation199_spill] sm:$0xff] }
 0x7a2   : > { %8264 = vperm.xlu1 %10447, %v7799_v41   ;;  %v16245_v41 = vpop.eup %11072 }
 0x7a3   : > { %8129 = vperm.xlu0 %10446, %v7765_v23   ;;  %v19343_v23 = vld [vmem:[#allocation300_spill] sm:$0xff] }
 0x7a4   : > { %v7778_v20 = vmul.f32 %v16143_v30, %v19343_v23  ;;  %v19354_v23 = vld [vmem:[#allocation23_spill] sm:$0xff] }
 0x7a6   : > { %8274 = vperm.xlu1 %10447, %v7801_v15   ;;  %v19344_v15 = vld [vmem:[#allocation252_spill] sm:$0xff] }
 0x7a7   : > { %8139 = vperm.xlu0 %10446, %v7768_v43   ;;  %v7780_v43 = vmul.f32 %v16143_v30, %v19345_v14  ;;  %v19355_v14 = vld [vmem:[#allocation27_spill] sm:$0xff] }
 0x7aa   : > { %8284 = vperm.xlu1 %10447, %v7804_v49   ;;  %v19347_v49 = vld [vmem:[#allocation250_spill] sm:$0xff] }
 0x7ab   : > { %8149 = vperm.xlu0 %10446, %v7770_v63   ;;  %v7816_v1 = vmul.f32 %v16245_v41, %v19347_v49  ;;  %v19348_v63 = vld [vmem:[#allocation261_spill] sm:$0xff] }
 0x7ae   : > { %8294 = vperm.xlu1 %10447, %v7806_v29  }
 0x7af   : > { %8159 = vperm.xlu0 %10446, %v7773_v34   ;;  %v8497_v34 = vmul.f32 %v16087_v3, %v19349_v18 }
 0x7b2   : > { %8304 = vperm.xlu1 %10447, %v7809_v36   ;;  %v16239_v37 = vpop.xlane.xlu0 %7531 }
 0x7b3   : > { %v7636_v19 = vrot.slane %v16239_v37, %v19245_v4  ;;  %8169 = vperm.xlu0 %10446, %v7775_v2   ;;  %v7640_v54 = vrot.slane %v16239_v37, %v19246_v48  ;;  %v7814_v4 = vmul.f32 %v16245_v41, %v19344_v15  ;;  %v7783_v48 = vmul.f32 %v16155_v52, %v19348_v63 }
 0x7b4   : > { %v7644_v30 = vrot.slane %v16239_v37, %v19249_v6  ;;  %v8499_v2 = vmul.f32 %v16091_v17, %v19351_v8  ;;  %v7648_v15 = vrot.slane %v16239_v37, %v19252_v46  ;;  %v19365_v46 = vld [vmem:[#allocation2_spill] sm:$0xff]  ;;  %v19366_v6 = vld [vmem:[#allocation33_spill] sm:$0xff] }
 0x7b5   : > { %11074 = vrcp.f32 %v7636_v19  ;;  %v16277_v19 = vpop.permute.xlu1 %8074 }
 0x7b6   : > { %8314 = vperm.xlu1 %10447, %v7811_v38   ;;  %11076 = vrcp.f32 %v7640_v54  ;;  %19352 = vst [vmem:[#allocation175_spill] sm:$0xff] %v16277_v19  ;;  %v7785_v38 = vmul.f32 %v16155_v52, %v19353_v27  ;;  %v19356_v52 = vld [vmem:[#allocation25_spill] sm:$0xff]  ;;  %v8628_v18 = vsel %vm413_vm0, %v8499_v2, 0.0  ;;  %v7652_v27 = vrot.slane %v16239_v37, %v19255_v44 }
 0x7b7   : > { %8179 = vperm.xlu0 %10446, %v7778_v20   ;;  %v8500_v20 = vmul.f32 %v16095_v24, %v19354_v23  ;;  %11078 = vrcp.f32 %v7644_v30  ;;  %v8504_v49 = vmul.f32 %v16103_v21, %v19356_v52  ;;  %v19359_v30 = vld [vmem:[#allocation24_spill] sm:$0xff]  ;;  %v8512_v44 = vmul.f32 %v16121_v32, %v19366_v6 }
 0x7b8   : > { %11080 = vrcp.f32 %v7648_v15 }
 0x7b9   : > { %v16306_v8 = vsel %vm413_vm0, %v8500_v20, 0.0  ;;  %v16320_v20 = vpop.permute.xlu1 %8084  ;;  %11082 = vrcp.f32 %v7652_v27  ;;  %v16369_v53 = vsel %vm413_vm0, %v8512_v44, 0.0  ;;  %v19373_v27 = vld [vmem:[#allocation41_spill] sm:$0xff] }
 0x7ba   : > { %8324 = vperm.xlu1 %10447, %v7814_v4   ;;  %v16257_v9 = vpop.permute.xlu0 %7864  ;;  %v8625_v4 = vsel %vm413_vm0, %v8497_v34, 0.0  ;;  %v19360_v34 = vld [vmem:[#allocation68_spill] sm:$0xff]  ;;  %19364 = vst [vmem:[#allocation206_spill] sm:$0xff] %v16320_v20 }
 0x7bb   : > { %8189 = vperm.xlu0 %10446, %v7780_v43   ;;  %v8502_v43 = vmul.f32 %v16099_v12, %v19355_v14  ;;  %v19362_v14 = vld [vmem:[#allocation29_spill] sm:$0xff] }
 0x7bc   : > { %v8508_v2 = vmul.f32 %v16111_v26, %v19362_v14  ;;  %v16328_v14 = vsel %vm413_vm0, %v8504_v49, 0.0 }
 0x7be   : > { %v16265_v59 = vpop.permute.xlu0 %7879  ;;  %8334 = vperm.xlu1 %10447, %v7816_v1   ;;  %v19357_v1 = vld [vmem:[#allocation254_spill] sm:$0xff]  ;;  %v16345_v20 = vsel %vm413_vm0, %v8508_v2, 0.0  ;;  %v19375_v2 = vld [vmem:[#allocation88_spill] sm:$0xff] }
 0x7bf   : > { %v16267_v29 = vpop.eup %11074  ;;  %8199 = vperm.xlu0 %10446, %v7783_v48  }
 0x7c0   : > { %v7819_v36 = vmul.f32 %v16267_v29, %v19350_v56  ;;  %v7821_v63 = vmul.f32 %v16267_v29, %v19357_v1  ;;  %v16296_v48 = vpop.eup %11076  ;;  %v8498_v56 = vmul.f32 %v16257_v9, %v19359_v30  ;;  %v19363_v30 = vld [vmem:[#allocation35_spill] sm:$0xff] }
 0x7c1   : > { %19358 = vst [vmem:[#allocation198_spill] sm:$0xff] %v16296_v48  ;;  %v7824_v1 = vmul.f32 %v16296_v48, %v19365_v46 }
 0x7c2   : > { %v16283_v54 = vpop.permute.xlu0 %7889  ;;  %8344 = vperm.xlu1 %10447, %v7819_v36   ;;  %v7788_v36 = vmul.f32 %v16171_v61, %v19360_v34  ;;  %v8510_v34 = vmul.f32 %v16117_v10, %v19363_v30  ;;  %v8626_v15 = vsel %vm413_vm0, %v8498_v56, 0.0  ;;  %v19369_v56 = vld [vmem:[#allocation37_spill] sm:$0xff] }
 0x7c3   : > { %8209 = vperm.xlu0 %10446, %v7785_v38   ;;  %v19361_v38 = vld [vmem:[#allocation31_spill] sm:$0xff]  ;;  %v8627_v46 = vadd.f32 %v8626_v15, %v8625_v4  ;;  %v19376_v15 = vld [vmem:[#allocation50_spill] sm:$0xff] }
 0x7c4   : > { %v8506_v23 = vmul.f32 %v16107_v16, %v19361_v38  ;;  %v16325_v38 = vsel %vm413_vm0, %v8502_v43, 0.0  ;;  %v16354_v6 = vsel %vm413_vm0, %v8510_v34, 0.0  ;;  %v16366_v34 = vpop.eup %11078  ;;  %v8522_v44 = vmul.f32 %v16167_v45, %v19376_v15 }
 0x7c5   : > { %19372 = vst [vmem:[#allocation185_spill] sm:$0xff] %v16366_v34 }
 0x7c6   : > { %v16314_v52 = vpop.permute.xlu0 %7899  ;;  %8354 = vperm.xlu1 %10447, %v7821_v63   ;;  %v16342_v49 = vsel %vm413_vm0, %v8506_v23, 0.0  ;;  %v19368_v63 = vld [vmem:[#allocation39_spill] sm:$0xff]  ;;  %v8516_v23 = vmul.f32 %v16137_v62, %v19369_v56  ;;  %v8524_v56 = vmul.f32 %v16179_v42, %v19377_v33  ;;  %v16418_v33 = vsel %vm413_vm0, %v8522_v44, 0.0 }
 0x7c7   : > { %8219 = vperm.xlu0 %10446, %v7788_v36   ;;  %v19367_v36 = vld [vmem:[#allocation78_spill] sm:$0xff]  ;;  %v8514_v30 = vmul.f32 %v16129_v55, %v19368_v63 }
 0x7c8   : > { %v7790_v43 = vmul.f32 %v16171_v61, %v19367_v36  ;;  %v19370_v36 = vld [vmem:[#allocation43_spill] sm:$0xff]  ;;  %v16375_v61 = vpop.permute.xlu1 %8094 }
 0x7c9   : > { %v8518_v63 = vmul.f32 %v16147_v13, %v19370_v36  ;;  %19374 = vst [vmem:[#allocation304_spill] sm:$0xff] %v16375_v61  ;;  %v7793_v36 = vmul.f32 %v16185_v35, %v19375_v2  ;;  %v16380_v4 = vsel %vm413_vm0, %v8514_v30, 0.0  ;;  %v19378_v30 = vld [vmem:[#allocation59_spill] sm:$0xff] }
 0x7ca   : > { %v16351_v19 = vpop.permute.xlu0 %7909  ;;  %8364 = vperm.xlu1 %10447, %v7824_v1   ;;  %v7826_v1 = vmul.f32 %v16296_v48, %v19371_v47  ;;  %v8526_v61 = vmul.f32 %v16191_v28, %v19378_v30  ;;  %v7656_v47 = vrot.slane %v16239_v37, %v19258_v5  ;;  %v16406_v48 = vpop.eup %11080  ;;  %v7660_v5 = vrot.slane %v16239_v37, %v19261_v58 }
 0x7cb   : > { %8229 = vperm.xlu0 %10446, %v7790_v43   ;;  %v8520_v43 = vmul.f32 %v16157_v57, %v19373_v27  ;;  %v16391_v27 = vsel %vm413_vm0, %v8516_v23, 0.0  ;;  %v16400_v15 = vsel %vm413_vm0, %v8518_v63, 0.0  ;;  %v7829_v23 = vmul.f32 %v16366_v34, %v19379_v7  ;;  %v19380_v63 = vld [vmem:[#allocation191_spill] sm:$0xff]  ;;  %v19385_v7 = vld [vmem:[#allocation28_spill] sm:$0xff]  ;;  %v19386_v34 = vld [vmem:[#allocation202_spill] sm:$0xff] }
 0x7cc   : > { %v16430_v58 = vsel %vm413_vm0, %v8526_v61, 0.0  ;;  %v16432_v30 = vpop.permute.xlu1 %8104  ;;  %11084 = vrcp.f32 %v7656_v47  ;;  %v19387_v61 = vld [vmem:[#allocation268_spill] sm:$0xff]  ;;  %v9131_v47 = vrot.slane %v16265_v59, %v19149_v22 }
 0x7cd   : > { %v16409_v2 = vsel %vm413_vm0, %v8520_v43, 0.0  ;;  %19382 = vst [vmem:[#allocation182_spill] sm:$0xff] %v16430_v58  ;;  %19383 = vst [vmem:[#allocation197_spill] sm:$0xff] %v16432_v30  ;;  %v7798_v28 = vmul.f32 %v16199_v0, %v19387_v61  ;;  %v16445_v30 = vpop.eup %11082  ;;  %11086 = vrcp.f32 %v7660_v5  ;;  %v19401_v57 = vld [vmem:[#allocation36_spill] sm:$0xff] }
 0x7ce   : > { %v16388_v60 = vpop.permute.xlu0 %7919  ;;  %8374 = vperm.xlu1 %10447, %v7826_v1   ;;  %v8629_v1 = vadd.f32 %v8628_v18, %v8627_v46  ;;  %v16421_v18 = vsel %vm413_vm0, %v8524_v56, 0.0  ;;  %v19384_v56 = vld [vmem:[#allocation22_spill] sm:$0xff]  ;;  %v8505_v46 = vmul.f32 %v16314_v52, %v19385_v7 }
 0x7cf   : > { %8239 = vperm.xlu0 %10446, %v7793_v36   ;;  %v7795_v36 = vmul.f32 %v16185_v35, %v19380_v63  ;;  %19381 = vst [vmem:[#allocation307_spill] sm:$0xff] %v16421_v18  ;;  %v9116_v35 = vrot.slane %v16257_v9, %v13939_v25  ;;  %v8501_v44 = vmul.f32 %v16265_v59, %v19384_v56  ;;  %v19391_v56 = vld [vmem:[#allocation26_spill] sm:$0xff]  ;;  %v19405_v18 = vld [vmem:[#allocation163_spill] sm:$0xff] }
 0x7d0   : > { %v8631_v63 = vadd.f32 %v16306_v8, %v8629_v1  ;;  %v7664_v9 = vrot.slane %v16239_v37, %v19264_v31  ;;  %v19389_v1 = vld [vmem:[#allocation53_spill] sm:$0xff]  ;;  %v8507_v61 = vmul.f32 %v16351_v19, %v19391_v56  ;;  %v19393_v59 = vrot.slane %v16087_v3, %v19149_v22  ;;  %v16479_v42 = vpop.permute.xlu1 %8114 }
 0x7d1   : > { %v16455_v7 = vmul.f32 %v16201_v51, %v19389_v1  ;;  %v19392_v31 = vld [vmem:[#allocation125_spill] sm:$0xff]  ;;  %v9140_v1 = vrot.slane %v16283_v54, %v13936_v39  ;;  %v19395_v51 = vld [vmem:[#allocation32_spill] sm:$0xff]  ;;  %19397 = vst [vmem:[#allocation162_spill] sm:$0xff] %v16479_v42 }
 0x7d2   : > { %v16427_v43 = vpop.permute.xlu0 %7929  ;;  %8384 = vperm.xlu1 %10447, %v7829_v23   ;;  %v7834_v23 = vmul.f32 %v16406_v48, %v19386_v34  ;;  %v7800_v37 = vmul.f32 %v16199_v0, %v19392_v31  ;;  %v9117_v5 = vsel %vm5165_vm1, %v9116_v35, %v19393_v59  ;;  %v19394_v34 = vld [vmem:[#allocation132_spill] sm:$0xff]  ;;  %v8509_v0 = vmul.f32 %v16388_v60, %v19395_v51  ;;  %v19396_v31 = vld [vmem:[#allocation194_spill] sm:$0xff] }
 0x7d3   : > { %8249 = vperm.xlu0 %10446, %v7795_v36   ;;  %v19388_v36 = vld [vmem:[#allocation21_spill] sm:$0xff]  ;;  %19390 = vst [vmem:[#allocation275_spill] sm:$0xff] %v16455_v7  ;;  %v7803_v56 = vmul.f32 %v16215_v11, %v19394_v34  ;;  %v8632_v7 = vrot.slane %v8631_v63, 4  ;;  %v7838_v3 = vmul.f32 %v16445_v30, %v19396_v31  ;;  %11088 = vrcp.f32 %v7664_v9  ;;  %v19400_v59 = vld [vmem:[#allocation30_spill] sm:$0xff] }
 0x7d4   : > { %v8503_v8 = vmul.f32 %v16283_v54, %v19388_v36  ;;  %v8638_v36 = vsel %vm413_vm0, %v8501_v44, 0.0  ;;  %v19398_v35 = vrot.slane %v16099_v12, %v13939_v25  ;;  %v19399_v44 = vld [vmem:[#allocation160_spill] sm:$0xff]  ;;  %v8654_v51 = vsel %vm413_vm0, %v8507_v61, 0.0 }
 0x7d5   : > { %v7805_v34 = vmul.f32 %v16215_v11, %v19399_v44  ;;  %v8511_v31 = vmul.f32 %v16427_v43, %v19400_v59  ;;  %v19402_v12 = vrot.slane %v16091_v17, %v13936_v39  ;;  %v19404_v44 = vld [vmem:[#allocation34_spill] sm:$0xff] }
 0x7d6   : > { %v16461_v58 = vpop.permute.xlu0 %7939  ;;  %8404 = vperm.xlu1 %10447, %v7834_v23   ;;  %v8651_v23 = vsel %vm413_vm0, %v8505_v46, 0.0  ;;  %v8641_v54 = vsel %vm413_vm0, %v8503_v8, 0.0  ;;  %v8640_v46 = vadd.f32 %v16325_v38, %v8638_v36  ;;  %v19403_v8 = vld [vmem:[#allocation190_spill] sm:$0xff]  ;;  %v8633_v36 = vadd.f32 %v8632_v7, %v8631_v63  ;;  %v16507_v59 = vpop.eup %11084 }
 0x7d7   : > { %8259 = vperm.xlu0 %10446, %v7798_v28   ;;  %v9136_v28 = vsel %vm5165_vm1, %v19398_v35, %v9131_v47  ;;  %v8513_v9 = vmul.f32 %v16461_v58, %v19401_v57  ;;  %v9122_v47 = vsel %vm5172_vm2, %v19402_v12, %v9117_v5  ;;  %v8653_v38 = vadd.f32 %v16342_v49, %v8651_v23 }
 0x7d8   : > { %v9141_v11 = vsel %vm5172_vm2, %v9140_v1, %v9136_v28  ;;  %v7835_v61 = vmul.f32 %v16406_v48, %v19403_v8  ;;  %v8642_v35 = vadd.f32 %v8641_v54, %v8640_v46  ;;  %v8664_v57 = vsel %vm413_vm0, %v8509_v0, 0.0  ;;  %v19406_v1 = vld [vmem:[#allocation299_spill] sm:$0xff]  ;;  %v19408_v54 = vld [vmem:[#allocation181_spill] sm:$0xff]  ;;  %v16531_v46 = vpop.permute.xlu1 %8124 }
 0x7d9   : > { %v8655_v17 = vadd.f32 %v8654_v51, %v8653_v38  ;;  %v7808_v5 = vmul.f32 %v16229_v40, %v19405_v18  ;;  %v16513_v49 = vmul.f32 %v16229_v40, %v19406_v1  ;;  %v9150_v63 = vrot.slane %v16314_v52, %v19149_v22  ;;  %v16529_v40 = vpop.eup %11086  ;;  %v19411_v38 = vld [vmem:[#allocation40_spill] sm:$0xff]  ;;  %v19412_v1 = vld [vmem:[#allocation86_spill] sm:$0xff] }
 0x7da   : > { %v16494_v42 = vpop.permute.xlu0 %7949  ;;  %8419 = vperm.xlu1 %10447, %v7838_v3   ;;  %v8667_v7 = vsel %vm413_vm0, %v8511_v31, 0.0  ;;  %v8677_v0 = vsel %vm413_vm0, %v8513_v9, 0.0  ;;  %v16527_v18 = vmul.f32 %v16245_v41, %v19408_v54  ;;  %v19409_v51 = vrot.slane %v16095_v24, %v13951_v50  ;;  %v19415_v54 = vld [vmem:[#allocation144_spill] sm:$0xff] }
 0x7db   : > { %8269 = vperm.xlu0 %10446, %v7800_v37   ;;  %v8515_v3 = vmul.f32 %v16494_v42, %v19404_v44  ;;  %v19407_v37 = vld [vmem:[#allocation174_spill] sm:$0xff]  ;;  %v19410_v31 = vrot.slane %v16103_v21, %v13951_v50  ;;  %v8666_v12 = vadd.f32 %v16354_v6, %v8664_v57  ;;  %v8634_v8 = vrot.slane %v8633_v36, 2 }
 0x7dc   : > { %v16517_v23 = vmul.f32 %v16245_v41, %v19407_v37  ;;  %v9127_v52 = vsel %vm5179_vm3, %v19409_v51, %v9122_v47  ;;  %v7844_v24 = vmul.f32 %v16507_v59, %v19412_v1  ;;  %v8657_v47 = vadd.f32 %v16345_v20, %v8655_v17 }
 0x7dd   : > { %v9146_v9 = vsel %vm5179_vm3, %v19410_v31, %v9141_v11  ;;  %v8680_v44 = vsel %vm413_vm0, %v8515_v3, 0.0  ;;  %v8668_v37 = vadd.f32 %v8667_v7, %v8666_v12  ;;  %v8679_v21 = vadd.f32 %v16380_v4, %v8677_v0  ;;  %v16562_v17 = vpop.eup %11088  ;;  %v19416_v0 = vld [vmem:[#allocation38_spill] sm:$0xff] }
 0x7de   : > { %v16523_v28 = vpop.permute.xlu0 %7959  ;;  %8409 = vperm.xlu1 %10447, %v7835_v61   ;;  %v8644_v61 = vadd.f32 %v16328_v14, %v8642_v35  ;;  %v9717_v6 = vsel %vm5770_vm4, %v9146_v9, %v9127_v52  ;;  %v19414_v35 = vld [vmem:[#allocation204_spill] sm:$0xff]  ;;  %v7849_v20 = vmul.f32 %v16529_v40, %v19415_v54  ;;  %v9159_v4 = vrot.slane %v16351_v19, %v13936_v39  ;;  %v19422_v54 = vld [vmem:[#allocation265_spill] sm:$0xff] }
 0x7df   : > { %v8517_v41 = vmul.f32 %v16523_v28, %v19411_v38  ;;  %8279 = vperm.xlu0 %10446, %v7803_v56   ;;  %v19413_v56 = vrot.slane %v16107_v16, %v13939_v25  ;;  %v7840_v3 = vmul.f32 %v16445_v30, %v19414_v35  ;;  %v8681_v7 = vadd.f32 %v8680_v44, %v8679_v21  ;;  %v16575_v38 = vpop.permute.xlu1 %8134 }
 0x7e0   : > { %v16570_v52 = vadd.f32 %v8634_v8, %v8633_v36  ;;  %v8645_v31 = vrot.slane %v8644_v61, 4  ;;  %v9169_v9 = vrot.slane %v16388_v60, %v19149_v22  ;;  %v8670_v19 = vadd.f32 %v16369_v53, %v8668_v37  ;;  %v19419_v37 = vld [vmem:[#allocation45_spill] sm:$0xff] }
 0x7e1   : > { %v8690_v11 = vsel %vm413_vm0, %v8517_v41, 0.0  ;;  %v9155_v57 = vsel %vm5165_vm1, %v19413_v56, %v9150_v63  ;;  %v19417_v63 = vld [vmem:[#allocation212_spill] sm:$0xff]  ;;  %v8658_v41 = vrot.slane %v8657_v47, 4  ;;  %v9188_v44 = vrot.slane %v16461_v58, %v19149_v22 }
 0x7e2   : > { %v16556_v14 = vpop.permute.xlu0 %7969  ;;  %8444 = vperm.xlu1 %10447, %v7844_v24   ;;  %v7845_v51 = vmul.f32 %v16507_v59, %v19417_v63  ;;  %v8692_v12 = vadd.f32 %v16400_v15, %v8690_v11  ;;  %v9178_v36 = vrot.slane %v16427_v43, %v13936_v39  ;;  %v9197_v8 = vrot.slane %v16494_v42, %v13936_v39  ;;  %v19418_v15 = vld [vmem:[#allocation302_spill] sm:$0xff] }
 0x7e3   : > { %v8519_v16 = vmul.f32 %v16556_v14, %v19416_v0  ;;  %8289 = vperm.xlu0 %10446, %v7805_v34   ;;  %v7854_v24 = vmul.f32 %v16562_v17, %v19418_v15  ;;  %v9160_v21 = vsel %vm5172_vm2, %v9159_v4, %v9155_v57  ;;  %v8683_v53 = vadd.f32 %v16391_v27, %v8681_v7  ;;  %v19420_v11 = vld [vmem:[#allocation214_spill] sm:$0xff] }
 0x7e4   : > { %v16592_v56 = vmul.f32 %v16529_v40, %v19420_v11  ;;  %v8646_v43 = vadd.f32 %v8645_v31, %v8644_v61  ;;  %v19421_v42 = vrot.slane %v16117_v10, %v13939_v25  ;;  %v16601_v57 = vmul.f32 %v16267_v29, %v19422_v54  ;;  %v16616_v31 = vpop.permute.xlu1 %8144 }
 0x7e5   : > { %v8693_v34 = vsel %vm413_vm0, %v8519_v16, 0.0  ;;  %v8659_v27 = vadd.f32 %v8658_v41, %v8657_v47  ;;  %v8671_v4 = vrot.slane %v8670_v19, 4  ;;  %v19424_v10 = vrot.slane %v16111_v26, %v13951_v50  ;;  %v19425_v26 = vld [vmem:[#allocation42_spill] sm:$0xff] }
 0x7e6   : > { %v8694_v1 = vadd.f32 %v8693_v34, %v8692_v12  ;;  %v7980_v60 = vpop.permute.xlu0 %7979  ;;  %8429 = vperm.xlu1 %10447, %v7840_v3   ;;  %v9174_v35 = vsel %vm5165_vm1, %v19421_v42, %v9169_v9  ;;  %v9207_v47 = vrot.slane %v16523_v28, %v19149_v22  ;;  %v9216_v9 = vrot.slane %v16556_v14, %v13936_v39 }
 0x7e7   : > { %v8521_v58 = vmul.f32 %v7980_v60, %v19419_v37  ;;  %8299 = vperm.xlu0 %10446, %v7808_v5   ;;  %v19423_v5 = vrot.slane %v16129_v55, %v13939_v25  ;;  %v9165_v0 = vsel %vm5179_vm3, %v19424_v10, %v9160_v21  ;;  %v8684_v55 = vrot.slane %v8683_v53, 4 }
 0x7e8   : > { %v8696_v3 = vadd.f32 %v16409_v2, %v8694_v1  ;;  %v9179_v2 = vsel %vm5172_vm2, %v9178_v36, %v9174_v35  ;;  %v9226_v12 = vrot.slane %v7980_v60, %v19149_v22  ;;  %v8672_v1 = vadd.f32 %v8671_v4, %v8670_v19  ;;  %v19430_v35 = vld [vmem:[#allocation51_spill] sm:$0xff] }
 0x7e9   : > { %v9193_v7 = vsel %vm5165_vm1, %v19423_v5, %v9188_v44  ;;  %v8703_v61 = vsel %vm413_vm0, %v8521_v58, 0.0  ;;  %v8647_v44 = vrot.slane %v8646_v43, 2  ;;  %v19426_v14 = vrot.slane %v16121_v32, %v13951_v50  ;;  %v19431_v4 = vld [vmem:[#allocation307_spill] sm:$0xff] }
 0x7ea   : > { %v9198_v16 = vsel %vm5172_vm2, %v9197_v8, %v9193_v7  ;;  %v7990_v63 = vpop.permute.xlu0 %7989  ;;  %8464 = vperm.xlu1 %10447, %v7849_v20   ;;  %v8697_v34 = vrot.slane %v8696_v3, 4  ;;  %v8705_v36 = vadd.f32 %v16418_v33, %v8703_v61  ;;  %v8660_v8 = vrot.slane %v8659_v27, 2 }
 0x7eb   : > { %v8523_v41 = vmul.f32 %v7990_v63, %v19425_v26  ;;  %8309 = vperm.xlu0 %10446, %v16513_v49   ;;  %v9235_v28 = vrot.slane %v7990_v63, %v13936_v39  ;;  %v9718_v20 = vsel %vm5772_vm5, %v9165_v0, %v9717_v6  ;;  %v9184_v60 = vsel %vm5179_vm3, %v19426_v14, %v9179_v2  ;;  %v19437_v26 = vld [vmem:[#allocation48_spill] sm:$0xff] }
 0x7ec   : > { %v19427_v49 = vrot.slane %v16137_v62, %v13951_v50  ;;  %v19428_v33 = vrot.slane %v16147_v13, %v13939_v25  ;;  %v8685_v19 = vadd.f32 %v8684_v55, %v8683_v53  ;;  %v19429_v32 = vrot.slane %v16167_v45, %v13939_v25 }
 0x7ed   : > { %v8706_v15 = vsel %vm413_vm0, %v8523_v41, 0.0  ;;  %v8698_v54 = vadd.f32 %v8697_v34, %v8696_v3  ;;  %v8648_v53 = vadd.f32 %v8647_v44, %v8646_v43  ;;  %v8673_v61 = vrot.slane %v8672_v1, 2 }
 0x7ee   : > { %v9203_v21 = vsel %vm5179_vm3, %v19427_v49, %v9198_v16  ;;  %v9212_v37 = vsel %vm5165_vm1, %v19428_v33, %v9207_v47  ;;  %v8707_v58 = vadd.f32 %v8706_v15, %v8705_v36  ;;  %v8000_v6 = vpop.permute.xlu0 %7999  ;;  %8449 = vperm.xlu1 %10447, %v7845_v51   ;;  %v9231_v42 = vsel %vm5165_vm1, %v19429_v32, %v9226_v12  ;;  %v16649_v51 = vpop.permute.xlu1 %8154  ;;  %v19438_v36 = vld [vmem:[#allocation182_spill] sm:$0xff] }
 0x7ef   : > { %v9217_v11 = vsel %vm5172_vm2, %v9216_v9, %v9212_v37  ;;  %v8525_v62 = vmul.f32 %v8000_v6, %v19430_v35  ;;  %8319 = vperm.xlu0 %10446, %v16517_v23   ;;  %v9236_v5 = vsel %vm5172_vm2, %v9235_v28, %v9231_v42  ;;  %v9245_v7 = vrot.slane %v8000_v6, %v19149_v22  ;;  %v19433_v23 = vld [vmem:[#allocation176_spill] sm:$0xff]  ;;  %v19441_v37 = vld [vmem:[#allocation287_spill] sm:$0xff] }
 0x7f0   : > { %v8709_v13 = vadd.f32 %v19431_v4, %v8707_v58  ;;  %19432 = vst [vmem:[#allocation203_spill] sm:$0xff] %v16649_v51  ;;  %v9719_v10 = vsel %vm5774_vm6, %v9184_v60, %v9718_v20  ;;  %v8661_v0 = vadd.f32 %v8660_v8, %v8659_v27  ;;  %v19434_v3 = vrot.slane %v19433_v23, %v13951_v50  ;;  %v19435_v9 = vld [vmem:[#allocation96_spill] sm:$0xff]  ;;  %v19439_v8 = vld [vmem:[#allocation309_spill] sm:$0xff] }
 0x7f1   : > { %v8716_v45 = vsel %vm413_vm0, %v8525_v62, 0.0  ;;  %v9720_v2 = vsel %vm5776_vm7, %v9203_v21, %v9719_v10  ;;  %v8686_v55 = vrot.slane %v8685_v19, 2  ;;  %v19436_v43 = vrot.slane %v19435_v9, %v13951_v50 }
 0x7f2   : > { %v9222_v16 = vsel %vm5179_vm3, %v19434_v3, %v9217_v11  ;;  %v8710_v47 = vrot.slane %v8709_v13, 4  ;;  %v8010_v63 = vpop.permute.xlu0 %8009  ;;  %8484 = vperm.xlu1 %10447, %v7854_v24   ;;  %v8699_v44 = vrot.slane %v8698_v54, 2  ;;  %v8718_v28 = vadd.f32 %v19438_v36, %v8716_v45  ;;  %v16689_v42 = vpop.permute.xlu1 %8164  ;;  %v19446_v45 = vld [vmem:[#allocation184_spill] sm:$0xff] }
 0x7f3   : > { %v9241_v12 = vsel %vm5179_vm3, %v19436_v43, %v9236_v5  ;;  %v8527_v41 = vmul.f32 %v8010_v63, %v19437_v26  ;;  %v9254_v27 = vrot.slane %v8010_v63, %v13936_v39  ;;  %8329 = vperm.xlu0 %10446, %v16527_v18   ;;  %v19440_v20 = vrot.slane %v19439_v8, %v13939_v25 }
 0x7f4   : > { %v8711_v34 = vadd.f32 %v8710_v47, %v8709_v13  ;;  %v8674_v15 = vadd.f32 %v8673_v61, %v8672_v1  ;;  %v9721_v14 = vsel %vm5778_vm8, %v9222_v16, %v9720_v2  ;;  %v19442_v58 = vrot.slane %v19441_v37, %v13951_v50  ;;  %v19443_v1 = vld [vmem:[#allocation275_spill] sm:$0xff]  ;;  %19444 = vst [vmem:[#allocation276_spill] sm:$0xff] %v16689_v42 }
 0x7f5   : > { %v9250_v24 = vsel %vm5165_vm1, %v19440_v20, %v9245_v7  ;;  %v8719_v60 = vsel %vm413_vm0, %v8527_v41, 0.0  ;;  %v9722_v21 = vsel %vm5780_vm9, %v9241_v12, %v9721_v14  ;;  %v8721_v32 = vsel %vm413_vm0, %v19443_v1, 0.0  ;;  %v19445_v7 = vld [vmem:[#allocation218_spill] sm:$0xff] }
 0x7f6   : > { %v9255_v18 = vsel %vm5172_vm2, %v9254_v27, %v9250_v24  ;;  %v8712_v49 = vrot.slane %v8711_v34, 2  ;;  %v8720_v33 = vadd.f32 %v8719_v60, %v8718_v28  ;;  %v16684_v11 = vpop.permute.xlu0 %8019  ;;  %8469 = vperm.xlu1 %10447, %v16592_v56   ;;  %v8687_v35 = vadd.f32 %v8686_v55, %v8685_v19  ;;  %v19447_v55 = vld [vmem:[#allocation171_spill] sm:$0xff]  ;;  %v16704_v43 = vpop.permute.xlu1 %8174  ;;  %v19450_v41 = vld [vmem:[#allocation198_spill] sm:$0xff] }
 0x7f7   : > { %v9260_v6 = vsel %vm5179_vm3, %v19442_v58, %v9255_v18  ;;  %8339 = vperm.xlu0 %10446, %v16601_v57   ;;  %v8649_v4 = vrot.slane %v8648_v53, 1  ;;  %v8700_v13 = vadd.f32 %v8699_v44, %v8698_v54  ;;  %v7855_v61 = vmul.f32 %v16562_v17, %v19445_v7  ;;  %19448 = vst [vmem:[#allocation167_spill] sm:$0xff] %v16704_v43  ;;  %v19452_v18 = vld [vmem:[#allocation188_spill] sm:$0xff]  ;;  %v19457_v7 = vld [vmem:[#allocation210_spill] sm:$0xff] }
 0x7f8   : > { %v9723_v62 = vsel %vm5782_vm10, %v9260_v6, %v9722_v21  ;;  %v8722_v5 = vadd.f32 %v8721_v32, %v8720_v33  ;;  %v8662_v10 = vrot.slane %v8661_v0, 1  ;;  %v8713_v56 = vadd.f32 %v8712_v49, %v8711_v34  ;;  %v19454_v32 = vld [vmem:[#allocation193_spill] sm:$0xff] }
 0x7f9   : > { %9749 = vst.msk [vmem:[%s16674_s15] sm:$0xff] %vm413_vm0, %v9723_v62  ;;  %v7820_v2 = vmul.f32 %v16267_v29, %v19446_v45  ;;  %v8636_v23 = vrot.slane %v16570_v52, 1  ;;  %v8675_v19 = vrot.slane %v8674_v15, 1  ;;  %v8688_v57 = vrot.slane %v8687_v35, 1  ;;  %v19449_v29 = vld [vmem:[#allocation271_spill] sm:$0xff] }
 0x7fa   : > { %v8723_v3 = vrot.slane %v8722_v5, 4  ;;  %v16700_v16 = vpop.permute.xlu0 %8029  ;;  %8489 = vperm.xlu1 %10447, %v7855_v61   ;;  %v8650_v54 = vadd.f32 %v8649_v4, %v8648_v53  ;;  %v8701_v47 = vrot.slane %v8700_v13, 1  ;;  %v7856_v9 = vmul.f32 %v16562_v17, %v19447_v55 }
 0x7fb   : > { %8349 = vperm.xlu0 %10446, %v7820_v2   ;;  %v8663_v12 = vadd.f32 %v8662_v10, %v8661_v0  ;;  %v8714_v26 = vrot.slane %v8713_v56, 1  ;;  %v7823_v27 = vmul.f32 %v19450_v41, %v19449_v29  ;;  %v8637_v44 = vadd.f32 %v8636_v23, %v16570_v52  ;;  %v19458_v10 = vld [vmem:[#allocation64_spill] sm:$0xff]  ;;  %v19461_v23 = vld [vmem:[#allocation217_spill] sm:$0xff] }
 0x7fc   : > { %v8724_v63 = vadd.f32 %v8723_v3, %v8722_v5  ;;  %v8676_v34 = vadd.f32 %v8675_v19, %v8674_v15  ;;  %v8689_v53 = vadd.f32 %v8688_v57, %v8687_v35  ;;  %v8702_v20 = vadd.f32 %v8701_v47, %v8700_v13  ;;  %v19455_v35 = vld [vmem:[#allocation185_spill] sm:$0xff]  ;;  %v19456_v5 = vld [vmem:[#allocation71_spill] sm:$0xff]  ;;  %v19460_v2 = vld [vmem:[#allocation80_spill] sm:$0xff] }
 0x7fd   : > { %v9073_v8 = vsel %vm5770_vm4, %v8650_v54, %v8637_v44  ;;  %v8715_v14 = vadd.f32 %v8714_v26, %v8713_v56  ;;  %v7825_v52 = vmul.f32 %v19450_v41, %v19452_v18  ;;  %v7828_v62 = vmul.f32 %v19455_v35, %v19454_v32  ;;  %v19459_v56 = vld [vmem:[#allocation310_spill] sm:$0xff]  ;;  %v19462_v3 = vld [vmem:[#allocation75_spill] sm:$0xff]  ;;  %v19463_v57 = vld [vmem:[#allocation196_spill] sm:$0xff] }
 0x7fe   : > { %v8725_v36 = vrot.slane %v8724_v63, 2  ;;  %v16709_v28 = vpop.permute.xlu0 %8039  ;;  %8494 = vperm.xlu1 %10447, %v7856_v9   ;;  %v9074_v0 = vsel %vm5772_vm5, %v8663_v12, %v9073_v8  ;;  %v8530_v61 = vmul.f32 %v19457_v7, %v19456_v5  ;;  %v8532_v45 = vmul.f32 %v19459_v56, %v19458_v10  ;;  %v19466_v12 = vld [vmem:[#allocation90_spill] sm:$0xff]  ;;  %v19467_v26 = vld [vmem:[#allocation305_spill] sm:$0xff]  ;;  %v19471_v18 = vld [vmem:[#allocation99_spill] sm:$0xff] }
 0x7ff   : > { %8359 = vperm.xlu0 %10446, %v7823_v27   ;;  %v9075_v15 = vsel %vm5774_vm6, %v8676_v34, %v9074_v0  ;;  %v8534_v19 = vmul.f32 %v19461_v23, %v19460_v2  ;;  %v8536_v54 = vmul.f32 %v19463_v57, %v19462_v3  ;;  %v8538_v29 = vmul.f32 %v19467_v26, %v19466_v12  ;;  %v19468_v41 = vld [vmem:[#allocation62_spill] sm:$0xff]  ;;  %v19469_v8 = vld [vmem:[#allocation85_spill] sm:$0xff]  ;;  %v19475_v32 = vld [vmem:[#allocation304_spill] sm:$0xff] }
 0x800   : > { %v8726_v24 = vadd.f32 %v8725_v36, %v8724_v63  ;;  %v9076_v33 = vsel %vm5776_vm7, %v8689_v53, %v9075_v15  ;;  %v19465_v63 = vld [vmem:[#allocation272_spill] sm:$0xff]  ;;  %v8529_v27 = vmul.f32 %v16684_v11, %v19468_v41  ;;  %v8730_v34 = vsel %vm413_vm0, %v8530_v61, 0.0  ;;  %v19477_v5 = vld [vmem:[#allocation186_spill] sm:$0xff]  ;;  %v19480_v41 = vld [vmem:[#allocation103_spill] sm:$0xff] }
 0x801   : > { %v16713_v60 = vpop.permute.xlu1 %8184  ;;  %v9077_v37 = vsel %vm5778_vm8, %v8702_v20, %v9076_v33  ;;  %v7833_v55 = vmul.f32 %v16406_v48, %v19465_v63  ;;  %v8734_v36 = vsel %vm413_vm0, %v8532_v45, 0.0  ;;  %v19470_v20 = vld [vmem:[#allocation175_spill] sm:$0xff]  ;;  %v16765_v0 = vsel %vm413_vm0, %v8534_v19, 0.0  ;;  %v19478_v2 = vld [vmem:[#allocation110_spill] sm:$0xff]  ;;  %v19479_v19 = vld [vmem:[#allocation197_spill] sm:$0xff] }
 0x802   : > { %19451 = vst [vmem:[#allocation201_spill] sm:$0xff] %v16713_v60  ;;  %v8727_v49 = vrot.slane %v8726_v24, 1  ;;  %v16718_v21 = vpop.permute.xlu0 %8049  ;;  %v9078_v6 = vsel %vm5780_vm9, %v8715_v14, %v9077_v37  ;;  %v16774_v37 = vsel %vm413_vm0, %v8536_v54, 0.0  ;;  %v7830_v61 = vmul.f32 %v19455_v35, %v19477_v5  ;;  %v19483_v12 = vld [vmem:[#allocation115_spill] sm:$0xff] }
 0x803   : > { %8369 = vperm.xlu0 %10446, %v7825_v52   ;;  %v19472_v52 = vld [vmem:[#allocation206_spill] sm:$0xff]  ;;  %v16785_v10 = vsel %vm413_vm0, %v8538_v29, 0.0  ;;  %v8546_v3 = vmul.f32 %v19479_v19, %v19478_v2  ;;  %v8729_v54 = vsel %vm413_vm0, %v8529_v27, 0.0  ;;  %v8552_v29 = vmul.f32 %v16575_v38, %v19483_v12  ;;  %v19498_v60 = vld [vmem:[#allocation91_spill] sm:$0xff] }
 0x804   : > { %v8728_v58 = vadd.f32 %v8727_v49, %v8726_v24  ;;  %v8540_v24 = vmul.f32 %v19470_v20, %v19469_v8  ;;  %v8542_v15 = vmul.f32 %v19472_v52, %v19471_v18  ;;  %v19473_v49 = vld [vmem:[#allocation56_spill] sm:$0xff]  ;;  %v19481_v8 = vld [vmem:[#allocation162_spill] sm:$0xff]  ;;  %v8731_v45 = vadd.f32 %v8730_v34, %v8729_v54 }
 0x805   : > { %v16729_v1 = vpop.permute.xlu1 %8194  ;;  %v8531_v33 = vmul.f32 %v16700_v16, %v19473_v49  ;;  %v8548_v18 = vmul.f32 %v19481_v8, %v19480_v41  ;;  %v19487_v54 = vld [vmem:[#allocation124_spill] sm:$0xff] }
 0x806   : > { %19453 = vst [vmem:[#allocation277_spill] sm:$0xff] %v16729_v1  ;;  %v9079_v4 = vsel %vm5782_vm10, %v8728_v58, %v9078_v6  ;;  %v16734_v13 = vpop.permute.xlu0 %8059  ;;  %v19474_v6 = vld [vmem:[#allocation93_spill] sm:$0xff]  ;;  %v16804_v49 = vsel %vm413_vm0, %v8542_v15, 0.0  ;;  %v16821_v58 = vsel %vm413_vm0, %v8546_v3, 0.0  ;;  %v8556_v12 = vmul.f32 %v16649_v51, %v19487_v54  ;;  %v19488_v3 = vld [vmem:[#allocation70_spill] sm:$0xff]  ;;  %v19493_v54 = vld [vmem:[#allocation208_spill] sm:$0xff] }
 0x807   : > { %9105 = vst.msk [vmem:[%s16725_s19] sm:$0xff] %vm413_vm0, %v9079_v4  ;;  %8379 = vperm.xlu0 %10446, %v7828_v62   ;;  %v8544_v62 = vmul.f32 %v19475_v32, %v19474_v6  ;;  %v19482_v6 = vld [vmem:[#allocation119_spill] sm:$0xff]  ;;  %v8732_v5 = vsel %vm413_vm0, %v8531_v33, 0.0  ;;  %v16832_v34 = vsel %vm413_vm0, %v8548_v18, 0.0  ;;  %v8533_v14 = vmul.f32 %v16709_v28, %v19488_v3 }
 0x808   : > { %v7843_v3 = vmul.f32 %v16507_v59, %v19493_v54  ;;  %v19496_v1 = vld [vmem:[#allocation47_spill] sm:$0xff]  ;;  %v9264_v51 = vrot.slane %v16684_v11, %v19149_v22 }
 0x809   : > { %v16746_v47 = vpop.permute.xlu1 %8204  ;;  %v16812_v2 = vsel %vm413_vm0, %v8544_v62, 0.0  ;;  %v19486_v62 = vld [vmem:[#allocation127_spill] sm:$0xff] }
 0x80a   : > { %19464 = vst [vmem:[#allocation263_spill] sm:$0xff] %v16746_v47  ;;  %v16756_v44 = vpop.permute.xlu0 %8069  ;;  %v8554_v27 = vmul.f32 %v16616_v31, %v19486_v62  ;;  %v19489_v62 = vld [vmem:[#allocation13_spill] sm:$0xff]  ;;  %v19501_v54 = vld [vmem:[#allocation87_spill] sm:$0xff] }
 0x80b   : > { %8399 = vperm.xlu0 %10446, %v7833_v55   ;;  %v16795_v55 = vsel %vm413_vm0, %v8540_v24, 0.0  ;;  %v8550_v24 = vmul.f32 %v16531_v46, %v19482_v6  ;;  %v8558_v9 = vmul.f32 %v16689_v42, %v19489_v62  ;;  %v19494_v62 = vld [vmem:[#allocation77_spill] sm:$0xff] }
 0x80c   : > { %v16859_v33 = vsel %vm413_vm0, %v8554_v27, 0.0  ;;  %v8742_v27 = vsel %vm413_vm0, %v8533_v14, 0.0 }
 0x80d   : > { %v16780_v4 = vpop.permute.xlu1 %8214  ;;  %v16839_v6 = vsel %vm413_vm0, %v8550_v24, 0.0 }
 0x80e   : > { %19476 = vst [vmem:[#allocation207_spill] sm:$0xff] %v16780_v4  ;;  %v16792_v63 = vpop.permute.xlu0 %8079  ;;  %v16848_v4 = vsel %vm413_vm0, %v8552_v29, 0.0  ;;  %v16880_v29 = vmul.f32 %v16704_v43, %v19496_v1  ;;  %v8744_v1 = vadd.f32 %v16765_v0, %v8742_v27  ;;  %v19503_v27 = vld [vmem:[#allocation95_spill] sm:$0xff] }
 0x80f   : > { %8389 = vperm.xlu0 %10446, %v7830_v61   ;;  %v19485_v61 = vld [vmem:[#allocation106_spill] sm:$0xff] }
 0x810   : > { %v7839_v15 = vmul.f32 %v16445_v30, %v19485_v61  ;;  %v8733_v61 = vadd.f32 %v8732_v5, %v8731_v45  ;;  %v19491_v5 = vld [vmem:[#allocation67_spill] sm:$0xff]  ;;  %v8539_v45 = vmul.f32 %v16756_v44, %v19494_v62  ;;  %19497 = vst [vmem:[#allocation279_spill] sm:$0xff] %v16880_v29  ;;  %v19502_v29 = vld [vmem:[#allocation101_spill] sm:$0xff] }
 0x811   : > { %v16816_v41 = vpop.permute.xlu1 %8224 }
 0x812   : > { %19484 = vst [vmem:[#allocation278_spill] sm:$0xff] %v16816_v41  ;;  %v16829_v53 = vpop.permute.xlu0 %8089  ;;  %v19490_v41 = vld [vmem:[#allocation81_spill] sm:$0xff] }
 0x813   : > { %8424 = vperm.xlu0 %10446, %v7839_v15   ;;  %v8537_v18 = vmul.f32 %v16734_v13, %v19490_v41  ;;  %v8535_v15 = vmul.f32 %v16718_v21, %v19491_v5  ;;  %v16870_v5 = vsel %vm413_vm0, %v8556_v12, 0.0  ;;  %v16876_v41 = vsel %vm413_vm0, %v8558_v9, 0.0  ;;  %v19500_v9 = vld [vmem:[#allocation306_spill] sm:$0xff] }
 0x814   : > { %19495 = vst [vmem:[#allocation205_spill] sm:$0xff] %v16876_v41  ;;  %v8541_v12 = vmul.f32 %v16792_v63, %v19498_v60  ;;  %v8543_v60 = vmul.f32 %v16829_v53, %v19501_v54 }
 0x815   : > { %v16854_v24 = vpop.permute.xlu1 %8234  ;;  %v8755_v62 = vsel %vm413_vm0, %v8537_v18, 0.0  ;;  %v8745_v14 = vsel %vm413_vm0, %v8535_v15, 0.0  ;;  %v8758_v18 = vsel %vm413_vm0, %v8539_v45, 0.0  ;;  %v9292_v45 = vrot.slane %v16718_v21, %v13936_v39 }
 0x816   : > { %19492 = vst [vmem:[#allocation267_spill] sm:$0xff] %v16854_v24  ;;  %v16867_v47 = vpop.permute.xlu0 %8099  ;;  %v8735_v24 = vadd.f32 %v8734_v36, %v8733_v61  ;;  %v9273_v36 = vrot.slane %v16700_v16, %v13936_v39  ;;  %v8746_v0 = vadd.f32 %v8745_v14, %v8744_v1  ;;  %v8768_v54 = vsel %vm413_vm0, %v8541_v12, 0.0 }
 0x817   : > { %8439 = vperm.xlu0 %10446, %v7843_v3   ;;  %v7831_v3 = vmul.f32 %v19455_v35, %v19500_v9  ;;  %v8545_v11 = vmul.f32 %v16867_v47, %v19502_v29  ;;  %v8757_v35 = vadd.f32 %v16785_v10, %v8755_v62  ;;  %v19504_v9 = vrot.slane %v19457_v7, %v13939_v25  ;;  %v19506_v62 = vld [vmem:[#allocation308_spill] sm:$0xff] }
 0x818   : > { %v8736_v15 = vrot.slane %v8735_v24, 4  ;;  %v7836_v14 = vmul.f32 %v16406_v48, %v19506_v62  ;;  %v8771_v12 = vsel %vm413_vm0, %v8543_v60, 0.0  ;;  %v19507_v7 = vld [vmem:[#allocation220_spill] sm:$0xff]  ;;  %v19509_v48 = vld [vmem:[#allocation113_spill] sm:$0xff]  ;;  %v8748_v60 = vadd.f32 %v16774_v37, %v8746_v0 }
 0x819   : > { %v16890_v61 = vpop.permute.xlu1 %8244  ;;  %v9269_v16 = vsel %vm5165_vm1, %v19504_v9, %v9264_v51  ;;  %v8759_v43 = vadd.f32 %v8758_v18, %v8757_v35  ;;  %v7853_v51 = vmul.f32 %v16562_v17, %v19507_v7  ;;  %v19508_v35 = vrot.slane %v19461_v23, %v13939_v25  ;;  %v19514_v62 = vld [vmem:[#allocation105_spill] sm:$0xff] }
 0x81a   : > { %19499 = vst [vmem:[#allocation195_spill] sm:$0xff] %v16890_v61  ;;  %v16900_v42 = vpop.permute.xlu0 %8109  ;;  %v9283_v61 = vrot.slane %v16709_v28, %v19149_v22  ;;  %v19505_v28 = vld [vmem:[#allocation216_spill] sm:$0xff]  ;;  %v9274_v21 = vsel %vm5172_vm2, %v9273_v36, %v9269_v16  ;;  %v8737_v18 = vadd.f32 %v8736_v15, %v8735_v24  ;;  %v8770_v9 = vadd.f32 %v16804_v49, %v8768_v54 }
 0x81b   : > { %8394 = vperm.xlu0 %10446, %v7831_v3   ;;  %v8547_v29 = vmul.f32 %v16900_v42, %v19503_v27  ;;  %v7848_v10 = vmul.f32 %v16529_v40, %v19505_v28  ;;  %v8781_v3 = vsel %vm413_vm0, %v8545_v11, 0.0  ;;  %v19510_v28 = vld [vmem:[#allocation117_spill] sm:$0xff]  ;;  %v8761_v24 = vadd.f32 %v16795_v55, %v8759_v43 }
 0x81c   : > { %v9288_v27 = vsel %vm5165_vm1, %v19508_v35, %v9283_v61  ;;  %v7841_v17 = vmul.f32 %v16445_v30, %v19510_v28  ;;  %v8772_v23 = vadd.f32 %v8771_v12, %v8770_v9  ;;  %v8783_v61 = vadd.f32 %v16821_v58, %v8781_v3  ;;  %v19512_v30 = vld [vmem:[#allocation157_spill] sm:$0xff] }
 0x81d   : > { %v16916_v41 = vpop.permute.xlu1 %8254  ;;  %v9293_v11 = vsel %vm5172_vm2, %v9292_v45, %v9288_v27  ;;  %v8784_v16 = vsel %vm413_vm0, %v8547_v29, 0.0  ;;  %v19511_v54 = vrot.slane %v19459_v56, %v13951_v50  ;;  %v9302_v0 = vrot.slane %v16734_v13, %v19149_v22  ;;  %v19513_v55 = vld [vmem:[#allocation169_spill] sm:$0xff] }
 0x81e   : > { %v16925_v1 = vpop.permute.xlu0 %8119  ;;  %v16956_v43 = vmul.f32 %v16507_v59, %v19512_v30  ;;  %v16960_v58 = vmul.f32 %v16529_v40, %v19513_v55  ;;  %v8738_v29 = vrot.slane %v8737_v18, 2  ;;  %v8785_v56 = vadd.f32 %v8784_v16, %v8783_v61  ;;  %v19517_v16 = vld [vmem:[#allocation120_spill] sm:$0xff] }
 0x81f   : > { %v8549_v36 = vmul.f32 %v16925_v1, %v19509_v48  ;;  %8459 = vperm.xlu0 %10446, %v7848_v10   ;;  %v9279_v37 = vsel %vm5179_vm3, %v19511_v54, %v9274_v21  ;;  %v9311_v10 = vrot.slane %v16756_v44, %v13936_v39  ;;  %v8749_v13 = vrot.slane %v8748_v60, 4 }
 0x820   : > { %v19515_v12 = vrot.slane %v19463_v57, %v13951_v50  ;;  %v9321_v3 = vrot.slane %v16792_v63, %v19149_v22  ;;  %v8762_v7 = vrot.slane %v8761_v24, 4  ;;  %v8774_v35 = vadd.f32 %v16812_v2, %v8772_v23 }
 0x821   : > { %v8794_v49 = vsel %vm413_vm0, %v8549_v36, 0.0  ;;  %v16944_v15 = vpop.permute.xlu1 %8264  ;;  %v9340_v44 = vrot.slane %v16867_v47, %v19149_v22  ;;  %v19516_v57 = vrot.slane %v19467_v26, %v13939_v25  ;;  %v9330_v63 = vrot.slane %v16829_v53, %v13936_v39 }
 0x822   : > { %v16952_v45 = vpop.permute.xlu0 %8129  ;;  %v9298_v59 = vsel %vm5179_vm3, %v19515_v12, %v9293_v11  ;;  %v8796_v40 = vadd.f32 %v16839_v6, %v8794_v49  ;;  %v9349_v6 = vrot.slane %v16900_v42, %v13936_v39  ;;  %v8787_v11 = vadd.f32 %v16832_v34, %v8785_v56 }
 0x823   : > { %v8551_v21 = vmul.f32 %v16952_v45, %v19514_v62  ;;  %8414 = vperm.xlu0 %10446, %v7836_v14   ;;  %v9307_v9 = vsel %vm5165_vm1, %v19516_v57, %v9302_v0  ;;  %v9724_v36 = vsel %vm5770_vm4, %v9298_v59, %v9279_v37  ;;  %v16991_v26 = vadd.f32 %v8738_v29, %v8737_v18 }
 0x824   : > { %v9312_v47 = vsel %vm5172_vm2, %v9311_v10, %v9307_v9  ;;  %v8750_v23 = vadd.f32 %v8749_v13, %v8748_v60  ;;  %v19518_v53 = vrot.slane %v19472_v52, %v13939_v25  ;;  %v8763_v49 = vadd.f32 %v8762_v7, %v8761_v24  ;;  %v19521_v10 = vld [vmem:[#allocation116_spill] sm:$0xff] }
 0x825   : > { %v8797_v27 = vsel %vm413_vm0, %v8551_v21, 0.0  ;;  %v16977_v14 = vpop.permute.xlu1 %8274  ;;  %v8775_v54 = vrot.slane %v8774_v35, 4  ;;  %v19519_v37 = vrot.slane %v19479_v19, %v13939_v25  ;;  %v19520_v18 = vrot.slane %v19470_v20, %v13951_v50 }
 0x826   : > { %v8798_v48 = vadd.f32 %v8797_v27, %v8796_v40  ;;  %v8140_v2 = vpop.permute.xlu0 %8139  ;;  %v9326_v61 = vsel %vm5165_vm1, %v19518_v53, %v9321_v3  ;;  %v9359_v24 = vrot.slane %v16925_v1, %v19149_v22  ;;  %v8788_v19 = vrot.slane %v8787_v11, 4 }
 0x827   : > { %v8553_v28 = vmul.f32 %v8140_v2, %v19517_v16  ;;  %8479 = vperm.xlu0 %10446, %v7853_v51   ;;  %v9345_v34 = vsel %vm5165_vm1, %v19519_v37, %v9340_v44  ;;  %v9317_v52 = vsel %vm5179_vm3, %v19520_v18, %v9312_v47  ;;  %v9331_v60 = vsel %vm5172_vm2, %v9330_v63, %v9326_v61 }
 0x828   : > { %v8800_v42 = vadd.f32 %v16848_v4, %v8798_v48  ;;  %v9350_v4 = vsel %vm5172_vm2, %v9349_v6, %v9345_v34  ;;  %v9368_v55 = vrot.slane %v16952_v45, %v13936_v39  ;;  %v9378_v29 = vrot.slane %v8140_v2, %v19149_v22  ;;  %v19526_v48 = vld [vmem:[#allocation128_spill] sm:$0xff] }
 0x829   : > { %v8807_v0 = vsel %vm413_vm0, %v8553_v28, 0.0  ;;  %v17003_v51 = vpop.permute.xlu1 %8284  ;;  %v8751_v20 = vrot.slane %v8750_v23, 2  ;;  %v8764_v12 = vrot.slane %v8763_v49, 2  ;;  %v9725_v59 = vsel %vm5772_vm5, %v9317_v52, %v9724_v36  ;;  %v19530_v52 = vld [vmem:[#allocation126_spill] sm:$0xff] }
 0x82a   : > { %v8150_v30 = vpop.permute.xlu0 %8149  ;;  %v8801_v62 = vrot.slane %v8800_v42, 4  ;;  %v8809_v21 = vadd.f32 %v16859_v33, %v8807_v0  ;;  %v8776_v1 = vadd.f32 %v8775_v54, %v8774_v35  ;;  %v19522_v45 = vrot.slane %v19475_v32, %v13951_v50  ;;  %v19528_v0 = vld [vmem:[#allocation203_spill] sm:$0xff] }
 0x82b   : > { %v8555_v56 = vmul.f32 %v8150_v30, %v19521_v10  ;;  %8434 = vperm.xlu0 %10446, %v7841_v17   ;;  %v9387_v13 = vrot.slane %v8150_v30, %v13936_v39  ;;  %v19523_v17 = vrot.slane %v19481_v8, %v13951_v50  ;;  %v19524_v44 = vrot.slane %v16531_v46, %v13939_v25  ;;  %v19531_v30 = vld [vmem:[#allocation205_spill] sm:$0xff] }
 0x82c   : > { %v9336_v7 = vsel %vm5179_vm3, %v19522_v45, %v9331_v60  ;;  %v8789_v9 = vadd.f32 %v8788_v19, %v8787_v11  ;;  %v19525_v32 = vrot.slane %v16616_v31, %v13939_v25  ;;  %v8802_v8 = vadd.f32 %v8801_v62, %v8800_v42  ;;  %v19532_v19 = vld [vmem:[#allocation276_spill] sm:$0xff] }
 0x82d   : > { %v8810_v3 = vsel %vm413_vm0, %v8555_v56, 0.0  ;;  %v17021_v40 = vpop.permute.xlu1 %8294  ;;  %v9355_v33 = vsel %vm5179_vm3, %v19523_v17, %v9350_v4  ;;  %v9364_v27 = vsel %vm5165_vm1, %v19524_v44, %v9359_v24  ;;  %v8752_v16 = vadd.f32 %v8751_v20, %v8750_v23 }
 0x82e   : > { %v8811_v35 = vadd.f32 %v8810_v3, %v8809_v21  ;;  %v8160_v57 = vpop.permute.xlu0 %8159  ;;  %v9369_v63 = vsel %vm5172_vm2, %v9368_v55, %v9364_v27  ;;  %v9383_v6 = vsel %vm5165_vm1, %v19525_v32, %v9378_v29  ;;  %v8777_v11 = vrot.slane %v8776_v1, 2 }
 0x82f   : > { %v8557_v2 = vmul.f32 %v8160_v57, %v19526_v48  ;;  %8454 = vperm.xlu0 %10446, %v16956_v43   ;;  %v9388_v46 = vsel %vm5172_vm2, %v9387_v13, %v9383_v6  ;;  %v9397_v47 = vrot.slane %v8160_v57, %v19149_v22  ;;  %v9726_v28 = vsel %vm5774_vm6, %v9336_v7, %v9725_v59  ;;  %v19534_v59 = vld [vmem:[#allocation167_spill] sm:$0xff] }
 0x830   : > { %v8813_v36 = vadd.f32 %v16870_v5, %v8811_v35  ;;  %v8765_v61 = vadd.f32 %v8764_v12, %v8763_v49  ;;  %v9727_v54 = vsel %vm5776_vm7, %v9355_v33, %v9726_v28  ;;  %v19527_v43 = vrot.slane %v16575_v38, %v13951_v50 }
 0x831   : > { %v8820_v53 = vsel %vm413_vm0, %v8557_v2, 0.0  ;;  %v17047_v31 = vpop.permute.xlu1 %8304  ;;  %v8790_v34 = vrot.slane %v8789_v9, 2  ;;  %v19529_v23 = vrot.slane %v19528_v0, %v13951_v50  ;;  %v8803_v49 = vrot.slane %v8802_v8, 2 }
 0x832   : > { %v9374_v5 = vsel %vm5179_vm3, %v19527_v43, %v9369_v63  ;;  %v8814_v42 = vrot.slane %v8813_v36, 4  ;;  %v8170_v37 = vpop.permute.xlu0 %8169  ;;  %v8822_v38 = vadd.f32 %v19531_v30, %v8820_v53  ;;  %v19533_v55 = vrot.slane %v19532_v19, %v13939_v25 }
 0x833   : > { %v9393_v18 = vsel %vm5179_vm3, %v19529_v23, %v9388_v46  ;;  %v8559_v60 = vmul.f32 %v8170_v37, %v19530_v52  ;;  %v9406_v4 = vrot.slane %v8170_v37, %v13936_v39  ;;  %8474 = vperm.xlu0 %10446, %v16960_v58   ;;  %v8778_v10 = vadd.f32 %v8777_v11, %v8776_v1  ;;  %v19536_v1 = vld [vmem:[#allocation279_spill] sm:$0xff] }
 0x834   : > { %v8815_v24 = vadd.f32 %v8814_v42, %v8813_v36  ;;  %v9402_v29 = vsel %vm5165_vm1, %v19533_v55, %v9397_v47  ;;  %v9728_v56 = vsel %vm5778_vm8, %v9374_v5, %v9727_v54  ;;  %v19535_v3 = vrot.slane %v19534_v59, %v13951_v50 }
 0x835   : > { %v8823_v20 = vsel %vm413_vm0, %v8559_v60, 0.0  ;;  %v9407_v62 = vsel %vm5172_vm2, %v9406_v4, %v9402_v29  ;;  %v17069_v21 = vpop.permute.xlu1 %8314  ;;  %v9729_v13 = vsel %vm5780_vm9, %v9393_v18, %v9728_v56  ;;  %v8825_v17 = vsel %vm413_vm0, %v19536_v1, 0.0  ;;  %v19538_v56 = vld [vmem:[#allocation201_spill] sm:$0xff]  ;;  %v19543_v1 = vld [vmem:[#allocation263_spill] sm:$0xff] }
 0x836   : > { %v8816_v58 = vrot.slane %v8815_v24, 2  ;;  %v8824_v12 = vadd.f32 %v8823_v20, %v8822_v38  ;;  %v9412_v45 = vsel %vm5179_vm3, %v19535_v3, %v9407_v62  ;;  %v17076_v7 = vpop.permute.xlu0 %8179  ;;  %v8791_v33 = vadd.f32 %v8790_v34, %v8789_v9  ;;  %v19539_v62 = vld [vmem:[#allocation134_spill] sm:$0xff] }
 0x837   : > { %v9730_v44 = vsel %vm5782_vm10, %v9412_v45, %v9729_v13  ;;  %v8753_v27 = vrot.slane %v8752_v16, 1  ;;  %v8804_v35 = vadd.f32 %v8803_v49, %v8802_v8  ;;  %v8766_v63 = vrot.slane %v8765_v61, 1  ;;  %v19542_v45 = vld [vmem:[#allocation139_spill] sm:$0xff] }
 0x838   : > { %v8826_v57 = vadd.f32 %v8825_v17, %v8824_v12  ;;  %9750 = vst.msk [vmem:[%s16674_s15 + $0x8] sm:$0xff] %vm413_vm0, %v9730_v44  ;;  %v8817_v32 = vadd.f32 %v8816_v58, %v8815_v24  ;;  %v8740_v48 = vrot.slane %v16991_v26, 1  ;;  %v8779_v2 = vrot.slane %v8778_v10, 1  ;;  %v19540_v58 = vld [vmem:[#allocation277_spill] sm:$0xff]  ;;  %v19541_v12 = vld [vmem:[#allocation131_spill] sm:$0xff] }
 0x839   : > { %v17083_v6 = vpop.permute.xlu1 %8324  ;;  %v8792_v47 = vrot.slane %v8791_v33, 1  ;;  %v8754_v11 = vadd.f32 %v8753_v27, %v8752_v16  ;;  %v8805_v9 = vrot.slane %v8804_v35, 1  ;;  %v8767_v53 = vadd.f32 %v8766_v63, %v8765_v61  ;;  %v19545_v44 = vld [vmem:[#allocation207_spill] sm:$0xff] }
 0x83a   : > { %v8827_v36 = vrot.slane %v8826_v57, 4  ;;  %v17086_v46 = vpop.permute.xlu0 %8189  ;;  %v8818_v54 = vrot.slane %v8817_v32, 1  ;;  %v8741_v43 = vadd.f32 %v8740_v48, %v16991_v26  ;;  %v8780_v5 = vadd.f32 %v8779_v2, %v8778_v10  ;;  %v19537_v10 = vld [vmem:[#allocation52_spill] sm:$0xff]  ;;  %v19547_v48 = vld [vmem:[#allocation143_spill] sm:$0xff]  ;;  %v19548_v2 = vld [vmem:[#allocation278_spill] sm:$0xff] }
 0x83b   : > { %v8793_v34 = vadd.f32 %v8792_v47, %v8791_v33  ;;  %v8806_v23 = vadd.f32 %v8805_v9, %v8804_v35  ;;  %v8562_v20 = vmul.f32 %v19538_v56, %v19537_v10  ;;  %v8564_v13 = vmul.f32 %v19540_v58, %v19539_v62  ;;  %v19544_v33 = vld [vmem:[#allocation55_spill] sm:$0xff]  ;;  %v19546_v35 = vld [vmem:[#allocation130_spill] sm:$0xff] }
 0x83c   : > { %v8828_v28 = vadd.f32 %v8827_v36, %v8826_v57  ;;  %v9080_v0 = vsel %vm5770_vm4, %v8754_v11, %v8741_v43  ;;  %v8819_v52 = vadd.f32 %v8818_v54, %v8817_v32  ;;  %v8561_v59 = vmul.f32 %v17076_v7, %v19541_v12  ;;  %v19555_v12 = vld [vmem:[#allocation147_spill] sm:$0xff] }
 0x83d   : > { %v17088_v8 = vpop.permute.xlu1 %8334  ;;  %v9081_v16 = vsel %vm5772_vm5, %v8767_v53, %v9080_v0  ;;  %v8566_v17 = vmul.f32 %v19543_v1, %v19542_v45  ;;  %v8568_v27 = vmul.f32 %v19545_v44, %v19544_v33  ;;  %v8563_v57 = vmul.f32 %v17086_v46, %v19546_v35  ;;  %v19550_v53 = vld [vmem:[#allocation267_spill] sm:$0xff]  ;;  %v19556_v45 = vld [vmem:[#allocation76_spill] sm:$0xff]  ;;  %v19557_v35 = vld [vmem:[#allocation73_spill] sm:$0xff] }
 0x83e   : > { %v8829_v42 = vrot.slane %v8828_v28, 2  ;;  %v17091_v37 = vpop.permute.xlu0 %8199  ;;  %v9082_v61 = vsel %vm5774_vm6, %v8780_v5, %v9081_v16  ;;  %v8834_v63 = vsel %vm413_vm0, %v8562_v20, 0.0  ;;  %v8570_v36 = vmul.f32 %v19548_v2, %v19547_v48  ;;  %v19558_v48 = vld [vmem:[#allocation18_spill] sm:$0xff] }
 0x83f   : > { %v9083_v26 = vsel %vm5776_vm7, %v8793_v34, %v9082_v61  ;;  %v8838_v11 = vsel %vm413_vm0, %v8564_v13, 0.0  ;;  %v8833_v43 = vsel %vm413_vm0, %v8561_v59, 0.0  ;;  %v8580_v59 = vmul.f32 %v16977_v14, %v19555_v12  ;;  %v19565_v61 = vld [vmem:[#allocation151_spill] sm:$0xff]  ;;  %v19569_v34 = vld [vmem:[#allocation12_spill] sm:$0xff] }
 0x840   : > { %v8830_v18 = vadd.f32 %v8829_v42, %v8828_v28  ;;  %v9084_v24 = vsel %vm5778_vm8, %v8806_v23, %v9083_v26  ;;  %v19549_v28 = vld [vmem:[#allocation141_spill] sm:$0xff]  ;;  %v8847_v42 = vsel %vm413_vm0, %v8566_v17, 0.0  ;;  %v8835_v20 = vadd.f32 %v8834_v63, %v8833_v43 }
 0x841   : > { %v17095_v60 = vpop.permute.xlu1 %8344  ;;  %v9085_v38 = vsel %vm5780_vm9, %v8819_v52, %v9084_v24  ;;  %v8572_v54 = vmul.f32 %v19550_v53, %v19549_v28  ;;  %v19551_v23 = vld [vmem:[#allocation17_spill] sm:$0xff]  ;;  %v17147_v52 = vsel %vm413_vm0, %v8568_v27, 0.0  ;;  %v8836_v24 = vsel %vm413_vm0, %v8563_v57, 0.0 }
 0x842   : > { %v8831_v4 = vrot.slane %v8830_v18, 1  ;;  %v17098_v49 = vpop.permute.xlu0 %8209  ;;  %v8582_v17 = vmul.f32 %v17003_v51, %v19556_v45  ;;  %v8584_v57 = vmul.f32 %v17021_v40, %v19557_v35  ;;  %v8837_v63 = vadd.f32 %v8836_v24, %v8835_v20  ;;  %v19562_v45 = vld [vmem:[#allocation133_spill] sm:$0xff] }
 0x843   : > { %v17160_v62 = vsel %vm413_vm0, %v8572_v54, 0.0  ;;  %v17194_v35 = vsel %vm413_vm0, %v8580_v59, 0.0 }
 0x844   : > { %v8832_v30 = vadd.f32 %v8831_v4, %v8830_v18  ;;  %v19552_v18 = vld [vmem:[#allocation195_spill] sm:$0xff]  ;;  %v19553_v4 = vld [vmem:[#allocation65_spill] sm:$0xff]  ;;  %v8839_v20 = vadd.f32 %v8838_v11, %v8837_v63  ;;  %v9425_v11 = vrot.slane %v17086_v46, %v13936_v39  ;;  %v9435_v46 = vrot.slane %v17091_v37, %v19149_v22 }
 0x845   : > { %v17108_v29 = vpop.permute.xlu1 %8354  ;;  %v8574_v16 = vmul.f32 %v19552_v18, %v19551_v23  ;;  %v8576_v26 = vmul.f32 %v16916_v41, %v19553_v4  ;;  %v19560_v23 = vld [vmem:[#allocation83_spill] sm:$0xff] }
 0x846   : > { %v9086_v19 = vsel %vm5782_vm10, %v8832_v30, %v9085_v38  ;;  %v17104_v55 = vpop.permute.xlu0 %8219  ;;  %v8860_v30 = vsel %vm413_vm0, %v8570_v36, 0.0  ;;  %v8565_v36 = vmul.f32 %v17091_v37, %v19558_v48  ;;  %v8586_v4 = vmul.f32 %v17047_v31, %v19560_v23 }
 0x847   : > { %9106 = vst.msk [vmem:[%s16725_s19 + $0x8] sm:$0xff] %vm413_vm0, %v9086_v19  ;;  %v19554_v19 = vld [vmem:[#allocation72_spill] sm:$0xff]  ;;  %v8873_v27 = vsel %vm413_vm0, %v8574_v16, 0.0  ;;  %v17178_v54 = vsel %vm413_vm0, %v8576_v26, 0.0  ;;  %v8567_v26 = vmul.f32 %v17098_v49, %v19562_v45  ;;  %v17197_v48 = vsel %vm413_vm0, %v8582_v17, 0.0 }
 0x848   : > { %v8578_v10 = vmul.f32 %v16944_v15, %v19554_v19  ;;  %v19561_v19 = vld [vmem:[#allocation60_spill] sm:$0xff]  ;;  %v17206_v38 = vsel %vm413_vm0, %v8584_v57, 0.0  ;;  %v8846_v59 = vsel %vm413_vm0, %v8565_v36, 0.0  ;;  %v17212_v17 = vsel %vm413_vm0, %v8586_v4, 0.0 }
 0x849   : > { %v17129_v47 = vpop.permute.xlu1 %8364  ;;  %v8569_v16 = vmul.f32 %v17104_v55, %v19561_v19  ;;  %v19563_v19 = vld [vmem:[#allocation137_spill] sm:$0xff]  ;;  %v8588_v57 = vmul.f32 %v17069_v21, %v19565_v61  ;;  %v9416_v45 = vrot.slane %v17076_v7, %v19149_v22  ;;  %v8849_v63 = vsel %vm413_vm0, %v8567_v26, 0.0 }
 0x84a   : > { %v17116_v3 = vpop.permute.xlu0 %8229  ;;  %v8886_v12 = vsel %vm413_vm0, %v8578_v10, 0.0  ;;  %v8848_v4 = vadd.f32 %v8847_v42, %v8846_v59  ;;  %v8590_v7 = vmul.f32 %v17083_v6, %v19569_v34  ;;  %v8840_v32 = vrot.slane %v8839_v20, 4  ;;  %v19570_v59 = vld [vmem:[#allocation146_spill] sm:$0xff] }
 0x84b   : > { %v8571_v10 = vmul.f32 %v17116_v3, %v19563_v19  ;;  %v8859_v24 = vsel %vm413_vm0, %v8569_v16, 0.0  ;;  %v19564_v19 = vld [vmem:[#allocation63_spill] sm:$0xff]  ;;  %v19567_v16 = vld [vmem:[#allocation61_spill] sm:$0xff]  ;;  %v9444_v42 = vrot.slane %v17098_v49, %v13936_v39  ;;  %v9553_v49 = vrot.slane %v17083_v6, %v13939_v25 }
 0x84c   : > { %v8861_v26 = vadd.f32 %v8860_v30, %v8859_v24 }
 0x84d   : > { %v17175_v28 = vpop.permute.xlu1 %8374  ;;  %v8862_v23 = vsel %vm413_vm0, %v8571_v10, 0.0 }
 0x84e   : > { %v17137_v5 = vpop.permute.xlu0 %8239  ;;  %19559 = vst [vmem:[#allocation211_spill] sm:$0xff] %v17175_v28  ;;  %v19571_v28 = vrot.slane %v19538_v56, %v13939_v25  ;;  %v8863_v30 = vadd.f32 %v8862_v23, %v8861_v26  ;;  %v19573_v23 = vld [vmem:[#allocation20_spill] sm:$0xff] }
 0x84f   : > { %v8573_v13 = vmul.f32 %v17137_v5, %v19564_v19  ;;  %v19568_v19 = vld [vmem:[#allocation66_spill] sm:$0xff] }
 0x850   : > { %v9421_v37 = vsel %vm5165_vm1, %v19571_v28, %v9416_v45 }
 0x851   : > { %v17226_v36 = vpop.permute.xlu1 %8384  ;;  %v8872_v10 = vsel %vm413_vm0, %v8573_v13, 0.0  ;;  %v9426_v13 = vsel %vm5172_vm2, %v9425_v11, %v9421_v37  ;;  %v17269_v11 = vsel %vm413_vm0, %v8590_v7, 0.0  ;;  %v19575_v37 = vld [vmem:[#allocation84_spill] sm:$0xff] }
 0x852   : > { %v17168_v33 = vpop.permute.xlu0 %8249  ;;  %19566 = vst [vmem:[#allocation280_spill] sm:$0xff] %v17226_v36  ;;  %v8850_v36 = vadd.f32 %v8849_v63, %v8848_v4  ;;  %v8841_v4 = vadd.f32 %v8840_v32, %v8839_v20  ;;  %v8874_v34 = vadd.f32 %v8873_v27, %v8872_v10  ;;  %v8865_v20 = vadd.f32 %v17160_v62, %v8863_v30 }
 0x853   : > { %v8575_v0 = vmul.f32 %v17168_v33, %v19567_v16  ;;  %v17282_v7 = vmul.f32 %v17088_v8, %v19575_v37 }
 0x855   : > { %v8875_v24 = vsel %vm413_vm0, %v8575_v0, 0.0  ;;  %v17264_v28 = vpop.permute.xlu1 %8404  ;;  %v8852_v0 = vadd.f32 %v17147_v52, %v8850_v36  ;;  %v9563_v52 = vrot.slane %v17088_v8, %v13951_v50  ;;  %v9454_v36 = vrot.slane %v17104_v55, %v19149_v22 }
 0x856   : > { %v17203_v43 = vpop.permute.xlu0 %8259  ;;  %v8866_v55 = vrot.slane %v8865_v20, 4 }
 0x857   : > { %v8577_v9 = vmul.f32 %v17203_v43, %v19568_v19  ;;  %v17245_v19 = vsel %vm413_vm0, %v8588_v57, 0.0  ;;  %v8853_v30 = vrot.slane %v8852_v0, 4 }
 0x859   : > { %v8885_v63 = vsel %vm413_vm0, %v8577_v9, 0.0 }
 0x85a   : > { %v17233_v61 = vpop.permute.xlu0 %8269  ;;  %v8887_v26 = vadd.f32 %v8886_v12, %v8885_v63  ;;  %v9463_v12 = vrot.slane %v17116_v3, %v13936_v39  ;;  %v9473_v63 = vrot.slane %v17137_v5, %v19149_v22  ;;  %v9492_v3 = vrot.slane %v17203_v43, %v19149_v22 }
 0x85b   : > { %v8579_v16 = vmul.f32 %v17233_v61, %v19570_v59  ;;  %v19572_v59 = vrot.slane %v19543_v1, %v13939_v25  ;;  %v8876_v1 = vadd.f32 %v8875_v24, %v8874_v34  ;;  %v19576_v34 = vld [vmem:[#allocation148_spill] sm:$0xff]  ;;  %v9482_v5 = vrot.slane %v17168_v33, %v13936_v39 }
 0x85d   : > { %v9440_v56 = vsel %vm5165_vm1, %v19572_v59, %v9435_v46  ;;  %v8888_v32 = vsel %vm413_vm0, %v8579_v16, 0.0  ;;  %v19574_v46 = vrot.slane %v19540_v58, %v13951_v50 }
 0x85e   : > { %v17258_v57 = vpop.permute.xlu0 %8279  ;;  %v9445_v9 = vsel %vm5172_vm2, %v9444_v42, %v9440_v56  ;;  %v8842_v42 = vrot.slane %v8841_v4, 2  ;;  %v8889_v16 = vadd.f32 %v8888_v32, %v8887_v26  ;;  %v8878_v56 = vadd.f32 %v17178_v54, %v8876_v1 }
 0x85f   : > { %v8581_v45 = vmul.f32 %v17258_v57, %v19573_v23  ;;  %v9431_v10 = vsel %vm5179_vm3, %v19574_v46, %v9426_v13  ;;  %v19577_v13 = vrot.slane %v19545_v44, %v13951_v50  ;;  %v17301_v23 = vpop.permute.xlu1 %8419  ;;  %v19578_v44 = vrot.slane %v19548_v2, %v13939_v25 }
 0x860   : > { %v8891_v26 = vadd.f32 %v17194_v35, %v8889_v16  ;;  %v17316_v37 = vadd.f32 %v8842_v42, %v8841_v4  ;;  %v8854_v2 = vadd.f32 %v8853_v30, %v8852_v0  ;;  %v19582_v4 = vrot.slane %v19550_v53, %v13951_v50 }
 0x861   : > { %v8898_v27 = vsel %vm413_vm0, %v8581_v45, 0.0  ;;  %v9450_v24 = vsel %vm5179_vm3, %v19577_v13, %v9445_v9  ;;  %v9459_v9 = vsel %vm5165_vm1, %v19578_v44, %v9454_v36  ;;  %v19580_v36 = vrot.slane %v19552_v18, %v13939_v25 }
 0x862   : > { %v8290_v62 = vpop.permute.xlu0 %8289  ;;  %v8900_v59 = vadd.f32 %v17197_v48, %v8898_v27  ;;  %v9501_v48 = vrot.slane %v17233_v61, %v13936_v39  ;;  %v9731_v1 = vsel %vm5770_vm4, %v9450_v24, %v9431_v10  ;;  %v9464_v43 = vsel %vm5172_vm2, %v9463_v12, %v9459_v9  ;;  %v19579_v27 = vld [vmem:[#allocation149_spill] sm:$0xff]  ;;  %v19583_v24 = vld [vmem:[#allocation74_spill] sm:$0xff] }
 0x863   : > { %v8583_v58 = vmul.f32 %v8290_v62, %v19576_v34  ;;  %v9478_v33 = vsel %vm5165_vm1, %v19580_v36, %v9473_v63  ;;  %v8867_v34 = vadd.f32 %v8866_v55, %v8865_v20  ;;  %v19581_v10 = vrot.slane %v16944_v15, %v13939_v25  ;;  %v17336_v30 = vpop.permute.xlu1 %8409  ;;  %v19588_v36 = vld [vmem:[#allocation82_spill] sm:$0xff] }
 0x864   : > { %v9469_v0 = vsel %vm5179_vm3, %v19582_v4, %v9464_v43  ;;  %v9483_v18 = vsel %vm5172_vm2, %v9482_v5, %v9478_v33  ;;  %v8892_v16 = vrot.slane %v8891_v26, 4  ;;  %v9520_v15 = vrot.slane %v8290_v62, %v13936_v39 }
 0x865   : > { %v8901_v45 = vsel %vm413_vm0, %v8583_v58, 0.0  ;;  %v8879_v58 = vrot.slane %v8878_v56, 4  ;;  %v9497_v12 = vsel %vm5165_vm1, %v19581_v10, %v9492_v3  ;;  %v8855_v53 = vrot.slane %v8854_v2, 2 }
 0x866   : > { %v8902_v32 = vadd.f32 %v8901_v45, %v8900_v59  ;;  %v8300_v54 = vpop.permute.xlu0 %8299  ;;  %v9502_v42 = vsel %vm5172_vm2, %v9501_v48, %v9497_v12  ;;  %v8868_v45 = vrot.slane %v8867_v34, 2  ;;  %v9732_v44 = vsel %vm5772_vm5, %v9469_v0, %v9731_v1 }
 0x867   : > { %v8585_v46 = vmul.f32 %v8300_v54, %v19579_v27  ;;  %v9530_v13 = vrot.slane %v8300_v54, %v19149_v22  ;;  %v19584_v5 = vrot.slane %v16916_v41, %v13951_v50  ;;  %v19585_v48 = vrot.slane %v16977_v14, %v13951_v50  ;;  %v17367_v4 = vpop.permute.xlu1 %8444 }
 0x868   : > { %v8904_v61 = vadd.f32 %v17206_v38, %v8902_v32  ;;  %v9511_v38 = vrot.slane %v17258_v57, %v19149_v22  ;;  %v8880_v57 = vadd.f32 %v8879_v58, %v8878_v56  ;;  %v8893_v56 = vadd.f32 %v8892_v16, %v8891_v26 }
 0x869   : > { %v8911_v35 = vsel %vm413_vm0, %v8585_v46, 0.0  ;;  %v9488_v62 = vsel %vm5179_vm3, %v19584_v5, %v9483_v18  ;;  %v9507_v32 = vsel %vm5179_vm3, %v19585_v48, %v9502_v42  ;;  %v19587_v41 = vrot.slane %v17047_v31, %v13939_v25 }
 0x86a   : > { %v8310_v20 = vpop.permute.xlu0 %8309  ;;  %v8905_v59 = vrot.slane %v8904_v61, 4  ;;  %v8913_v55 = vadd.f32 %v17212_v17, %v8911_v35  ;;  %v19586_v17 = vrot.slane %v17003_v51, %v13939_v25  ;;  %v8856_v12 = vadd.f32 %v8855_v53, %v8854_v2 }
 0x86b   : > { %v8587_v63 = vmul.f32 %v8310_v20, %v19583_v24  ;;  %v9539_v3 = vrot.slane %v8310_v20, %v13936_v39  ;;  %v9535_v46 = vsel %vm5165_vm1, %v19587_v41, %v9530_v13  ;;  %v8881_v35 = vrot.slane %v8880_v57, 2  ;;  %v17398_v5 = vpop.permute.xlu1 %8429 }
 0x86c   : > { %v9516_v54 = vsel %vm5165_vm1, %v19586_v17, %v9511_v38  ;;  %v8906_v14 = vadd.f32 %v8905_v59, %v8904_v61  ;;  %v9733_v26 = vsel %vm5774_vm6, %v9488_v62, %v9732_v44  ;;  %v8869_v31 = vadd.f32 %v8868_v45, %v8867_v34 }
 0x86d   : > { %v8914_v9 = vsel %vm413_vm0, %v8587_v63, 0.0  ;;  %v9521_v27 = vsel %vm5172_vm2, %v9520_v15, %v9516_v54  ;;  %v9540_v10 = vsel %vm5172_vm2, %v9539_v3, %v9535_v46  ;;  %v9734_v18 = vsel %vm5776_vm7, %v9507_v32, %v9733_v26  ;;  %v19591_v15 = vld [vmem:[#allocation150_spill] sm:$0xff] }
 0x86e   : > { %v8915_v43 = vadd.f32 %v8914_v9, %v8913_v55  ;;  %v8320_v1 = vpop.permute.xlu0 %8319  ;;  %v19589_v61 = vrot.slane %v17021_v40, %v13951_v50  ;;  %v8894_v20 = vrot.slane %v8893_v56, 2  ;;  %v19590_v2 = vrot.slane %v17069_v21, %v13951_v50 }
 0x86f   : > { %v8589_v33 = vmul.f32 %v8320_v1, %v19588_v36  ;;  %v9549_v51 = vrot.slane %v8320_v1, %v19149_v22  ;;  %v8907_v34 = vrot.slane %v8906_v14, 2  ;;  %v8882_v59 = vadd.f32 %v8881_v35, %v8880_v57 }
 0x870   : > { %v8917_v58 = vadd.f32 %v17245_v19, %v8915_v43  ;;  %v9526_v19 = vsel %vm5179_vm3, %v19589_v61, %v9521_v27  ;;  %v9545_v16 = vsel %vm5179_vm3, %v19590_v2, %v9540_v10  ;;  %v8895_v57 = vadd.f32 %v8894_v20, %v8893_v56 }
 0x871   : > { %v8924_v0 = vsel %vm413_vm0, %v8589_v33, 0.0  ;;  %v9554_v40 = vsel %vm5165_vm1, %v9553_v49, %v9549_v51  ;;  %v9735_v55 = vsel %vm5778_vm8, %v9526_v19, %v9734_v18  ;;  %v8929_v49 = vsel %vm413_vm0, %v17282_v7, 0.0  ;;  %v17406_v33 = vpop.permute.xlu1 %8464 }
 0x872   : > { %v8918_v42 = vrot.slane %v8917_v58, 4  ;;  %v8330_v38 = vpop.permute.xlu0 %8329  ;;  %v8926_v53 = vadd.f32 %v17269_v11, %v8924_v0  ;;  %v9736_v44 = vsel %vm5780_vm9, %v9545_v16, %v9735_v55  ;;  %v8857_v48 = vrot.slane %v8856_v12, 1  ;;  %v19594_v55 = vld [vmem:[#allocation152_spill] sm:$0xff] }
 0x873   : > { %v8591_v13 = vmul.f32 %v8330_v38, %v19591_v15  ;;  %v9558_v24 = vrot.slane %v8330_v38, %v13936_v39  ;;  %v8908_v32 = vadd.f32 %v8907_v34, %v8906_v14  ;;  %v8870_v54 = vrot.slane %v8869_v31, 1  ;;  %v19592_v34 = vld [vmem:[#allocation153_spill] sm:$0xff] }
 0x874   : > { %v8919_v63 = vadd.f32 %v8918_v42, %v8917_v58  ;;  %v8844_v8 = vrot.slane %v17316_v37, 1  ;;  %v8896_v41 = vrot.slane %v8895_v57, 1  ;;  %v8858_v7 = vadd.f32 %v8857_v48, %v8856_v12 }
 0x875   : > { %v8927_v21 = vsel %vm413_vm0, %v8591_v13, 0.0  ;;  %v9559_v3 = vsel %vm5172_vm2, %v9558_v24, %v9554_v40  ;;  %v8909_v56 = vrot.slane %v8908_v32, 1  ;;  %v8871_v36 = vadd.f32 %v8870_v54, %v8869_v31  ;;  %v17417_v20 = vpop.permute.xlu1 %8449  ;;  %v19599_v54 = vld [vmem:[#allocation211_spill] sm:$0xff] }
 0x876   : > { %v8920_v45 = vrot.slane %v8919_v63, 2  ;;  %v8928_v9 = vadd.f32 %v8927_v21, %v8926_v53  ;;  %v9564_v11 = vsel %vm5179_vm3, %v9563_v52, %v9559_v3  ;;  %v17394_v6 = vpop.permute.xlu0 %8339  ;;  %v8883_v52 = vrot.slane %v8882_v59, 1  ;;  %v19593_v53 = vld [vmem:[#allocation156_spill] sm:$0xff] }
 0x877   : > { %v9737_v62 = vsel %vm5782_vm10, %v9564_v11, %v9736_v44  ;;  %v8845_v14 = vadd.f32 %v8844_v8, %v17316_v37  ;;  %v8897_v26 = vadd.f32 %v8896_v41, %v8895_v57  ;;  %v8910_v18 = vadd.f32 %v8909_v56, %v8908_v32  ;;  %v19596_v11 = vld [vmem:[#allocation15_spill] sm:$0xff] }
 0x878   : > { %v8930_v17 = vadd.f32 %v8929_v49, %v8928_v9  ;;  %9751 = vst.msk [vmem:[%s16674_s15 + $0x10] sm:$0xff] %vm413_vm0, %v9737_v62  ;;  %v8921_v43 = vadd.f32 %v8920_v45, %v8919_v63  ;;  %v8884_v10 = vadd.f32 %v8883_v52, %v8882_v59  ;;  %v8593_v63 = vmul.f32 %v17394_v6, %v19592_v34  ;;  %v19595_v45 = vld [vmem:[#allocation155_spill] sm:$0xff]  ;;  %v19597_v62 = vld [vmem:[#allocation94_spill] sm:$0xff] }
 0x879   : > { %v9087_v0 = vsel %vm5770_vm4, %v8858_v7, %v8845_v14  ;;  %v8594_v40 = vmul.f32 %v17095_v60, %v19593_v53  ;;  %v17430_v59 = vpop.permute.xlu1 %8484  ;;  %v8596_v44 = vmul.f32 %v17108_v29, %v19595_v45  ;;  %v8598_v48 = vmul.f32 %v17129_v47, %v19597_v62  ;;  %v19600_v52 = vld [vmem:[#allocation154_spill] sm:$0xff] }
 0x87a   : > { %v8931_v1 = vrot.slane %v8930_v17, 4  ;;  %v17404_v27 = vpop.permute.xlu0 %8349  ;;  %v8922_v58 = vrot.slane %v8921_v43, 1  ;;  %v9088_v12 = vsel %vm5772_vm5, %v8871_v36, %v9087_v0  ;;  %v8937_v9 = vsel %vm413_vm0, %v8593_v63, 0.0  ;;  %v19601_v36 = vld [vmem:[#allocation102_spill] sm:$0xff] }
 0x87b   : > { %v9089_v31 = vsel %vm5774_vm6, %v8884_v10, %v9088_v12  ;;  %v8595_v21 = vmul.f32 %v17404_v27, %v19594_v55  ;;  %v8938_v57 = vsel %vm413_vm0, %v8594_v40, 0.0  ;;  %v9572_v7 = vrot.slane %v17095_v60, %v13939_v25  ;;  %v19607_v40 = vld [vmem:[#allocation165_spill] sm:$0xff] }
 0x87c   : > { %v8932_v46 = vadd.f32 %v8931_v1, %v8930_v17  ;;  %v8923_v19 = vadd.f32 %v8922_v58, %v8921_v43  ;;  %v9090_v37 = vsel %vm5776_vm7, %v8897_v26, %v9089_v31  ;;  %v19598_v17 = vld [vmem:[#allocation92_spill] sm:$0xff]  ;;  %v8939_v8 = vadd.f32 %v8938_v57, %v8937_v9  ;;  %v19603_v26 = vld [vmem:[#allocation14_spill] sm:$0xff] }
 0x87d   : > { %v9091_v2 = vsel %vm5778_vm8, %v8910_v18, %v9090_v37  ;;  %v8940_v32 = vsel %vm413_vm0, %v8595_v21, 0.0  ;;  %v8600_v43 = vmul.f32 %v19599_v54, %v19598_v17  ;;  %v8942_v56 = vsel %vm413_vm0, %v8596_v44, 0.0  ;;  %v19602_v58 = vld [vmem:[#allocation280_spill] sm:$0xff]  ;;  %v17458_v10 = vpop.permute.xlu1 %8469  ;;  %v19608_v9 = vld [vmem:[#allocation122_spill] sm:$0xff] }
 0x87e   : > { %v8933_v51 = vrot.slane %v8932_v46, 2  ;;  %v17409_v35 = vpop.permute.xlu0 %8359  ;;  %v9092_v15 = vsel %vm5780_vm9, %v8923_v19, %v9091_v2  ;;  %v8602_v14 = vmul.f32 %v19602_v58, %v19601_v36  ;;  %v8606_v0 = vmul.f32 %v17264_v28, %v19603_v26  ;;  %v19604_v19 = vld [vmem:[#allocation104_spill] sm:$0xff] }
 0x87f   : > { %v8597_v49 = vmul.f32 %v17409_v35, %v19596_v11  ;;  %v8941_v18 = vadd.f32 %v8940_v32, %v8939_v8  ;;  %v8951_v60 = vsel %vm413_vm0, %v8598_v48, 0.0  ;;  %v9601_v12 = vrot.slane %v19599_v54, %v13951_v50  ;;  %v19617_v48 = vld [vmem:[#allocation123_spill] sm:$0xff] }
 0x880   : > { %v8934_v61 = vadd.f32 %v8933_v51, %v8932_v46  ;;  %v9582_v46 = vrot.slane %v17108_v29, %v13951_v50  ;;  %v9591_v51 = vrot.slane %v17129_v47, %v13939_v25  ;;  %v8609_v31 = vmul.f32 %v17301_v23, %v19604_v19 }
 0x881   : > { %v8955_v2 = vsel %vm413_vm0, %v8600_v43, 0.0  ;;  %v9610_v47 = vrot.slane %v19602_v58, %v13939_v25  ;;  %v8964_v63 = vsel %vm413_vm0, %v8602_v14, 0.0  ;;  %v9629_v53 = vrot.slane %v17264_v28, %v13939_v25  ;;  %v17498_v32 = vpop.permute.xlu1 %8489 }
 0x882   : > { %v8935_v42 = vrot.slane %v8934_v61, 1  ;;  %v17414_v38 = vpop.permute.xlu0 %8369  ;;  %v8611_v55 = vmul.f32 %v17398_v5, %v19607_v40  ;;  %v8977_v45 = vsel %vm413_vm0, %v8606_v0, 0.0  ;;  %v9644_v44 = vrot.slane %v17301_v23, %v19149_v22  ;;  %v19610_v0 = vld [vmem:[#allocation177_spill] sm:$0xff] }
 0x883   : > { %v8599_v1 = vmul.f32 %v17414_v38, %v19600_v52  ;;  %v8618_v11 = vmul.f32 %v17406_v33, %v19608_v9  ;;  %v17491_v57 = vsel %vm413_vm0, %v8609_v31, 0.0  ;;  %v9568_v31 = vrot.slane %v17394_v6, %v19149_v22 }
 0x884   : > { %v8936_v16 = vadd.f32 %v8935_v42, %v8934_v61  ;;  %v8950_v61 = vsel %vm413_vm0, %v8597_v49, 0.0  ;;  %v19605_v42 = vld [vmem:[#allocation98_spill] sm:$0xff]  ;;  %v8943_v49 = vadd.f32 %v8942_v56, %v8941_v18  ;;  %v17512_v14 = vsel %vm413_vm0, %v8611_v55, 0.0 }
 0x885   : > { %v8607_v37 = vmul.f32 %v17336_v30, %v19605_v42  ;;  %v8952_v21 = vadd.f32 %v8951_v60, %v8950_v61  ;;  %v8622_v18 = vmul.f32 %v17430_v59, %v19610_v0  ;;  %v19611_v61 = vld [vmem:[#allocation159_spill] sm:$0xff]  ;;  %v17521_v19 = vsel %vm413_vm0, %v8618_v11, 0.0  ;;  %v19613_v55 = vld [vmem:[#allocation158_spill] sm:$0xff]  ;;  %v17549_v0 = vpop.permute.xlu1 %8494  ;;  %v19616_v11 = vld [vmem:[#allocation172_spill] sm:$0xff] }
 0x886   : > { %v9093_v13 = vsel %vm5782_vm10, %v8936_v16, %v9092_v15  ;;  %v17422_v24 = vpop.permute.xlu0 %8379  ;;  %v19606_v16 = vld [vmem:[#allocation114_spill] sm:$0xff]  ;;  %v8944_v42 = vrot.slane %v8943_v49, 4  ;;  %v9715_v54 = vrot.slane %v17549_v0, %v13951_v50 }
 0x887   : > { %9107 = vst.msk [vmem:[%s16725_s19 + $0x10] sm:$0xff] %vm413_vm0, %v9093_v13  ;;  %v8614_v15 = vmul.f32 %v17367_v4, %v19606_v16  ;;  %v8953_v13 = vsel %vm413_vm0, %v8599_v1, 0.0  ;;  %v17494_v62 = vsel %vm413_vm0, %v8607_v37, 0.0  ;;  %v19609_v1 = vld [vmem:[#allocation108_spill] sm:$0xff]  ;;  %v8601_v60 = vmul.f32 %v17422_v24, %v19611_v61  ;;  %v19615_v61 = vld [vmem:[#allocation161_spill] sm:$0xff] }
 0x888   : > { %v8954_v17 = vadd.f32 %v8953_v13, %v8952_v21  ;;  %v8615_v56 = vmul.f32 %v17417_v20, %v19609_v1  ;;  %v9587_v37 = vrot.slane %v17409_v35, %v19149_v22  ;;  %v19612_v13 = vld [vmem:[#allocation100_spill] sm:$0xff]  ;;  %v9577_v35 = vrot.slane %v17404_v27, %v13936_v39 }
 0x889   : > { %v17501_v43 = vsel %vm413_vm0, %v8614_v15, 0.0  ;;  %v9596_v15 = vrot.slane %v17414_v38, %v13936_v39  ;;  %v17545_v38 = vsel %vm413_vm0, %v8622_v18, 0.0  ;;  %v8623_v27 = vmul.f32 %v17498_v32, %v19616_v11 }
 0x88a   : > { %v17434_v3 = vpop.permute.xlu0 %8399  ;;  %v8956_v16 = vadd.f32 %v8955_v2, %v8954_v17  ;;  %v17534_v9 = vsel %vm413_vm0, %v8615_v56, 0.0  ;;  %v19614_v17 = vld [vmem:[#allocation112_spill] sm:$0xff]  ;;  %v8963_v56 = vsel %vm413_vm0, %v8601_v60, 0.0  ;;  %v8945_v26 = vadd.f32 %v8944_v42, %v8943_v49 }
 0x88b   : > { %v8605_v40 = vmul.f32 %v17434_v3, %v19612_v13  ;;  %v8619_v1 = vmul.f32 %v17458_v10, %v19614_v17  ;;  %v9592_v6 = vsel %vm5165_vm1, %v9591_v51, %v9587_v37  ;;  %v9691_v60 = vrot.slane %v17458_v10, %v13936_v39 }
 0x88c   : > { %v8957_v18 = vrot.slane %v8956_v16, 4  ;;  %v9597_v52 = vsel %vm5172_vm2, %v9596_v15, %v9592_v6  ;;  %v9710_v51 = vrot.slane %v17498_v32, %v13936_v39  ;;  %v9625_v42 = vrot.slane %v17434_v3, %v19149_v22 }
 0x88d   : > { %v8976_v17 = vsel %vm413_vm0, %v8605_v40, 0.0  ;;  %v17567_v49 = vsel %vm413_vm0, %v8619_v1, 0.0  ;;  %v9602_v15 = vsel %vm5179_vm3, %v9601_v12, %v9597_v52  ;;  %v9031_v6 = vsel %vm413_vm0, %v8623_v27, 0.0  ;;  %v19620_v27 = vld [vmem:[#allocation19_spill] sm:$0xff] }
 0x88e   : > { %v17449_v41 = vpop.permute.xlu0 %8389  ;;  %v8978_v40 = vadd.f32 %v8977_v45, %v8976_v17  ;;  %v8958_v1 = vadd.f32 %v8957_v18, %v8956_v16  ;;  %v9606_v12 = vrot.slane %v17422_v24, %v19149_v22  ;;  %v9630_v52 = vsel %vm5165_vm1, %v9629_v53, %v9625_v42  ;;  %v19619_v16 = vld [vmem:[#allocation164_spill] sm:$0xff] }
 0x88f   : > { %v8603_v21 = vmul.f32 %v17449_v41, %v19613_v55  ;;  %v9573_v55 = vsel %vm5165_vm1, %v9572_v7, %v9568_v31  ;;  %v8624_v7 = vmul.f32 %v17549_v0, %v19617_v48  ;;  %v8965_v31 = vadd.f32 %v8964_v63, %v8963_v56  ;;  %v19618_v63 = vld [vmem:[#allocation109_spill] sm:$0xff] }
 0x890   : > { %v8980_v28 = vadd.f32 %v17494_v62, %v8978_v40  ;;  %v8959_v53 = vrot.slane %v8958_v1, 2  ;;  %v9615_v42 = vrot.slane %v17449_v41, %v13936_v39  ;;  %v19622_v40 = vrot.slane %v17336_v30, %v13936_v39 }
 0x891   : > { %v8966_v8 = vsel %vm413_vm0, %v8603_v21, 0.0  ;;  %v9033_v56 = vsel %vm413_vm0, %v8624_v7, 0.0  ;;  %v19624_v41 = vrot.slane %v17367_v4, %v13939_v25 }
 0x892   : > { %v17478_v34 = vpop.permute.xlu0 %8424  ;;  %v8967_v48 = vadd.f32 %v8966_v8, %v8965_v31  ;;  %v9611_v31 = vsel %vm5165_vm1, %v9610_v47, %v9606_v12  ;;  %v9635_v58 = vsel %vm5172_vm2, %v19622_v40, %v9630_v52 }
 0x893   : > { %v8610_v21 = vmul.f32 %v17478_v34, %v19618_v63  ;;  %v9648_v29 = vrot.slane %v17478_v34, %v13939_v25  ;;  %v9616_v12 = vsel %vm5172_vm2, %v9615_v42, %v9611_v31 }
 0x896   : > { %v17509_v36 = vpop.permute.xlu0 %8439 }
 0x897   : > { %v8613_v24 = vmul.f32 %v17509_v36, %v19620_v27  ;;  %v9663_v18 = vrot.slane %v17509_v36, %v19149_v22  ;;  %v19627_v27 = vrot.slane %v17417_v20, %v13936_v39 }
 0x899   : > { %v9002_v63 = vsel %vm413_vm0, %v8613_v24, 0.0 }
 0x89a   : > { %v17542_v2 = vpop.permute.xlu0 %8394 }
 0x89b   : > { %v8604_v13 = vmul.f32 %v17542_v2, %v19615_v61  ;;  %v9578_v61 = vsel %vm5172_vm2, %v9577_v35, %v9573_v55  ;;  %v8946_v35 = vrot.slane %v8945_v26, 2  ;;  %v8990_v55 = vsel %vm413_vm0, %v8610_v21, 0.0 }
 0x89c   : > { %v9583_v3 = vsel %vm5179_vm3, %v9582_v46, %v9578_v61  ;;  %v19621_v61 = vld [vmem:[#allocation170_spill] sm:$0xff]  ;;  %v8991_v62 = vadd.f32 %v8990_v55, %v17491_v57  ;;  %v9668_v21 = vsel %vm5165_vm1, %v19624_v41, %v9663_v18  ;;  %v9620_v57 = vrot.slane %v17542_v2, %v13951_v50 }
 0x89d   : > { %v8968_v37 = vsel %vm413_vm0, %v8604_v13, 0.0  ;;  %v9738_v46 = vsel %vm5770_vm4, %v9602_v15, %v9583_v3  ;;  %v17607_v17 = vadd.f32 %v8946_v35, %v8945_v26  ;;  %v9649_v26 = vsel %vm5165_vm1, %v9648_v29, %v9644_v44 }
 0x89e   : > { %v8460_v11 = vpop.permute.xlu0 %8459  ;;  %v8969_v45 = vadd.f32 %v8968_v37, %v8967_v48  ;;  %v19623_v48 = vld [vmem:[#allocation121_spill] sm:$0xff]  ;;  %v17635_v44 = vadd.f32 %v8959_v53, %v8958_v1  ;;  %v19626_v1 = vld [vmem:[#allocation168_spill] sm:$0xff]  ;;  %v8993_v55 = vadd.f32 %v17512_v14, %v8991_v62  ;;  %v9673_v24 = vsel %vm5172_vm2, %v19627_v27, %v9668_v21 }
 0x89f   : > { %v8617_v34 = vmul.f32 %v8460_v11, %v19621_v61  ;;  %v9682_v23 = vrot.slane %v8460_v11, %v19149_v22  ;;  %v9004_v11 = vadd.f32 %v17501_v43, %v9002_v63  ;;  %v8948_v27 = vrot.slane %v17607_v17, 1 }
 0x8a0   : > { %v8970_v37 = vrot.slane %v8969_v45, 4 }
 0x8a1   : > { %v9015_v30 = vsel %vm413_vm0, %v8617_v34, 0.0  ;;  %v8949_v0 = vadd.f32 %v8948_v27, %v17607_v17 }
 0x8a2   : > { %v17590_v8 = vpop.permute.xlu0 %8414  ;;  %v8971_v52 = vadd.f32 %v8970_v37, %v8969_v45  ;;  %v9621_v45 = vsel %vm5179_vm3, %v9620_v57, %v9616_v12 }
 0x8a3   : > { %v8608_v13 = vmul.f32 %v17590_v8, %v19619_v16  ;;  %v19625_v16 = vrot.slane %v17398_v5, %v13936_v39  ;;  %v19628_v5 = vrot.slane %v17406_v33, %v13939_v25  ;;  %v9639_v53 = vrot.slane %v17590_v8, %v13951_v50  ;;  %v19629_v33 = vld [vmem:[#allocation111_spill] sm:$0xff] }
 0x8a4   : > { %v8972_v61 = vrot.slane %v8971_v52, 2  ;;  %v9739_v42 = vsel %vm5772_vm5, %v9621_v45, %v9738_v46  ;;  %v19630_v46 = vrot.slane %v17430_v59, %v13939_v25 }
 0x8a5   : > { %v8981_v7 = vsel %vm413_vm0, %v8608_v13, 0.0  ;;  %v9654_v2 = vsel %vm5172_vm2, %v19625_v16, %v9649_v26  ;;  %v9687_v18 = vsel %vm5165_vm1, %v19628_v5, %v9682_v23  ;;  %v9640_v26 = vsel %vm5179_vm3, %v9639_v53, %v9635_v58 }
 0x8a6   : > { %v8982_v15 = vadd.f32 %v8981_v7, %v8980_v28  ;;  %v8480_v36 = vpop.permute.xlu0 %8479  ;;  %v9740_v23 = vsel %vm5774_vm6, %v9640_v26, %v9739_v42 }
 0x8a7   : > { %v8621_v47 = vmul.f32 %v8480_v36, %v19623_v48  ;;  %v9701_v14 = vrot.slane %v8480_v36, %v19149_v22  ;;  %v8973_v48 = vadd.f32 %v8972_v61, %v8971_v52 }
 0x8a8   : > { %v8983_v35 = vrot.slane %v8982_v15, 4 }
 0x8a9   : > { %v9028_v3 = vsel %vm413_vm0, %v8621_v47, 0.0  ;;  %v9706_v40 = vsel %vm5165_vm1, %v19630_v46, %v9701_v14 }
 0x8aa   : > { %v9030_v29 = vadd.f32 %v17545_v38, %v9028_v3  ;;  %v8435_v4 = vpop.permute.xlu0 %8434  ;;  %v9017_v38 = vadd.f32 %v17521_v19, %v9015_v30  ;;  %v8984_v43 = vadd.f32 %v8983_v35, %v8982_v15  ;;  %v9711_v25 = vsel %vm5172_vm2, %v9710_v51, %v9706_v40 }
 0x8ab   : > { %v8612_v13 = vmul.f32 %v8435_v4, %v19626_v1  ;;  %v9658_v31 = vrot.slane %v8435_v4, %v13951_v50  ;;  %v8974_v51 = vrot.slane %v8973_v48, 1  ;;  %v9716_v1 = vsel %vm5179_vm3, %v9715_v54, %v9711_v25 }
 0x8ac   : > { %v9032_v28 = vadd.f32 %v9031_v6, %v9030_v29  ;;  %v9006_v6 = vadd.f32 %v17534_v9, %v9004_v11  ;;  %v9019_v22 = vadd.f32 %v17567_v49, %v9017_v38  ;;  %v8985_v36 = vrot.slane %v8984_v43, 2 }
 0x8ad   : > { %v8994_v20 = vsel %vm413_vm0, %v8612_v13, 0.0  ;;  %v9659_v63 = vsel %vm5179_vm3, %v9658_v31, %v9654_v2  ;;  %v8961_v11 = vrot.slane %v17635_v44, 1  ;;  %v8975_v53 = vadd.f32 %v8974_v51, %v8973_v48 }
 0x8ae   : > { %v9034_v34 = vadd.f32 %v9033_v56, %v9032_v28  ;;  %v8995_v7 = vadd.f32 %v8994_v20, %v8993_v55  ;;  %v8455_v19 = vpop.permute.xlu0 %8454  ;;  %v9692_v56 = vsel %vm5172_vm2, %v9691_v60, %v9687_v18  ;;  %v19631_v60 = vld [vmem:[#allocation173_spill] sm:$0xff]  ;;  %v8986_v35 = vadd.f32 %v8985_v36, %v8984_v43 }
 0x8af   : > { %v8616_v37 = vmul.f32 %v8455_v19, %v19629_v33  ;;  %v9677_v15 = vrot.slane %v8455_v19, %v13951_v50  ;;  %v9741_v3 = vsel %vm5776_vm7, %v9659_v63, %v9740_v23  ;;  %v8962_v28 = vadd.f32 %v8961_v11, %v17635_v44 }
 0x8b0   : > { %v9035_v62 = vrot.slane %v9034_v34, 4  ;;  %v8996_v8 = vrot.slane %v8995_v7, 4 }
 0x8b1   : > { %v9007_v9 = vsel %vm413_vm0, %v8616_v37, 0.0  ;;  %v9678_v10 = vsel %vm5179_vm3, %v9677_v15, %v9673_v24  ;;  %v8987_v24 = vrot.slane %v8986_v35, 1 }
 0x8b2   : > { %v8997_v47 = vadd.f32 %v8996_v8, %v8995_v7  ;;  %v9008_v49 = vadd.f32 %v9007_v9, %v9006_v6  ;;  %v8475_v41 = vpop.permute.xlu0 %8474  ;;  %v9036_v21 = vadd.f32 %v9035_v62, %v9034_v34  ;;  %v9742_v16 = vsel %vm5778_vm8, %v9678_v10, %v9741_v3 }
 0x8b3   : > { %v8620_v57 = vmul.f32 %v8475_v41, %v19631_v60  ;;  %v9696_v58 = vrot.slane %v8475_v41, %v13951_v50  ;;  %v8988_v54 = vadd.f32 %v8987_v24, %v8986_v35  ;;  %v9094_v34 = vsel %vm5770_vm4, %v8962_v28, %v8949_v0 }
 0x8b4   : > { %v8998_v59 = vrot.slane %v8997_v47, 2  ;;  %v9009_v30 = vrot.slane %v9008_v49, 4  ;;  %v9037_v39 = vrot.slane %v9036_v21, 2  ;;  %v9095_v19 = vsel %vm5772_vm5, %v8975_v53, %v9094_v34 }
 0x8b5   : > { %v9020_v12 = vsel %vm413_vm0, %v8620_v57, 0.0  ;;  %v9697_v52 = vsel %vm5179_vm3, %v9696_v58, %v9692_v56  ;;  %v9096_v33 = vsel %vm5774_vm6, %v8988_v54, %v9095_v19 }
 0x8b6   : > { %v8999_v29 = vadd.f32 %v8998_v59, %v8997_v47  ;;  %v9010_v4 = vadd.f32 %v9009_v30, %v9008_v49  ;;  %v9021_v2 = vadd.f32 %v9020_v12, %v9019_v22  ;;  %v9743_v32 = vsel %vm5780_vm9, %v9697_v52, %v9742_v16 }
 0x8b7   : > { %v9744_v45 = vsel %vm5782_vm10, %v9716_v1, %v9743_v32  ;;  %v9038_v43 = vadd.f32 %v9037_v39, %v9036_v21 }
 0x8b8   : > { %v9011_v13 = vrot.slane %v9010_v4, 2  ;;  %v9022_v55 = vrot.slane %v9021_v2, 4  ;;  %v9000_v38 = vrot.slane %v8999_v29, 1  ;;  %9752 = vst.msk [vmem:[%s16674_s15 + $0x18] sm:$0xff] %vm413_vm0, %v9744_v45 }
 0x8b9   : > { %v9039_v7 = vrot.slane %v9038_v43, 1 }
 0x8ba   : > { %v9012_v5 = vadd.f32 %v9011_v13, %v9010_v4  ;;  %v9023_v18 = vadd.f32 %v9022_v55, %v9021_v2  ;;  %v9001_v20 = vadd.f32 %v9000_v38, %v8999_v29 }
 0x8bb   : > { %v9040_v6 = vadd.f32 %v9039_v7, %v9038_v43 }
 0x8bc   : > { %v9013_v14 = vrot.slane %v9012_v5, 1  ;;  %v9024_v50 = vrot.slane %v9023_v18, 2  ;;  %v9097_v44 = vsel %vm5776_vm7, %v9001_v20, %v9096_v33 }
 0x8be   : > { %v9025_v61 = vadd.f32 %v9024_v50, %v9023_v18  ;;  %v9014_v31 = vadd.f32 %v9013_v14, %v9012_v5 }
 0x8c0   : > { %v9026_v42 = vrot.slane %v9025_v61, 1  ;;  %v9098_v15 = vsel %vm5778_vm8, %v9014_v31, %v9097_v44 }
 0x8c2   : > { %v9027_v37 = vadd.f32 %v9026_v42, %v9025_v61 }
 0x8c4   : > { %v9099_v17 = vsel %vm5780_vm9, %v9027_v37, %v9098_v15 }
 0x8c5   : > { %v9100_v62 = vsel %vm5782_vm10, %v9040_v6, %v9099_v17 }
 0x8c6   : > { %9108 = vst.msk [vmem:[%s16725_s19 + $0x18] sm:$0xff] %vm413_vm0, %v9100_v62 }
 0x8c7 PF: > { %s20_s30 = sadd.s32 1, %s11098_s30  }
 0x8c8   : > { %p17_p5 = scmp.ge.s32.totalorder %s20_s30, 4  }
 0x8ca   :  { %19 = sbr.rel (!%p17_p5) target bundleno = 1 (0x1), region = 100 }

</bundles_post_ra>
